<compile_context>
chip_gen: v5e
topology: v5e:2x2
jax: 0.10.0
libtpu: 0.0.40
codegen_flags: <defaults>
</compile_context>

<pallas_src>
import functools

import jax
import jax.numpy as jnp
from jax import lax
from jax.experimental import pallas as pl
from jax.experimental.pallas import tpu as pltpu


# ----------------------------------------------------------------------------
# Pallas kernels
# ----------------------------------------------------------------------------
def _conv_matmul_kernel(a_ref, w_ref, bias_ref, o_ref, *, relu):
    """out = act(A @ W + bias).  A: [TM, K] bf16 im2col tile, W: [K, Cout]
    bf16 (BN scale pre-folded, resident across the grid), bias: [1, Cout] f32.
    Single dot per grid step (full-K contraction, no accumulator scratch)."""
    y = jnp.dot(a_ref[...], w_ref[...], preferred_element_type=jnp.float32)
    y = y + bias_ref[...]
    if relu:
        y = jnp.maximum(y, 0.0)
    o_ref[...] = y.astype(o_ref.dtype)


def _conv_matmul_res_kernel(a_ref, w_ref, bias_ref, res_ref, o_ref, *, relu):
    """Same as above plus a residual add before the activation."""
    y = jnp.dot(a_ref[...], w_ref[...], preferred_element_type=jnp.float32)
    y = y + bias_ref[...] + res_ref[...].astype(jnp.float32)
    if relu:
        y = jnp.maximum(y, 0.0)
    o_ref[...] = y.astype(o_ref.dtype)


def _aggregation_kernel(x_ref, o_ref):
    """x: [1, HW, C] (one image per grid step). Per-position L2-normalize over
    C (F.normalize, eps=1e-12), then average over HW. out: [1, 1, C] f32.
    rsqrt -> EUP slot."""
    x = x_ref[...].astype(jnp.float32)
    norm_sq = jnp.sum(x * x, axis=-1, keepdims=True)
    # x / max(||x||, 1e-12) == x * rsqrt(max(||x||^2, 1e-24))
    y = x * lax.rsqrt(jnp.maximum(norm_sq, 1e-24))
    o_ref[...] = jnp.mean(y, axis=1, keepdims=True).astype(o_ref.dtype)


# ----------------------------------------------------------------------------
# Tiling helpers
# ----------------------------------------------------------------------------
def _round_up(x, q):
    return ((x + q - 1) // q) * q


def _choose_tm(m, tm_target=512):
    """M tile: multiple of 16 (bf16 sublane packing), at least two tiles when
    possible so the 'parallel' M axis can shard across v7x's 2 TensorCores."""
    m16 = _round_up(m, 16)
    if m16 < 32:
        return m16, m16
    n_tiles = max(2, -(-m16 // tm_target))
    tm = _round_up(-(-m16 // n_tiles), 16)
    return tm, n_tiles * tm


# ----------------------------------------------------------------------------
# Layer wrappers (plain-JAX glue around the Pallas kernels)
# ----------------------------------------------------------------------------
def conv_bn(x, p, *, kh, kw, stride, padding, relu, residual=None):
    """x: [N, H, W, Cin] NHWC (bf16, Cin possibly zero-padded to 128n).
    p['wm']: [K_pad, Cout_pad] bf16 matmul-ready weights (BN folded),
    p['bias']: [1, Cout_pad] f32.  Returns bf16 NHWC feature map with
    Cout_pad channels (padded channels stay exactly zero)."""
    n, h, w_in, cin = x.shape
    k_pad, cout_pad = p["wm"].shape
    ho = (h + 2 * padding - kh) // stride + 1
    wo = (w_in + 2 * padding - kw) // stride + 1
    m = n * ho * wo
    k = kh * kw * cin
    assert k_pad == _round_up(k, 128), (k, k_pad)

    # im2col (1x1 convs need only a strided spatial subsample, no expansion).
    # TODO(synk): move this tap expansion into the Pallas kernel to avoid the
    #             ~9x HBM read amplification + extra im2col buffer round trip.
    if kh == 1 and kw == 1 and padding == 0:
        a = x[:, ::stride, ::stride, :].reshape(m, k)
    else:
        xp = jnp.pad(x, ((0, 0), (padding, padding), (padding, padding), (0, 0)))
        patches = [xp[:, ih:ih + ho * stride:stride,
                      iw:iw + wo * stride:stride, :]
                   for ih in range(kh) for iw in range(kw)]
        a = jnp.concatenate(patches, axis=-1).reshape(m, k)
    a = a.astype(jnp.bfloat16)

    tm, m_pad = _choose_tm(m)
    if m_pad != m or k_pad != k:
        a = jnp.pad(a, ((0, m_pad - m), (0, k_pad - k)))

    grid = (m_pad // tm,)

    in_specs = [
        pl.BlockSpec((tm, k_pad), lambda i: (i, 0)),       # A tile
        pl.BlockSpec((k_pad, cout_pad), lambda i: (0, 0)),  # W (resident)
        pl.BlockSpec((1, cout_pad), lambda i: (0, 0)),      # bias (resident)
    ]
    args = [a, p["wm"], p["bias"]]
    has_res = residual is not None
    if has_res:
        res = residual.reshape(m, cout_pad).astype(jnp.bfloat16)
        if m_pad != m:
            res = jnp.pad(res, ((0, m_pad - m), (0, 0)))
        in_specs.append(pl.BlockSpec((tm, cout_pad), lambda i: (i, 0)))
        args.append(res)
        kernel = functools.partial(_conv_matmul_res_kernel, relu=relu)
    else:
        kernel = functools.partial(_conv_matmul_kernel, relu=relu)

    # VMEM budget: double-buffered A / residual / output, single resident W+bias.
    vmem_need = (2 * tm * k_pad * 2 + k_pad * cout_pad * 2
                 + 2 * tm * cout_pad * 2
                 + (2 * tm * cout_pad * 2 if has_res else 0)
                 + cout_pad * 4)
    # Cap well below v7x's 64 MiB physical VMEM to leave compiler headroom.
    vmem_limit = int(min(48 << 20, max(32 << 20, 2 * vmem_need)))

    bytes_accessed = (m_pad * k_pad * 2 + k_pad * cout_pad * 2 + cout_pad * 4
                      + m_pad * cout_pad * 2 * (2 if has_res else 1))

    out = pl.pallas_call(
        kernel,
        out_shape=jax.ShapeDtypeStruct((m_pad, cout_pad), jnp.bfloat16),
        grid_spec=pltpu.PrefetchScalarGridSpec(
            num_scalar_prefetch=0,
            grid=grid,
            in_specs=in_specs,
            out_specs=pl.BlockSpec((tm, cout_pad), lambda i: (i, 0))),
        compiler_params=pltpu.CompilerParams(
            dimension_semantics=("parallel",),
            vmem_limit_bytes=vmem_limit),
        cost_estimate=pl.CostEstimate(
            flops=2 * m_pad * k_pad * cout_pad,
            transcendentals=0,
            bytes_accessed=bytes_accessed),
    )(*args)

    # Padded tail rows carry bias/ReLU garbage -> slice them off here.
    return out[:m].reshape(n, ho, wo, cout_pad)


def maxpool_3x3_s2(x):
    """PyTorch MaxPool2d(kernel_size=3, stride=2, padding=1), NHWC input.
    Pairwise-max tap tree in plain JAX (no 9x window materialization);
    memory-bound, XLA fuses the taps into one pass.  Padded (zero) channels
    remain zero: max(0, -inf-padding) == 0."""
    n, h, w, c = x.shape
    xp = jnp.pad(x, ((0, 0), (1, 1), (1, 1), (0, 0)),
                 constant_values=-jnp.inf)
    ho = (h + 2 - 3) // 2 + 1
    wo = (w + 2 - 3) // 2 + 1
    out = None
    for ih in range(3):
        for iw in range(3):
            win = xp[:, ih:ih + ho * 2:2, iw:iw + wo * 2:2, :]
            out = win if out is None else jnp.maximum(out, win)
    return out


def basic_block(x, p, *, stride):
    """ResNet BasicBlock: conv3x3-bn-relu, conv3x3-bn, (+downsampled identity), relu."""
    identity = x
    out = conv_bn(x, p["conv1"], kh=3, kw=3, stride=stride, padding=1, relu=True)
    if "down" in p:
        identity = conv_bn(x, p["down"], kh=1, kw=1, stride=stride, padding=0,
                           relu=False)
    out = conv_bn(out, p["conv2"], kh=3, kw=3, stride=1, padding=1, relu=True,
                  residual=identity)
    return out


def aggregation(x):
    """L2Norm(dim=channel) -> AdaptiveAvgPool2d(1) -> Flatten. x: NHWC bf16.
    Gridded over the batch so only one image's feature map sits in VMEM."""
    n, h, w, c = x.shape
    hw = h * w
    out = pl.pallas_call(
        _aggregation_kernel,
        out_shape=jax.ShapeDtypeStruct((n, 1, c), jnp.float32),
        grid_spec=pltpu.PrefetchScalarGridSpec(
            num_scalar_prefetch=0,
            grid=(n,),
            in_specs=[pl.BlockSpec((1, hw, c), lambda i: (i, 0, 0))],
            out_specs=pl.BlockSpec((1, 1, c), lambda i: (i, 0, 0))),
        compiler_params=pltpu.CompilerParams(
            dimension_semantics=("parallel",)),
    )(x.reshape(n, hw, c))
    return out.reshape(n, c)


# ----------------------------------------------------------------------------
# Parameter init (deterministic, synthetic — mirrors ResNet-18 layer shapes)
# and one-time matmul-ready preprocessing (hoisted out of the forward pass).
# ----------------------------------------------------------------------------
def _init_conv_bn_raw(key, cin, cout, k):
    k1, k2, k3, k4, k5 = jax.random.split(key, 5)
    fan_in = cin * k * k
    w = jax.random.normal(k1, (cout, cin, k, k), jnp.float32) / jnp.sqrt(fan_in)
    gamma = 1.0 + 0.1 * jax.random.normal(k2, (cout,), jnp.float32)
    beta = 0.1 * jax.random.normal(k3, (cout,), jnp.float32)
    mean = 0.1 * jax.random.normal(k4, (cout,), jnp.float32)
    var = jnp.abs(jax.random.normal(k5, (cout,), jnp.float32)) + 0.5
    return {"w": w, "gamma": gamma, "beta": beta, "mean": mean, "var": var}


def _init_block_raw(key, cin, cout, downsample):
    keys = jax.random.split(key, 3)
    p = {
        "conv1": _init_conv_bn_raw(keys[0], cin, cout, 3),
        "conv2": _init_conv_bn_raw(keys[1], cout, cout, 3),
    }
    if downsample:
        p["down"] = _init_conv_bn_raw(keys[2], cin, cout, 1)
    return p


def init_raw_params(key):
    ks = jax.random.split(key, 7)
    return {
        "conv1": _init_conv_bn_raw(ks[0], 3, 64, 7),
        "layer1": [_init_block_raw(ks[1], 64, 64, False),
                   _init_block_raw(ks[2], 64, 64, False)],
        "layer2": [_init_block_raw(ks[3], 64, 128, True),
                   _init_block_raw(ks[4], 128, 128, False)],
        "layer3": [_init_block_raw(ks[5], 128, 256, True),
                   _init_block_raw(ks[6], 256, 256, False)],
    }


def _prep_conv_bn(raw, cin_in):
    """Fold eval-mode BatchNorm into the conv and emit matmul-ready weights:
    Cin zero-padded to the feature-map channel count `cin_in`, K padded to a
    multiple of 128, Cout padded to a multiple of 128 (lane-dense stores).
    Padded columns have zero weight & bias so padded channels stay zero."""
    w = raw["w"]                                        # [cout, cin, kh, kw]
    cout, cin, kh, kw = w.shape
    scale = raw["gamma"] / jnp.sqrt(raw["var"] + 1e-5)
    bias = raw["beta"] - raw["mean"] * scale
    if cin_in > cin:
        w = jnp.pad(w, ((0, 0), (0, cin_in - cin), (0, 0), (0, 0)))
    k = kh * kw * cin_in
    wm = jnp.transpose(w, (2, 3, 1, 0)).reshape(k, cout) * scale[None, :]
    k_pad = _round_up(k, 128)
    cout_pad = _round_up(cout, 128)
    wm = jnp.pad(wm, ((0, k_pad - k), (0, cout_pad - cout)))
    bias = jnp.pad(bias, (0, cout_pad - cout)).reshape(1, cout_pad)
    return {"wm": wm.astype(jnp.bfloat16), "bias": bias.astype(jnp.float32)}


def prepare_params(raw):
    """One-time preprocessing: done once outside jit so the per-forward weight
    transforms (transpose / fold / pad / cast) never re-run."""
    def prep_block(blk, cin_in):
        cout = blk["conv1"]["w"].shape[0]
        p = {"conv1": _prep_conv_bn(blk["conv1"], cin_in),
             "conv2": _prep_conv_bn(blk["conv2"], _round_up(cout, 128))}
        if "down" in blk:
            p["down"] = _prep_conv_bn(blk["down"], cin_in)
        return p

    params = {"conv1": _prep_conv_bn(raw["conv1"], 3)}
    cin = 128                       # conv1 output is channel-padded 64 -> 128
    for name in ("layer1", "layer2", "layer3"):
        blocks = []
        for blk in raw[name]:
            blocks.append(prep_block(blk, cin))
            cin = _round_up(blk["conv1"]["w"].shape[0], 128)
        params[name] = blocks
    return params


# ----------------------------------------------------------------------------
# Full forward pass (GeoLocalizationNet, default args: resnet18 backbone,
# no attention, no GeM, no NetVLAD)
# ----------------------------------------------------------------------------
def geolocalization_forward(params, x_nchw):
    # NCHW -> NHWC; bf16 intermediates (matmuls accumulate in f32).
    x = jnp.transpose(x_nchw, (0, 2, 3, 1)).astype(jnp.bfloat16)
    # --- backbone: cropped ResNet-18 (conv1..layer3) ---
    x = conv_bn(x, params["conv1"], kh=7, kw=7, stride=2, padding=3, relu=True)
    x = maxpool_3x3_s2(x)
    for blk in params["layer1"]:
        x = basic_block(x, blk, stride=1)
    x = basic_block(x, params["layer2"][0], stride=2)
    x = basic_block(x, params["layer2"][1], stride=1)
    x = basic_block(x, params["layer3"][0], stride=2)
    x = basic_block(x, params["layer3"][1], stride=1)
    # layer3 has 256 channels (already a 128 multiple -> no padded channels).
    # --- aggregation: L2Norm -> AdaptiveAvgPool2d(1) -> Flatten ---
    return aggregation(x)                                        # [N, 256]


if __name__ == "__main__":
    key = jax.random.PRNGKey(0)
    k_params, k_x = jax.random.split(key)
    params = prepare_params(init_raw_params(k_params))   # one-time weight prep
    params = jax.tree_util.tree_map(jnp.asarray, params)
    # Small input consistent with the module: NCHW image batch.
    x = jax.random.normal(k_x, (2, 3, 32, 32), jnp.float32)

    fwd = jax.jit(geolocalization_forward)
    out = fwd(params, x)
    jax.block_until_ready(out)

    assert out.shape == (2, 256), out.shape
    # Sanity: descriptors are finite (bf16 pipeline -> loose tolerance only).
    assert bool(jnp.all(jnp.isfinite(out)))
    print("KERNEL_OK")
</pallas_src>

<mosaic_0001>
module attributes {stable_mosaic.version = 11 : i64} {
  func.func @_conv_matmul_kernel(%arg0: i32, %arg1: memref<256x256xbf16, #tpu.memory_space<vmem>>, %arg2: memref<256x128xbf16, #tpu.memory_space<vmem>>, %arg3: memref<1x128xf32, #tpu.memory_space<vmem>>, %arg4: memref<256x128xbf16, #tpu.memory_space<vmem>>) attributes {dimension_semantics = [#tpu.dimension_semantics<parallel>], iteration_bounds = array<i64: 2>, scalar_prefetch = 0 : i64, scratch_operands = 0 : i64, tpu.core_type = #tpu.core_type<tc>, window_params = [{transform_indices = @transform_0, window_bounds = array<i64: 256, 256>}, {pipeline_mode = #tpu.pipeline_mode<synchronous>, transform_indices = @transform_1, window_bounds = array<i64: 256, 128>}, {pipeline_mode = #tpu.pipeline_mode<synchronous>, transform_indices = @transform_2, window_bounds = array<i64: 1, 128>}, {transform_indices = @transform_3, window_bounds = array<i64: 256, 128>}]} {
    %c0 = arith.constant 0 : index
    %c0_0 = arith.constant 0 : index
    %0 = vector.load %arg1[%c0, %c0_0] : memref<256x256xbf16, #tpu.memory_space<vmem>>, vector<256x256xbf16>
    %c0_1 = arith.constant 0 : index
    %c0_2 = arith.constant 0 : index
    %1 = vector.load %arg2[%c0_1, %c0_2] : memref<256x128xbf16, #tpu.memory_space<vmem>>, vector<256x128xbf16>
    %cst = arith.constant dense<0.000000e+00> : vector<256x128xf32>
    %2 = tpu.matmul %0, %1, %cst {dimension_numbers = #tpu.dot_dimension_numbers<[1], [0], [0], [1], [0, 0, 1, 1], [], []>} : vector<256x256xbf16>, vector<256x128xbf16>, vector<256x128xf32> -> vector<256x128xf32>
    %c0_3 = arith.constant 0 : index
    %c0_4 = arith.constant 0 : index
    %3 = vector.load %arg3[%c0_3, %c0_4] : memref<1x128xf32, #tpu.memory_space<vmem>>, vector<1x128xf32>
    %4 = vector.broadcast %3 : vector<1x128xf32> to vector<256x128xf32>
    %5 = arith.addf %2, %4 : vector<256x128xf32>
    %cst_5 = arith.constant 0.000000e+00 : f32
    %6 = vector.broadcast %cst_5 : f32 to vector<256x128xf32>
    %7 = arith.maximumf %5, %6 : vector<256x128xf32>
    %8 = arith.truncf %7 : vector<256x128xf32> to vector<256x128xbf16>
    %c0_6 = arith.constant 0 : index
    %c0_7 = arith.constant 0 : index
    %9 = vector.load %arg4[%c0_6, %c0_7] : memref<256x128xbf16, #tpu.memory_space<vmem>>, vector<256x128xbf16>
    tpu.vector_store %arg4[%c0_6, %c0_7], %8 {strides = array<i32>} : memref<256x128xbf16, #tpu.memory_space<vmem>>, vector<256x128xbf16>,
    return
  }
  func.func @transform_0(%arg0: i32) -> (i32, i32) {
    %c0_i32 = arith.constant 0 : i32
    %c0_i32_0 = arith.constant 0 : i32
    return %arg0, %c0_i32 : i32, i32
  }
  func.func @transform_1(%arg0: i32) -> (i32, i32) {
    %c0_i32 = arith.constant 0 : i32
    %c0_i32_0 = arith.constant 0 : i32
    %c0_i32_1 = arith.constant 0 : i32
    return %c0_i32, %c0_i32_0 : i32, i32
  }
  func.func @transform_2(%arg0: i32) -> (i32, i32) {
    %c0_i32 = arith.constant 0 : i32
    %c0_i32_0 = arith.constant 0 : i32
    %c0_i32_1 = arith.constant 0 : i32
    return %c0_i32, %c0_i32_0 : i32, i32
  }
  func.func @transform_3(%arg0: i32) -> (i32, i32) {
    %c0_i32 = arith.constant 0 : i32
    %c0_i32_0 = arith.constant 0 : i32
    return %arg0, %c0_i32 : i32, i32
  }
}

module attributes {stable_mosaic.version = 11 : i64} {
  func.func @_conv_matmul_kernel(%arg0: i32, %arg1: memref<64x1152xbf16, #tpu.memory_space<vmem>>, %arg2: memref<1152x128xbf16, #tpu.memory_space<vmem>>, %arg3: memref<1x128xf32, #tpu.memory_space<vmem>>, %arg4: memref<64x128xbf16, #tpu.memory_space<vmem>>) attributes {dimension_semantics = [#tpu.dimension_semantics<parallel>], iteration_bounds = array<i64: 2>, scalar_prefetch = 0 : i64, scratch_operands = 0 : i64, tpu.core_type = #tpu.core_type<tc>, window_params = [{transform_indices = @transform_0, window_bounds = array<i64: 64, 1152>}, {pipeline_mode = #tpu.pipeline_mode<synchronous>, transform_indices = @transform_1, window_bounds = array<i64: 1152, 128>}, {pipeline_mode = #tpu.pipeline_mode<synchronous>, transform_indices = @transform_2, window_bounds = array<i64: 1, 128>}, {transform_indices = @transform_3, window_bounds = array<i64: 64, 128>}]} {
    %c0 = arith.constant 0 : index
    %c0_0 = arith.constant 0 : index
    %0 = vector.load %arg1[%c0, %c0_0] : memref<64x1152xbf16, #tpu.memory_space<vmem>>, vector<64x1152xbf16>
    %c0_1 = arith.constant 0 : index
    %c0_2 = arith.constant 0 : index
    %1 = vector.load %arg2[%c0_1, %c0_2] : memref<1152x128xbf16, #tpu.memory_space<vmem>>, vector<1152x128xbf16>
    %cst = arith.constant dense<0.000000e+00> : vector<64x128xf32>
    %2 = tpu.matmul %0, %1, %cst {dimension_numbers = #tpu.dot_dimension_numbers<[1], [0], [0], [1], [0, 0, 1, 1], [], []>} : vector<64x1152xbf16>, vector<1152x128xbf16>, vector<64x128xf32> -> vector<64x128xf32>
    %c0_3 = arith.constant 0 : index
    %c0_4 = arith.constant 0 : index
    %3 = vector.load %arg3[%c0_3, %c0_4] : memref<1x128xf32, #tpu.memory_space<vmem>>, vector<1x128xf32>
    %4 = vector.broadcast %3 : vector<1x128xf32> to vector<64x128xf32>
    %5 = arith.addf %2, %4 : vector<64x128xf32>
    %cst_5 = arith.constant 0.000000e+00 : f32
    %6 = vector.broadcast %cst_5 : f32 to vector<64x128xf32>
    %7 = arith.maximumf %5, %6 : vector<64x128xf32>
    %8 = arith.truncf %7 : vector<64x128xf32> to vector<64x128xbf16>
    %c0_6 = arith.constant 0 : index
    %c0_7 = arith.constant 0 : index
    %9 = vector.load %arg4[%c0_6, %c0_7] : memref<64x128xbf16, #tpu.memory_space<vmem>>, vector<64x128xbf16>
    tpu.vector_store %arg4[%c0_6, %c0_7], %8 {strides = array<i32>} : memref<64x128xbf16, #tpu.memory_space<vmem>>, vector<64x128xbf16>,
    return
  }
  func.func @transform_0(%arg0: i32) -> (i32, i32) {
    %c0_i32 = arith.constant 0 : i32
    %c0_i32_0 = arith.constant 0 : i32
    return %arg0, %c0_i32 : i32, i32
  }
  func.func @transform_1(%arg0: i32) -> (i32, i32) {
    %c0_i32 = arith.constant 0 : i32
    %c0_i32_0 = arith.constant 0 : i32
    %c0_i32_1 = arith.constant 0 : i32
    return %c0_i32, %c0_i32_0 : i32, i32
  }
  func.func @transform_2(%arg0: i32) -> (i32, i32) {
    %c0_i32 = arith.constant 0 : i32
    %c0_i32_0 = arith.constant 0 : i32
    %c0_i32_1 = arith.constant 0 : i32
    return %c0_i32, %c0_i32_0 : i32, i32
  }
  func.func @transform_3(%arg0: i32) -> (i32, i32) {
    %c0_i32 = arith.constant 0 : i32
    %c0_i32_0 = arith.constant 0 : i32
    return %arg0, %c0_i32 : i32, i32
  }
}

module attributes {stable_mosaic.version = 11 : i64} {
  func.func @_conv_matmul_res_kernel(%arg0: i32, %arg1: memref<64x1152xbf16, #tpu.memory_space<vmem>>, %arg2: memref<1152x128xbf16, #tpu.memory_space<vmem>>, %arg3: memref<1x128xf32, #tpu.memory_space<vmem>>, %arg4: memref<64x128xbf16, #tpu.memory_space<vmem>>, %arg5: memref<64x128xbf16, #tpu.memory_space<vmem>>) attributes {dimension_semantics = [#tpu.dimension_semantics<parallel>], iteration_bounds = array<i64: 2>, scalar_prefetch = 0 : i64, scratch_operands = 0 : i64, tpu.core_type = #tpu.core_type<tc>, window_params = [{transform_indices = @transform_0, window_bounds = array<i64: 64, 1152>}, {pipeline_mode = #tpu.pipeline_mode<synchronous>, transform_indices = @transform_1, window_bounds = array<i64: 1152, 128>}, {pipeline_mode = #tpu.pipeline_mode<synchronous>, transform_indices = @transform_2, window_bounds = array<i64: 1, 128>}, {transform_indices = @transform_3, window_bounds = array<i64: 64, 128>}, {transform_indices = @transform_4, window_bounds = array<i64: 64, 128>}]} {
    %c0 = arith.constant 0 : index
    %c0_0 = arith.constant 0 : index
    %0 = vector.load %arg1[%c0, %c0_0] : memref<64x1152xbf16, #tpu.memory_space<vmem>>, vector<64x1152xbf16>
    %c0_1 = arith.constant 0 : index
    %c0_2 = arith.constant 0 : index
    %1 = vector.load %arg2[%c0_1, %c0_2] : memref<1152x128xbf16, #tpu.memory_space<vmem>>, vector<1152x128xbf16>
    %cst = arith.constant dense<0.000000e+00> : vector<64x128xf32>
    %2 = tpu.matmul %0, %1, %cst {dimension_numbers = #tpu.dot_dimension_numbers<[1], [0], [0], [1], [0, 0, 1, 1], [], []>} : vector<64x1152xbf16>, vector<1152x128xbf16>, vector<64x128xf32> -> vector<64x128xf32>
    %c0_3 = arith.constant 0 : index
    %c0_4 = arith.constant 0 : index
    %3 = vector.load %arg3[%c0_3, %c0_4] : memref<1x128xf32, #tpu.memory_space<vmem>>, vector<1x128xf32>
    %4 = vector.broadcast %3 : vector<1x128xf32> to vector<64x128xf32>
    %5 = arith.addf %2, %4 : vector<64x128xf32>
    %c0_5 = arith.constant 0 : index
    %c0_6 = arith.constant 0 : index
    %6 = vector.load %arg4[%c0_5, %c0_6] : memref<64x128xbf16, #tpu.memory_space<vmem>>, vector<64x128xbf16>
    %7 = arith.extf %6 : vector<64x128xbf16> to vector<64x128xf32>
    %8 = arith.addf %5, %7 : vector<64x128xf32>
    %cst_7 = arith.constant 0.000000e+00 : f32
    %9 = vector.broadcast %cst_7 : f32 to vector<64x128xf32>
    %10 = arith.maximumf %8, %9 : vector<64x128xf32>
    %11 = arith.truncf %10 : vector<64x128xf32> to vector<64x128xbf16>
    %c0_8 = arith.constant 0 : index
    %c0_9 = arith.constant 0 : index
    %12 = vector.load %arg5[%c0_8, %c0_9] : memref<64x128xbf16, #tpu.memory_space<vmem>>, vector<64x128xbf16>
    tpu.vector_store %arg5[%c0_8, %c0_9], %11 {strides = array<i32>} : memref<64x128xbf16, #tpu.memory_space<vmem>>, vector<64x128xbf16>,
    return
  }
  func.func @transform_0(%arg0: i32) -> (i32, i32) {
    %c0_i32 = arith.constant 0 : i32
    %c0_i32_0 = arith.constant 0 : i32
    return %arg0, %c0_i32 : i32, i32
  }
  func.func @transform_1(%arg0: i32) -> (i32, i32) {
    %c0_i32 = arith.constant 0 : i32
    %c0_i32_0 = arith.constant 0 : i32
    %c0_i32_1 = arith.constant 0 : i32
    return %c0_i32, %c0_i32_0 : i32, i32
  }
  func.func @transform_2(%arg0: i32) -> (i32, i32) {
    %c0_i32 = arith.constant 0 : i32
    %c0_i32_0 = arith.constant 0 : i32
    %c0_i32_1 = arith.constant 0 : i32
    return %c0_i32, %c0_i32_0 : i32, i32
  }
  func.func @transform_3(%arg0: i32) -> (i32, i32) {
    %c0_i32 = arith.constant 0 : i32
    %c0_i32_0 = arith.constant 0 : i32
    return %arg0, %c0_i32 : i32, i32
  }
  func.func @transform_4(%arg0: i32) -> (i32, i32) {
    %c0_i32 = arith.constant 0 : i32
    %c0_i32_0 = arith.constant 0 : i32
    return %arg0, %c0_i32 : i32, i32
  }
}

module attributes {stable_mosaic.version = 11 : i64} {
  func.func @_conv_matmul_kernel(%arg0: i32, %arg1: memref<16x128xbf16, #tpu.memory_space<vmem>>, %arg2: memref<128x128xbf16, #tpu.memory_space<vmem>>, %arg3: memref<1x128xf32, #tpu.memory_space<vmem>>, %arg4: memref<16x128xbf16, #tpu.memory_space<vmem>>) attributes {dimension_semantics = [#tpu.dimension_semantics<parallel>], iteration_bounds = array<i64: 2>, scalar_prefetch = 0 : i64, scratch_operands = 0 : i64, tpu.core_type = #tpu.core_type<tc>, window_params = [{transform_indices = @transform_0, window_bounds = array<i64: 16, 128>}, {pipeline_mode = #tpu.pipeline_mode<synchronous>, transform_indices = @transform_1, window_bounds = array<i64: 128, 128>}, {pipeline_mode = #tpu.pipeline_mode<synchronous>, transform_indices = @transform_2, window_bounds = array<i64: 1, 128>}, {transform_indices = @transform_3, window_bounds = array<i64: 16, 128>}]} {
    %c0 = arith.constant 0 : index
    %c0_0 = arith.constant 0 : index
    %0 = vector.load %arg1[%c0, %c0_0] : memref<16x128xbf16, #tpu.memory_space<vmem>>, vector<16x128xbf16>
    %c0_1 = arith.constant 0 : index
    %c0_2 = arith.constant 0 : index
    %1 = vector.load %arg2[%c0_1, %c0_2] : memref<128x128xbf16, #tpu.memory_space<vmem>>, vector<128x128xbf16>
    %cst = arith.constant dense<0.000000e+00> : vector<16x128xf32>
    %2 = tpu.matmul %0, %1, %cst {dimension_numbers = #tpu.dot_dimension_numbers<[1], [0], [0], [1], [0, 0, 1, 1], [], []>} : vector<16x128xbf16>, vector<128x128xbf16>, vector<16x128xf32> -> vector<16x128xf32>
    %c0_3 = arith.constant 0 : index
    %c0_4 = arith.constant 0 : index
    %3 = vector.load %arg3[%c0_3, %c0_4] : memref<1x128xf32, #tpu.memory_space<vmem>>, vector<1x128xf32>
    %4 = vector.broadcast %3 : vector<1x128xf32> to vector<16x128xf32>
    %5 = arith.addf %2, %4 : vector<16x128xf32>
    %6 = arith.truncf %5 : vector<16x128xf32> to vector<16x128xbf16>
    %c0_5 = arith.constant 0 : index
    %c0_6 = arith.constant 0 : index
    %7 = vector.load %arg4[%c0_5, %c0_6] : memref<16x128xbf16, #tpu.memory_space<vmem>>, vector<16x128xbf16>
    tpu.vector_store %arg4[%c0_5, %c0_6], %6 {strides = array<i32>} : memref<16x128xbf16, #tpu.memory_space<vmem>>, vector<16x128xbf16>,
    return
  }
  func.func @transform_0(%arg0: i32) -> (i32, i32) {
    %c0_i32 = arith.constant 0 : i32
    %c0_i32_0 = arith.constant 0 : i32
    return %arg0, %c0_i32 : i32, i32
  }
  func.func @transform_1(%arg0: i32) -> (i32, i32) {
    %c0_i32 = arith.constant 0 : i32
    %c0_i32_0 = arith.constant 0 : i32
    %c0_i32_1 = arith.constant 0 : i32
    return %c0_i32, %c0_i32_0 : i32, i32
  }
  func.func @transform_2(%arg0: i32) -> (i32, i32) {
    %c0_i32 = arith.constant 0 : i32
    %c0_i32_0 = arith.constant 0 : i32
    %c0_i32_1 = arith.constant 0 : i32
    return %c0_i32, %c0_i32_0 : i32, i32
  }
  func.func @transform_3(%arg0: i32) -> (i32, i32) {
    %c0_i32 = arith.constant 0 : i32
    %c0_i32_0 = arith.constant 0 : i32
    return %arg0, %c0_i32 : i32, i32
  }
}

module attributes {stable_mosaic.version = 11 : i64} {
  func.func @_conv_matmul_res_kernel(%arg0: i32, %arg1: memref<16x1152xbf16, #tpu.memory_space<vmem>>, %arg2: memref<1152x128xbf16, #tpu.memory_space<vmem>>, %arg3: memref<1x128xf32, #tpu.memory_space<vmem>>, %arg4: memref<16x128xbf16, #tpu.memory_space<vmem>>, %arg5: memref<16x128xbf16, #tpu.memory_space<vmem>>) attributes {dimension_semantics = [#tpu.dimension_semantics<parallel>], iteration_bounds = array<i64: 2>, scalar_prefetch = 0 : i64, scratch_operands = 0 : i64, tpu.core_type = #tpu.core_type<tc>, window_params = [{transform_indices = @transform_0, window_bounds = array<i64: 16, 1152>}, {pipeline_mode = #tpu.pipeline_mode<synchronous>, transform_indices = @transform_1, window_bounds = array<i64: 1152, 128>}, {pipeline_mode = #tpu.pipeline_mode<synchronous>, transform_indices = @transform_2, window_bounds = array<i64: 1, 128>}, {transform_indices = @transform_3, window_bounds = array<i64: 16, 128>}, {transform_indices = @transform_4, window_bounds = array<i64: 16, 128>}]} {
    %c0 = arith.constant 0 : index
    %c0_0 = arith.constant 0 : index
    %0 = vector.load %arg1[%c0, %c0_0] : memref<16x1152xbf16, #tpu.memory_space<vmem>>, vector<16x1152xbf16>
    %c0_1 = arith.constant 0 : index
    %c0_2 = arith.constant 0 : index
    %1 = vector.load %arg2[%c0_1, %c0_2] : memref<1152x128xbf16, #tpu.memory_space<vmem>>, vector<1152x128xbf16>
    %cst = arith.constant dense<0.000000e+00> : vector<16x128xf32>
    %2 = tpu.matmul %0, %1, %cst {dimension_numbers = #tpu.dot_dimension_numbers<[1], [0], [0], [1], [0, 0, 1, 1], [], []>} : vector<16x1152xbf16>, vector<1152x128xbf16>, vector<16x128xf32> -> vector<16x128xf32>
    %c0_3 = arith.constant 0 : index
    %c0_4 = arith.constant 0 : index
    %3 = vector.load %arg3[%c0_3, %c0_4] : memref<1x128xf32, #tpu.memory_space<vmem>>, vector<1x128xf32>
    %4 = vector.broadcast %3 : vector<1x128xf32> to vector<16x128xf32>
    %5 = arith.addf %2, %4 : vector<16x128xf32>
    %c0_5 = arith.constant 0 : index
    %c0_6 = arith.constant 0 : index
    %6 = vector.load %arg4[%c0_5, %c0_6] : memref<16x128xbf16, #tpu.memory_space<vmem>>, vector<16x128xbf16>
    %7 = arith.extf %6 : vector<16x128xbf16> to vector<16x128xf32>
    %8 = arith.addf %5, %7 : vector<16x128xf32>
    %cst_7 = arith.constant 0.000000e+00 : f32
    %9 = vector.broadcast %cst_7 : f32 to vector<16x128xf32>
    %10 = arith.maximumf %8, %9 : vector<16x128xf32>
    %11 = arith.truncf %10 : vector<16x128xf32> to vector<16x128xbf16>
    %c0_8 = arith.constant 0 : index
    %c0_9 = arith.constant 0 : index
    %12 = vector.load %arg5[%c0_8, %c0_9] : memref<16x128xbf16, #tpu.memory_space<vmem>>, vector<16x128xbf16>
    tpu.vector_store %arg5[%c0_8, %c0_9], %11 {strides = array<i32>} : memref<16x128xbf16, #tpu.memory_space<vmem>>, vector<16x128xbf16>,
    return
  }
  func.func @transform_0(%arg0: i32) -> (i32, i32) {
    %c0_i32 = arith.constant 0 : i32
    %c0_i32_0 = arith.constant 0 : i32
    return %arg0, %c0_i32 : i32, i32
  }
  func.func @transform_1(%arg0: i32) -> (i32, i32) {
    %c0_i32 = arith.constant 0 : i32
    %c0_i32_0 = arith.constant 0 : i32
    %c0_i32_1 = arith.constant 0 : i32
    return %c0_i32, %c0_i32_0 : i32, i32
  }
  func.func @transform_2(%arg0: i32) -> (i32, i32) {
    %c0_i32 = arith.constant 0 : i32
    %c0_i32_0 = arith.constant 0 : i32
    %c0_i32_1 = arith.constant 0 : i32
    return %c0_i32, %c0_i32_0 : i32, i32
  }
  func.func @transform_3(%arg0: i32) -> (i32, i32) {
    %c0_i32 = arith.constant 0 : i32
    %c0_i32_0 = arith.constant 0 : i32
    return %arg0, %c0_i32 : i32, i32
  }
  func.func @transform_4(%arg0: i32) -> (i32, i32) {
    %c0_i32 = arith.constant 0 : i32
    %c0_i32_0 = arith.constant 0 : i32
    return %arg0, %c0_i32 : i32, i32
  }
}

module attributes {stable_mosaic.version = 11 : i64} {
  func.func @_conv_matmul_kernel(%arg0: i32, %arg1: memref<16x1152xbf16, #tpu.memory_space<vmem>>, %arg2: memref<1152x128xbf16, #tpu.memory_space<vmem>>, %arg3: memref<1x128xf32, #tpu.memory_space<vmem>>, %arg4: memref<16x128xbf16, #tpu.memory_space<vmem>>) attributes {dimension_semantics = [#tpu.dimension_semantics<parallel>], iteration_bounds = array<i64: 2>, scalar_prefetch = 0 : i64, scratch_operands = 0 : i64, tpu.core_type = #tpu.core_type<tc>, window_params = [{transform_indices = @transform_0, window_bounds = array<i64: 16, 1152>}, {pipeline_mode = #tpu.pipeline_mode<synchronous>, transform_indices = @transform_1, window_bounds = array<i64: 1152, 128>}, {pipeline_mode = #tpu.pipeline_mode<synchronous>, transform_indices = @transform_2, window_bounds = array<i64: 1, 128>}, {transform_indices = @transform_3, window_bounds = array<i64: 16, 128>}]} {
    %c0 = arith.constant 0 : index
    %c0_0 = arith.constant 0 : index
    %0 = vector.load %arg1[%c0, %c0_0] : memref<16x1152xbf16, #tpu.memory_space<vmem>>, vector<16x1152xbf16>
    %c0_1 = arith.constant 0 : index
    %c0_2 = arith.constant 0 : index
    %1 = vector.load %arg2[%c0_1, %c0_2] : memref<1152x128xbf16, #tpu.memory_space<vmem>>, vector<1152x128xbf16>
    %cst = arith.constant dense<0.000000e+00> : vector<16x128xf32>
    %2 = tpu.matmul %0, %1, %cst {dimension_numbers = #tpu.dot_dimension_numbers<[1], [0], [0], [1], [0, 0, 1, 1], [], []>} : vector<16x1152xbf16>, vector<1152x128xbf16>, vector<16x128xf32> -> vector<16x128xf32>
    %c0_3 = arith.constant 0 : index
    %c0_4 = arith.constant 0 : index
    %3 = vector.load %arg3[%c0_3, %c0_4] : memref<1x128xf32, #tpu.memory_space<vmem>>, vector<1x128xf32>
    %4 = vector.broadcast %3 : vector<1x128xf32> to vector<16x128xf32>
    %5 = arith.addf %2, %4 : vector<16x128xf32>
    %cst_5 = arith.constant 0.000000e+00 : f32
    %6 = vector.broadcast %cst_5 : f32 to vector<16x128xf32>
    %7 = arith.maximumf %5, %6 : vector<16x128xf32>
    %8 = arith.truncf %7 : vector<16x128xf32> to vector<16x128xbf16>
    %c0_6 = arith.constant 0 : index
    %c0_7 = arith.constant 0 : index
    %9 = vector.load %arg4[%c0_6, %c0_7] : memref<16x128xbf16, #tpu.memory_space<vmem>>, vector<16x128xbf16>
    tpu.vector_store %arg4[%c0_6, %c0_7], %8 {strides = array<i32>} : memref<16x128xbf16, #tpu.memory_space<vmem>>, vector<16x128xbf16>,
    return
  }
  func.func @transform_0(%arg0: i32) -> (i32, i32) {
    %c0_i32 = arith.constant 0 : i32
    %c0_i32_0 = arith.constant 0 : i32
    return %arg0, %c0_i32 : i32, i32
  }
  func.func @transform_1(%arg0: i32) -> (i32, i32) {
    %c0_i32 = arith.constant 0 : i32
    %c0_i32_0 = arith.constant 0 : i32
    %c0_i32_1 = arith.constant 0 : i32
    return %c0_i32, %c0_i32_0 : i32, i32
  }
  func.func @transform_2(%arg0: i32) -> (i32, i32) {
    %c0_i32 = arith.constant 0 : i32
    %c0_i32_0 = arith.constant 0 : i32
    %c0_i32_1 = arith.constant 0 : i32
    return %c0_i32, %c0_i32_0 : i32, i32
  }
  func.func @transform_3(%arg0: i32) -> (i32, i32) {
    %c0_i32 = arith.constant 0 : i32
    %c0_i32_0 = arith.constant 0 : i32
    return %arg0, %c0_i32 : i32, i32
  }
}

module attributes {stable_mosaic.version = 11 : i64} {
  func.func @_conv_matmul_kernel(%arg0: i32, %arg1: memref<16x128xbf16, #tpu.memory_space<vmem>>, %arg2: memref<128x256xbf16, #tpu.memory_space<vmem>>, %arg3: memref<1x256xf32, #tpu.memory_space<vmem>>, %arg4: memref<16x256xbf16, #tpu.memory_space<vmem>>) attributes {dimension_semantics = [#tpu.dimension_semantics<parallel>], iteration_bounds = array<i64: 1>, scalar_prefetch = 0 : i64, scratch_operands = 0 : i64, tpu.core_type = #tpu.core_type<tc>, window_params = [{transform_indices = @transform_0, window_bounds = array<i64: 16, 128>}, {pipeline_mode = #tpu.pipeline_mode<synchronous>, transform_indices = @transform_1, window_bounds = array<i64: 128, 256>}, {pipeline_mode = #tpu.pipeline_mode<synchronous>, transform_indices = @transform_2, window_bounds = array<i64: 1, 256>}, {transform_indices = @transform_3, window_bounds = array<i64: 16, 256>}]} {
    %c0 = arith.constant 0 : index
    %c0_0 = arith.constant 0 : index
    %0 = vector.load %arg1[%c0, %c0_0] : memref<16x128xbf16, #tpu.memory_space<vmem>>, vector<16x128xbf16>
    %c0_1 = arith.constant 0 : index
    %c0_2 = arith.constant 0 : index
    %1 = vector.load %arg2[%c0_1, %c0_2] : memref<128x256xbf16, #tpu.memory_space<vmem>>, vector<128x256xbf16>
    %cst = arith.constant dense<0.000000e+00> : vector<16x256xf32>
    %2 = tpu.matmul %0, %1, %cst {dimension_numbers = #tpu.dot_dimension_numbers<[1], [0], [0], [1], [0, 0, 1, 1], [], []>} : vector<16x128xbf16>, vector<128x256xbf16>, vector<16x256xf32> -> vector<16x256xf32>
    %c0_3 = arith.constant 0 : index
    %c0_4 = arith.constant 0 : index
    %3 = vector.load %arg3[%c0_3, %c0_4] : memref<1x256xf32, #tpu.memory_space<vmem>>, vector<1x256xf32>
    %4 = vector.broadcast %3 : vector<1x256xf32> to vector<16x256xf32>
    %5 = arith.addf %2, %4 : vector<16x256xf32>
    %6 = arith.truncf %5 : vector<16x256xf32> to vector<16x256xbf16>
    %c0_5 = arith.constant 0 : index
    %c0_6 = arith.constant 0 : index
    %7 = vector.load %arg4[%c0_5, %c0_6] : memref<16x256xbf16, #tpu.memory_space<vmem>>, vector<16x256xbf16>
    tpu.vector_store %arg4[%c0_5, %c0_6], %6 {strides = array<i32>} : memref<16x256xbf16, #tpu.memory_space<vmem>>, vector<16x256xbf16>,
    return
  }
  func.func @transform_0(%arg0: i32) -> (i32, i32) {
    %c0_i32 = arith.constant 0 : i32
    %c0_i32_0 = arith.constant 0 : i32
    return %arg0, %c0_i32 : i32, i32
  }
  func.func @transform_1(%arg0: i32) -> (i32, i32) {
    %c0_i32 = arith.constant 0 : i32
    %c0_i32_0 = arith.constant 0 : i32
    %c0_i32_1 = arith.constant 0 : i32
    return %c0_i32, %c0_i32_0 : i32, i32
  }
  func.func @transform_2(%arg0: i32) -> (i32, i32) {
    %c0_i32 = arith.constant 0 : i32
    %c0_i32_0 = arith.constant 0 : i32
    %c0_i32_1 = arith.constant 0 : i32
    return %c0_i32, %c0_i32_0 : i32, i32
  }
  func.func @transform_3(%arg0: i32) -> (i32, i32) {
    %c0_i32 = arith.constant 0 : i32
    %c0_i32_0 = arith.constant 0 : i32
    return %arg0, %c0_i32 : i32, i32
  }
}

module attributes {stable_mosaic.version = 11 : i64} {
  func.func @_conv_matmul_kernel(%arg0: i32, %arg1: memref<16x2304xbf16, #tpu.memory_space<vmem>>, %arg2: memref<2304x256xbf16, #tpu.memory_space<vmem>>, %arg3: memref<1x256xf32, #tpu.memory_space<vmem>>, %arg4: memref<16x256xbf16, #tpu.memory_space<vmem>>) attributes {dimension_semantics = [#tpu.dimension_semantics<parallel>], iteration_bounds = array<i64: 1>, scalar_prefetch = 0 : i64, scratch_operands = 0 : i64, tpu.core_type = #tpu.core_type<tc>, window_params = [{transform_indices = @transform_0, window_bounds = array<i64: 16, 2304>}, {pipeline_mode = #tpu.pipeline_mode<synchronous>, transform_indices = @transform_1, window_bounds = array<i64: 2304, 256>}, {pipeline_mode = #tpu.pipeline_mode<synchronous>, transform_indices = @transform_2, window_bounds = array<i64: 1, 256>}, {transform_indices = @transform_3, window_bounds = array<i64: 16, 256>}]} {
    %c0 = arith.constant 0 : index
    %c0_0 = arith.constant 0 : index
    %0 = vector.load %arg1[%c0, %c0_0] : memref<16x2304xbf16, #tpu.memory_space<vmem>>, vector<16x2304xbf16>
    %c0_1 = arith.constant 0 : index
    %c0_2 = arith.constant 0 : index
    %1 = vector.load %arg2[%c0_1, %c0_2] : memref<2304x256xbf16, #tpu.memory_space<vmem>>, vector<2304x256xbf16>
    %cst = arith.constant dense<0.000000e+00> : vector<16x256xf32>
    %2 = tpu.matmul %0, %1, %cst {dimension_numbers = #tpu.dot_dimension_numbers<[1], [0], [0], [1], [0, 0, 1, 1], [], []>} : vector<16x2304xbf16>, vector<2304x256xbf16>, vector<16x256xf32> -> vector<16x256xf32>
    %c0_3 = arith.constant 0 : index
    %c0_4 = arith.constant 0 : index
    %3 = vector.load %arg3[%c0_3, %c0_4] : memref<1x256xf32, #tpu.memory_space<vmem>>, vector<1x256xf32>
    %4 = vector.broadcast %3 : vector<1x256xf32> to vector<16x256xf32>
    %5 = arith.addf %2, %4 : vector<16x256xf32>
    %cst_5 = arith.constant 0.000000e+00 : f32
    %6 = vector.broadcast %cst_5 : f32 to vector<16x256xf32>
    %7 = arith.maximumf %5, %6 : vector<16x256xf32>
    %8 = arith.truncf %7 : vector<16x256xf32> to vector<16x256xbf16>
    %c0_6 = arith.constant 0 : index
    %c0_7 = arith.constant 0 : index
    %9 = vector.load %arg4[%c0_6, %c0_7] : memref<16x256xbf16, #tpu.memory_space<vmem>>, vector<16x256xbf16>
    tpu.vector_store %arg4[%c0_6, %c0_7], %8 {strides = array<i32>} : memref<16x256xbf16, #tpu.memory_space<vmem>>, vector<16x256xbf16>,
    return
  }
  func.func @transform_0(%arg0: i32) -> (i32, i32) {
    %c0_i32 = arith.constant 0 : i32
    %c0_i32_0 = arith.constant 0 : i32
    return %arg0, %c0_i32 : i32, i32
  }
  func.func @transform_1(%arg0: i32) -> (i32, i32) {
    %c0_i32 = arith.constant 0 : i32
    %c0_i32_0 = arith.constant 0 : i32
    %c0_i32_1 = arith.constant 0 : i32
    return %c0_i32, %c0_i32_0 : i32, i32
  }
  func.func @transform_2(%arg0: i32) -> (i32, i32) {
    %c0_i32 = arith.constant 0 : i32
    %c0_i32_0 = arith.constant 0 : i32
    %c0_i32_1 = arith.constant 0 : i32
    return %c0_i32, %c0_i32_0 : i32, i32
  }
  func.func @transform_3(%arg0: i32) -> (i32, i32) {
    %c0_i32 = arith.constant 0 : i32
    %c0_i32_0 = arith.constant 0 : i32
    return %arg0, %c0_i32 : i32, i32
  }
}

module attributes {stable_mosaic.version = 11 : i64} {
  func.func @_conv_matmul_kernel(%arg0: i32, %arg1: memref<16x1152xbf16, #tpu.memory_space<vmem>>, %arg2: memref<1152x256xbf16, #tpu.memory_space<vmem>>, %arg3: memref<1x256xf32, #tpu.memory_space<vmem>>, %arg4: memref<16x256xbf16, #tpu.memory_space<vmem>>) attributes {dimension_semantics = [#tpu.dimension_semantics<parallel>], iteration_bounds = array<i64: 1>, scalar_prefetch = 0 : i64, scratch_operands = 0 : i64, tpu.core_type = #tpu.core_type<tc>, window_params = [{transform_indices = @transform_0, window_bounds = array<i64: 16, 1152>}, {pipeline_mode = #tpu.pipeline_mode<synchronous>, transform_indices = @transform_1, window_bounds = array<i64: 1152, 256>}, {pipeline_mode = #tpu.pipeline_mode<synchronous>, transform_indices = @transform_2, window_bounds = array<i64: 1, 256>}, {transform_indices = @transform_3, window_bounds = array<i64: 16, 256>}]} {
    %c0 = arith.constant 0 : index
    %c0_0 = arith.constant 0 : index
    %0 = vector.load %arg1[%c0, %c0_0] : memref<16x1152xbf16, #tpu.memory_space<vmem>>, vector<16x1152xbf16>
    %c0_1 = arith.constant 0 : index
    %c0_2 = arith.constant 0 : index
    %1 = vector.load %arg2[%c0_1, %c0_2] : memref<1152x256xbf16, #tpu.memory_space<vmem>>, vector<1152x256xbf16>
    %cst = arith.constant dense<0.000000e+00> : vector<16x256xf32>
    %2 = tpu.matmul %0, %1, %cst {dimension_numbers = #tpu.dot_dimension_numbers<[1], [0], [0], [1], [0, 0, 1, 1], [], []>} : vector<16x1152xbf16>, vector<1152x256xbf16>, vector<16x256xf32> -> vector<16x256xf32>
    %c0_3 = arith.constant 0 : index
    %c0_4 = arith.constant 0 : index
    %3 = vector.load %arg3[%c0_3, %c0_4] : memref<1x256xf32, #tpu.memory_space<vmem>>, vector<1x256xf32>
    %4 = vector.broadcast %3 : vector<1x256xf32> to vector<16x256xf32>
    %5 = arith.addf %2, %4 : vector<16x256xf32>
    %cst_5 = arith.constant 0.000000e+00 : f32
    %6 = vector.broadcast %cst_5 : f32 to vector<16x256xf32>
    %7 = arith.maximumf %5, %6 : vector<16x256xf32>
    %8 = arith.truncf %7 : vector<16x256xf32> to vector<16x256xbf16>
    %c0_6 = arith.constant 0 : index
    %c0_7 = arith.constant 0 : index
    %9 = vector.load %arg4[%c0_6, %c0_7] : memref<16x256xbf16, #tpu.memory_space<vmem>>, vector<16x256xbf16>
    tpu.vector_store %arg4[%c0_6, %c0_7], %8 {strides = array<i32>} : memref<16x256xbf16, #tpu.memory_space<vmem>>, vector<16x256xbf16>,
    return
  }
  func.func @transform_0(%arg0: i32) -> (i32, i32) {
    %c0_i32 = arith.constant 0 : i32
    %c0_i32_0 = arith.constant 0 : i32
    return %arg0, %c0_i32 : i32, i32
  }
  func.func @transform_1(%arg0: i32) -> (i32, i32) {
    %c0_i32 = arith.constant 0 : i32
    %c0_i32_0 = arith.constant 0 : i32
    %c0_i32_1 = arith.constant 0 : i32
    return %c0_i32, %c0_i32_0 : i32, i32
  }
  func.func @transform_2(%arg0: i32) -> (i32, i32) {
    %c0_i32 = arith.constant 0 : i32
    %c0_i32_0 = arith.constant 0 : i32
    %c0_i32_1 = arith.constant 0 : i32
    return %c0_i32, %c0_i32_0 : i32, i32
  }
  func.func @transform_3(%arg0: i32) -> (i32, i32) {
    %c0_i32 = arith.constant 0 : i32
    %c0_i32_0 = arith.constant 0 : i32
    return %arg0, %c0_i32 : i32, i32
  }
}

module attributes {stable_mosaic.version = 11 : i64} {
  func.func @_conv_matmul_res_kernel(%arg0: i32, %arg1: memref<16x2304xbf16, #tpu.memory_space<vmem>>, %arg2: memref<2304x256xbf16, #tpu.memory_space<vmem>>, %arg3: memref<1x256xf32, #tpu.memory_space<vmem>>, %arg4: memref<16x256xbf16, #tpu.memory_space<vmem>>, %arg5: memref<16x256xbf16, #tpu.memory_space<vmem>>) attributes {dimension_semantics = [#tpu.dimension_semantics<parallel>], iteration_bounds = array<i64: 1>, scalar_prefetch = 0 : i64, scratch_operands = 0 : i64, tpu.core_type = #tpu.core_type<tc>, window_params = [{transform_indices = @transform_0, window_bounds = array<i64: 16, 2304>}, {pipeline_mode = #tpu.pipeline_mode<synchronous>, transform_indices = @transform_1, window_bounds = array<i64: 2304, 256>}, {pipeline_mode = #tpu.pipeline_mode<synchronous>, transform_indices = @transform_2, window_bounds = array<i64: 1, 256>}, {transform_indices = @transform_3, window_bounds = array<i64: 16, 256>}, {transform_indices = @transform_4, window_bounds = array<i64: 16, 256>}]} {
    %c0 = arith.constant 0 : index
    %c0_0 = arith.constant 0 : index
    %0 = vector.load %arg1[%c0, %c0_0] : memref<16x2304xbf16, #tpu.memory_space<vmem>>, vector<16x2304xbf16>
    %c0_1 = arith.constant 0 : index
    %c0_2 = arith.constant 0 : index
    %1 = vector.load %arg2[%c0_1, %c0_2] : memref<2304x256xbf16, #tpu.memory_space<vmem>>, vector<2304x256xbf16>
    %cst = arith.constant dense<0.000000e+00> : vector<16x256xf32>
    %2 = tpu.matmul %0, %1, %cst {dimension_numbers = #tpu.dot_dimension_numbers<[1], [0], [0], [1], [0, 0, 1, 1], [], []>} : vector<16x2304xbf16>, vector<2304x256xbf16>, vector<16x256xf32> -> vector<16x256xf32>
    %c0_3 = arith.constant 0 : index
    %c0_4 = arith.constant 0 : index
    %3 = vector.load %arg3[%c0_3, %c0_4] : memref<1x256xf32, #tpu.memory_space<vmem>>, vector<1x256xf32>
    %4 = vector.broadcast %3 : vector<1x256xf32> to vector<16x256xf32>
    %5 = arith.addf %2, %4 : vector<16x256xf32>
    %c0_5 = arith.constant 0 : index
    %c0_6 = arith.constant 0 : index
    %6 = vector.load %arg4[%c0_5, %c0_6] : memref<16x256xbf16, #tpu.memory_space<vmem>>, vector<16x256xbf16>
    %7 = arith.extf %6 : vector<16x256xbf16> to vector<16x256xf32>
    %8 = arith.addf %5, %7 : vector<16x256xf32>
    %cst_7 = arith.constant 0.000000e+00 : f32
    %9 = vector.broadcast %cst_7 : f32 to vector<16x256xf32>
    %10 = arith.maximumf %8, %9 : vector<16x256xf32>
    %11 = arith.truncf %10 : vector<16x256xf32> to vector<16x256xbf16>
    %c0_8 = arith.constant 0 : index
    %c0_9 = arith.constant 0 : index
    %12 = vector.load %arg5[%c0_8, %c0_9] : memref<16x256xbf16, #tpu.memory_space<vmem>>, vector<16x256xbf16>
    tpu.vector_store %arg5[%c0_8, %c0_9], %11 {strides = array<i32>} : memref<16x256xbf16, #tpu.memory_space<vmem>>, vector<16x256xbf16>,
    return
  }
  func.func @transform_0(%arg0: i32) -> (i32, i32) {
    %c0_i32 = arith.constant 0 : i32
    %c0_i32_0 = arith.constant 0 : i32
    return %arg0, %c0_i32 : i32, i32
  }
  func.func @transform_1(%arg0: i32) -> (i32, i32) {
    %c0_i32 = arith.constant 0 : i32
    %c0_i32_0 = arith.constant 0 : i32
    %c0_i32_1 = arith.constant 0 : i32
    return %c0_i32, %c0_i32_0 : i32, i32
  }
  func.func @transform_2(%arg0: i32) -> (i32, i32) {
    %c0_i32 = arith.constant 0 : i32
    %c0_i32_0 = arith.constant 0 : i32
    %c0_i32_1 = arith.constant 0 : i32
    return %c0_i32, %c0_i32_0 : i32, i32
  }
  func.func @transform_3(%arg0: i32) -> (i32, i32) {
    %c0_i32 = arith.constant 0 : i32
    %c0_i32_0 = arith.constant 0 : i32
    return %arg0, %c0_i32 : i32, i32
  }
  func.func @transform_4(%arg0: i32) -> (i32, i32) {
    %c0_i32 = arith.constant 0 : i32
    %c0_i32_0 = arith.constant 0 : i32
    return %arg0, %c0_i32 : i32, i32
  }
}

module attributes {stable_mosaic.version = 11 : i64} {
  func.func @_aggregation_kernel(%arg0: i32, %arg1: memref<1x4x256xbf16, #tpu.memory_space<vmem>>, %arg2: memref<1x1x256xf32, #tpu.memory_space<vmem>>) attributes {dimension_semantics = [#tpu.dimension_semantics<parallel>], iteration_bounds = array<i64: 2>, scalar_prefetch = 0 : i64, scratch_operands = 0 : i64, tpu.core_type = #tpu.core_type<tc>, window_params = [{transform_indices = @transform_0, window_bounds = array<i64: 1, 4, 256>}, {transform_indices = @transform_1, window_bounds = array<i64: 1, 1, 256>}]} {
    %c0 = arith.constant 0 : index
    %c0_0 = arith.constant 0 : index
    %c0_1 = arith.constant 0 : index
    %0 = vector.load %arg1[%c0, %c0_0, %c0_1] : memref<1x4x256xbf16, #tpu.memory_space<vmem>>, vector<1x4x256xbf16>
    %1 = arith.extf %0 : vector<1x4x256xbf16> to vector<1x4x256xf32>
    %2 = arith.mulf %1, %1 : vector<1x4x256xf32>
    %cst = arith.constant dense<0.000000e+00> : vector<1x4xf32>
    %3 = vector.multi_reduction <add>, %2, %cst [2] : vector<1x4x256xf32> to vector<1x4xf32>
    %4 = vector.shape_cast %3 : vector<1x4xf32> to vector<1x4x1xf32>
    %cst_2 = arith.constant 1.000000e-24 : f32
    %5 = vector.broadcast %cst_2 : f32 to vector<1x4x1xf32>
    %6 = arith.maximumf %4, %5 : vector<1x4x1xf32>
    %7 = math.rsqrt %6 : vector<1x4x1xf32>
    %8 = vector.broadcast %7 : vector<1x4x1xf32> to vector<1x4x256xf32>
    %9 = arith.mulf %1, %8 : vector<1x4x256xf32>
    %cst_3 = arith.constant dense<0.000000e+00> : vector<1x256xf32>
    %10 = vector.multi_reduction <add>, %9, %cst_3 [1] : vector<1x4x256xf32> to vector<1x256xf32>
    %11 = vector.shape_cast %10 : vector<1x256xf32> to vector<1x1x256xf32>
    %cst_4 = arith.constant 4.000000e+00 : f32
    %12 = vector.broadcast %cst_4 : f32 to vector<1x1x256xf32>
    %13 = arith.divf %11, %12 : vector<1x1x256xf32>
    %c0_5 = arith.constant 0 : index
    %c0_6 = arith.constant 0 : index
    %c0_7 = arith.constant 0 : index
    %14 = vector.load %arg2[%c0_5, %c0_6, %c0_7] : memref<1x1x256xf32, #tpu.memory_space<vmem>>, vector<1x1x256xf32>
    tpu.vector_store %arg2[%c0_5, %c0_6, %c0_7], %13 {strides = array<i32>} : memref<1x1x256xf32, #tpu.memory_space<vmem>>, vector<1x1x256xf32>,
    return
  }
  func.func @transform_0(%arg0: i32) -> (i32, i32, i32) {
    %c0_i32 = arith.constant 0 : i32
    %c0_i32_0 = arith.constant 0 : i32
    %c0_i32_1 = arith.constant 0 : i32
    return %arg0, %c0_i32, %c0_i32_0 : i32, i32, i32
  }
  func.func @transform_1(%arg0: i32) -> (i32, i32, i32) {
    %c0_i32 = arith.constant 0 : i32
    %c0_i32_0 = arith.constant 0 : i32
    %c0_i32_1 = arith.constant 0 : i32
    return %arg0, %c0_i32, %c0_i32_0 : i32, i32, i32
  }
}

</mosaic_0001>

<bundles_post_ra>
// kernel: geolocalization_forward.16
= control target key start
LH: loop header
LB: loop body
LE: loop exit
PB: predicated region body
PF: predicated region fallthrough
CT: control target
= control target key end

     0   :  { %s1232_s12 = smov 0   ;;  %s1422_s0 = inlined_call_operand.vmem [shape: bf16[512,256], index: 0, kind: input, shape index: {}]   ;;  %s1423_s1 = inlined_call_operand.vmem [shape: bf16[256,128], index: 1, kind: input, shape index: {}]   ;;  %s1424_s2 = inlined_call_operand.vmem [shape: f32[1,128], index: 2, kind: input, shape index: {}]   ;;  %s1425_s3 = inlined_call_operand.vmem [shape: bf16[512,128], index: 3, kind: output, shape index: {}]  }
   0x1 LB: > { %s831_s13 = sadd.s32 4294967295, %s1210_s12   ;;  %p835_p0 = scmp.ge.s32.totalorder %s1210_s12, 1  ;;  %s1210_s12 = sphi %s1232_s12, %s13_s12  }
   0x2   : > { %p139_p1 = scmp.lt.s32.totalorder %s1210_s12, 3 }
   0x4   : > { %p140_p2 = pnand %p835_p0, %p139_p1 }
   0x5   : > { %s836_s26 = sshll.u32 (!%p140_p2), %s831_s13, 5 }
   0x6   : > { %143 = sbr.rel (%p140_p2) target bundleno = 304 (0x130), region = 32  ;;  %p165_p3 = scmp.lt.s32.totalorder (!%p140_p2), %s836_s26, 63 }
   0xb   : > { %v1075_v0 = vld [vmem:[%s1423_s1 + $0x38] sm:$0xff]  ;;  %v1074_v2 = vld [vmem:[%s1423_s1 + $0x30] sm:$0xff]  ;;  %v1073_v4 = vld [vmem:[%s1423_s1 + $0x28] sm:$0xff]  ;;  %s1427_s26 = smov (!%p165_p3, %s836_s26), 63 }
   0xc   : > { %v1083_v1 = vld [vmem:[%s1423_s1 + $0x78] sm:$0xff]  ;;  %501 = vmatpush.bf16.msra.mxu0 %v1075_v0  ;;  %1179 = vmatpush.bf16.msra.mxu2 %v1075_v0  ;;  %v1082_v3 = vld [vmem:[%s1423_s1 + $0x70] sm:$0xff]  ;;  %v1081_v5 = vld [vmem:[%s1423_s1 + $0x68] sm:$0xff]  ;;  %s1035_s13 = sshll.u32 %s1427_s26, 3  ;;  %s840_s28 = sshll.u32 %s1427_s26, 2 }
   0xd   : > { %590 = vmatpush.bf16.msra.mxu1 %v1083_v1  ;;  %1187 = vmatpush.bf16.msra.mxu3 %v1083_v1  ;;  %v1072_v6 = vld [vmem:[%s1423_s1 + $0x20] sm:$0xff]  ;;  %v1071_v8 = vld [vmem:[%s1423_s1 + $0x18] sm:$0xff]  ;;  %v1070_v10 = vld [vmem:[%s1423_s1 + $0x10] sm:$0xff]  ;;  %s1285_s18 = scalar_lea.vmem %s1422_s0, %s1035_s13  ;;  %s1372_s4 = scalar_lea.vmem %s1425_s3, %s840_s28 }
   0xe   : > { %v1080_v7 = vld [vmem:[%s1423_s1 + $0x60] sm:$0xff]  ;;  %v1079_v9 = vld [vmem:[%s1423_s1 + $0x58] sm:$0xff]  ;;  %v1078_v11 = vld [vmem:[%s1423_s1 + $0x50] sm:$0xff] }
   0xf   : > { %v1069_v12 = vld [vmem:[%s1423_s1 + $0x8] sm:$0xff]  ;;  %v1068_v14 = vld [vmem:[%s1423_s1] sm:$0xff]  ;;  %v851_v28 = vld [vmem:[%s1285_s18 + $0x10] sm:$0xf] }
  0x10   : > { %502 = vmatpush.bf16.msra.mxu0 %v1074_v2  ;;  %1180 = vmatpush.bf16.msra.mxu2 %v1074_v2  ;;  %v1077_v13 = vld [vmem:[%s1423_s1 + $0x48] sm:$0xff]  ;;  %v1076_v15 = vld [vmem:[%s1423_s1 + $0x40] sm:$0xff]  ;;  %v1039_v29 = vld [vmem:[%s1285_s18 + $0x14] sm:$0xf0] }
  0x11   : > { %591 = vmatpush.bf16.msra.mxu1 %v1082_v3  ;;  %1188 = vmatpush.bf16.msra.mxu3 %v1082_v3  ;;  %v843_v16 = vld [vmem:[%s1285_s18] sm:$0xf]  ;;  %v1037_v17 = vld [vmem:[%s1285_s18 + $0x4] sm:$0xf0]  ;;  %v1036_v20 = vld [vmem:[%s1285_s18 + $0x4] sm:$0xf]  ;;  %v852_v36 = vor.u32 %v1039_v29, %v851_v28 }
  0x12   : > { %v907_v18 = vld [vmem:[%s1285_s18 + $0x80] sm:$0xf]  ;;  %v1053_v19 = vld [vmem:[%s1285_s18 + $0x84] sm:$0xf0]  ;;  %v845_v21 = vld [vmem:[%s1285_s18 + $0x8] sm:$0xf0]  ;;  %v844_v24 = vor.u32 %v1037_v17, %v843_v16 }
  0x13   : > { %v1052_v22 = vld [vmem:[%s1285_s18 + $0x84] sm:$0xf]  ;;  %v909_v23 = vld [vmem:[%s1285_s18 + $0x88] sm:$0xf0]  ;;  %v908_v25 = vor.u32 %v1053_v19, %v907_v18  ;;  %v848_v26 = vor.u32 %v1036_v20, %v845_v21  ;;  %v915_v30 = vld [vmem:[%s1285_s18 + $0x90] sm:$0xf] }
  0x14   : > { %503 = vmatpush.bf16.msra.mxu0 %v1073_v4  ;;  %1181 = vmatpush.bf16.msra.mxu2 %v1073_v4  ;;  %v912_v27 = vor.u32 %v1052_v22, %v909_v23  ;;  %v1055_v31 = vld [vmem:[%s1285_s18 + $0x94] sm:$0xf0]  ;;  %v1038_v32 = vld [vmem:[%s1285_s18 + $0x14] sm:$0xf]  ;;  %v853_v33 = vld [vmem:[%s1285_s18 + $0x18] sm:$0xf0] }
  0x15   : > { %592 = vmatpush.bf16.msra.mxu1 %v1081_v5  ;;  %1189 = vmatpush.bf16.msra.mxu3 %v1081_v5  ;;  %v1054_v34 = vld [vmem:[%s1285_s18 + $0x94] sm:$0xf]  ;;  %v917_v35 = vld [vmem:[%s1285_s18 + $0x98] sm:$0xf0]  ;;  %v916_v37 = vor.u32 %v1055_v31, %v915_v30  ;;  %v856_v38 = vor.u32 %v1038_v32, %v853_v33  ;;  %v859_v40 = vld [vmem:[%s1285_s18 + $0x20] sm:$0xf] }
  0x16   : > { %v920_v39 = vor.u32 %v1054_v34, %v917_v35  ;;  %v1041_v41 = vld [vmem:[%s1285_s18 + $0x24] sm:$0xf0]  ;;  %v923_v42 = vld [vmem:[%s1285_s18 + $0xa0] sm:$0xf]  ;;  %v1040_v44 = vld [vmem:[%s1285_s18 + $0x24] sm:$0xf] }
  0x17   : > { %v1057_v43 = vld [vmem:[%s1285_s18 + $0xa4] sm:$0xf0]  ;;  %v861_v45 = vld [vmem:[%s1285_s18 + $0x28] sm:$0xf0]  ;;  %v1056_v46 = vld [vmem:[%s1285_s18 + $0xa4] sm:$0xf]  ;;  %v860_v48 = vor.u32 %v1041_v41, %v859_v40 }
  0x18   : > { %504 = vmatpush.bf16.msra.mxu0 %v1072_v6  ;;  %1182 = vmatpush.bf16.msra.mxu2 %v1072_v6  ;;  %v925_v47 = vld [vmem:[%s1285_s18 + $0xa8] sm:$0xf0]  ;;  %v924_v49 = vor.u32 %v1057_v43, %v923_v42  ;;  %v864_v50 = vor.u32 %v1040_v44, %v861_v45  ;;  %v867_v52 = vld [vmem:[%s1285_s18 + $0x30] sm:$0xf]  ;;  %v1043_v53 = vld [vmem:[%s1285_s18 + $0x34] sm:$0xf0] }
  0x19   : > { %593 = vmatpush.bf16.msra.mxu1 %v1080_v7  ;;  %1190 = vmatpush.bf16.msra.mxu3 %v1080_v7  ;;  %v928_v51 = vor.u32 %v1056_v46, %v925_v47  ;;  %v931_v54 = vld [vmem:[%s1285_s18 + $0xb0] sm:$0xf]  ;;  %v1059_v55 = vld [vmem:[%s1285_s18 + $0xb4] sm:$0xf0]  ;;  %v1042_v56 = vld [vmem:[%s1285_s18 + $0x34] sm:$0xf]  ;;  %v868_v60 = vor.u32 %v1043_v53, %v867_v52 }
  0x1a   : > { %v869_v57 = vld [vmem:[%s1285_s18 + $0x38] sm:$0xf0]  ;;  %v1058_v58 = vld [vmem:[%s1285_s18 + $0xb4] sm:$0xf]  ;;  %v932_v61 = vor.u32 %v1059_v55, %v931_v54  ;;  %v875_v0 = vld [vmem:[%s1285_s18 + $0x40] sm:$0xf] }
  0x1b   : > { %v933_v59 = vld [vmem:[%s1285_s18 + $0xb8] sm:$0xf0]  ;;  %v872_v62 = vor.u32 %v1042_v56, %v869_v57  ;;  %v1045_v1 = vld [vmem:[%s1285_s18 + $0x44] sm:$0xf0]  ;;  %v939_v2 = vld [vmem:[%s1285_s18 + $0xc0] sm:$0xf] }
  0x1c   : > { %505 = vmatpush.bf16.msra.mxu0 %v1071_v8  ;;  %1183 = vmatpush.bf16.msra.mxu2 %v1071_v8  ;;  %v936_v63 = vor.u32 %v1058_v58, %v933_v59  ;;  %v1061_v3 = vld [vmem:[%s1285_s18 + $0xc4] sm:$0xf0]  ;;  %v1044_v4 = vld [vmem:[%s1285_s18 + $0x44] sm:$0xf]  ;;  %v877_v5 = vld [vmem:[%s1285_s18 + $0x48] sm:$0xf0]  ;;  %v876_v8 = vor.u32 %v1045_v1, %v875_v0 }
  0x1d   : > { %594 = vmatpush.bf16.msra.mxu1 %v1079_v9  ;;  %1191 = vmatpush.bf16.msra.mxu3 %v1079_v9  ;;  %v1060_v6 = vld [vmem:[%s1285_s18 + $0xc4] sm:$0xf]  ;;  %v941_v7 = vld [vmem:[%s1285_s18 + $0xc8] sm:$0xf0]  ;;  %v940_v9 = vor.u32 %v1061_v3, %v939_v2  ;;  %v1046_v16 = vld [vmem:[%s1285_s18 + $0x54] sm:$0xf] }
  0x1e   : > { %v885_v17 = vld [vmem:[%s1285_s18 + $0x58] sm:$0xf0]  ;;  %v1062_v18 = vld [vmem:[%s1285_s18 + $0xd4] sm:$0xf]  ;;  %v1048_v28 = vld [vmem:[%s1285_s18 + $0x64] sm:$0xf] }
  0x1f   : > { %v949_v19 = vld [vmem:[%s1285_s18 + $0xd8] sm:$0xf0]  ;;  %v888_v22 = vor.u32 %v1046_v16, %v885_v17  ;;  %v893_v29 = vld [vmem:[%s1285_s18 + $0x68] sm:$0xf0]  ;;  %v1064_v30 = vld [vmem:[%s1285_s18 + $0xe4] sm:$0xf] }
  0x20   : > { %506 = vmatpush.bf16.msra.mxu0 %v1070_v10  ;;  %1184 = vmatpush.bf16.msra.mxu2 %v1070_v10  ;;  %v880_v10 = vor.u32 %v1044_v4, %v877_v5  ;;  %v952_v23 = vor.u32 %v1062_v18, %v949_v19  ;;  %v957_v31 = vld [vmem:[%s1285_s18 + $0xe8] sm:$0xf0]  ;;  %v896_v34 = vor.u32 %v1048_v28, %v893_v29  ;;  %v1050_v40 = vld [vmem:[%s1285_s18 + $0x74] sm:$0xf]  ;;  %v901_v41 = vld [vmem:[%s1285_s18 + $0x78] sm:$0xf0] }
  0x21   : > { %595 = vmatpush.bf16.msra.mxu1 %v1078_v11  ;;  %1192 = vmatpush.bf16.msra.mxu3 %v1078_v11  ;;  %v944_v11 = vor.u32 %v1060_v6, %v941_v7  ;;  %v960_v35 = vor.u32 %v1064_v30, %v957_v31  ;;  %v1066_v42 = vld [vmem:[%s1285_s18 + $0xf4] sm:$0xf]  ;;  %v965_v43 = vld [vmem:[%s1285_s18 + $0xf8] sm:$0xf0]  ;;  %v904_v46 = vor.u32 %v1050_v40, %v901_v41 }
  0x22   : > { %v968_v47 = vor.u32 %v1066_v42, %v965_v43 }
  0x24   : > { %507 = vmatpush.bf16.msra.mxu0 %v1069_v12  ;;  %1185 = vmatpush.bf16.msra.mxu2 %v1069_v12  ;;  %v883_v12 = vld [vmem:[%s1285_s18 + $0x50] sm:$0xf] }
  0x25   : > { %596 = vmatpush.bf16.msra.mxu1 %v1077_v13  ;;  %1193 = vmatpush.bf16.msra.mxu3 %v1077_v13  ;;  %v1047_v13 = vld [vmem:[%s1285_s18 + $0x54] sm:$0xf0] }
  0x26   : > { %v884_v20 = vor.u32 %v1047_v13, %v883_v12 }
  0x28   : > { %508 = vmatpush.bf16.msra.mxu0 %v1068_v14  ;;  %1186 = vmatpush.bf16.msra.mxu2 %v1068_v14  ;;  %v947_v14 = vld [vmem:[%s1285_s18 + $0xd0] sm:$0xf] }
  0x29   : > { %597 = vmatpush.bf16.msra.mxu1 %v1076_v15  ;;  %1194 = vmatpush.bf16.msra.mxu3 %v1076_v15  ;;  %v1063_v15 = vld [vmem:[%s1285_s18 + $0xd4] sm:$0xf0] }
  0x2a   : > { %v948_v21 = vor.u32 %v1063_v15, %v947_v14 }
  0x2b   : > { %509 = vmatmul.bf16.vlgmr.msra.gmra.mxu0 %v844_v24  ;;  %549 = vmatmul.bf16.vlgmr.msra.gmra.mxu2 %v908_v25  ;;  %v891_v24 = vld [vmem:[%s1285_s18 + $0x60] sm:$0xf]  ;;  %v1049_v25 = vld [vmem:[%s1285_s18 + $0x64] sm:$0xf0] }
  0x2c   : > { %598 = vmatmul.bf16.vlgmr.msra.gmra.mxu1 %v848_v26  ;;  %638 = vmatmul.bf16.vlgmr.msra.gmra.mxu3 %v912_v27  ;;  %v955_v26 = vld [vmem:[%s1285_s18 + $0xe0] sm:$0xf]  ;;  %v1065_v27 = vld [vmem:[%s1285_s18 + $0xe4] sm:$0xf0]  ;;  %v892_v32 = vor.u32 %v1049_v25, %v891_v24 }
  0x2d   : > { %v956_v33 = vor.u32 %v1065_v27, %v955_v26 }
  0x3b   : > { %514 = vmatmul.bf16.gmra.mxu0 %v852_v36  ;;  %554 = vmatmul.bf16.gmra.mxu2 %v916_v37  ;;  %v899_v36 = vld [vmem:[%s1285_s18 + $0x70] sm:$0xf]  ;;  %v1051_v37 = vld [vmem:[%s1285_s18 + $0x74] sm:$0xf0] }
  0x3c   : > { %603 = vmatmul.bf16.gmra.mxu1 %v856_v38  ;;  %643 = vmatmul.bf16.gmra.mxu3 %v920_v39  ;;  %v963_v38 = vld [vmem:[%s1285_s18 + $0xf0] sm:$0xf]  ;;  %v1067_v39 = vld [vmem:[%s1285_s18 + $0xf4] sm:$0xf0]  ;;  %v900_v44 = vor.u32 %v1051_v37, %v899_v36 }
  0x3d   : > { %v964_v45 = vor.u32 %v1067_v39, %v963_v38 }
  0x4b   : > { %519 = vmatmul.bf16.gmra.mxu0 %v860_v48  ;;  %559 = vmatmul.bf16.gmra.mxu2 %v924_v49  ;;  %v1363_v49 = vld [vmem:[%s1424_s2] ss:$0 sm:$0xff] }
  0x4c   : > { %608 = vmatmul.bf16.gmra.mxu1 %v864_v50  ;;  %648 = vmatmul.bf16.gmra.mxu3 %v928_v51 }
  0x5b   : > { %524 = vmatmul.bf16.gmra.mxu0 %v868_v60  ;;  %564 = vmatmul.bf16.gmra.mxu2 %v932_v61 }
  0x5c   : > { %613 = vmatmul.bf16.gmra.mxu1 %v872_v62  ;;  %653 = vmatmul.bf16.gmra.mxu3 %v936_v63 }
  0x6b   : > { %529 = vmatmul.bf16.gmra.mxu0 %v876_v8  ;;  %569 = vmatmul.bf16.gmra.mxu2 %v940_v9 }
  0x6c   : > { %618 = vmatmul.bf16.gmra.mxu1 %v880_v10  ;;  %658 = vmatmul.bf16.gmra.mxu3 %v944_v11 }
  0x7b   : > { %534 = vmatmul.bf16.gmra.mxu0 %v884_v20  ;;  %574 = vmatmul.bf16.gmra.mxu2 %v948_v21 }
  0x7c   : > { %623 = vmatmul.bf16.gmra.mxu1 %v888_v22  ;;  %663 = vmatmul.bf16.gmra.mxu3 %v952_v23 }
  0x8b   : > { %539 = vmatmul.bf16.gmra.mxu0 %v892_v32  ;;  %579 = vmatmul.bf16.gmra.mxu2 %v956_v33 }
  0x8c   : > { %628 = vmatmul.bf16.gmra.mxu1 %v896_v34  ;;  %668 = vmatmul.bf16.gmra.mxu3 %v960_v35 }
  0x9b   : > { %544 = vmatmul.bf16.gmra.mxu0 %v900_v44  ;;  %584 = vmatmul.bf16.gmra.mxu2 %v964_v45 }
  0x9c   : > { %633 = vmatmul.bf16.gmra.mxu1 %v904_v46  ;;  %673 = vmatmul.bf16.gmra.mxu3 %v968_v47 }
  0xa8   : > { %v510_v48 = vpop.f32.mrf.mxu0 }
  0xa9   : > { %v599_v50 = vpop.f32.mrf.mxu1  ;;  %v511_v51 = vadd.f32 %v1363_v49, %v510_v48 }
  0xab   : > { %v600_v55 = vadd.f32 %v599_v50, %v511_v51 }
  0xad   : > { %v679_v60 = vmax.f32 %v600_v55, 0.0 }
  0xae   : > { %v550_v52 = vpop.f32.mrf.mxu2 }
  0xaf   : > { %v639_v53 = vpop.f32.mrf.mxu3  ;;  %v551_v58 = vadd.f32 %v1363_v49, %v550_v52 }
  0xb0   : > { %v512_v54 = vpop.f32.mrf.mxu0 }
  0xb1   : > { %v513_v56 = vadd.f32 %v1363_v49, %v512_v54  ;;  %v601_v57 = vpop.f32.mrf.mxu1  ;;  %v640_v63 = vadd.f32 %v639_v53, %v551_v58 }
  0xb3   : > { %v602_v59 = vadd.f32 %v601_v57, %v513_v56  ;;  %v695_v6 = vmax.f32 %v640_v63, 0.0 }
  0xb5   : > { %v680_v61 = vmax.f32 %v602_v59, 0.0 }
  0xb6   : > { %v552_v62 = vpop.f32.mrf.mxu2 }
  0xb7   : > { %v1087_v0 = vpack.c.bf16 %v680_v61, %v679_v60  ;;  %v553_v1 = vadd.f32 %v1363_v49, %v552_v62  ;;  %v641_v2 = vpop.f32.mrf.mxu3 }
  0xb8   : > { %v515_v3 = vpop.f32.mrf.mxu0 }
  0xb9   : > { %1088 = vst [vmem:[%s1372_s4] sm:$0xff] %v1087_v0   ;;  %v642_v4 = vadd.f32 %v641_v2, %v553_v1  ;;  %v604_v5 = vpop.f32.mrf.mxu1  ;;  %v516_v9 = vadd.f32 %v1363_v49, %v515_v3 }
  0xbb   : > { %v696_v7 = vmax.f32 %v642_v4, 0.0  ;;  %v605_v13 = vadd.f32 %v604_v5, %v516_v9 }
  0xbd   : > { %v1127_v8 = vpack.c.bf16 %v696_v7, %v695_v6  ;;  %v681_v18 = vmax.f32 %v605_v13, 0.0 }
  0xbe   : > { %v555_v10 = vpop.f32.mrf.mxu2 }
  0xbf   : > { %1171 = vst [vmem:[%s1372_s4 + $0x40] sm:$0xff] %v1127_v8   ;;  %v644_v11 = vpop.f32.mrf.mxu3  ;;  %v556_v16 = vadd.f32 %v1363_v49, %v555_v10 }
  0xc0   : > { %v517_v12 = vpop.f32.mrf.mxu0 }
  0xc1   : > { %v518_v14 = vadd.f32 %v1363_v49, %v517_v12  ;;  %v606_v15 = vpop.f32.mrf.mxu1  ;;  %v645_v21 = vadd.f32 %v644_v11, %v556_v16 }
  0xc3   : > { %v607_v17 = vadd.f32 %v606_v15, %v518_v14  ;;  %v697_v28 = vmax.f32 %v645_v21, 0.0 }
  0xc5   : > { %v682_v19 = vmax.f32 %v607_v17, 0.0 }
  0xc6   : > { %v557_v20 = vpop.f32.mrf.mxu2 }
  0xc7   : > { %v1092_v22 = vpack.c.bf16 %v682_v19, %v681_v18  ;;  %v558_v23 = vadd.f32 %v1363_v49, %v557_v20  ;;  %v646_v24 = vpop.f32.mrf.mxu3 }
  0xc8   : > { %v520_v25 = vpop.f32.mrf.mxu0 }
  0xc9   : > { %1164 = vst [vmem:[%s1372_s4 + $0x8] sm:$0xff] %v1092_v22   ;;  %v647_v26 = vadd.f32 %v646_v24, %v558_v23  ;;  %v609_v27 = vpop.f32.mrf.mxu1  ;;  %v521_v31 = vadd.f32 %v1363_v49, %v520_v25 }
  0xcb   : > { %v698_v29 = vmax.f32 %v647_v26, 0.0  ;;  %v610_v35 = vadd.f32 %v609_v27, %v521_v31 }
  0xcd   : > { %v1132_v30 = vpack.c.bf16 %v698_v29, %v697_v28  ;;  %v683_v40 = vmax.f32 %v610_v35, 0.0 }
  0xce   : > { %v560_v32 = vpop.f32.mrf.mxu2 }
  0xcf   : > { %1172 = vst [vmem:[%s1372_s4 + $0x48] sm:$0xff] %v1132_v30   ;;  %v649_v33 = vpop.f32.mrf.mxu3  ;;  %v561_v38 = vadd.f32 %v1363_v49, %v560_v32 }
  0xd0   : > { %v522_v34 = vpop.f32.mrf.mxu0 }
  0xd1   : > { %v523_v36 = vadd.f32 %v1363_v49, %v522_v34  ;;  %v611_v37 = vpop.f32.mrf.mxu1  ;;  %v650_v43 = vadd.f32 %v649_v33, %v561_v38 }
  0xd3   : > { %v612_v39 = vadd.f32 %v611_v37, %v523_v36  ;;  %v699_v51 = vmax.f32 %v650_v43, 0.0 }
  0xd5   : > { %v684_v41 = vmax.f32 %v612_v39, 0.0 }
  0xd6   : > { %v562_v42 = vpop.f32.mrf.mxu2 }
  0xd7   : > { %v1097_v44 = vpack.c.bf16 %v684_v41, %v683_v40  ;;  %v563_v45 = vadd.f32 %v1363_v49, %v562_v42  ;;  %v651_v46 = vpop.f32.mrf.mxu3 }
  0xd8   : > { %v525_v47 = vpop.f32.mrf.mxu0 }
  0xd9   : > { %1165 = vst [vmem:[%s1372_s4 + $0x10] sm:$0xff] %v1097_v44   ;;  %v652_v48 = vadd.f32 %v651_v46, %v563_v45  ;;  %v614_v50 = vpop.f32.mrf.mxu1  ;;  %v526_v54 = vadd.f32 %v1363_v49, %v525_v47 }
  0xdb   : > { %v700_v52 = vmax.f32 %v652_v48, 0.0  ;;  %v615_v58 = vadd.f32 %v614_v50, %v526_v54 }
  0xdd   : > { %v1137_v53 = vpack.c.bf16 %v700_v52, %v699_v51  ;;  %v685_v63 = vmax.f32 %v615_v58, 0.0 }
  0xde   : > { %v565_v55 = vpop.f32.mrf.mxu2 }
  0xdf   : > { %1173 = vst [vmem:[%s1372_s4 + $0x50] sm:$0xff] %v1137_v53   ;;  %v654_v56 = vpop.f32.mrf.mxu3  ;;  %v566_v61 = vadd.f32 %v1363_v49, %v565_v55 }
  0xe0   : > { %v527_v57 = vpop.f32.mrf.mxu0 }
  0xe1   : > { %v528_v59 = vadd.f32 %v1363_v49, %v527_v57  ;;  %v616_v60 = vpop.f32.mrf.mxu1  ;;  %v655_v2 = vadd.f32 %v654_v56, %v566_v61 }
  0xe3   : > { %v617_v62 = vadd.f32 %v616_v60, %v528_v59  ;;  %v701_v9 = vmax.f32 %v655_v2, 0.0 }
  0xe5   : > { %v686_v0 = vmax.f32 %v617_v62, 0.0 }
  0xe6   : > { %v567_v1 = vpop.f32.mrf.mxu2 }
  0xe7   : > { %v1102_v3 = vpack.c.bf16 %v686_v0, %v685_v63  ;;  %v568_v4 = vadd.f32 %v1363_v49, %v567_v1  ;;  %v656_v5 = vpop.f32.mrf.mxu3 }
  0xe8   : > { %v530_v6 = vpop.f32.mrf.mxu0 }
  0xe9   : > { %1166 = vst [vmem:[%s1372_s4 + $0x18] sm:$0xff] %v1102_v3   ;;  %v657_v7 = vadd.f32 %v656_v5, %v568_v4  ;;  %v619_v8 = vpop.f32.mrf.mxu1  ;;  %v531_v12 = vadd.f32 %v1363_v49, %v530_v6 }
  0xeb   : > { %v702_v10 = vmax.f32 %v657_v7, 0.0  ;;  %v620_v16 = vadd.f32 %v619_v8, %v531_v12 }
  0xed   : > { %v1142_v11 = vpack.c.bf16 %v702_v10, %v701_v9  ;;  %v687_v21 = vmax.f32 %v620_v16, 0.0 }
  0xee   : > { %v570_v13 = vpop.f32.mrf.mxu2 }
  0xef   : > { %1174 = vst [vmem:[%s1372_s4 + $0x58] sm:$0xff] %v1142_v11   ;;  %v659_v14 = vpop.f32.mrf.mxu3  ;;  %v571_v19 = vadd.f32 %v1363_v49, %v570_v13 }
  0xf0   : > { %v532_v15 = vpop.f32.mrf.mxu0 }
  0xf1   : > { %v533_v17 = vadd.f32 %v1363_v49, %v532_v15  ;;  %v621_v18 = vpop.f32.mrf.mxu1  ;;  %v660_v24 = vadd.f32 %v659_v14, %v571_v19 }
  0xf3   : > { %v622_v20 = vadd.f32 %v621_v18, %v533_v17  ;;  %v703_v31 = vmax.f32 %v660_v24, 0.0 }
  0xf5   : > { %v688_v22 = vmax.f32 %v622_v20, 0.0 }
  0xf6   : > { %v572_v23 = vpop.f32.mrf.mxu2 }
  0xf7   : > { %v1107_v25 = vpack.c.bf16 %v688_v22, %v687_v21  ;;  %v573_v26 = vadd.f32 %v1363_v49, %v572_v23  ;;  %v661_v27 = vpop.f32.mrf.mxu3 }
  0xf8   : > { %v535_v28 = vpop.f32.mrf.mxu0 }
  0xf9   : > { %1167 = vst [vmem:[%s1372_s4 + $0x20] sm:$0xff] %v1107_v25   ;;  %v662_v29 = vadd.f32 %v661_v27, %v573_v26  ;;  %v624_v30 = vpop.f32.mrf.mxu1  ;;  %v536_v34 = vadd.f32 %v1363_v49, %v535_v28 }
  0xfb   : > { %v704_v32 = vmax.f32 %v662_v29, 0.0  ;;  %v625_v38 = vadd.f32 %v624_v30, %v536_v34 }
  0xfd   : > { %v1147_v33 = vpack.c.bf16 %v704_v32, %v703_v31  ;;  %v689_v43 = vmax.f32 %v625_v38, 0.0 }
  0xfe   : > { %v575_v35 = vpop.f32.mrf.mxu2 }
  0xff   : > { %1175 = vst [vmem:[%s1372_s4 + $0x60] sm:$0xff] %v1147_v33   ;;  %v664_v36 = vpop.f32.mrf.mxu3  ;;  %v576_v41 = vadd.f32 %v1363_v49, %v575_v35 }
 0x100   : > { %v537_v37 = vpop.f32.mrf.mxu0 }
 0x101   : > { %v538_v39 = vadd.f32 %v1363_v49, %v537_v37  ;;  %v626_v40 = vpop.f32.mrf.mxu1  ;;  %v665_v46 = vadd.f32 %v664_v36, %v576_v41 }
 0x103   : > { %v627_v42 = vadd.f32 %v626_v40, %v538_v39  ;;  %v705_v54 = vmax.f32 %v665_v46, 0.0 }
 0x105   : > { %v690_v44 = vmax.f32 %v627_v42, 0.0 }
 0x106   : > { %v577_v45 = vpop.f32.mrf.mxu2 }
 0x107   : > { %v1112_v47 = vpack.c.bf16 %v690_v44, %v689_v43  ;;  %v578_v48 = vadd.f32 %v1363_v49, %v577_v45  ;;  %v666_v50 = vpop.f32.mrf.mxu3 }
 0x108   : > { %v540_v51 = vpop.f32.mrf.mxu0 }
 0x109   : > { %1168 = vst [vmem:[%s1372_s4 + $0x28] sm:$0xff] %v1112_v47   ;;  %v667_v52 = vadd.f32 %v666_v50, %v578_v48  ;;  %v629_v53 = vpop.f32.mrf.mxu1  ;;  %v541_v57 = vadd.f32 %v1363_v49, %v540_v51 }
 0x10b   : > { %v706_v55 = vmax.f32 %v667_v52, 0.0  ;;  %v630_v61 = vadd.f32 %v629_v53, %v541_v57 }
 0x10d   : > { %v1152_v56 = vpack.c.bf16 %v706_v55, %v705_v54  ;;  %v691_v2 = vmax.f32 %v630_v61, 0.0 }
 0x10e   : > { %v580_v58 = vpop.f32.mrf.mxu2 }
 0x10f   : > { %1176 = vst [vmem:[%s1372_s4 + $0x68] sm:$0xff] %v1152_v56   ;;  %v669_v59 = vpop.f32.mrf.mxu3  ;;  %v581_v0 = vadd.f32 %v1363_v49, %v580_v58 }
 0x110   : > { %v542_v60 = vpop.f32.mrf.mxu0 }
 0x111   : > { %v543_v62 = vadd.f32 %v1363_v49, %v542_v60  ;;  %v631_v63 = vpop.f32.mrf.mxu1  ;;  %v670_v5 = vadd.f32 %v669_v59, %v581_v0 }
 0x113   : > { %v632_v1 = vadd.f32 %v631_v63, %v543_v62  ;;  %v707_v12 = vmax.f32 %v670_v5, 0.0 }
 0x115   : > { %v692_v3 = vmax.f32 %v632_v1, 0.0 }
 0x116   : > { %v582_v4 = vpop.f32.mrf.mxu2 }
 0x117   : > { %v1117_v6 = vpack.c.bf16 %v692_v3, %v691_v2  ;;  %v583_v7 = vadd.f32 %v1363_v49, %v582_v4  ;;  %v671_v8 = vpop.f32.mrf.mxu3 }
 0x118   : > { %v545_v9 = vpop.f32.mrf.mxu0 }
 0x119   : > { %1169 = vst [vmem:[%s1372_s4 + $0x30] sm:$0xff] %v1117_v6   ;;  %v672_v10 = vadd.f32 %v671_v8, %v583_v7  ;;  %v634_v11 = vpop.f32.mrf.mxu1  ;;  %v546_v15 = vadd.f32 %v1363_v49, %v545_v9 }
 0x11b   : > { %v708_v13 = vmax.f32 %v672_v10, 0.0  ;;  %v635_v19 = vadd.f32 %v634_v11, %v546_v15 }
 0x11d   : > { %v1157_v14 = vpack.c.bf16 %v708_v13, %v707_v12  ;;  %v693_v24 = vmax.f32 %v635_v19, 0.0 }
 0x11e   : > { %v585_v16 = vpop.f32.mrf.mxu2 }
 0x11f   : > { %1177 = vst [vmem:[%s1372_s4 + $0x70] sm:$0xff] %v1157_v14   ;;  %v674_v17 = vpop.f32.mrf.mxu3  ;;  %v586_v22 = vadd.f32 %v1363_v49, %v585_v16 }
 0x120   : > { %v547_v18 = vpop.f32.mrf.mxu0 }
 0x121   : > { %v548_v20 = vadd.f32 %v1363_v49, %v547_v18  ;;  %v636_v21 = vpop.f32.mrf.mxu1  ;;  %v675_v27 = vadd.f32 %v674_v17, %v586_v22 }
 0x123   : > { %v637_v23 = vadd.f32 %v636_v21, %v548_v20  ;;  %v709_v32 = vmax.f32 %v675_v27, 0.0 }
 0x125   : > { %v694_v25 = vmax.f32 %v637_v23, 0.0 }
 0x126   : > { %v587_v26 = vpop.f32.mrf.mxu2 }
 0x127   : > { %v1122_v28 = vpack.c.bf16 %v694_v25, %v693_v24  ;;  %v588_v29 = vadd.f32 %v1363_v49, %v587_v26  ;;  %v676_v30 = vpop.f32.mrf.mxu3 }
 0x129   : > { %1170 = vst [vmem:[%s1372_s4 + $0x38] sm:$0xff] %v1122_v28   ;;  %v677_v31 = vadd.f32 %v676_v30, %v588_v29 }
 0x12b   : > { %v710_v33 = vmax.f32 %v677_v31, 0.0 }
 0x12d   : > { %v1162_v34 = vpack.c.bf16 %v710_v33, %v709_v32 }
 0x12f   : > { %1178 = vst [vmem:[%s1372_s4 + $0x78] sm:$0xff] %v1162_v34  }
 0x130 PF: > { %s13_s12 = sadd.s32 1, %s1210_s12  }
 0x131   : > { %p10_p4 = scmp.ge.s32.totalorder %s13_s12, 4  }
 0x133   :  { %12 = sbr.rel (!%p10_p4) target bundleno = 1 (0x1), region = 62 }

// kernel: geolocalization_forward.17
= control target key start
LH: loop header
LB: loop body
LE: loop exit
PB: predicated region body
PF: predicated region fallthrough
CT: control target
= control target key end

     0   :  { %s1950_s12 = smov 0   ;;  %s2303_s0 = inlined_call_operand.vmem [shape: bf16[128,1152], index: 0, kind: input, shape index: {}]   ;;  %s2304_s1 = inlined_call_operand.vmem [shape: bf16[1152,128], index: 1, kind: input, shape index: {}]   ;;  %s2305_s2 = inlined_call_operand.vmem [shape: f32[1,128], index: 2, kind: input, shape index: {}]   ;;  %s2306_s3 = inlined_call_operand.vmem [shape: bf16[128,128], index: 3, kind: output, shape index: {}]  }
   0x1 LB: > { %s1322_s13 = sadd.s32 4294967295, %s1928_s12   ;;  %p1326_p0 = scmp.ge.s32.totalorder %s1928_s12, 1  ;;  %s1928_s12 = sphi %s1950_s12, %s13_s12  }
   0x2   : > { %p139_p1 = scmp.lt.s32.totalorder %s1928_s12, 3 }
   0x4   : > { %p140_p2 = pnand %p1326_p0, %p139_p1 }
   0x5   : > { %s1327_s30 = sshll.u32 (!%p140_p2), %s1322_s13, 3 }
   0x6   : > { %143 = sbr.rel (%p140_p2) target bundleno = 334 (0x14e), region = 32  ;;  %p165_p3 = scmp.lt.s32.totalorder (!%p140_p2), %s1327_s30, 15 }
   0xb   : > { %v1808_v0 = vld [vmem:[%s2304_s1 + $0x38] sm:$0xff]  ;;  %v1807_v2 = vld [vmem:[%s2304_s1 + $0x30] sm:$0xff]  ;;  %v1806_v6 = vld [vmem:[%s2304_s1 + $0x28] sm:$0xff]  ;;  %s2308_s30 = smov (!%p165_p3, %s1327_s30), 15 }
   0xc   : > { %v1824_v1 = vld [vmem:[%s2304_s1 + $0xb8] sm:$0xff]  ;;  %1896 = vmatpush.bf16.msra.mxu1 %v1808_v0  ;;  %981 = vmatpush.bf16.msra.mxu0 %v1808_v0  ;;  %v1823_v3 = vld [vmem:[%s2304_s1 + $0xb0] sm:$0xff]  ;;  %v1822_v7 = vld [vmem:[%s2304_s1 + $0xa8] sm:$0xff]  ;;  %s1912_s21 = smul.u32 36, %s2308_s30 }
   0xd   : > { %1039 = vmatpush.bf16.msra.mxu2 %v1824_v1  ;;  %v1832_v4 = vld [vmem:[%s2304_s1 + $0xf8] sm:$0xff]  ;;  %v1831_v5 = vld [vmem:[%s2304_s1 + $0xf0] sm:$0xff]  ;;  %v1830_v8 = vld [vmem:[%s2304_s1 + $0xe8] sm:$0xff] }
   0xe   : > { %1068 = vmatpush.bf16.msra.mxu3 %v1832_v4  ;;  %v1805_v9 = vld [vmem:[%s2304_s1 + $0x20] sm:$0xff]  ;;  %v1804_v12 = vld [vmem:[%s2304_s1 + $0x18] sm:$0xff]  ;;  %v1803_v15 = vld [vmem:[%s2304_s1 + $0x10] sm:$0xff]  ;;  %s2021_s4 = scalar_lea.vmem %s2303_s0, %s1912_s21 }
   0xf   : > { %v1821_v10 = vld [vmem:[%s2304_s1 + $0xa0] sm:$0xff]  ;;  %v1820_v13 = vld [vmem:[%s2304_s1 + $0x98] sm:$0xff]  ;;  %v1819_v16 = vld [vmem:[%s2304_s1 + $0x90] sm:$0xff] }
  0x10   : > { %1897 = vmatpush.bf16.msra.mxu1 %v1807_v2  ;;  %982 = vmatpush.bf16.msra.mxu0 %v1807_v2  ;;  %v1829_v11 = vld [vmem:[%s2304_s1 + $0xe0] sm:$0xff]  ;;  %v1828_v14 = vld [vmem:[%s2304_s1 + $0xd8] sm:$0xff]  ;;  %v1827_v17 = vld [vmem:[%s2304_s1 + $0xd0] sm:$0xff] }
  0x11   : > { %1040 = vmatpush.bf16.msra.mxu2 %v1823_v3  ;;  %v1802_v18 = vld [vmem:[%s2304_s1 + $0x8] sm:$0xff]  ;;  %v1801_v20 = vld [vmem:[%s2304_s1] sm:$0xff]  ;;  %v1405_v21 = vld [vmem:[%s2021_s4 + $0x90] sm:$0xf] }
  0x12   : > { %1069 = vmatpush.bf16.msra.mxu3 %v1831_v5  ;;  %v1818_v19 = vld [vmem:[%s2304_s1 + $0x88] sm:$0xff]  ;;  %v1816_v22 = vld [vmem:[%s2304_s1 + $0x78] sm:$0xff]  ;;  %v1787_v24 = vld [vmem:[%s2021_s4 + $0xb0] sm:$0xf0] }
  0x13   : > { %v1826_v23 = vld [vmem:[%s2304_s1 + $0xc8] sm:$0xff]  ;;  %v1333_v25 = vld [vmem:[%s2021_s4] sm:$0xf]  ;;  %v1769_v26 = vld [vmem:[%s2021_s4 + $0x20] sm:$0xf0]  ;;  %v1406_v32 = vor.u32 %v1787_v24, %v1405_v21 }
  0x14   : > { %1898 = vmatpush.bf16.msra.mxu1 %v1806_v6  ;;  %983 = vmatpush.bf16.msra.mxu0 %v1806_v6  ;;  %v1817_v27 = vld [vmem:[%s2304_s1 + $0x80] sm:$0xff]  ;;  %v1341_v28 = vld [vmem:[%s2021_s4 + $0x8] sm:$0xf]  ;;  %v1770_v29 = vld [vmem:[%s2021_s4 + $0x28] sm:$0xf0]  ;;  %v1334_v33 = vor.u32 %v1769_v26, %v1333_v25 }
  0x15   : > { %1041 = vmatpush.bf16.msra.mxu2 %v1822_v7  ;;  %v1840_v30 = vld [vmem:[%s2304_s1 + $0x138] sm:$0xff]  ;;  %v1342_v34 = vor.u32 %v1770_v29, %v1341_v28  ;;  %v1825_v35 = vld [vmem:[%s2304_s1 + $0xc0] sm:$0xff]  ;;  %v1766_v36 = vld [vmem:[%s2021_s4 + $0xc] sm:$0xf] }
  0x16   : > { %1070 = vmatpush.bf16.msra.mxu3 %v1830_v8  ;;  %v1856_v31 = vld [vmem:[%s2304_s1 + $0x1b8] sm:$0xff]  ;;  %v1343_v37 = vld [vmem:[%s2021_s4 + $0x2c] sm:$0xf0]  ;;  %v1814_v43 = vld [vmem:[%s2304_s1 + $0x68] sm:$0xff] }
  0x17   : > { %v1815_v38 = vld [vmem:[%s2304_s1 + $0x70] sm:$0xff]  ;;  %v1864_v39 = vld [vmem:[%s2304_s1 + $0x1f8] sm:$0xff]  ;;  %v1346_v42 = vor.u32 %v1766_v36, %v1343_v37  ;;  %v1838_v45 = vld [vmem:[%s2304_s1 + $0x128] sm:$0xff] }
  0x18   : > { %1899 = vmatpush.bf16.msra.mxu1 %v1805_v9  ;;  %984 = vmatpush.bf16.msra.mxu0 %v1805_v9  ;;  %v1839_v40 = vld [vmem:[%s2304_s1 + $0x130] sm:$0xff]  ;;  %v1854_v46 = vld [vmem:[%s2304_s1 + $0x1a8] sm:$0xff]  ;;  %v1813_v47 = vld [vmem:[%s2304_s1 + $0x60] sm:$0xff] }
  0x19   : > { %1042 = vmatpush.bf16.msra.mxu2 %v1821_v10  ;;  %v1855_v41 = vld [vmem:[%s2304_s1 + $0x1b0] sm:$0xff]  ;;  %v1862_v48 = vld [vmem:[%s2304_s1 + $0x1e8] sm:$0xff]  ;;  %v1837_v49 = vld [vmem:[%s2304_s1 + $0x120] sm:$0xff] }
  0x1a   : > { %1071 = vmatpush.bf16.msra.mxu3 %v1829_v11  ;;  %v1863_v44 = vld [vmem:[%s2304_s1 + $0x1f0] sm:$0xff]  ;;  %v1853_v50 = vld [vmem:[%s2304_s1 + $0x1a0] sm:$0xff]  ;;  %v1441_v51 = vld [vmem:[%s2021_s4 + $0xd8] sm:$0xf] }
  0x1b   : > { %v1796_v52 = vld [vmem:[%s2021_s4 + $0xf8] sm:$0xf0]  ;;  %v1369_v53 = vld [vmem:[%s2021_s4 + $0x48] sm:$0xf]  ;;  %v1778_v54 = vld [vmem:[%s2021_s4 + $0x68] sm:$0xf0] }
  0x1c   : > { %1900 = vmatpush.bf16.msra.mxu1 %v1804_v12  ;;  %985 = vmatpush.bf16.msra.mxu0 %v1804_v12  ;;  %v1812_v55 = vld [vmem:[%s2304_s1 + $0x58] sm:$0xff]  ;;  %v1377_v56 = vld [vmem:[%s2021_s4 + $0x50] sm:$0xf]  ;;  %v1779_v57 = vld [vmem:[%s2021_s4 + $0x70] sm:$0xf0]  ;;  %v1442_v59 = vor.u32 %v1796_v52, %v1441_v51  ;;  %v1370_v60 = vor.u32 %v1778_v54, %v1369_v53 }
  0x1d   : > { %1043 = vmatpush.bf16.msra.mxu2 %v1820_v13  ;;  %v1836_v58 = vld [vmem:[%s2304_s1 + $0x118] sm:$0xff]  ;;  %v1378_v61 = vor.u32 %v1779_v57, %v1377_v56  ;;  %v1775_v62 = vld [vmem:[%s2021_s4 + $0x54] sm:$0xf]  ;;  %v1810_v4 = vld [vmem:[%s2304_s1 + $0x48] sm:$0xff] }
  0x1e   : > { %1072 = vmatpush.bf16.msra.mxu3 %v1828_v14  ;;  %v1379_v63 = vld [vmem:[%s2021_s4 + $0x74] sm:$0xf0]  ;;  %v1811_v0 = vld [vmem:[%s2304_s1 + $0x50] sm:$0xff]  ;;  %v1861_v5 = vld [vmem:[%s2304_s1 + $0x1e0] sm:$0xff] }
  0x1f   : > { %v1835_v1 = vld [vmem:[%s2304_s1 + $0x110] sm:$0xff]  ;;  %v1382_v2 = vor.u32 %v1775_v62, %v1379_v63  ;;  %v1852_v3 = vld [vmem:[%s2304_s1 + $0x198] sm:$0xff]  ;;  %v1834_v6 = vld [vmem:[%s2304_s1 + $0x108] sm:$0xff] }
  0x20   : > { %1901 = vmatpush.bf16.msra.mxu1 %v1803_v15  ;;  %986 = vmatpush.bf16.msra.mxu0 %v1803_v15  ;;  %v1851_v7 = vld [vmem:[%s2304_s1 + $0x190] sm:$0xff]  ;;  %v1860_v8 = vld [vmem:[%s2304_s1 + $0x1d8] sm:$0xff]  ;;  %v1809_v9 = vld [vmem:[%s2304_s1 + $0x40] sm:$0xff] }
  0x21   : > { %1044 = vmatpush.bf16.msra.mxu2 %v1819_v16  ;;  %v1848_v10 = vld [vmem:[%s2304_s1 + $0x178] sm:$0xff]  ;;  %v1833_v11 = vld [vmem:[%s2304_s1 + $0x100] sm:$0xff]  ;;  %v1335_v14 = vld [vmem:[%s2021_s4 + $0x24] sm:$0xf0] }
  0x22   : > { %1073 = vmatpush.bf16.msra.mxu3 %v1827_v17  ;;  %v1765_v12 = vld [vmem:[%s2021_s4 + $0x4] sm:$0xf]  ;;  %v1872_v13 = vld [vmem:[%s2304_s1 + $0x238] sm:$0xff]  ;;  %v1349_v15 = vld [vmem:[%s2021_s4 + $0x10] sm:$0xf] }
  0x23   : > { %v1771_v16 = vld [vmem:[%s2021_s4 + $0x30] sm:$0xf0]  ;;  %v1413_v17 = vld [vmem:[%s2021_s4 + $0x98] sm:$0xf]  ;;  %v1415_v24 = vld [vmem:[%s2021_s4 + $0xbc] sm:$0xf0] }
  0x24   : > { %1902 = vmatpush.bf16.msra.mxu1 %v1802_v18  ;;  %987 = vmatpush.bf16.msra.mxu0 %v1802_v18  ;;  %v1788_v18 = vld [vmem:[%s2021_s4 + $0xb8] sm:$0xf0]  ;;  %v1350_v21 = vor.u32 %v1771_v16, %v1349_v15  ;;  %v1871_v25 = vld [vmem:[%s2304_s1 + $0x230] sm:$0xff]  ;;  %v1846_v26 = vld [vmem:[%s2304_s1 + $0x168] sm:$0xff] }
  0x25   : > { %1045 = vmatpush.bf16.msra.mxu2 %v1818_v19  ;;  %v1847_v19 = vld [vmem:[%s2304_s1 + $0x170] sm:$0xff]  ;;  %v1849_v29 = vld [vmem:[%s2304_s1 + $0x180] sm:$0xff]  ;;  %v1774_v36 = vld [vmem:[%s2021_s4 + $0x4c] sm:$0xf] }
  0x26   : > { %1074 = vmatpush.bf16.msra.mxu3 %v1826_v23  ;;  %v1784_v23 = vld [vmem:[%s2021_s4 + $0x9c] sm:$0xf]  ;;  %v1371_v37 = vld [vmem:[%s2021_s4 + $0x6c] sm:$0xf0]  ;;  %v1841_v52 = vld [vmem:[%s2304_s1 + $0x140] sm:$0xff] }
  0x27   : > { %v1418_v28 = vor.u32 %v1784_v23, %v1415_v24  ;;  %v1868_v51 = vld [vmem:[%s2304_s1 + $0x218] sm:$0xff]  ;;  %v1867_v53 = vld [vmem:[%s2304_s1 + $0x210] sm:$0xff]  ;;  %v1421_v57 = vld [vmem:[%s2021_s4 + $0xa0] sm:$0xf] }
  0x28   : > { %1903 = vmatpush.bf16.msra.mxu1 %v1801_v20  ;;  %988 = vmatpush.bf16.msra.mxu0 %v1801_v20  ;;  %v1338_v20 = vor.u32 %v1765_v12, %v1335_v14  ;;  %v1783_v54 = vld [vmem:[%s2021_s4 + $0x94] sm:$0xf]  ;;  %v1407_v56 = vld [vmem:[%s2021_s4 + $0xb4] sm:$0xf0]  ;;  %v1395_v14 = vld [vmem:[%s2021_s4 + $0x84] sm:$0xf0] }
  0x29   : > { %1046 = vmatpush.bf16.msra.mxu2 %v1817_v27  ;;  %v1850_v27 = vld [vmem:[%s2304_s1 + $0x188] sm:$0xff]  ;;  %v1767_v16 = vld [vmem:[%s2021_s4 + $0x14] sm:$0xf] }
  0x2a   : > { %1075 = vmatpush.bf16.msra.mxu3 %v1825_v35  ;;  %v1844_v35 = vld [vmem:[%s2304_s1 + $0x158] sm:$0xff] }
  0x2b   : > { %999 = vmatmul.bf16.vlgmr.msra.gmra.mxu1 %v1406_v32  ;;  %989 = vmatmul.bf16.vlgmr.msra.gmra.mxu0 %v1334_v33  ;;  %v1845_v32 = vld [vmem:[%s2304_s1 + $0x160] sm:$0xff]  ;;  %v1858_v33 = vld [vmem:[%s2304_s1 + $0x1c8] sm:$0xff] }
  0x2c   : > { %1010 = vmatpush.bf16.msrb.mxu1 %v1816_v22  ;;  %1097 = vmatpush.bf16.msrb.mxu0 %v1840_v30  ;;  %v1414_v22 = vor.u32 %v1788_v18, %v1413_v17  ;;  %v1859_v30 = vld [vmem:[%s2304_s1 + $0x1d0] sm:$0xff]  ;;  %v1351_v17 = vld [vmem:[%s2021_s4 + $0x34] sm:$0xf0]  ;;  %v1365_v18 = vld [vmem:[%s2021_s4 + $0x20] sm:$0xf] }
  0x2d   : > { %1155 = vmatpush.bf16.msrb.mxu2 %v1856_v31  ;;  %1076 = vmatmul.bf16.vlgmr.msra.gmra.mxu3 %v1346_v42  ;;  %v1870_v31 = vld [vmem:[%s2304_s1 + $0x228] sm:$0xff]  ;;  %v1843_v42 = vld [vmem:[%s2304_s1 + $0x150] sm:$0xff] }
  0x2e   : > { %1047 = vmatmul.bf16.vlgmr.msra.gmra.mxu2 %v1342_v34  ;;  %1184 = vmatpush.bf16.msrb.mxu3 %v1864_v39  ;;  %v1869_v34 = vld [vmem:[%s2304_s1 + $0x220] sm:$0xff]  ;;  %v1780_v39 = vld [vmem:[%s2021_s4 + $0x78] sm:$0xf0] }
  0x30   : > { %1011 = vmatpush.bf16.msrb.mxu1 %v1815_v38  ;;  %1098 = vmatpush.bf16.msrb.mxu0 %v1839_v40  ;;  %v1385_v38 = vld [vmem:[%s2021_s4 + $0x58] sm:$0xf]  ;;  %v1449_v40 = vld [vmem:[%s2021_s4 + $0xe0] sm:$0xf] }
  0x31   : > { %1156 = vmatpush.bf16.msrb.mxu2 %v1855_v41  ;;  %v1797_v41 = vld [vmem:[%s2021_s4 + $0x100] sm:$0xf0] }
  0x32   : > { %1185 = vmatpush.bf16.msrb.mxu3 %v1863_v44  ;;  %v1386_v44 = vor.u32 %v1780_v39, %v1385_v38  ;;  %v1467_v38 = vld [vmem:[%s2021_s4 + $0x114] sm:$0xf0] }
  0x34   : > { %1012 = vmatpush.bf16.msrb.mxu1 %v1814_v43  ;;  %1099 = vmatpush.bf16.msrb.mxu0 %v1838_v45  ;;  %v1374_v43 = vor.u32 %v1774_v36, %v1371_v37  ;;  %v1450_v45 = vor.u32 %v1797_v41, %v1449_v40  ;;  %v1795_v37 = vld [vmem:[%s2021_s4 + $0xf4] sm:$0xf]  ;;  %v1785_v40 = vld [vmem:[%s2021_s4 + $0xa4] sm:$0xf]  ;;  %v1423_v41 = vld [vmem:[%s2021_s4 + $0xc4] sm:$0xf0] }
  0x35   : > { %1157 = vmatpush.bf16.msrb.mxu2 %v1854_v46  ;;  %v1793_v46 = vld [vmem:[%s2021_s4 + $0xe4] sm:$0xf]  ;;  %v1470_v39 = vor.u32 %v1795_v37, %v1467_v38 }
  0x36   : > { %1186 = vmatpush.bf16.msrb.mxu3 %v1862_v48 }
  0x38   : > { %1013 = vmatpush.bf16.msrb.mxu1 %v1813_v47  ;;  %1100 = vmatpush.bf16.msrb.mxu0 %v1837_v49  ;;  %v1451_v47 = vld [vmem:[%s2021_s4 + $0x104] sm:$0xf0] }
  0x39   : > { %1158 = vmatpush.bf16.msrb.mxu2 %v1853_v50  ;;  %v1454_v48 = vor.u32 %v1793_v46, %v1451_v47  ;;  %v1842_v49 = vld [vmem:[%s2304_s1 + $0x148] sm:$0xff]  ;;  %v1857_v50 = vld [vmem:[%s2304_s1 + $0x1c0] sm:$0xff]  ;;  %v1426_v46 = vor.u32 %v1785_v40, %v1423_v41 }
  0x3a   : > { %1187 = vmatpush.bf16.msrb.mxu3 %v1861_v5  ;;  %v1443_v5 = vld [vmem:[%s2021_s4 + $0xfc] sm:$0xf0] }
  0x3b   : > { %1004 = vmatmul.bf16.gmra.mxu1 %v1442_v59  ;;  %994 = vmatmul.bf16.gmra.mxu0 %v1370_v60  ;;  %v1357_v59 = vld [vmem:[%s2021_s4 + $0x18] sm:$0xf]  ;;  %v1772_v60 = vld [vmem:[%s2021_s4 + $0x38] sm:$0xf0] }
  0x3c   : > { %1014 = vmatpush.bf16.msrb.mxu1 %v1812_v55  ;;  %1101 = vmatpush.bf16.msrb.mxu0 %v1836_v58  ;;  %v1866_v55 = vld [vmem:[%s2304_s1 + $0x208] sm:$0xff]  ;;  %v1789_v58 = vld [vmem:[%s2021_s4 + $0xc0] sm:$0xf0]  ;;  %v1358_v63 = vor.u32 %v1772_v60, %v1357_v59 }
  0x3d   : > { %1159 = vmatpush.bf16.msrb.mxu2 %v1852_v3  ;;  %1081 = vmatmul.bf16.gmra.mxu3 %v1382_v2  ;;  %v1422_v62 = vor.u32 %v1789_v58, %v1421_v57  ;;  %v1865_v3 = vld [vmem:[%s2304_s1 + $0x200] sm:$0xff] }
  0x3e   : > { %1052 = vmatmul.bf16.gmra.mxu2 %v1378_v61  ;;  %1188 = vmatpush.bf16.msrb.mxu3 %v1860_v8  ;;  %v1410_v61 = vor.u32 %v1783_v54, %v1407_v56  ;;  %v1393_v8 = vld [vmem:[%s2021_s4 + $0x60] sm:$0xf]  ;;  %v1459_v56 = vld [vmem:[%s2021_s4 + $0x10c] sm:$0xf0] }
  0x40   : > { %1015 = vmatpush.bf16.msrb.mxu1 %v1811_v0  ;;  %1102 = vmatpush.bf16.msrb.mxu0 %v1835_v1  ;;  %v1768_v0 = vld [vmem:[%s2021_s4 + $0x1c] sm:$0xf]  ;;  %v1359_v1 = vld [vmem:[%s2021_s4 + $0x3c] sm:$0xf0] }
  0x41   : > { %1160 = vmatpush.bf16.msrb.mxu2 %v1851_v7  ;;  %v1362_v2 = vor.u32 %v1768_v0, %v1359_v1  ;;  %v1798_v7 = vld [vmem:[%s2021_s4 + $0x108] sm:$0xf0] }
  0x42   : > { %1189 = vmatpush.bf16.msrb.mxu3 %v1859_v30  ;;  %v1401_v30 = vld [vmem:[%s2021_s4 + $0x68] sm:$0xf] }
  0x44   : > { %1016 = vmatpush.bf16.msrb.mxu1 %v1810_v4  ;;  %1103 = vmatpush.bf16.msrb.mxu0 %v1834_v6  ;;  %v1792_v4 = vld [vmem:[%s2021_s4 + $0xdc] sm:$0xf]  ;;  %v1457_v6 = vld [vmem:[%s2021_s4 + $0xe8] sm:$0xf] }
  0x45   : > { %1161 = vmatpush.bf16.msrb.mxu2 %v1850_v27 }
  0x46   : > { %1190 = vmatpush.bf16.msrb.mxu3 %v1858_v33  ;;  %v1799_v33 = vld [vmem:[%s2021_s4 + $0x110] sm:$0xf0] }
  0x48   : > { %1017 = vmatpush.bf16.msrb.mxu1 %v1809_v9  ;;  %1104 = vmatpush.bf16.msrb.mxu0 %v1833_v11  ;;  %v1781_v9 = vld [vmem:[%s2021_s4 + $0x80] sm:$0xf0]  ;;  %v1458_v11 = vor.u32 %v1798_v7, %v1457_v6 }
  0x49   : > { %1162 = vmatpush.bf16.msrb.mxu2 %v1849_v29  ;;  %v1394_v12 = vor.u32 %v1781_v9, %v1393_v8  ;;  %v1387_v29 = vld [vmem:[%s2021_s4 + $0x7c] sm:$0xf0] }
  0x4a   : > { %1191 = vmatpush.bf16.msrb.mxu3 %v1857_v50 }
  0x4b   : > { %1018 = vmatmul.bf16.vlgmr.msrb.gmra.mxu1 %v1338_v20  ;;  %1105 = vmatmul.bf16.vlgmr.msrb.gmra.mxu0 %v1350_v21  ;;  %v1429_v20 = vld [vmem:[%s2021_s4 + $0xa8] sm:$0xf]  ;;  %v1790_v21 = vld [vmem:[%s2021_s4 + $0xc8] sm:$0xf0] }
  0x4c   : > { %1126 = vmatpush.bf16.msra.mxu1 %v1848_v10  ;;  %1213 = vmatpush.bf16.msra.mxu0 %v1872_v13  ;;  %v1446_v10 = vor.u32 %v1792_v4, %v1443_v5  ;;  %v1430_v24 = vor.u32 %v1790_v21, %v1429_v20 }
  0x4d   : > { %1086 = vmatmul.bf16.gmra.mxu3 %v1418_v28  ;;  %1904 = vmatpush.bf16.msra.mxu2 %v1872_v13  ;;  %v1777_v13 = vld [vmem:[%s2021_s4 + $0x64] sm:$0xf]  ;;  %v1776_v28 = vld [vmem:[%s2021_s4 + $0x5c] sm:$0xf] }
  0x4e   : > { %1057 = vmatmul.bf16.gmra.mxu2 %v1414_v22  ;;  %v1398_v15 = vor.u32 %v1777_v13, %v1395_v14  ;;  %v1354_v22 = vor.u32 %v1767_v16, %v1351_v17 }
  0x50   : > { %1127 = vmatpush.bf16.msra.mxu1 %v1847_v19  ;;  %1214 = vmatpush.bf16.msra.mxu0 %v1871_v25  ;;  %v1773_v19 = vld [vmem:[%s2021_s4 + $0x40] sm:$0xf0] }
  0x51   : > { %1905 = vmatpush.bf16.msra.mxu2 %v1871_v25  ;;  %v1366_v23 = vor.u32 %v1773_v19, %v1365_v18  ;;  %v1786_v25 = vld [vmem:[%s2021_s4 + $0xac] sm:$0xf] }
  0x54   : > { %1128 = vmatpush.bf16.msra.mxu1 %v1846_v26  ;;  %1215 = vmatpush.bf16.msra.mxu0 %v1870_v31  ;;  %v1431_v26 = vld [vmem:[%s2021_s4 + $0xcc] sm:$0xf0] }
  0x55   : > { %1906 = vmatpush.bf16.msra.mxu2 %v1870_v31  ;;  %v1434_v27 = vor.u32 %v1786_v25, %v1431_v26  ;;  %v1782_v31 = vld [vmem:[%s2021_s4 + $0x88] sm:$0xf0] }
  0x58   : > { %1129 = vmatpush.bf16.msra.mxu1 %v1845_v32  ;;  %1216 = vmatpush.bf16.msra.mxu0 %v1869_v34  ;;  %v1465_v32 = vld [vmem:[%s2021_s4 + $0xf0] sm:$0xf] }
  0x59   : > { %1907 = vmatpush.bf16.msra.mxu2 %v1869_v34  ;;  %v1390_v34 = vor.u32 %v1776_v28, %v1387_v29  ;;  %v1466_v36 = vor.u32 %v1799_v33, %v1465_v32 }
  0x5b   : > { %1023 = vmatmul.bf16.gmra.mxu1 %v1374_v43  ;;  %1110 = vmatmul.bf16.gmra.mxu0 %v1386_v44  ;;  %v1791_v43 = vld [vmem:[%s2021_s4 + $0xd0] sm:$0xf0]  ;;  %v1473_v44 = vld [vmem:[%s2021_s4 + $0xf8] sm:$0xf] }
  0x5c   : > { %1130 = vmatpush.bf16.msra.mxu1 %v1844_v35  ;;  %1217 = vmatpush.bf16.msra.mxu0 %v1868_v51  ;;  %v1402_v35 = vor.u32 %v1782_v31, %v1401_v30 }
  0x5d   : > { %1091 = vmatmul.bf16.gmra.mxu3 %v1454_v48  ;;  %1908 = vmatpush.bf16.msra.mxu2 %v1868_v51 }
  0x5e   : > { %1062 = vmatmul.bf16.gmra.mxu2 %v1450_v45  ;;  %v1800_v45 = vld [vmem:[%s2021_s4 + $0x118] sm:$0xf0] }
  0x5f   : > { %v1474_v50 = vor.u32 %v1800_v45, %v1473_v44 }
  0x60   : > { %1131 = vmatpush.bf16.msra.mxu1 %v1843_v42  ;;  %1218 = vmatpush.bf16.msra.mxu0 %v1867_v53  ;;  %v1437_v42 = vld [vmem:[%s2021_s4 + $0xb0] sm:$0xf] }
  0x61   : > { %1909 = vmatpush.bf16.msra.mxu2 %v1867_v53  ;;  %v1438_v47 = vor.u32 %v1791_v43, %v1437_v42 }
  0x64   : > { %1132 = vmatpush.bf16.msra.mxu1 %v1842_v49  ;;  %1219 = vmatpush.bf16.msra.mxu0 %v1866_v55 }
  0x65   : > { %1910 = vmatpush.bf16.msra.mxu2 %v1866_v55  ;;  %v1794_v55 = vld [vmem:[%s2021_s4 + $0xec] sm:$0xf]  ;;  %s1330_s4 = sshll.u32 %s2308_s30, 2 }
  0x66   : > { %v1462_v57 = vor.u32 %v1794_v55, %v1459_v56  ;;  %s2284_s20 = scalar_lea.vmem %s2306_s3, %s1330_s4 }
  0x68   : > { %1133 = vmatpush.bf16.msra.mxu1 %v1841_v52  ;;  %1220 = vmatpush.bf16.msra.mxu0 %v1865_v3 }
  0x69   : > { %1911 = vmatpush.bf16.msra.mxu2 %v1865_v3 }
  0x6b   : > { %1028 = vmatmul.bf16.gmra.mxu1 %v1410_v61  ;;  %1115 = vmatmul.bf16.gmra.mxu0 %v1422_v62 }
  0x6d   : > { %1192 = vmatmul.bf16.vlgmr.msrb.gmra.mxu3 %v1362_v2  ;;  %v1921_v2 = vld [vmem:[%s2305_s2] ss:$0 sm:$0xff] }
  0x6e   : > { %1163 = vmatmul.bf16.vlgmr.msrb.gmra.mxu2 %v1358_v63 }
  0x7b   : > { %1033 = vmatmul.bf16.gmra.mxu1 %v1446_v10  ;;  %1120 = vmatmul.bf16.gmra.mxu0 %v1458_v11 }
  0x7d   : > { %1197 = vmatmul.bf16.gmra.mxu3 %v1398_v15 }
  0x7e   : > { %1168 = vmatmul.bf16.gmra.mxu2 %v1394_v12 }
  0x8b   : > { %1134 = vmatmul.bf16.vlgmr.msra.gmra.mxu1 %v1354_v22  ;;  %1221 = vmatmul.bf16.vlgmr.msra.gmra.mxu0 %v1366_v23 }
  0x8d   : > { %1202 = vmatmul.bf16.gmra.mxu3 %v1434_v27 }
  0x8e   : > { %1173 = vmatmul.bf16.gmra.mxu2 %v1430_v24 }
  0x9b   : > { %1139 = vmatmul.bf16.gmra.mxu1 %v1390_v34  ;;  %1226 = vmatmul.bf16.gmra.mxu0 %v1402_v35 }
  0x9d   : > { %1207 = vmatmul.bf16.gmra.mxu3 %v1470_v39 }
  0x9e   : > { %1178 = vmatmul.bf16.gmra.mxu2 %v1466_v36 }
  0xa8   : > { %v1000_v48 = vpop.f32.mrf.mxu1  ;;  %v990_v49 = vpop.f32.mrf.mxu0 }
  0xa9   : > { %v991_v3 = vadd.f32 %v1921_v2, %v990_v49  ;;  %v1001_v34 = vadd.f32 %v1921_v2, %v1000_v48 }
  0xab   : > { %1144 = vmatmul.bf16.gmra.mxu1 %v1426_v46  ;;  %1231 = vmatmul.bf16.gmra.mxu0 %v1438_v47 }
  0xae   : > { %1236 = vmatmul.bf16.vlgmr.msra.gmra.mxu2 %v1474_v50 }
  0xb0   : > { %v1002_v52 = vpop.f32.mrf.mxu1  ;;  %v992_v53 = vpop.f32.mrf.mxu0 }
  0xb1   : > { %v1048_v51 = vpop.f32.mrf.mxu2  ;;  %v1077_v54 = vpop.f32.mrf.mxu3  ;;  %v993_v11 = vadd.f32 %v1921_v2, %v992_v53  ;;  %v1003_v42 = vadd.f32 %v1921_v2, %v1002_v52 }
  0xb8   : > { %v1005_v59 = vpop.f32.mrf.mxu1  ;;  %v995_v60 = vpop.f32.mrf.mxu0 }
  0xb9   : > { %v1050_v58 = vpop.f32.mrf.mxu2  ;;  %v2254_v61 = vpop.f32.mrf.mxu3  ;;  %v996_v19 = vadd.f32 %v1921_v2, %v995_v60  ;;  %v1006_v48 = vadd.f32 %v1921_v2, %v1005_v59 }
  0xbb   : > { %1149 = vmatmul.bf16.gmra.mxu1 %v1462_v57 }
  0xc0   : > { %v1007_v63 = vpop.f32.mrf.mxu1  ;;  %v997_v0 = vpop.f32.mrf.mxu0 }
  0xc1   : > { %v1053_v62 = vpop.f32.mrf.mxu2  ;;  %v1082_v1 = vpop.f32.mrf.mxu3  ;;  %v998_v26 = vadd.f32 %v1921_v2, %v997_v0  ;;  %v1008_v52 = vadd.f32 %v1921_v2, %v1007_v63 }
  0xc8   : > { %v1019_v5 = vpop.f32.mrf.mxu1  ;;  %v1106_v6 = vpop.f32.mrf.mxu0 }
  0xc9   : > { %v1055_v4 = vpop.f32.mrf.mxu2  ;;  %v1020_v7 = vadd.f32 %v1019_v5, %v991_v3  ;;  %v2259_v9 = vpop.f32.mrf.mxu3 }
  0xcb   : > { %v1049_v8 = vadd.f32 %v1048_v51, %v1020_v7 }
  0xcd   : > { %v1078_v10 = vadd.f32 %v1077_v54, %v1049_v8 }
  0xcf   : > { %v1107_v12 = vadd.f32 %v1106_v6, %v1078_v10 }
  0xd0   : > { %v1021_v14 = vpop.f32.mrf.mxu1  ;;  %v1108_v15 = vpop.f32.mrf.mxu0 }
  0xd1   : > { %v1058_v13 = vpop.f32.mrf.mxu2  ;;  %v1022_v16 = vadd.f32 %v1021_v14, %v993_v11  ;;  %v1087_v18 = vpop.f32.mrf.mxu3 }
  0xd3   : > { %v1051_v17 = vadd.f32 %v1050_v58, %v1022_v16 }
  0xd5   : > { %v1080_v10 = vadd.f32 %v2254_v61, %v1051_v17 }
  0xd8   : > { %v1024_v21 = vpop.f32.mrf.mxu1  ;;  %v1111_v22 = vpop.f32.mrf.mxu0 }
  0xd9   : > { %v1060_v20 = vpop.f32.mrf.mxu2  ;;  %v1025_v23 = vadd.f32 %v1024_v21, %v996_v19  ;;  %v2261_v29 = vpop.f32.mrf.mxu3 }
  0xdb   : > { %v1054_v24 = vadd.f32 %v1053_v62, %v1025_v23 }
  0xdd   : > { %v1083_v25 = vadd.f32 %v1082_v1, %v1054_v24 }
  0xdf   : > { %v1112_v27 = vadd.f32 %v1111_v22, %v1083_v25 }
  0xe0   : > { %v1026_v30 = vpop.f32.mrf.mxu1  ;;  %v2263_v31 = vpop.f32.mrf.mxu0 }
  0xe1   : > { %v1063_v28 = vpop.f32.mrf.mxu2  ;;  %v1027_v32 = vadd.f32 %v1026_v30, %v998_v26  ;;  %v1092_v39 = vpop.f32.mrf.mxu3 }
  0xe3   : > { %v1056_v33 = vadd.f32 %v1055_v4, %v1027_v32 }
  0xe5   : > { %v1085_v61 = vadd.f32 %v2259_v9, %v1056_v33 }
  0xe8   : > { %v1029_v36 = vpop.f32.mrf.mxu1  ;;  %v1116_v37 = vpop.f32.mrf.mxu0 }
  0xe9   : > { %v1065_v35 = vpop.f32.mrf.mxu2  ;;  %v1030_v38 = vadd.f32 %v1029_v36, %v1001_v34  ;;  %v2271_v50 = vpop.f32.mrf.mxu3  ;;  %v1114_v34 = vadd.f32 %v2263_v31, %v1085_v61 }
  0xeb   : > { %v1059_v40 = vadd.f32 %v1058_v13, %v1030_v38  ;;  %v1109_v13 = vadd.f32 %v1108_v15, %v1080_v10 }
  0xed   : > { %v1088_v41 = vadd.f32 %v1087_v18, %v1059_v40 }
  0xef   : > { %v2265_v43 = vadd.f32 %v1116_v37, %v1088_v41 }
  0xf0   : > { %v1031_v45 = vpop.f32.mrf.mxu1  ;;  %v2267_v46 = vpop.f32.mrf.mxu0 }
  0xf1   : > { %v1164_v44 = vpop.f32.mrf.mxu2  ;;  %v1032_v47 = vadd.f32 %v1031_v45, %v1003_v42  ;;  %v1193_v58 = vpop.f32.mrf.mxu3 }
  0xf3   : > { %v2269_v49 = vadd.f32 %v1060_v20, %v1032_v47 }
  0xf5   : > { %v1090_v31 = vadd.f32 %v2261_v29, %v2269_v49 }
  0xf8   : > { %v1034_v53 = vpop.f32.mrf.mxu1  ;;  %v1121_v54 = vpop.f32.mrf.mxu0 }
  0xf9   : > { %v1166_v51 = vpop.f32.mrf.mxu2  ;;  %v1035_v55 = vadd.f32 %v1034_v53, %v1006_v48  ;;  %v1195_v5 = vpop.f32.mrf.mxu3 }
  0xfb   : > { %v1064_v56 = vadd.f32 %v1063_v28, %v1035_v55 }
  0xfd   : > { %v1093_v57 = vadd.f32 %v1092_v39, %v1064_v56 }
  0xff   : > { %v2273_v60 = vadd.f32 %v1121_v54, %v1093_v57  ;;  %v1119_v54 = vadd.f32 %v2267_v46, %v1090_v31 }
 0x100   : > { %v1036_v0 = vpop.f32.mrf.mxu1  ;;  %v2275_v1 = vpop.f32.mrf.mxu0 }
 0x101   : > { %v1169_v62 = vpop.f32.mrf.mxu2  ;;  %v1037_v3 = vadd.f32 %v1036_v0, %v1008_v52  ;;  %v1198_v18 = vpop.f32.mrf.mxu3 }
 0x103   : > { %v2277_v4 = vadd.f32 %v1065_v35, %v1037_v3 }
 0x105   : > { %v1095_v46 = vadd.f32 %v2271_v50, %v2277_v4 }
 0x108   : > { %v1135_v6 = vpop.f32.mrf.mxu1  ;;  %v1222_v59 = vpop.f32.mrf.mxu0 }
 0x109   : > { %v1136_v7 = vadd.f32 %v1135_v6, %v1107_v12  ;;  %v1171_v8 = vpop.f32.mrf.mxu2  ;;  %v1200_v17 = vpop.f32.mrf.mxu3 }
 0x10b   : > { %v1165_v11 = vadd.f32 %v1164_v44, %v1136_v7 }
 0x10d   : > { %v1194_v14 = vadd.f32 %v1193_v58, %v1165_v11 }
 0x10f   : > { %v1223_v21 = vadd.f32 %v1222_v59, %v1194_v14 }
 0x110   : > { %v1137_v63 = vpop.f32.mrf.mxu1  ;;  %v1224_v2 = vpop.f32.mrf.mxu0 }
 0x111   : > { %v1138_v16 = vadd.f32 %v1137_v63, %v1109_v13  ;;  %v1174_v20 = vpop.f32.mrf.mxu2  ;;  %v1242_v26 = vmax.f32 %v1223_v21, 0.0  ;;  %v1203_v41 = vpop.f32.mrf.mxu3  ;;  %v1124_v13 = vadd.f32 %v2275_v1, %v1095_v46 }
 0x113   : > { %v1167_v19 = vadd.f32 %v1166_v51, %v1138_v16 }
 0x115   : > { %v1196_v22 = vadd.f32 %v1195_v5, %v1167_v19 }
 0x117   : > { %v1225_v23 = vadd.f32 %v1224_v2, %v1196_v22 }
 0x118   : > { %v1140_v24 = vpop.f32.mrf.mxu1  ;;  %v1227_v25 = vpop.f32.mrf.mxu0 }
 0x119   : > { %v1243_v12 = vmax.f32 %v1225_v23, 0.0  ;;  %v1141_v28 = vadd.f32 %v1140_v24, %v1112_v27  ;;  %v1176_v32 = vpop.f32.mrf.mxu2  ;;  %v1205_v55 = vpop.f32.mrf.mxu3 }
 0x11b   : > { %v1876_v15 = vpack.c.bf16 %v1243_v12, %v1242_v26  ;;  %v1170_v30 = vadd.f32 %v1169_v62, %v1141_v28 }
 0x11d   : > { %1877 = vst [vmem:[%s2284_s20] sm:$0xff] %v1876_v15   ;;  %v1199_v37 = vadd.f32 %v1198_v18, %v1170_v30 }
 0x11f   : > { %v1228_v39 = vadd.f32 %v1227_v25, %v1199_v37 }
 0x120   : > { %v1142_v35 = vpop.f32.mrf.mxu1  ;;  %v1229_v36 = vpop.f32.mrf.mxu0 }
 0x121   : > { %v1143_v27 = vadd.f32 %v1142_v35, %v1114_v34  ;;  %v1179_v44 = vpop.f32.mrf.mxu2  ;;  %v1244_v9 = vmax.f32 %v1228_v39, 0.0  ;;  %v1208_v49 = vpop.f32.mrf.mxu3 }
 0x123   : > { %v1172_v38 = vadd.f32 %v1171_v8, %v1143_v27 }
 0x125   : > { %v1201_v40 = vadd.f32 %v1200_v17, %v1172_v38 }
 0x127   : > { %v1230_v42 = vadd.f32 %v1229_v36, %v1201_v40 }
 0x128   : > { %v1145_v45 = vpop.f32.mrf.mxu1  ;;  %v1232_v48 = vpop.f32.mrf.mxu0 }
 0x129   : > { %v1245_v33 = vmax.f32 %v1230_v42, 0.0  ;;  %v1146_v47 = vadd.f32 %v1145_v45, %v2265_v43  ;;  %v1181_v52 = vpop.f32.mrf.mxu2  ;;  %v1210_v18 = vpop.f32.mrf.mxu3 }
 0x12b   : > { %v1881_v51 = vpack.c.bf16 %v1245_v33, %v1244_v9  ;;  %v1175_v53 = vadd.f32 %v1174_v20, %v1146_v47 }
 0x12d   : > { %1893 = vst [vmem:[%s2284_s20 + $0x8] sm:$0xff] %v1881_v51   ;;  %v1204_v57 = vadd.f32 %v1203_v41, %v1175_v53 }
 0x12f   : > { %v1233_v3 = vadd.f32 %v1232_v48, %v1204_v57 }
 0x130   : > { %v1147_v56 = vpop.f32.mrf.mxu1  ;;  %v1234_v0 = vpop.f32.mrf.mxu0 }
 0x131   : > { %v1148_v58 = vadd.f32 %v1147_v56, %v1119_v54  ;;  %v1246_v59 = vmax.f32 %v1233_v3, 0.0  ;;  %v1237_v10 = vpop.f32.mrf.mxu2 }
 0x133   : > { %v1177_v62 = vadd.f32 %v1176_v32, %v1148_v58 }
 0x135   : > { %v1206_v5 = vadd.f32 %v1205_v55, %v1177_v62 }
 0x137   : > { %v1235_v43 = vadd.f32 %v1234_v0, %v1206_v5 }
 0x138   : > { %v1150_v6 = vpop.f32.mrf.mxu1 }
 0x139   : > { %v1247_v7 = vmax.f32 %v1235_v43, 0.0  ;;  %v1151_v29 = vadd.f32 %v1150_v6, %v2273_v60  ;;  %v1239_v21 = vpop.f32.mrf.mxu2 }
 0x13b   : > { %v1886_v8 = vpack.c.bf16 %v1247_v7, %v1246_v59  ;;  %v1180_v11 = vadd.f32 %v1179_v44, %v1151_v29 }
 0x13d   : > { %1894 = vst [vmem:[%s2284_s20 + $0x10] sm:$0xff] %v1886_v8   ;;  %v1209_v2 = vadd.f32 %v1208_v49, %v1180_v11 }
 0x13f   : > { %v1238_v19 = vadd.f32 %v1237_v10, %v1209_v2 }
 0x140   : > { %v1152_v63 = vpop.f32.mrf.mxu1 }
 0x141   : > { %v1153_v14 = vadd.f32 %v1152_v63, %v1124_v13  ;;  %v1248_v22 = vmax.f32 %v1238_v19, 0.0 }
 0x143   : > { %v1182_v16 = vadd.f32 %v1181_v52, %v1153_v14 }
 0x145   : > { %v1211_v20 = vadd.f32 %v1210_v18, %v1182_v16 }
 0x147   : > { %v1240_v60 = vadd.f32 %v1239_v21, %v1211_v20 }
 0x149   : > { %v1249_v23 = vmax.f32 %v1240_v60, 0.0 }
 0x14b   : > { %v1891_v24 = vpack.c.bf16 %v1249_v23, %v1248_v22 }
 0x14d   : > { %1895 = vst [vmem:[%s2284_s20 + $0x18] sm:$0xff] %v1891_v24  }
 0x14e PF: > { %s13_s12 = sadd.s32 1, %s1928_s12  }
 0x14f   : > { %p10_p4 = scmp.ge.s32.totalorder %s13_s12, 4  }
 0x151   :  { %12 = sbr.rel (!%p10_p4) target bundleno = 1 (0x1), region = 62 }

// kernel: geolocalization_forward.22
= control target key start
LH: loop header
LB: loop body
LE: loop exit
PB: predicated region body
PF: predicated region fallthrough
CT: control target
= control target key end

     0   :  { %s422_s12 = smov 0   ;;  %s466_s0 = inlined_call_operand.vmem [shape: bf16[32,128], index: 0, kind: input, shape index: {}]   ;;  %s467_s1 = inlined_call_operand.vmem [shape: bf16[128,128], index: 1, kind: input, shape index: {}]   ;;  %s468_s2 = inlined_call_operand.vmem [shape: f32[1,128], index: 2, kind: input, shape index: {}]   ;;  %s469_s3 = inlined_call_operand.vmem [shape: bf16[32,128], index: 3, kind: output, shape index: {}]  }
   0x1 LB: > { %s324_s13 = sadd.s32 4294967295, %s400_s12   ;;  %p328_p0 = scmp.ge.s32.totalorder %s400_s12, 1  ;;  %s400_s12 = sphi %s422_s12, %s13_s12  }
   0x2   : > { %p138_p1 = scmp.lt.s32.totalorder %s400_s12, 3 }
   0x4   : > { %p139_p2 = pnand %p328_p0, %p138_p1 }
   0x5   : > { %s329_s22 = sshll.u32 (!%p139_p2), %s324_s13, 1 }
   0x6   : > { %142 = sbr.rel (%p139_p2) target bundleno = 182 (0xb6), region = 32  ;;  %p163_p3 = scmp.lt.s32.totalorder (!%p139_p2), %s329_s22, 3 }
   0xb   : > { %v379_v0 = vld [vmem:[%s467_s1 + $0x38] sm:$0xff]  ;;  %v378_v1 = vld [vmem:[%s467_s1 + $0x30] sm:$0xff]  ;;  %v377_v2 = vld [vmem:[%s467_s1 + $0x28] sm:$0xff]  ;;  %s471_s22 = smov (!%p163_p3, %s329_s22), 3 }
   0xc   : > { %250 = vmatpush.bf16.msra.mxu0 %v379_v0  ;;  %v376_v3 = vld [vmem:[%s467_s1 + $0x20] sm:$0xff]  ;;  %v375_v4 = vld [vmem:[%s467_s1 + $0x18] sm:$0xff]  ;;  %v374_v5 = vld [vmem:[%s467_s1 + $0x10] sm:$0xff]  ;;  %s330_s29 = sshll.u32 %s471_s22, 2 }
   0xd   : > { %v373_v6 = vld [vmem:[%s467_s1 + $0x8] sm:$0xff]  ;;  %v372_v7 = vld [vmem:[%s467_s1] sm:$0xff]  ;;  %s166_s7 = scalar_lea.vmem %s466_s0, %s330_s29  ;;  %s172_s13 = scalar_lea.vmem %s469_s3, %s330_s29 }
   0xe   : > { %v371_v8 = vld [vmem:[%s166_s7] sm:$0xff] }
   0xf   : > { %v393_v10 = vld [vmem:[%s468_s2] ss:$0 sm:$0xff] }
  0x10   : > { %251 = vmatpush.bf16.msra.mxu0 %v378_v1 }
  0x14   : > { %252 = vmatpush.bf16.msra.mxu0 %v377_v2 }
  0x18   : > { %253 = vmatpush.bf16.msra.mxu0 %v376_v3 }
  0x1c   : > { %254 = vmatpush.bf16.msra.mxu0 %v375_v4 }
  0x20   : > { %255 = vmatpush.bf16.msra.mxu0 %v374_v5 }
  0x24   : > { %256 = vmatpush.bf16.msra.mxu0 %v373_v6 }
  0x28   : > { %257 = vmatpush.bf16.msra.mxu0 %v372_v7 }
  0x2b   : > { %258 = vmatmul.bf16.vlgmr.msra.gmra.mxu0 %v371_v8 }
  0xa8   : > { %v259_v9 = vpop.f32.mrf.mxu0 }
  0xa9   : > { %v260_v12 = vadd.f32 %v393_v10, %v259_v9 }
  0xb0   : > { %v261_v11 = vpop.f32.mrf.mxu0 }
  0xb1   : > { %v262_v13 = vadd.f32 %v393_v10, %v261_v11 }
  0xb3   : > { %v383_v14 = vpack.c.bf16 %v262_v13, %v260_v12 }
  0xb5   : > { %384 = vst [vmem:[%s172_s13] sm:$0xff] %v383_v14  }
  0xb6 PF: > { %s13_s12 = sadd.s32 1, %s400_s12  }
  0xb7   : > { %p10_p4 = scmp.ge.s32.totalorder %s13_s12, 4  }
  0xb9   :  { %12 = sbr.rel (!%p10_p4) target bundleno = 1 (0x1), region = 62 }

// kernel: geolocalization_forward.18
= control target key start
LH: loop header
LB: loop body
LE: loop exit
PB: predicated region body
PF: predicated region fallthrough
CT: control target
= control target key end

     0   :  { %s2061_s15 = smov 0   ;;  %s2426_s0 = inlined_call_operand.vmem [shape: bf16[128,1152], index: 0, kind: input, shape index: {}]   ;;  %s2427_s1 = inlined_call_operand.vmem [shape: bf16[1152,128], index: 1, kind: input, shape index: {}]   ;;  %s2428_s2 = inlined_call_operand.vmem [shape: f32[1,128], index: 2, kind: input, shape index: {}]   ;;  %s2429_s3 = inlined_call_operand.vmem [shape: bf16[128,128], index: 3, kind: input, shape index: {}]   ;;  %s2430_s4 = inlined_call_operand.vmem [shape: bf16[128,128], index: 4, kind: output, shape index: {}]  }
   0x1 LB: > { %s1407_s16 = sadd.s32 4294967295, %s2034_s15   ;;  %p1411_p0 = scmp.ge.s32.totalorder %s2034_s15, 1  ;;  %s2034_s15 = sphi %s2061_s15, %s14_s15  }
   0x2   : > { %p175_p1 = scmp.lt.s32.totalorder %s2034_s15, 3 }
   0x4   : > { %p176_p2 = pnand %p1411_p0, %p175_p1 }
   0x5   : > { %s1412_s7 = sshll.u32 (!%p176_p2), %s1407_s16, 3 }
   0x6   : > { %179 = sbr.rel (%p176_p2) target bundleno = 336 (0x150), region = 36  ;;  %p208_p3 = scmp.lt.s32.totalorder (!%p176_p2), %s1412_s7, 15 }
   0xb   : > { %v1895_v0 = vld [vmem:[%s2427_s1 + $0x38] sm:$0xff]  ;;  %v1894_v2 = vld [vmem:[%s2427_s1 + $0x30] sm:$0xff]  ;;  %v1893_v6 = vld [vmem:[%s2427_s1 + $0x28] sm:$0xff]  ;;  %s2432_s7 = smov (!%p208_p3, %s1412_s7), 15 }
   0xc   : > { %v1911_v1 = vld [vmem:[%s2427_s1 + $0xb8] sm:$0xff]  ;;  %2002 = vmatpush.bf16.msra.mxu1 %v1895_v0  ;;  %1030 = vmatpush.bf16.msra.mxu0 %v1895_v0  ;;  %v1910_v3 = vld [vmem:[%s2427_s1 + $0xb0] sm:$0xff]  ;;  %v1909_v7 = vld [vmem:[%s2427_s1 + $0xa8] sm:$0xff]  ;;  %s2018_s25 = smul.u32 36, %s2432_s7 }
   0xd   : > { %1088 = vmatpush.bf16.msra.mxu2 %v1911_v1  ;;  %v1919_v4 = vld [vmem:[%s2427_s1 + $0xf8] sm:$0xff]  ;;  %v1918_v5 = vld [vmem:[%s2427_s1 + $0xf0] sm:$0xff]  ;;  %v1917_v8 = vld [vmem:[%s2427_s1 + $0xe8] sm:$0xff] }
   0xe   : > { %1117 = vmatpush.bf16.msra.mxu3 %v1919_v4  ;;  %v1892_v9 = vld [vmem:[%s2427_s1 + $0x20] sm:$0xff]  ;;  %v1891_v12 = vld [vmem:[%s2427_s1 + $0x18] sm:$0xff]  ;;  %v1890_v15 = vld [vmem:[%s2427_s1 + $0x10] sm:$0xff]  ;;  %s2132_s9 = scalar_lea.vmem %s2426_s0, %s2018_s25 }
   0xf   : > { %v1908_v10 = vld [vmem:[%s2427_s1 + $0xa0] sm:$0xff]  ;;  %v1907_v13 = vld [vmem:[%s2427_s1 + $0x98] sm:$0xff]  ;;  %v1906_v16 = vld [vmem:[%s2427_s1 + $0x90] sm:$0xff] }
  0x10   : > { %2003 = vmatpush.bf16.msra.mxu1 %v1894_v2  ;;  %1031 = vmatpush.bf16.msra.mxu0 %v1894_v2  ;;  %v1916_v11 = vld [vmem:[%s2427_s1 + $0xe0] sm:$0xff]  ;;  %v1915_v14 = vld [vmem:[%s2427_s1 + $0xd8] sm:$0xff]  ;;  %v1914_v17 = vld [vmem:[%s2427_s1 + $0xd0] sm:$0xff] }
  0x11   : > { %1089 = vmatpush.bf16.msra.mxu2 %v1910_v3  ;;  %v1889_v18 = vld [vmem:[%s2427_s1 + $0x8] sm:$0xff]  ;;  %v1888_v20 = vld [vmem:[%s2427_s1] sm:$0xff]  ;;  %v1492_v21 = vld [vmem:[%s2132_s9 + $0x90] sm:$0xf] }
  0x12   : > { %1118 = vmatpush.bf16.msra.mxu3 %v1918_v5  ;;  %v1905_v19 = vld [vmem:[%s2427_s1 + $0x88] sm:$0xff]  ;;  %v1903_v22 = vld [vmem:[%s2427_s1 + $0x78] sm:$0xff]  ;;  %v1874_v24 = vld [vmem:[%s2132_s9 + $0xb0] sm:$0xf0] }
  0x13   : > { %v1913_v23 = vld [vmem:[%s2427_s1 + $0xc8] sm:$0xff]  ;;  %v1420_v25 = vld [vmem:[%s2132_s9] sm:$0xf]  ;;  %v1856_v26 = vld [vmem:[%s2132_s9 + $0x20] sm:$0xf0]  ;;  %v1493_v32 = vor.u32 %v1874_v24, %v1492_v21 }
  0x14   : > { %2004 = vmatpush.bf16.msra.mxu1 %v1893_v6  ;;  %1032 = vmatpush.bf16.msra.mxu0 %v1893_v6  ;;  %v1904_v27 = vld [vmem:[%s2427_s1 + $0x80] sm:$0xff]  ;;  %v1428_v28 = vld [vmem:[%s2132_s9 + $0x8] sm:$0xf]  ;;  %v1857_v29 = vld [vmem:[%s2132_s9 + $0x28] sm:$0xf0]  ;;  %v1421_v33 = vor.u32 %v1856_v26, %v1420_v25 }
  0x15   : > { %1090 = vmatpush.bf16.msra.mxu2 %v1909_v7  ;;  %v1927_v30 = vld [vmem:[%s2427_s1 + $0x138] sm:$0xff]  ;;  %v1429_v34 = vor.u32 %v1857_v29, %v1428_v28  ;;  %v1912_v35 = vld [vmem:[%s2427_s1 + $0xc0] sm:$0xff]  ;;  %v1853_v36 = vld [vmem:[%s2132_s9 + $0xc] sm:$0xf] }
  0x16   : > { %1119 = vmatpush.bf16.msra.mxu3 %v1917_v8  ;;  %v1943_v31 = vld [vmem:[%s2427_s1 + $0x1b8] sm:$0xff]  ;;  %v1430_v37 = vld [vmem:[%s2132_s9 + $0x2c] sm:$0xf0]  ;;  %v1901_v43 = vld [vmem:[%s2427_s1 + $0x68] sm:$0xff] }
  0x17   : > { %v1902_v38 = vld [vmem:[%s2427_s1 + $0x70] sm:$0xff]  ;;  %v1951_v39 = vld [vmem:[%s2427_s1 + $0x1f8] sm:$0xff]  ;;  %v1433_v42 = vor.u32 %v1853_v36, %v1430_v37  ;;  %v1925_v45 = vld [vmem:[%s2427_s1 + $0x128] sm:$0xff] }
  0x18   : > { %2005 = vmatpush.bf16.msra.mxu1 %v1892_v9  ;;  %1033 = vmatpush.bf16.msra.mxu0 %v1892_v9  ;;  %v1926_v40 = vld [vmem:[%s2427_s1 + $0x130] sm:$0xff]  ;;  %v1941_v46 = vld [vmem:[%s2427_s1 + $0x1a8] sm:$0xff]  ;;  %v1900_v47 = vld [vmem:[%s2427_s1 + $0x60] sm:$0xff] }
  0x19   : > { %1091 = vmatpush.bf16.msra.mxu2 %v1908_v10  ;;  %v1942_v41 = vld [vmem:[%s2427_s1 + $0x1b0] sm:$0xff]  ;;  %v1949_v48 = vld [vmem:[%s2427_s1 + $0x1e8] sm:$0xff]  ;;  %v1924_v49 = vld [vmem:[%s2427_s1 + $0x120] sm:$0xff] }
  0x1a   : > { %1120 = vmatpush.bf16.msra.mxu3 %v1916_v11  ;;  %v1950_v44 = vld [vmem:[%s2427_s1 + $0x1f0] sm:$0xff]  ;;  %v1940_v50 = vld [vmem:[%s2427_s1 + $0x1a0] sm:$0xff]  ;;  %v1528_v51 = vld [vmem:[%s2132_s9 + $0xd8] sm:$0xf] }
  0x1b   : > { %v1883_v52 = vld [vmem:[%s2132_s9 + $0xf8] sm:$0xf0]  ;;  %v1456_v53 = vld [vmem:[%s2132_s9 + $0x48] sm:$0xf]  ;;  %v1865_v54 = vld [vmem:[%s2132_s9 + $0x68] sm:$0xf0] }
  0x1c   : > { %2006 = vmatpush.bf16.msra.mxu1 %v1891_v12  ;;  %1034 = vmatpush.bf16.msra.mxu0 %v1891_v12  ;;  %v1899_v55 = vld [vmem:[%s2427_s1 + $0x58] sm:$0xff]  ;;  %v1464_v56 = vld [vmem:[%s2132_s9 + $0x50] sm:$0xf]  ;;  %v1866_v57 = vld [vmem:[%s2132_s9 + $0x70] sm:$0xf0]  ;;  %v1529_v59 = vor.u32 %v1883_v52, %v1528_v51  ;;  %v1457_v60 = vor.u32 %v1865_v54, %v1456_v53 }
  0x1d   : > { %1092 = vmatpush.bf16.msra.mxu2 %v1907_v13  ;;  %v1923_v58 = vld [vmem:[%s2427_s1 + $0x118] sm:$0xff]  ;;  %v1465_v61 = vor.u32 %v1866_v57, %v1464_v56  ;;  %v1862_v62 = vld [vmem:[%s2132_s9 + $0x54] sm:$0xf]  ;;  %v1897_v4 = vld [vmem:[%s2427_s1 + $0x48] sm:$0xff] }
  0x1e   : > { %1121 = vmatpush.bf16.msra.mxu3 %v1915_v14  ;;  %v1466_v63 = vld [vmem:[%s2132_s9 + $0x74] sm:$0xf0]  ;;  %v1898_v0 = vld [vmem:[%s2427_s1 + $0x50] sm:$0xff]  ;;  %v1948_v5 = vld [vmem:[%s2427_s1 + $0x1e0] sm:$0xff] }
  0x1f   : > { %v1922_v1 = vld [vmem:[%s2427_s1 + $0x110] sm:$0xff]  ;;  %v1469_v2 = vor.u32 %v1862_v62, %v1466_v63  ;;  %v1939_v3 = vld [vmem:[%s2427_s1 + $0x198] sm:$0xff]  ;;  %v1921_v6 = vld [vmem:[%s2427_s1 + $0x108] sm:$0xff] }
  0x20   : > { %2007 = vmatpush.bf16.msra.mxu1 %v1890_v15  ;;  %1035 = vmatpush.bf16.msra.mxu0 %v1890_v15  ;;  %v1938_v7 = vld [vmem:[%s2427_s1 + $0x190] sm:$0xff]  ;;  %v1947_v8 = vld [vmem:[%s2427_s1 + $0x1d8] sm:$0xff]  ;;  %v1896_v9 = vld [vmem:[%s2427_s1 + $0x40] sm:$0xff] }
  0x21   : > { %1093 = vmatpush.bf16.msra.mxu2 %v1906_v16  ;;  %v1935_v10 = vld [vmem:[%s2427_s1 + $0x178] sm:$0xff]  ;;  %v1920_v11 = vld [vmem:[%s2427_s1 + $0x100] sm:$0xff]  ;;  %v1422_v14 = vld [vmem:[%s2132_s9 + $0x24] sm:$0xf0] }
  0x22   : > { %1122 = vmatpush.bf16.msra.mxu3 %v1914_v17  ;;  %v1852_v12 = vld [vmem:[%s2132_s9 + $0x4] sm:$0xf]  ;;  %v1959_v13 = vld [vmem:[%s2427_s1 + $0x238] sm:$0xff]  ;;  %v1436_v15 = vld [vmem:[%s2132_s9 + $0x10] sm:$0xf] }
  0x23   : > { %v1858_v16 = vld [vmem:[%s2132_s9 + $0x30] sm:$0xf0]  ;;  %v1500_v17 = vld [vmem:[%s2132_s9 + $0x98] sm:$0xf]  ;;  %v1502_v24 = vld [vmem:[%s2132_s9 + $0xbc] sm:$0xf0] }
  0x24   : > { %2008 = vmatpush.bf16.msra.mxu1 %v1889_v18  ;;  %1036 = vmatpush.bf16.msra.mxu0 %v1889_v18  ;;  %v1875_v18 = vld [vmem:[%s2132_s9 + $0xb8] sm:$0xf0]  ;;  %v1437_v21 = vor.u32 %v1858_v16, %v1436_v15  ;;  %v1958_v25 = vld [vmem:[%s2427_s1 + $0x230] sm:$0xff]  ;;  %v1933_v26 = vld [vmem:[%s2427_s1 + $0x168] sm:$0xff] }
  0x25   : > { %1094 = vmatpush.bf16.msra.mxu2 %v1905_v19  ;;  %v1934_v19 = vld [vmem:[%s2427_s1 + $0x170] sm:$0xff]  ;;  %v1936_v29 = vld [vmem:[%s2427_s1 + $0x180] sm:$0xff]  ;;  %v1861_v36 = vld [vmem:[%s2132_s9 + $0x4c] sm:$0xf] }
  0x26   : > { %1123 = vmatpush.bf16.msra.mxu3 %v1913_v23  ;;  %v1871_v23 = vld [vmem:[%s2132_s9 + $0x9c] sm:$0xf]  ;;  %v1458_v37 = vld [vmem:[%s2132_s9 + $0x6c] sm:$0xf0]  ;;  %v1928_v52 = vld [vmem:[%s2427_s1 + $0x140] sm:$0xff] }
  0x27   : > { %v1505_v28 = vor.u32 %v1871_v23, %v1502_v24  ;;  %v1955_v51 = vld [vmem:[%s2427_s1 + $0x218] sm:$0xff]  ;;  %v1954_v53 = vld [vmem:[%s2427_s1 + $0x210] sm:$0xff]  ;;  %v1508_v57 = vld [vmem:[%s2132_s9 + $0xa0] sm:$0xf] }
  0x28   : > { %2009 = vmatpush.bf16.msra.mxu1 %v1888_v20  ;;  %1037 = vmatpush.bf16.msra.mxu0 %v1888_v20  ;;  %v1425_v20 = vor.u32 %v1852_v12, %v1422_v14  ;;  %v1870_v54 = vld [vmem:[%s2132_s9 + $0x94] sm:$0xf]  ;;  %v1494_v56 = vld [vmem:[%s2132_s9 + $0xb4] sm:$0xf0]  ;;  %v1482_v14 = vld [vmem:[%s2132_s9 + $0x84] sm:$0xf0] }
  0x29   : > { %1095 = vmatpush.bf16.msra.mxu2 %v1904_v27  ;;  %v1937_v27 = vld [vmem:[%s2427_s1 + $0x188] sm:$0xff]  ;;  %v1854_v16 = vld [vmem:[%s2132_s9 + $0x14] sm:$0xf] }
  0x2a   : > { %1124 = vmatpush.bf16.msra.mxu3 %v1912_v35  ;;  %v1931_v35 = vld [vmem:[%s2427_s1 + $0x158] sm:$0xff] }
  0x2b   : > { %1048 = vmatmul.bf16.vlgmr.msra.gmra.mxu1 %v1493_v32  ;;  %1038 = vmatmul.bf16.vlgmr.msra.gmra.mxu0 %v1421_v33  ;;  %v1932_v32 = vld [vmem:[%s2427_s1 + $0x160] sm:$0xff]  ;;  %v1945_v33 = vld [vmem:[%s2427_s1 + $0x1c8] sm:$0xff] }
  0x2c   : > { %1059 = vmatpush.bf16.msrb.mxu1 %v1903_v22  ;;  %1146 = vmatpush.bf16.msrb.mxu0 %v1927_v30  ;;  %v1501_v22 = vor.u32 %v1875_v18, %v1500_v17  ;;  %v1946_v30 = vld [vmem:[%s2427_s1 + $0x1d0] sm:$0xff]  ;;  %v1438_v17 = vld [vmem:[%s2132_s9 + $0x34] sm:$0xf0]  ;;  %v1452_v18 = vld [vmem:[%s2132_s9 + $0x20] sm:$0xf] }
  0x2d   : > { %1204 = vmatpush.bf16.msrb.mxu2 %v1943_v31  ;;  %1125 = vmatmul.bf16.vlgmr.msra.gmra.mxu3 %v1433_v42  ;;  %v1957_v31 = vld [vmem:[%s2427_s1 + $0x228] sm:$0xff]  ;;  %v1930_v42 = vld [vmem:[%s2427_s1 + $0x150] sm:$0xff] }
  0x2e   : > { %1096 = vmatmul.bf16.vlgmr.msra.gmra.mxu2 %v1429_v34  ;;  %1233 = vmatpush.bf16.msrb.mxu3 %v1951_v39  ;;  %v1956_v34 = vld [vmem:[%s2427_s1 + $0x220] sm:$0xff]  ;;  %v1867_v39 = vld [vmem:[%s2132_s9 + $0x78] sm:$0xf0] }
  0x30   : > { %1060 = vmatpush.bf16.msrb.mxu1 %v1902_v38  ;;  %1147 = vmatpush.bf16.msrb.mxu0 %v1926_v40  ;;  %v1472_v38 = vld [vmem:[%s2132_s9 + $0x58] sm:$0xf]  ;;  %v1536_v40 = vld [vmem:[%s2132_s9 + $0xe0] sm:$0xf] }
  0x31   : > { %1205 = vmatpush.bf16.msrb.mxu2 %v1942_v41  ;;  %v1884_v41 = vld [vmem:[%s2132_s9 + $0x100] sm:$0xf0] }
  0x32   : > { %1234 = vmatpush.bf16.msrb.mxu3 %v1950_v44  ;;  %v1473_v44 = vor.u32 %v1867_v39, %v1472_v38  ;;  %v1554_v38 = vld [vmem:[%s2132_s9 + $0x114] sm:$0xf0] }
  0x34   : > { %1061 = vmatpush.bf16.msrb.mxu1 %v1901_v43  ;;  %1148 = vmatpush.bf16.msrb.mxu0 %v1925_v45  ;;  %v1461_v43 = vor.u32 %v1861_v36, %v1458_v37  ;;  %v1537_v45 = vor.u32 %v1884_v41, %v1536_v40  ;;  %v1882_v37 = vld [vmem:[%s2132_s9 + $0xf4] sm:$0xf]  ;;  %v1872_v40 = vld [vmem:[%s2132_s9 + $0xa4] sm:$0xf]  ;;  %v1510_v41 = vld [vmem:[%s2132_s9 + $0xc4] sm:$0xf0] }
  0x35   : > { %1206 = vmatpush.bf16.msrb.mxu2 %v1941_v46  ;;  %v1880_v46 = vld [vmem:[%s2132_s9 + $0xe4] sm:$0xf]  ;;  %v1557_v39 = vor.u32 %v1882_v37, %v1554_v38 }
  0x36   : > { %1235 = vmatpush.bf16.msrb.mxu3 %v1949_v48 }
  0x38   : > { %1062 = vmatpush.bf16.msrb.mxu1 %v1900_v47  ;;  %1149 = vmatpush.bf16.msrb.mxu0 %v1924_v49  ;;  %v1538_v47 = vld [vmem:[%s2132_s9 + $0x104] sm:$0xf0] }
  0x39   : > { %1207 = vmatpush.bf16.msrb.mxu2 %v1940_v50  ;;  %v1541_v48 = vor.u32 %v1880_v46, %v1538_v47  ;;  %v1929_v49 = vld [vmem:[%s2427_s1 + $0x148] sm:$0xff]  ;;  %v1944_v50 = vld [vmem:[%s2427_s1 + $0x1c0] sm:$0xff]  ;;  %v1513_v46 = vor.u32 %v1872_v40, %v1510_v41 }
  0x3a   : > { %1236 = vmatpush.bf16.msrb.mxu3 %v1948_v5  ;;  %v1530_v5 = vld [vmem:[%s2132_s9 + $0xfc] sm:$0xf0] }
  0x3b   : > { %1053 = vmatmul.bf16.gmra.mxu1 %v1529_v59  ;;  %1043 = vmatmul.bf16.gmra.mxu0 %v1457_v60  ;;  %v1444_v59 = vld [vmem:[%s2132_s9 + $0x18] sm:$0xf]  ;;  %v1859_v60 = vld [vmem:[%s2132_s9 + $0x38] sm:$0xf0] }
  0x3c   : > { %1063 = vmatpush.bf16.msrb.mxu1 %v1899_v55  ;;  %1150 = vmatpush.bf16.msrb.mxu0 %v1923_v58  ;;  %v1953_v55 = vld [vmem:[%s2427_s1 + $0x208] sm:$0xff]  ;;  %v1876_v58 = vld [vmem:[%s2132_s9 + $0xc0] sm:$0xf0]  ;;  %v1445_v63 = vor.u32 %v1859_v60, %v1444_v59 }
  0x3d   : > { %1208 = vmatpush.bf16.msrb.mxu2 %v1939_v3  ;;  %1130 = vmatmul.bf16.gmra.mxu3 %v1469_v2  ;;  %v1509_v62 = vor.u32 %v1876_v58, %v1508_v57  ;;  %v1952_v3 = vld [vmem:[%s2427_s1 + $0x200] sm:$0xff] }
  0x3e   : > { %1101 = vmatmul.bf16.gmra.mxu2 %v1465_v61  ;;  %1237 = vmatpush.bf16.msrb.mxu3 %v1947_v8  ;;  %v1497_v61 = vor.u32 %v1870_v54, %v1494_v56  ;;  %v1480_v8 = vld [vmem:[%s2132_s9 + $0x60] sm:$0xf]  ;;  %v1546_v56 = vld [vmem:[%s2132_s9 + $0x10c] sm:$0xf0] }
  0x40   : > { %1064 = vmatpush.bf16.msrb.mxu1 %v1898_v0  ;;  %1151 = vmatpush.bf16.msrb.mxu0 %v1922_v1  ;;  %v1855_v0 = vld [vmem:[%s2132_s9 + $0x1c] sm:$0xf]  ;;  %v1446_v1 = vld [vmem:[%s2132_s9 + $0x3c] sm:$0xf0] }
  0x41   : > { %1209 = vmatpush.bf16.msrb.mxu2 %v1938_v7  ;;  %v1449_v2 = vor.u32 %v1855_v0, %v1446_v1  ;;  %v1885_v7 = vld [vmem:[%s2132_s9 + $0x108] sm:$0xf0] }
  0x42   : > { %1238 = vmatpush.bf16.msrb.mxu3 %v1946_v30  ;;  %v1488_v30 = vld [vmem:[%s2132_s9 + $0x68] sm:$0xf] }
  0x44   : > { %1065 = vmatpush.bf16.msrb.mxu1 %v1897_v4  ;;  %1152 = vmatpush.bf16.msrb.mxu0 %v1921_v6  ;;  %v1879_v4 = vld [vmem:[%s2132_s9 + $0xdc] sm:$0xf]  ;;  %v1544_v6 = vld [vmem:[%s2132_s9 + $0xe8] sm:$0xf] }
  0x45   : > { %1210 = vmatpush.bf16.msrb.mxu2 %v1937_v27 }
  0x46   : > { %1239 = vmatpush.bf16.msrb.mxu3 %v1945_v33  ;;  %v1886_v33 = vld [vmem:[%s2132_s9 + $0x110] sm:$0xf0] }
  0x48   : > { %1066 = vmatpush.bf16.msrb.mxu1 %v1896_v9  ;;  %1153 = vmatpush.bf16.msrb.mxu0 %v1920_v11  ;;  %v1868_v9 = vld [vmem:[%s2132_s9 + $0x80] sm:$0xf0]  ;;  %v1545_v11 = vor.u32 %v1885_v7, %v1544_v6 }
  0x49   : > { %1211 = vmatpush.bf16.msrb.mxu2 %v1936_v29  ;;  %v1481_v12 = vor.u32 %v1868_v9, %v1480_v8  ;;  %v1474_v29 = vld [vmem:[%s2132_s9 + $0x7c] sm:$0xf0] }
  0x4a   : > { %1240 = vmatpush.bf16.msrb.mxu3 %v1944_v50 }
  0x4b   : > { %1067 = vmatmul.bf16.vlgmr.msrb.gmra.mxu1 %v1425_v20  ;;  %1154 = vmatmul.bf16.vlgmr.msrb.gmra.mxu0 %v1437_v21  ;;  %v1516_v20 = vld [vmem:[%s2132_s9 + $0xa8] sm:$0xf]  ;;  %v1877_v21 = vld [vmem:[%s2132_s9 + $0xc8] sm:$0xf0] }
  0x4c   : > { %1175 = vmatpush.bf16.msra.mxu1 %v1935_v10  ;;  %1262 = vmatpush.bf16.msra.mxu0 %v1959_v13  ;;  %v1533_v10 = vor.u32 %v1879_v4, %v1530_v5  ;;  %v1517_v24 = vor.u32 %v1877_v21, %v1516_v20 }
  0x4d   : > { %1135 = vmatmul.bf16.gmra.mxu3 %v1505_v28  ;;  %2010 = vmatpush.bf16.msra.mxu2 %v1959_v13  ;;  %v1864_v13 = vld [vmem:[%s2132_s9 + $0x64] sm:$0xf]  ;;  %v1863_v28 = vld [vmem:[%s2132_s9 + $0x5c] sm:$0xf] }
  0x4e   : > { %1106 = vmatmul.bf16.gmra.mxu2 %v1501_v22  ;;  %v1485_v15 = vor.u32 %v1864_v13, %v1482_v14  ;;  %v1441_v22 = vor.u32 %v1854_v16, %v1438_v17 }
  0x50   : > { %1176 = vmatpush.bf16.msra.mxu1 %v1934_v19  ;;  %1263 = vmatpush.bf16.msra.mxu0 %v1958_v25  ;;  %v1860_v19 = vld [vmem:[%s2132_s9 + $0x40] sm:$0xf0] }
  0x51   : > { %2011 = vmatpush.bf16.msra.mxu2 %v1958_v25  ;;  %v1453_v23 = vor.u32 %v1860_v19, %v1452_v18  ;;  %v1873_v25 = vld [vmem:[%s2132_s9 + $0xac] sm:$0xf] }
  0x54   : > { %1177 = vmatpush.bf16.msra.mxu1 %v1933_v26  ;;  %1264 = vmatpush.bf16.msra.mxu0 %v1957_v31  ;;  %v1518_v26 = vld [vmem:[%s2132_s9 + $0xcc] sm:$0xf0] }
  0x55   : > { %2012 = vmatpush.bf16.msra.mxu2 %v1957_v31  ;;  %v1521_v27 = vor.u32 %v1873_v25, %v1518_v26  ;;  %v1869_v31 = vld [vmem:[%s2132_s9 + $0x88] sm:$0xf0] }
  0x58   : > { %1178 = vmatpush.bf16.msra.mxu1 %v1932_v32  ;;  %1265 = vmatpush.bf16.msra.mxu0 %v1956_v34  ;;  %v1552_v32 = vld [vmem:[%s2132_s9 + $0xf0] sm:$0xf] }
  0x59   : > { %2013 = vmatpush.bf16.msra.mxu2 %v1956_v34  ;;  %v1477_v34 = vor.u32 %v1863_v28, %v1474_v29  ;;  %v1553_v36 = vor.u32 %v1886_v33, %v1552_v32 }
  0x5b   : > { %1072 = vmatmul.bf16.gmra.mxu1 %v1461_v43  ;;  %1159 = vmatmul.bf16.gmra.mxu0 %v1473_v44  ;;  %v1878_v43 = vld [vmem:[%s2132_s9 + $0xd0] sm:$0xf0]  ;;  %v1560_v44 = vld [vmem:[%s2132_s9 + $0xf8] sm:$0xf] }
  0x5c   : > { %1179 = vmatpush.bf16.msra.mxu1 %v1931_v35  ;;  %1266 = vmatpush.bf16.msra.mxu0 %v1955_v51  ;;  %v1489_v35 = vor.u32 %v1869_v31, %v1488_v30 }
  0x5d   : > { %1140 = vmatmul.bf16.gmra.mxu3 %v1541_v48  ;;  %2014 = vmatpush.bf16.msra.mxu2 %v1955_v51 }
  0x5e   : > { %1111 = vmatmul.bf16.gmra.mxu2 %v1537_v45  ;;  %v1887_v45 = vld [vmem:[%s2132_s9 + $0x118] sm:$0xf0] }
  0x5f   : > { %v1561_v50 = vor.u32 %v1887_v45, %v1560_v44 }
  0x60   : > { %1180 = vmatpush.bf16.msra.mxu1 %v1930_v42  ;;  %1267 = vmatpush.bf16.msra.mxu0 %v1954_v53  ;;  %v1524_v42 = vld [vmem:[%s2132_s9 + $0xb0] sm:$0xf] }
  0x61   : > { %2015 = vmatpush.bf16.msra.mxu2 %v1954_v53  ;;  %v1525_v47 = vor.u32 %v1878_v43, %v1524_v42 }
  0x64   : > { %1181 = vmatpush.bf16.msra.mxu1 %v1929_v49  ;;  %1268 = vmatpush.bf16.msra.mxu0 %v1953_v55 }
  0x65   : > { %2016 = vmatpush.bf16.msra.mxu2 %v1953_v55  ;;  %v1881_v55 = vld [vmem:[%s2132_s9 + $0xec] sm:$0xf]  ;;  %s1415_s9 = sshll.u32 %s2432_s7, 2 }
  0x66   : > { %v1549_v57 = vor.u32 %v1881_v55, %v1546_v56  ;;  %s2397_s29 = scalar_lea.vmem %s2429_s3, %s1415_s9  ;;  %s2405_s5 = scalar_lea.vmem %s2430_s4, %s1415_s9 }
  0x68   : > { %1182 = vmatpush.bf16.msra.mxu1 %v1928_v52  ;;  %1269 = vmatpush.bf16.msra.mxu0 %v1952_v3 }
  0x69   : > { %2017 = vmatpush.bf16.msra.mxu2 %v1952_v3 }
  0x6b   : > { %1077 = vmatmul.bf16.gmra.mxu1 %v1497_v61  ;;  %1164 = vmatmul.bf16.gmra.mxu0 %v1509_v62 }
  0x6d   : > { %1241 = vmatmul.bf16.vlgmr.msrb.gmra.mxu3 %v1449_v2  ;;  %v2027_v2 = vld [vmem:[%s2428_s2] ss:$0 sm:$0xff] }
  0x6e   : > { %1212 = vmatmul.bf16.vlgmr.msrb.gmra.mxu2 %v1445_v63 }
  0x7b   : > { %1082 = vmatmul.bf16.gmra.mxu1 %v1533_v10  ;;  %1169 = vmatmul.bf16.gmra.mxu0 %v1545_v11 }
  0x7d   : > { %1246 = vmatmul.bf16.gmra.mxu3 %v1485_v15 }
  0x7e   : > { %1217 = vmatmul.bf16.gmra.mxu2 %v1481_v12 }
  0x8b   : > { %1183 = vmatmul.bf16.vlgmr.msra.gmra.mxu1 %v1441_v22  ;;  %1270 = vmatmul.bf16.vlgmr.msra.gmra.mxu0 %v1453_v23 }
  0x8d   : > { %1251 = vmatmul.bf16.gmra.mxu3 %v1521_v27 }
  0x8e   : > { %1222 = vmatmul.bf16.gmra.mxu2 %v1517_v24 }
  0x9b   : > { %1188 = vmatmul.bf16.gmra.mxu1 %v1477_v34  ;;  %1275 = vmatmul.bf16.gmra.mxu0 %v1489_v35 }
  0x9d   : > { %1256 = vmatmul.bf16.gmra.mxu3 %v1557_v39 }
  0x9e   : > { %1227 = vmatmul.bf16.gmra.mxu2 %v1553_v36 }
  0xa8   : > { %v1049_v48 = vpop.f32.mrf.mxu1  ;;  %v1039_v49 = vpop.f32.mrf.mxu0 }
  0xa9   : > { %v1040_v3 = vadd.f32 %v2027_v2, %v1039_v49  ;;  %v1050_v34 = vadd.f32 %v2027_v2, %v1049_v48 }
  0xab   : > { %1193 = vmatmul.bf16.gmra.mxu1 %v1513_v46  ;;  %1280 = vmatmul.bf16.gmra.mxu0 %v1525_v47 }
  0xae   : > { %1285 = vmatmul.bf16.vlgmr.msra.gmra.mxu2 %v1561_v50 }
  0xb0   : > { %v1051_v52 = vpop.f32.mrf.mxu1  ;;  %v1041_v53 = vpop.f32.mrf.mxu0 }
  0xb1   : > { %v1097_v51 = vpop.f32.mrf.mxu2  ;;  %v1126_v54 = vpop.f32.mrf.mxu3  ;;  %v1042_v11 = vadd.f32 %v2027_v2, %v1041_v53  ;;  %v1052_v42 = vadd.f32 %v2027_v2, %v1051_v52 }
  0xb8   : > { %v1054_v59 = vpop.f32.mrf.mxu1  ;;  %v1044_v60 = vpop.f32.mrf.mxu0 }
  0xb9   : > { %v1099_v58 = vpop.f32.mrf.mxu2  ;;  %v2365_v61 = vpop.f32.mrf.mxu3  ;;  %v1045_v19 = vadd.f32 %v2027_v2, %v1044_v60  ;;  %v1055_v48 = vadd.f32 %v2027_v2, %v1054_v59 }
  0xbb   : > { %1198 = vmatmul.bf16.gmra.mxu1 %v1549_v57 }
  0xc0   : > { %v1056_v63 = vpop.f32.mrf.mxu1  ;;  %v1046_v0 = vpop.f32.mrf.mxu0 }
  0xc1   : > { %v1102_v62 = vpop.f32.mrf.mxu2  ;;  %v1131_v1 = vpop.f32.mrf.mxu3  ;;  %v1047_v26 = vadd.f32 %v2027_v2, %v1046_v0 }
  0xc8   : > { %v1068_v5 = vpop.f32.mrf.mxu1  ;;  %v1155_v6 = vpop.f32.mrf.mxu0 }
  0xc9   : > { %v1104_v4 = vpop.f32.mrf.mxu2  ;;  %v1069_v7 = vadd.f32 %v1068_v5, %v1040_v3  ;;  %v2370_v9 = vpop.f32.mrf.mxu3 }
  0xcb   : > { %v1098_v8 = vadd.f32 %v1097_v51, %v1069_v7 }
  0xcd   : > { %v1127_v10 = vadd.f32 %v1126_v54, %v1098_v8 }
  0xcf   : > { %v1156_v12 = vadd.f32 %v1155_v6, %v1127_v10 }
  0xd0   : > { %v1070_v14 = vpop.f32.mrf.mxu1  ;;  %v1157_v15 = vpop.f32.mrf.mxu0 }
  0xd1   : > { %v1107_v13 = vpop.f32.mrf.mxu2  ;;  %v1071_v16 = vadd.f32 %v1070_v14, %v1042_v11  ;;  %v1136_v18 = vpop.f32.mrf.mxu3 }
  0xd3   : > { %v1100_v17 = vadd.f32 %v1099_v58, %v1071_v16  ;;  %v1057_v58 = vadd.f32 %v2027_v2, %v1056_v63 }
  0xd5   : > { %v1129_v10 = vadd.f32 %v2365_v61, %v1100_v17 }
  0xd7   : > { %v1158_v63 = vadd.f32 %v1157_v15, %v1129_v10 }
  0xd8   : > { %v1073_v21 = vpop.f32.mrf.mxu1  ;;  %v1160_v22 = vpop.f32.mrf.mxu0 }
  0xd9   : > { %v1109_v20 = vpop.f32.mrf.mxu2  ;;  %v1074_v23 = vadd.f32 %v1073_v21, %v1045_v19  ;;  %v2374_v29 = vpop.f32.mrf.mxu3 }
  0xdb   : > { %v1103_v24 = vadd.f32 %v1102_v62, %v1074_v23 }
  0xdd   : > { %v1132_v25 = vadd.f32 %v1131_v1, %v1103_v24 }
  0xdf   : > { %v2372_v27 = vadd.f32 %v1160_v22, %v1132_v25 }
  0xe0   : > { %v1075_v30 = vpop.f32.mrf.mxu1  ;;  %v2376_v31 = vpop.f32.mrf.mxu0 }
  0xe1   : > { %v1112_v28 = vpop.f32.mrf.mxu2  ;;  %v1076_v32 = vadd.f32 %v1075_v30, %v1047_v26  ;;  %v1141_v39 = vpop.f32.mrf.mxu3 }
  0xe3   : > { %v1105_v33 = vadd.f32 %v1104_v4, %v1076_v32 }
  0xe5   : > { %v1134_v30 = vadd.f32 %v2370_v9, %v1105_v33 }
  0xe8   : > { %v1078_v36 = vpop.f32.mrf.mxu1  ;;  %v1165_v37 = vpop.f32.mrf.mxu0 }
  0xe9   : > { %v1114_v35 = vpop.f32.mrf.mxu2  ;;  %v1079_v38 = vadd.f32 %v1078_v36, %v1050_v34  ;;  %v2384_v50 = vpop.f32.mrf.mxu3 }
  0xeb   : > { %v1108_v40 = vadd.f32 %v1107_v13, %v1079_v38  ;;  %v1961_v13 = vld [vmem:[%s2397_s29] sm:$0xff]  }
  0xec   : > { %v1963_v61 = vunpack.c.h.bf16 %v1961_v13 }
  0xed   : > { %v1137_v41 = vadd.f32 %v1136_v18, %v1108_v40 }
  0xef   : > { %v2378_v43 = vadd.f32 %v1165_v37, %v1137_v41  ;;  %v1996_v41 = vld [vmem:[%s2397_s29 + $0x8] sm:$0xff]  }
  0xf0   : > { %v1080_v45 = vpop.f32.mrf.mxu1  ;;  %v2380_v46 = vpop.f32.mrf.mxu0 }
  0xf1   : > { %v1213_v44 = vpop.f32.mrf.mxu2  ;;  %v1081_v47 = vadd.f32 %v1080_v45, %v1052_v42  ;;  %v1242_v52 = vpop.f32.mrf.mxu3 }
  0xf3   : > { %v2382_v49 = vadd.f32 %v1109_v20, %v1081_v47 }
  0xf8   : > { %v1083_v53 = vpop.f32.mrf.mxu1  ;;  %v1170_v54 = vpop.f32.mrf.mxu0 }
  0xf9   : > { %v1215_v51 = vpop.f32.mrf.mxu2  ;;  %v1084_v55 = vadd.f32 %v1083_v53, %v1055_v48  ;;  %v1244_v5 = vpop.f32.mrf.mxu3  ;;  %v1967_v48 = vunpack.c.h.bf16 %v1996_v41 }
  0xfb   : > { %v1113_v56 = vadd.f32 %v1112_v28, %v1084_v55 }
  0xfd   : > { %v1142_v57 = vadd.f32 %v1141_v39, %v1113_v56  ;;  %v1163_v39 = vadd.f32 %v2376_v31, %v1134_v30 }
  0xff   : > { %v2386_v60 = vadd.f32 %v1170_v54, %v1142_v57 }
 0x100   : > { %v1085_v0 = vpop.f32.mrf.mxu1  ;;  %v2388_v1 = vpop.f32.mrf.mxu0 }
 0x101   : > { %v1218_v62 = vpop.f32.mrf.mxu2  ;;  %v1086_v3 = vadd.f32 %v1085_v0, %v1057_v58  ;;  %v1247_v19 = vpop.f32.mrf.mxu3  ;;  %v1139_v58 = vadd.f32 %v2374_v29, %v2382_v49 }
 0x103   : > { %v2390_v4 = vadd.f32 %v1114_v35, %v1086_v3 }
 0x108   : > { %v1184_v59 = vpop.f32.mrf.mxu1  ;;  %v1271_v6 = vpop.f32.mrf.mxu0 }
 0x109   : > { %v1185_v7 = vadd.f32 %v1184_v59, %v1156_v12  ;;  %v1220_v8 = vpop.f32.mrf.mxu2  ;;  %v1962_v12 = vunpack.c.l.bf16 %v1961_v13  ;;  %v1249_v36 = vpop.f32.mrf.mxu3  ;;  %v1168_v59 = vadd.f32 %v2380_v46, %v1139_v58 }
 0x10b   : > { %v1214_v11 = vadd.f32 %v1213_v44, %v1185_v7  ;;  %v1966_v44 = vunpack.c.l.bf16 %v1996_v41 }
 0x10d   : > { %v1243_v2 = vadd.f32 %v1242_v52, %v1214_v11 }
 0x10f   : > { %v1272_v20 = vadd.f32 %v1271_v6, %v1243_v2 }
 0x110   : > { %v1186_v14 = vpop.f32.mrf.mxu1  ;;  %v1273_v16 = vpop.f32.mrf.mxu0 }
 0x111   : > { %v1187_v18 = vadd.f32 %v1186_v14, %v1158_v63  ;;  %v1223_v22 = vpop.f32.mrf.mxu2  ;;  %v1307_v17 = vadd.f32 %v1962_v12, %v1272_v20 }
 0x113   : > { %v1216_v21 = vadd.f32 %v1215_v51, %v1187_v18  ;;  %v1315_v32 = vmax.f32 %v1307_v17, 0.0  ;;  %v1252_v51 = vpop.f32.mrf.mxu3 }
 0x115   : > { %v1245_v23 = vadd.f32 %v1244_v5, %v1216_v21  ;;  %v1144_v21 = vadd.f32 %v2384_v50, %v2390_v4 }
 0x117   : > { %v1274_v24 = vadd.f32 %v1273_v16, %v1245_v23 }
 0x118   : > { %v1189_v25 = vpop.f32.mrf.mxu1  ;;  %v1276_v26 = vpop.f32.mrf.mxu0 }
 0x119   : > { %v1308_v28 = vadd.f32 %v1963_v61, %v1274_v24  ;;  %v1190_v15 = vadd.f32 %v1189_v25, %v2372_v27  ;;  %v1225_v38 = vpop.f32.mrf.mxu2  ;;  %v1173_v25 = vadd.f32 %v2388_v1, %v1144_v21 }
 0x11b   : > { %v1316_v34 = vmax.f32 %v1308_v28, 0.0  ;;  %v1219_v35 = vadd.f32 %v1218_v62, %v1190_v15  ;;  %v1254_v7 = vpop.f32.mrf.mxu3  ;;  %v1998_v28 = vld [vmem:[%s2397_s29 + $0x18] sm:$0xff]  }
 0x11d   : > { %v1979_v37 = vpack.c.bf16 %v1316_v34, %v1315_v32  ;;  %v1248_v40 = vadd.f32 %v1247_v19, %v1219_v35  ;;  %v1974_v34 = vunpack.c.l.bf16 %v1998_v28 }
 0x11f   : > { %1980 = vst [vmem:[%s2405_s5] sm:$0xff] %v1979_v37   ;;  %v1277_v33 = vadd.f32 %v1276_v26, %v1248_v40  ;;  %v1975_v37 = vunpack.c.h.bf16 %v1998_v28 }
 0x120   : > { %v1191_v27 = vpop.f32.mrf.mxu1  ;;  %v1278_v42 = vpop.f32.mrf.mxu0 }
 0x121   : > { %v1192_v9 = vadd.f32 %v1191_v27, %v1163_v39  ;;  %v1309_v53 = vadd.f32 %v1966_v44, %v1277_v33  ;;  %v1228_v55 = vpop.f32.mrf.mxu2 }
 0x123   : > { %v1221_v45 = vadd.f32 %v1220_v8, %v1192_v9  ;;  %v1317_v62 = vmax.f32 %v1309_v53, 0.0  ;;  %v1997_v8 = vld [vmem:[%s2397_s29 + $0x10] sm:$0xff]   ;;  %v1257_v12 = vpop.f32.mrf.mxu3 }
 0x124   : > { %v1970_v13 = vunpack.c.l.bf16 %v1997_v8  ;;  %v1971_v29 = vunpack.c.h.bf16 %v1997_v8 }
 0x125   : > { %v1250_v47 = vadd.f32 %v1249_v36, %v1221_v45 }
 0x127   : > { %v1279_v54 = vadd.f32 %v1278_v42, %v1250_v47 }
 0x128   : > { %v1194_v56 = vpop.f32.mrf.mxu1  ;;  %v1281_v52 = vpop.f32.mrf.mxu0 }
 0x129   : > { %v1310_v57 = vadd.f32 %v1967_v48, %v1279_v54  ;;  %v1195_v31 = vadd.f32 %v1194_v56, %v2378_v43  ;;  %v1230_v63 = vpop.f32.mrf.mxu2 }
 0x12b   : > { %v1318_v0 = vmax.f32 %v1310_v57, 0.0  ;;  %v1224_v3 = vadd.f32 %v1223_v22, %v1195_v31  ;;  %v1259_v35 = vpop.f32.mrf.mxu3 }
 0x12d   : > { %v1984_v5 = vpack.c.bf16 %v1318_v0, %v1317_v62  ;;  %v1253_v6 = vadd.f32 %v1252_v51, %v1224_v3 }
 0x12f   : > { %1999 = vst [vmem:[%s2405_s5 + $0x8] sm:$0xff] %v1984_v5   ;;  %v1282_v2 = vadd.f32 %v1281_v52, %v1253_v6 }
 0x130   : > { %v1196_v10 = vpop.f32.mrf.mxu1  ;;  %v1283_v14 = vpop.f32.mrf.mxu0 }
 0x131   : > { %v1197_v11 = vadd.f32 %v1196_v10, %v1168_v59  ;;  %v1311_v49 = vadd.f32 %v1970_v13, %v1282_v2  ;;  %v1286_v17 = vpop.f32.mrf.mxu2 }
 0x133   : > { %v1226_v43 = vadd.f32 %v1225_v38, %v1197_v11  ;;  %v1319_v22 = vmax.f32 %v1311_v49, 0.0 }
 0x135   : > { %v1255_v16 = vadd.f32 %v1254_v7, %v1226_v43 }
 0x137   : > { %v1284_v18 = vadd.f32 %v1283_v14, %v1255_v16 }
 0x138   : > { %v1199_v19 = vpop.f32.mrf.mxu1 }
 0x139   : > { %v1312_v20 = vadd.f32 %v1971_v29, %v1284_v18  ;;  %v1200_v46 = vadd.f32 %v1199_v19, %v2386_v60  ;;  %v1288_v50 = vpop.f32.mrf.mxu2 }
 0x13b   : > { %v1320_v23 = vmax.f32 %v1312_v20, 0.0  ;;  %v1229_v61 = vadd.f32 %v1228_v55, %v1200_v46 }
 0x13d   : > { %v1989_v24 = vpack.c.bf16 %v1320_v23, %v1319_v22  ;;  %v1258_v26 = vadd.f32 %v1257_v12, %v1229_v61 }
 0x13f   : > { %2000 = vst [vmem:[%s2405_s5 + $0x10] sm:$0xff] %v1989_v24   ;;  %v1287_v32 = vadd.f32 %v1286_v17, %v1258_v26 }
 0x140   : > { %v1201_v15 = vpop.f32.mrf.mxu1 }
 0x141   : > { %v1202_v30 = vadd.f32 %v1201_v15, %v1173_v25  ;;  %v1313_v4 = vadd.f32 %v1974_v34, %v1287_v32 }
 0x143   : > { %v1231_v60 = vadd.f32 %v1230_v63, %v1202_v30  ;;  %v1321_v40 = vmax.f32 %v1313_v4, 0.0 }
 0x145   : > { %v1260_v36 = vadd.f32 %v1259_v35, %v1231_v60 }
 0x147   : > { %v1289_v38 = vadd.f32 %v1288_v50, %v1260_v36 }
 0x149   : > { %v1314_v39 = vadd.f32 %v1975_v37, %v1289_v38 }
 0x14b   : > { %v1322_v41 = vmax.f32 %v1314_v39, 0.0 }
 0x14d   : > { %v1994_v27 = vpack.c.bf16 %v1322_v41, %v1321_v40 }
 0x14f   : > { %2001 = vst [vmem:[%s2405_s5 + $0x18] sm:$0xff] %v1994_v27  }
 0x150 PF: > { %s14_s15 = sadd.s32 1, %s2034_s15  }
 0x151   : > { %p11_p4 = scmp.ge.s32.totalorder %s14_s15, 4  }
 0x153   :  { %13 = sbr.rel (!%p11_p4) target bundleno = 1 (0x1), region = 69 }

// kernel: geolocalization_forward.27
= control target key start
LH: loop header
LB: loop body
LE: loop exit
PB: predicated region body
PF: predicated region fallthrough
CT: control target
= control target key end

     0   :  { %s373_s1 = inlined_call_operand.vmem [shape: bf16[128,256], index: 1, kind: input, shape index: {}]   ;;  %s374_s0 = inlined_call_operand.vmem [shape: bf16[16,128], index: 0, kind: input, shape index: {}]   ;;  %s375_s2 = inlined_call_operand.vmem [shape: f32[1,256], index: 2, kind: input, shape index: {}]   ;;  %s376_s3 = inlined_call_operand.vmem [shape: bf16[16,256], index: 3, kind: output, shape index: {}]  }
   0x1   :  { %v222_v0 = vld [vmem:[%s373_s1 + $0x70] sm:$0xf]  ;;  %v244_v1 = vld [vmem:[%s373_s1 + $0x74] sm:$0xf0]  ;;  %v243_v2 = vld [vmem:[%s373_s1 + $0x74] sm:$0xf] }
   0x2   :  { %v223_v3 = vor.u32 %v244_v1, %v222_v0  ;;  %v224_v4 = vld [vmem:[%s373_s1 + $0x78] sm:$0xf0]  ;;  %v214_v5 = vld [vmem:[%s373_s1 + $0x60] sm:$0xf]  ;;  %v242_v6 = vld [vmem:[%s373_s1 + $0x64] sm:$0xf0] }
   0x3   :  { %v227_v7 = vor.u32 %v243_v2, %v224_v4  ;;  %v241_v8 = vld [vmem:[%s373_s1 + $0x64] sm:$0xf]  ;;  %v216_v9 = vld [vmem:[%s373_s1 + $0x68] sm:$0xf0]  ;;  %v215_v10 = vor.u32 %v242_v6, %v214_v5  ;;  %v206_v12 = vld [vmem:[%s373_s1 + $0x50] sm:$0xf] }
   0x4   :  { %124 = vmatpush.bf16.msra.mxu0 %v223_v3  ;;  %v219_v11 = vor.u32 %v241_v8, %v216_v9  ;;  %v240_v13 = vld [vmem:[%s373_s1 + $0x54] sm:$0xf0]  ;;  %v239_v14 = vld [vmem:[%s373_s1 + $0x54] sm:$0xf]  ;;  %v208_v15 = vld [vmem:[%s373_s1 + $0x58] sm:$0xf0] }
   0x5   :  { %138 = vmatpush.bf16.msra.mxu1 %v227_v7  ;;  %v207_v16 = vor.u32 %v240_v13, %v206_v12  ;;  %v211_v17 = vor.u32 %v239_v14, %v208_v15  ;;  %v198_v18 = vld [vmem:[%s373_s1 + $0x40] sm:$0xf]  ;;  %v238_v19 = vld [vmem:[%s373_s1 + $0x44] sm:$0xf0]  ;;  %v237_v20 = vld [vmem:[%s373_s1 + $0x44] sm:$0xf] }
   0x6   :  { %v200_v21 = vld [vmem:[%s373_s1 + $0x48] sm:$0xf0]  ;;  %v199_v22 = vor.u32 %v238_v19, %v198_v18  ;;  %v190_v24 = vld [vmem:[%s373_s1 + $0x30] sm:$0xf]  ;;  %v236_v25 = vld [vmem:[%s373_s1 + $0x34] sm:$0xf0] }
   0x7   :  { %v203_v23 = vor.u32 %v237_v20, %v200_v21  ;;  %v235_v26 = vld [vmem:[%s373_s1 + $0x34] sm:$0xf]  ;;  %v192_v27 = vld [vmem:[%s373_s1 + $0x38] sm:$0xf0]  ;;  %v191_v28 = vor.u32 %v236_v25, %v190_v24  ;;  %v182_v30 = vld [vmem:[%s373_s1 + $0x20] sm:$0xf] }
   0x8   :  { %125 = vmatpush.bf16.msra.mxu0 %v215_v10  ;;  %v195_v29 = vor.u32 %v235_v26, %v192_v27  ;;  %v234_v31 = vld [vmem:[%s373_s1 + $0x24] sm:$0xf0]  ;;  %v233_v32 = vld [vmem:[%s373_s1 + $0x24] sm:$0xf]  ;;  %v184_v33 = vld [vmem:[%s373_s1 + $0x28] sm:$0xf0] }
   0x9   :  { %139 = vmatpush.bf16.msra.mxu1 %v219_v11  ;;  %v183_v34 = vor.u32 %v234_v31, %v182_v30  ;;  %v187_v35 = vor.u32 %v233_v32, %v184_v33  ;;  %v174_v36 = vld [vmem:[%s373_s1 + $0x10] sm:$0xf]  ;;  %v232_v37 = vld [vmem:[%s373_s1 + $0x14] sm:$0xf0]  ;;  %v231_v38 = vld [vmem:[%s373_s1 + $0x14] sm:$0xf] }
   0xa   :  { %v176_v39 = vld [vmem:[%s373_s1 + $0x18] sm:$0xf0]  ;;  %v175_v40 = vor.u32 %v232_v37, %v174_v36  ;;  %v166_v42 = vld [vmem:[%s373_s1] sm:$0xf]  ;;  %v230_v43 = vld [vmem:[%s373_s1 + $0x4] sm:$0xf0] }
   0xb   :  { %v179_v41 = vor.u32 %v231_v38, %v176_v39  ;;  %v229_v44 = vld [vmem:[%s373_s1 + $0x4] sm:$0xf]  ;;  %v168_v45 = vld [vmem:[%s373_s1 + $0x8] sm:$0xf0]  ;;  %v167_v46 = vor.u32 %v230_v43, %v166_v42  ;;  %v32_v49 = vld [vmem:[%s375_s2] sm:$0x3] }
   0xc   :  { %126 = vmatpush.bf16.msra.mxu0 %v207_v16  ;;  %v171_v47 = vor.u32 %v229_v44, %v168_v45  ;;  %v228_v48 = vld [vmem:[%s374_s0] sm:$0xff]  ;;  %v34_v50 = vperm.slane %v32_v49, 0  ;;  %v35_v51 = vperm.slane %v32_v49, 1 }
   0xd   :  { %140 = vmatpush.bf16.msra.mxu1 %v211_v17 }
  0x10   :  { %127 = vmatpush.bf16.msra.mxu0 %v199_v22 }
  0x11   :  { %141 = vmatpush.bf16.msra.mxu1 %v203_v23 }
  0x14   :  { %128 = vmatpush.bf16.msra.mxu0 %v191_v28 }
  0x15   :  { %142 = vmatpush.bf16.msra.mxu1 %v195_v29 }
  0x18   :  { %129 = vmatpush.bf16.msra.mxu0 %v183_v34 }
  0x19   :  { %143 = vmatpush.bf16.msra.mxu1 %v187_v35 }
  0x1c   :  { %130 = vmatpush.bf16.msra.mxu0 %v175_v40 }
  0x1d   :  { %144 = vmatpush.bf16.msra.mxu1 %v179_v41 }
  0x20   :  { %131 = vmatpush.bf16.msra.mxu0 %v167_v46 }
  0x21   :  { %145 = vmatpush.bf16.msra.mxu1 %v171_v47 }
  0x23   :  { %132 = vmatmul.bf16.vlgmr.msra.gmra.mxu0 %v228_v48 }
  0x24   :  { %146 = vmatmul.bf16.vlgmr.msra.gmra.mxu1 %v228_v48 }
  0xa0   :  { %v133_v52 = vpop.f32.mrf.mxu0 }
  0xa1   :  { %v134_v53 = vadd.f32 %v133_v52, %v34_v50  ;;  %v147_v54 = vpop.f32.mrf.mxu1 }
  0xa2   :  { %v148_v55 = vadd.f32 %v147_v54, %v35_v51 }
  0xa4   :  { %v152_v56 = vpack.c.bf16 %v148_v55, %v134_v53 }
  0xa6   :  { %154 = vst [vmem:[%s376_s3] sm:$0xff] %v152_v56 }
  0xa8   :  { %v135_v57 = vpop.f32.mrf.mxu0 }
  0xa9   :  { %v136_v58 = vadd.f32 %v135_v57, %v34_v50  ;;  %v149_v59 = vpop.f32.mrf.mxu1 }
  0xaa   :  { %v150_v60 = vadd.f32 %v149_v59, %v35_v51 }
  0xac   :  { %v153_v61 = vpack.c.bf16 %v150_v60, %v136_v58 }
  0xae   :  { %155 = vst [vmem:[%s376_s3 + $0x8] sm:$0xff] %v153_v61 }

// kernel: geolocalization_forward.23
= control target key start
LH: loop header
LB: loop body
LE: loop exit
PB: predicated region body
PF: predicated region fallthrough
CT: control target
= control target key end

     0   :  { %s1538_s15 = smov 0   ;;  %s1801_s0 = inlined_call_operand.vmem [shape: bf16[32,1152], index: 0, kind: input, shape index: {}]   ;;  %s1802_s1 = inlined_call_operand.vmem [shape: bf16[1152,128], index: 1, kind: input, shape index: {}]   ;;  %s1803_s2 = inlined_call_operand.vmem [shape: f32[1,128], index: 2, kind: input, shape index: {}]   ;;  %s1804_s3 = inlined_call_operand.vmem [shape: bf16[32,128], index: 3, kind: input, shape index: {}]   ;;  %s1805_s4 = inlined_call_operand.vmem [shape: bf16[32,128], index: 4, kind: output, shape index: {}]  }
   0x1 LB: > { %s1068_s16 = sadd.s32 4294967295, %s1511_s15   ;;  %p1072_p0 = scmp.ge.s32.totalorder %s1511_s15, 1  ;;  %s1511_s15 = sphi %s1538_s15, %s14_s15  }
   0x2   : > { %p175_p1 = scmp.lt.s32.totalorder %s1511_s15, 3 }
   0x4   : > { %p176_p2 = pnand %p1072_p0, %p175_p1 }
   0x5   : > { %s1073_s17 = sshll.u32 (!%p176_p2), %s1068_s16, 1 }
   0x6   : > { %179 = sbr.rel (%p176_p2) target bundleno = 250 (0xfa), region = 36  ;;  %p208_p3 = scmp.lt.s32.totalorder (!%p176_p2), %s1073_s17, 3 }
   0xb   : > { %v1421_v0 = vld [vmem:[%s1802_s1 + $0x38] sm:$0xff]  ;;  %v1420_v4 = vld [vmem:[%s1802_s1 + $0x30] sm:$0xff]  ;;  %v1419_v8 = vld [vmem:[%s1802_s1 + $0x28] sm:$0xff]  ;;  %s1807_s17 = smov (!%p208_p3, %s1073_s17), 3 }
   0xc   : > { %v1437_v1 = vld [vmem:[%s1802_s1 + $0xb8] sm:$0xff]  ;;  %862 = vmatpush.bf16.msra.mxu0 %v1421_v0  ;;  %v1436_v5 = vld [vmem:[%s1802_s1 + $0xb0] sm:$0xff]  ;;  %v1435_v9 = vld [vmem:[%s1802_s1 + $0xa8] sm:$0xff]  ;;  %s1495_s18 = smul.u32 36, %s1807_s17 }
   0xd   : > { %v1429_v2 = vld [vmem:[%s1802_s1 + $0x78] sm:$0xff]  ;;  %890 = vmatpush.bf16.msra.mxu2 %v1437_v1  ;;  %v1428_v6 = vld [vmem:[%s1802_s1 + $0x70] sm:$0xff]  ;;  %v1427_v10 = vld [vmem:[%s1802_s1 + $0x68] sm:$0xff] }
   0xe   : > { %v1445_v3 = vld [vmem:[%s1802_s1 + $0xf8] sm:$0xff]  ;;  %876 = vmatpush.bf16.msra.mxu1 %v1429_v2  ;;  %v1444_v7 = vld [vmem:[%s1802_s1 + $0xf0] sm:$0xff]  ;;  %v1443_v11 = vld [vmem:[%s1802_s1 + $0xe8] sm:$0xff]  ;;  %s1636_s28 = scalar_lea.vmem %s1801_s0, %s1495_s18 }
   0xf   : > { %904 = vmatpush.bf16.msra.mxu3 %v1445_v3  ;;  %v1418_v12 = vld [vmem:[%s1802_s1 + $0x20] sm:$0xff]  ;;  %v1417_v16 = vld [vmem:[%s1802_s1 + $0x18] sm:$0xff]  ;;  %v1416_v20 = vld [vmem:[%s1802_s1 + $0x10] sm:$0xff] }
  0x10   : > { %863 = vmatpush.bf16.msra.mxu0 %v1420_v4  ;;  %v1434_v13 = vld [vmem:[%s1802_s1 + $0xa0] sm:$0xff]  ;;  %v1433_v17 = vld [vmem:[%s1802_s1 + $0x98] sm:$0xff]  ;;  %v1432_v21 = vld [vmem:[%s1802_s1 + $0x90] sm:$0xff] }
  0x11   : > { %891 = vmatpush.bf16.msra.mxu2 %v1436_v5  ;;  %v1426_v14 = vld [vmem:[%s1802_s1 + $0x60] sm:$0xff]  ;;  %v1425_v18 = vld [vmem:[%s1802_s1 + $0x58] sm:$0xff]  ;;  %v1424_v22 = vld [vmem:[%s1802_s1 + $0x50] sm:$0xff] }
  0x12   : > { %877 = vmatpush.bf16.msra.mxu1 %v1428_v6  ;;  %v1442_v15 = vld [vmem:[%s1802_s1 + $0xe0] sm:$0xff]  ;;  %v1441_v19 = vld [vmem:[%s1802_s1 + $0xd8] sm:$0xff]  ;;  %v1440_v23 = vld [vmem:[%s1802_s1 + $0xd0] sm:$0xff] }
  0x13   : > { %905 = vmatpush.bf16.msra.mxu3 %v1444_v7  ;;  %v1415_v24 = vld [vmem:[%s1802_s1 + $0x8] sm:$0xff]  ;;  %v1414_v28 = vld [vmem:[%s1802_s1] sm:$0xff]  ;;  %v1453_v30 = vld [vmem:[%s1802_s1 + $0x138] sm:$0xff] }
  0x14   : > { %864 = vmatpush.bf16.msra.mxu0 %v1419_v8  ;;  %v1431_v25 = vld [vmem:[%s1802_s1 + $0x88] sm:$0xff]  ;;  %v1430_v29 = vld [vmem:[%s1802_s1 + $0x80] sm:$0xff]  ;;  %v1469_v31 = vld [vmem:[%s1802_s1 + $0x1b8] sm:$0xff] }
  0x15   : > { %892 = vmatpush.bf16.msra.mxu2 %v1435_v9  ;;  %v1423_v26 = vld [vmem:[%s1802_s1 + $0x48] sm:$0xff]  ;;  %v1422_v32 = vld [vmem:[%s1802_s1 + $0x40] sm:$0xff]  ;;  %v1461_v38 = vld [vmem:[%s1802_s1 + $0x178] sm:$0xff] }
  0x16   : > { %878 = vmatpush.bf16.msra.mxu1 %v1427_v10  ;;  %v1439_v27 = vld [vmem:[%s1802_s1 + $0xc8] sm:$0xff]  ;;  %v1438_v33 = vld [vmem:[%s1802_s1 + $0xc0] sm:$0xff]  ;;  %v1477_v39 = vld [vmem:[%s1802_s1 + $0x1f8] sm:$0xff] }
  0x17   : > { %906 = vmatpush.bf16.msra.mxu3 %v1443_v11  ;;  %v1081_v34 = vld [vmem:[%s1636_s28] sm:$0xf]  ;;  %v1409_v35 = vld [vmem:[%s1636_s28 + $0x20] sm:$0xf0]  ;;  %v1089_v36 = vld [vmem:[%s1636_s28 + $0x8] sm:$0xf] }
  0x18   : > { %865 = vmatpush.bf16.msra.mxu0 %v1418_v12  ;;  %v1410_v37 = vld [vmem:[%s1636_s28 + $0x28] sm:$0xf0]  ;;  %v1405_v40 = vld [vmem:[%s1636_s28 + $0x4] sm:$0xf]  ;;  %v1083_v41 = vld [vmem:[%s1636_s28 + $0x24] sm:$0xf0]  ;;  %v1082_v44 = vor.u32 %v1409_v35, %v1081_v34 }
  0x19   : > { %893 = vmatpush.bf16.msra.mxu2 %v1434_v13  ;;  %v1406_v42 = vld [vmem:[%s1636_s28 + $0xc] sm:$0xf]  ;;  %v1091_v43 = vld [vmem:[%s1636_s28 + $0x2c] sm:$0xf0]  ;;  %v1090_v45 = vor.u32 %v1410_v37, %v1089_v36  ;;  %v1086_v48 = vor.u32 %v1405_v40, %v1083_v41  ;;  %v1450_v56 = vld [vmem:[%s1802_s1 + $0x120] sm:$0xff] }
  0x1a   : > { %879 = vmatpush.bf16.msra.mxu1 %v1426_v14  ;;  %v1452_v46 = vld [vmem:[%s1802_s1 + $0x130] sm:$0xff]  ;;  %v1094_v49 = vor.u32 %v1406_v42, %v1091_v43  ;;  %v1451_v52 = vld [vmem:[%s1802_s1 + $0x128] sm:$0xff]  ;;  %v1466_v57 = vld [vmem:[%s1802_s1 + $0x1a0] sm:$0xff] }
  0x1b   : > { %907 = vmatpush.bf16.msra.mxu3 %v1442_v15  ;;  %v1468_v47 = vld [vmem:[%s1802_s1 + $0x1b0] sm:$0xff]  ;;  %v1467_v53 = vld [vmem:[%s1802_s1 + $0x1a8] sm:$0xff]  ;;  %v1458_v58 = vld [vmem:[%s1802_s1 + $0x160] sm:$0xff] }
  0x1c   : > { %866 = vmatpush.bf16.msra.mxu0 %v1417_v16  ;;  %v1460_v50 = vld [vmem:[%s1802_s1 + $0x170] sm:$0xff]  ;;  %v1459_v54 = vld [vmem:[%s1802_s1 + $0x168] sm:$0xff]  ;;  %v1474_v59 = vld [vmem:[%s1802_s1 + $0x1e0] sm:$0xff] }
  0x1d   : > { %894 = vmatpush.bf16.msra.mxu2 %v1433_v17  ;;  %v1476_v51 = vld [vmem:[%s1802_s1 + $0x1f0] sm:$0xff]  ;;  %v1475_v55 = vld [vmem:[%s1802_s1 + $0x1e8] sm:$0xff]  ;;  %v1449_v60 = vld [vmem:[%s1802_s1 + $0x118] sm:$0xff] }
  0x1e   : > { %880 = vmatpush.bf16.msra.mxu1 %v1425_v18  ;;  %v1465_v61 = vld [vmem:[%s1802_s1 + $0x198] sm:$0xff]  ;;  %v1448_v0 = vld [vmem:[%s1802_s1 + $0x110] sm:$0xff]  ;;  %v1447_v4 = vld [vmem:[%s1802_s1 + $0x108] sm:$0xff] }
  0x1f   : > { %908 = vmatpush.bf16.msra.mxu3 %v1441_v19  ;;  %v1457_v62 = vld [vmem:[%s1802_s1 + $0x158] sm:$0xff]  ;;  %v1464_v1 = vld [vmem:[%s1802_s1 + $0x190] sm:$0xff]  ;;  %v1463_v5 = vld [vmem:[%s1802_s1 + $0x188] sm:$0xff] }
  0x20   : > { %867 = vmatpush.bf16.msra.mxu0 %v1416_v20  ;;  %v1473_v63 = vld [vmem:[%s1802_s1 + $0x1d8] sm:$0xff]  ;;  %v1456_v2 = vld [vmem:[%s1802_s1 + $0x150] sm:$0xff]  ;;  %v1455_v6 = vld [vmem:[%s1802_s1 + $0x148] sm:$0xff] }
  0x21   : > { %895 = vmatpush.bf16.msra.mxu2 %v1432_v21  ;;  %v1472_v3 = vld [vmem:[%s1802_s1 + $0x1d0] sm:$0xff]  ;;  %v1471_v7 = vld [vmem:[%s1802_s1 + $0x1c8] sm:$0xff]  ;;  %v1446_v8 = vld [vmem:[%s1802_s1 + $0x100] sm:$0xff] }
  0x22   : > { %881 = vmatpush.bf16.msra.mxu1 %v1424_v22  ;;  %v1462_v9 = vld [vmem:[%s1802_s1 + $0x180] sm:$0xff]  ;;  %v1485_v10 = vld [vmem:[%s1802_s1 + $0x238] sm:$0xff]  ;;  %v1097_v11 = vld [vmem:[%s1636_s28 + $0x10] sm:$0xf] }
  0x23   : > { %909 = vmatpush.bf16.msra.mxu3 %v1440_v23  ;;  %v1411_v12 = vld [vmem:[%s1636_s28 + $0x30] sm:$0xf0]  ;;  %v1105_v13 = vld [vmem:[%s1636_s28 + $0x18] sm:$0xf]  ;;  %v1412_v14 = vld [vmem:[%s1636_s28 + $0x38] sm:$0xf0] }
  0x24   : > { %868 = vmatpush.bf16.msra.mxu0 %v1415_v24  ;;  %v1454_v15 = vld [vmem:[%s1802_s1 + $0x140] sm:$0xff]  ;;  %v1407_v17 = vld [vmem:[%s1636_s28 + $0x14] sm:$0xf]  ;;  %v1099_v18 = vld [vmem:[%s1636_s28 + $0x34] sm:$0xf0]  ;;  %v1098_v21 = vor.u32 %v1411_v12, %v1097_v11  ;;  %v1106_v22 = vor.u32 %v1412_v14, %v1105_v13 }
  0x25   : > { %896 = vmatpush.bf16.msra.mxu2 %v1431_v25  ;;  %v1470_v16 = vld [vmem:[%s1802_s1 + $0x1c0] sm:$0xff]  ;;  %v1408_v19 = vld [vmem:[%s1636_s28 + $0x1c] sm:$0xf]  ;;  %v1102_v23 = vor.u32 %v1407_v17, %v1099_v18  ;;  %v1484_v25 = vld [vmem:[%s1802_s1 + $0x230] sm:$0xff] }
  0x26   : > { %882 = vmatpush.bf16.msra.mxu1 %v1423_v26  ;;  %v1107_v20 = vld [vmem:[%s1636_s28 + $0x3c] sm:$0xf0]  ;;  %v1483_v26 = vld [vmem:[%s1802_s1 + $0x228] sm:$0xff] }
  0x27   : > { %910 = vmatpush.bf16.msra.mxu3 %v1439_v27  ;;  %v1110_v24 = vor.u32 %v1408_v19, %v1107_v20  ;;  %v1482_v27 = vld [vmem:[%s1802_s1 + $0x220] sm:$0xff] }
  0x28   : > { %869 = vmatpush.bf16.msra.mxu0 %v1414_v28  ;;  %v1481_v28 = vld [vmem:[%s1802_s1 + $0x218] sm:$0xff] }
  0x29   : > { %897 = vmatpush.bf16.msra.mxu2 %v1430_v29  ;;  %v1480_v29 = vld [vmem:[%s1802_s1 + $0x210] sm:$0xff] }
  0x2a   : > { %883 = vmatpush.bf16.msra.mxu1 %v1422_v32  ;;  %v1113_v32 = vld [vmem:[%s1636_s28 + $0x20] sm:$0xf] }
  0x2b   : > { %911 = vmatpush.bf16.msra.mxu3 %v1438_v33  ;;  %870 = vmatmul.bf16.vlgmr.msra.gmra.mxu0 %v1082_v44  ;;  %v1413_v33 = vld [vmem:[%s1636_s28 + $0x40] sm:$0xf0]  ;;  %s1076_s28 = sshll.u32 %s1807_s17, 2 }
  0x2c   : > { %918 = vmatpush.bf16.msrb.mxu0 %v1453_v30  ;;  %898 = vmatmul.bf16.vlgmr.msra.gmra.mxu2 %v1090_v45  ;;  %v1479_v30 = vld [vmem:[%s1802_s1 + $0x208] sm:$0xff]  ;;  %v1114_v34 = vor.u32 %v1413_v33, %v1113_v32  ;;  %s218_s29 = scalar_lea.vmem %s1804_s3, %s1076_s28  ;;  %s224_s5 = scalar_lea.vmem %s1805_s4, %s1076_s28 }
  0x2d   : > { %946 = vmatpush.bf16.msrb.mxu2 %v1469_v31  ;;  %884 = vmatmul.bf16.vlgmr.msra.gmra.mxu1 %v1086_v48  ;;  %v1478_v31 = vld [vmem:[%s1802_s1 + $0x200] sm:$0xff] }
  0x2e   : > { %932 = vmatpush.bf16.msrb.mxu1 %v1461_v38  ;;  %912 = vmatmul.bf16.vlgmr.msra.gmra.mxu3 %v1094_v49  ;;  %v1504_v38 = vld [vmem:[%s1803_s2] ss:$0 sm:$0xff] }
  0x2f   : > { %960 = vmatpush.bf16.msrb.mxu3 %v1477_v39 }
  0x30   : > { %919 = vmatpush.bf16.msrb.mxu0 %v1452_v46 }
  0x31   : > { %947 = vmatpush.bf16.msrb.mxu2 %v1468_v47 }
  0x32   : > { %933 = vmatpush.bf16.msrb.mxu1 %v1460_v50 }
  0x33   : > { %961 = vmatpush.bf16.msrb.mxu3 %v1476_v51 }
  0x34   : > { %920 = vmatpush.bf16.msrb.mxu0 %v1451_v52 }
  0x35   : > { %948 = vmatpush.bf16.msrb.mxu2 %v1467_v53 }
  0x36   : > { %934 = vmatpush.bf16.msrb.mxu1 %v1459_v54 }
  0x37   : > { %962 = vmatpush.bf16.msrb.mxu3 %v1475_v55 }
  0x38   : > { %921 = vmatpush.bf16.msrb.mxu0 %v1450_v56 }
  0x39   : > { %949 = vmatpush.bf16.msrb.mxu2 %v1466_v57 }
  0x3a   : > { %935 = vmatpush.bf16.msrb.mxu1 %v1458_v58 }
  0x3b   : > { %963 = vmatpush.bf16.msrb.mxu3 %v1474_v59 }
  0x3c   : > { %922 = vmatpush.bf16.msrb.mxu0 %v1449_v60 }
  0x3d   : > { %950 = vmatpush.bf16.msrb.mxu2 %v1465_v61 }
  0x3e   : > { %936 = vmatpush.bf16.msrb.mxu1 %v1457_v62 }
  0x3f   : > { %964 = vmatpush.bf16.msrb.mxu3 %v1473_v63 }
  0x40   : > { %923 = vmatpush.bf16.msrb.mxu0 %v1448_v0 }
  0x41   : > { %951 = vmatpush.bf16.msrb.mxu2 %v1464_v1  ;;  %v1487_v1 = vld [vmem:[%s218_s29] sm:$0xff]  }
  0x42   : > { %937 = vmatpush.bf16.msrb.mxu1 %v1456_v2 }
  0x43   : > { %965 = vmatpush.bf16.msrb.mxu3 %v1472_v3 }
  0x44   : > { %924 = vmatpush.bf16.msrb.mxu0 %v1447_v4 }
  0x45   : > { %952 = vmatpush.bf16.msrb.mxu2 %v1463_v5 }
  0x46   : > { %938 = vmatpush.bf16.msrb.mxu1 %v1455_v6  ;;  %v1488_v6 = vunpack.c.l.bf16 %v1487_v1 }
  0x47   : > { %966 = vmatpush.bf16.msrb.mxu3 %v1471_v7 }
  0x48   : > { %925 = vmatpush.bf16.msrb.mxu0 %v1446_v8  ;;  %v1489_v8 = vunpack.c.h.bf16 %v1487_v1 }
  0x49   : > { %953 = vmatpush.bf16.msrb.mxu2 %v1462_v9 }
  0x4a   : > { %939 = vmatpush.bf16.msrb.mxu1 %v1454_v15 }
  0x4b   : > { %967 = vmatpush.bf16.msrb.mxu3 %v1470_v16  ;;  %926 = vmatmul.bf16.vlgmr.msrb.gmra.mxu0 %v1098_v21 }
  0x4c   : > { %974 = vmatpush.bf16.msra.mxu0 %v1485_v10  ;;  %954 = vmatmul.bf16.vlgmr.msrb.gmra.mxu2 %v1106_v22 }
  0x4d   : > { %940 = vmatmul.bf16.vlgmr.msrb.gmra.mxu1 %v1102_v23 }
  0x4e   : > { %968 = vmatmul.bf16.vlgmr.msrb.gmra.mxu3 %v1110_v24 }
  0x50   : > { %975 = vmatpush.bf16.msra.mxu0 %v1484_v25 }
  0x54   : > { %976 = vmatpush.bf16.msra.mxu0 %v1483_v26 }
  0x58   : > { %977 = vmatpush.bf16.msra.mxu0 %v1482_v27 }
  0x5c   : > { %978 = vmatpush.bf16.msra.mxu0 %v1481_v28 }
  0x60   : > { %979 = vmatpush.bf16.msra.mxu0 %v1480_v29 }
  0x64   : > { %980 = vmatpush.bf16.msra.mxu0 %v1479_v30 }
  0x68   : > { %981 = vmatpush.bf16.msra.mxu0 %v1478_v31 }
  0x6b   : > { %982 = vmatmul.bf16.vlgmr.msra.gmra.mxu0 %v1114_v34 }
  0xa8   : > { %v871_v35 = vpop.f32.mrf.mxu0 }
  0xa9   : > { %v872_v41 = vadd.f32 %v1504_v38, %v871_v35 }
  0xaa   : > { %v885_v36 = vpop.f32.mrf.mxu1 }
  0xab   : > { %v886_v43 = vadd.f32 %v885_v36, %v872_v41 }
  0xaf   : > { %v899_v37 = vpop.f32.mrf.mxu2 }
  0xb0   : > { %v873_v39 = vpop.f32.mrf.mxu0  ;;  %v900_v46 = vadd.f32 %v899_v37, %v886_v43 }
  0xb1   : > { %v913_v40 = vpop.f32.mrf.mxu3  ;;  %v874_v47 = vadd.f32 %v1504_v38, %v873_v39 }
  0xb2   : > { %v887_v42 = vpop.f32.mrf.mxu1  ;;  %v914_v49 = vadd.f32 %v913_v40, %v900_v46 }
  0xb3   : > { %v888_v50 = vadd.f32 %v887_v42, %v874_v47 }
  0xb7   : > { %v901_v44 = vpop.f32.mrf.mxu2 }
  0xb8   : > { %v902_v53 = vadd.f32 %v901_v44, %v888_v50 }
  0xb9   : > { %v915_v48 = vpop.f32.mrf.mxu3 }
  0xba   : > { %v916_v57 = vadd.f32 %v915_v48, %v902_v53 }
  0xc8   : > { %v927_v45 = vpop.f32.mrf.mxu0 }
  0xc9   : > { %v928_v54 = vadd.f32 %v927_v45, %v914_v49 }
  0xca   : > { %v941_v51 = vpop.f32.mrf.mxu1 }
  0xcb   : > { %v942_v58 = vadd.f32 %v941_v51, %v928_v54 }
  0xcf   : > { %v955_v52 = vpop.f32.mrf.mxu2 }
  0xd0   : > { %v929_v55 = vpop.f32.mrf.mxu0  ;;  %v956_v61 = vadd.f32 %v955_v52, %v942_v58 }
  0xd1   : > { %v969_v56 = vpop.f32.mrf.mxu3  ;;  %v930_v59 = vadd.f32 %v929_v55, %v916_v57 }
  0xd2   : > { %v943_v60 = vpop.f32.mrf.mxu1  ;;  %v970_v2 = vadd.f32 %v969_v56, %v956_v61 }
  0xd3   : > { %v944_v0 = vadd.f32 %v943_v60, %v930_v59 }
  0xd7   : > { %v957_v62 = vpop.f32.mrf.mxu2 }
  0xd8   : > { %v958_v3 = vadd.f32 %v957_v62, %v944_v0 }
  0xd9   : > { %v971_v4 = vpop.f32.mrf.mxu3 }
  0xda   : > { %v972_v7 = vadd.f32 %v971_v4, %v958_v3 }
  0xe8   : > { %v983_v63 = vpop.f32.mrf.mxu0 }
  0xe9   : > { %v984_v5 = vadd.f32 %v983_v63, %v970_v2 }
  0xeb   : > { %v992_v10 = vadd.f32 %v1488_v6, %v984_v5 }
  0xed   : > { %v994_v13 = vmax.f32 %v992_v10, 0.0 }
  0xf0   : > { %v985_v9 = vpop.f32.mrf.mxu0 }
  0xf1   : > { %v986_v11 = vadd.f32 %v985_v9, %v972_v7 }
  0xf3   : > { %v993_v12 = vadd.f32 %v1489_v8, %v986_v11 }
  0xf5   : > { %v995_v14 = vmax.f32 %v993_v12, 0.0 }
  0xf7   : > { %v1493_v15 = vpack.c.bf16 %v995_v14, %v994_v13 }
  0xf9   : > { %1494 = vst [vmem:[%s224_s5] sm:$0xff] %v1493_v15  }
  0xfa PF: > { %s14_s15 = sadd.s32 1, %s1511_s15  }
  0xfb   : > { %p11_p4 = scmp.ge.s32.totalorder %s14_s15, 4  }
  0xfd   :  { %13 = sbr.rel (!%p11_p4) target bundleno = 1 (0x1), region = 69 }

// kernel: geolocalization_forward.21
= control target key start
LH: loop header
LB: loop body
LE: loop exit
PB: predicated region body
PF: predicated region fallthrough
CT: control target
= control target key end

     0   :  { %s1460_s12 = smov 0   ;;  %s1720_s0 = inlined_call_operand.vmem [shape: bf16[32,1152], index: 0, kind: input, shape index: {}]   ;;  %s1721_s1 = inlined_call_operand.vmem [shape: bf16[1152,128], index: 1, kind: input, shape index: {}]   ;;  %s1722_s2 = inlined_call_operand.vmem [shape: f32[1,128], index: 2, kind: input, shape index: {}]   ;;  %s1723_s3 = inlined_call_operand.vmem [shape: bf16[32,128], index: 3, kind: output, shape index: {}]  }
   0x1 LB: > { %s1001_s13 = sadd.s32 4294967295, %s1438_s12   ;;  %p1005_p0 = scmp.ge.s32.totalorder %s1438_s12, 1  ;;  %s1438_s12 = sphi %s1460_s12, %s13_s12  }
   0x2   : > { %p139_p1 = scmp.lt.s32.totalorder %s1438_s12, 3 }
   0x4   : > { %p140_p2 = pnand %p1005_p0, %p139_p1 }
   0x5   : > { %s1006_s11 = sshll.u32 (!%p140_p2), %s1001_s13, 1 }
   0x6   : > { %143 = sbr.rel (%p140_p2) target bundleno = 248 (0xf8), region = 32  ;;  %p165_p3 = scmp.lt.s32.totalorder (!%p140_p2), %s1006_s11, 3 }
   0xb   : > { %v1352_v0 = vld [vmem:[%s1721_s1 + $0x38] sm:$0xff]  ;;  %v1351_v4 = vld [vmem:[%s1721_s1 + $0x30] sm:$0xff]  ;;  %v1350_v8 = vld [vmem:[%s1721_s1 + $0x28] sm:$0xff]  ;;  %s1725_s11 = smov (!%p165_p3, %s1006_s11), 3 }
   0xc   : > { %v1368_v1 = vld [vmem:[%s1721_s1 + $0xb8] sm:$0xff]  ;;  %813 = vmatpush.bf16.msra.mxu0 %v1352_v0  ;;  %v1367_v5 = vld [vmem:[%s1721_s1 + $0xb0] sm:$0xff]  ;;  %v1366_v9 = vld [vmem:[%s1721_s1 + $0xa8] sm:$0xff]  ;;  %s1422_s10 = smul.u32 36, %s1725_s11 }
   0xd   : > { %v1360_v2 = vld [vmem:[%s1721_s1 + $0x78] sm:$0xff]  ;;  %841 = vmatpush.bf16.msra.mxu2 %v1368_v1  ;;  %v1359_v6 = vld [vmem:[%s1721_s1 + $0x70] sm:$0xff]  ;;  %v1358_v10 = vld [vmem:[%s1721_s1 + $0x68] sm:$0xff] }
   0xe   : > { %v1376_v3 = vld [vmem:[%s1721_s1 + $0xf8] sm:$0xff]  ;;  %827 = vmatpush.bf16.msra.mxu1 %v1360_v2  ;;  %v1375_v7 = vld [vmem:[%s1721_s1 + $0xf0] sm:$0xff]  ;;  %v1374_v11 = vld [vmem:[%s1721_s1 + $0xe8] sm:$0xff]  ;;  %s1558_s23 = scalar_lea.vmem %s1720_s0, %s1422_s10 }
   0xf   : > { %855 = vmatpush.bf16.msra.mxu3 %v1376_v3  ;;  %v1349_v12 = vld [vmem:[%s1721_s1 + $0x20] sm:$0xff]  ;;  %v1348_v16 = vld [vmem:[%s1721_s1 + $0x18] sm:$0xff]  ;;  %v1347_v20 = vld [vmem:[%s1721_s1 + $0x10] sm:$0xff] }
  0x10   : > { %814 = vmatpush.bf16.msra.mxu0 %v1351_v4  ;;  %v1365_v13 = vld [vmem:[%s1721_s1 + $0xa0] sm:$0xff]  ;;  %v1364_v17 = vld [vmem:[%s1721_s1 + $0x98] sm:$0xff]  ;;  %v1363_v21 = vld [vmem:[%s1721_s1 + $0x90] sm:$0xff] }
  0x11   : > { %842 = vmatpush.bf16.msra.mxu2 %v1367_v5  ;;  %v1357_v14 = vld [vmem:[%s1721_s1 + $0x60] sm:$0xff]  ;;  %v1356_v18 = vld [vmem:[%s1721_s1 + $0x58] sm:$0xff]  ;;  %v1355_v22 = vld [vmem:[%s1721_s1 + $0x50] sm:$0xff] }
  0x12   : > { %828 = vmatpush.bf16.msra.mxu1 %v1359_v6  ;;  %v1373_v15 = vld [vmem:[%s1721_s1 + $0xe0] sm:$0xff]  ;;  %v1372_v19 = vld [vmem:[%s1721_s1 + $0xd8] sm:$0xff]  ;;  %v1371_v23 = vld [vmem:[%s1721_s1 + $0xd0] sm:$0xff] }
  0x13   : > { %856 = vmatpush.bf16.msra.mxu3 %v1375_v7  ;;  %v1346_v24 = vld [vmem:[%s1721_s1 + $0x8] sm:$0xff]  ;;  %v1345_v28 = vld [vmem:[%s1721_s1] sm:$0xff]  ;;  %v1384_v30 = vld [vmem:[%s1721_s1 + $0x138] sm:$0xff] }
  0x14   : > { %815 = vmatpush.bf16.msra.mxu0 %v1350_v8  ;;  %v1362_v25 = vld [vmem:[%s1721_s1 + $0x88] sm:$0xff]  ;;  %v1361_v29 = vld [vmem:[%s1721_s1 + $0x80] sm:$0xff]  ;;  %v1400_v31 = vld [vmem:[%s1721_s1 + $0x1b8] sm:$0xff] }
  0x15   : > { %843 = vmatpush.bf16.msra.mxu2 %v1366_v9  ;;  %v1354_v26 = vld [vmem:[%s1721_s1 + $0x48] sm:$0xff]  ;;  %v1353_v32 = vld [vmem:[%s1721_s1 + $0x40] sm:$0xff]  ;;  %v1392_v38 = vld [vmem:[%s1721_s1 + $0x178] sm:$0xff] }
  0x16   : > { %829 = vmatpush.bf16.msra.mxu1 %v1358_v10  ;;  %v1370_v27 = vld [vmem:[%s1721_s1 + $0xc8] sm:$0xff]  ;;  %v1369_v33 = vld [vmem:[%s1721_s1 + $0xc0] sm:$0xff]  ;;  %v1408_v39 = vld [vmem:[%s1721_s1 + $0x1f8] sm:$0xff] }
  0x17   : > { %857 = vmatpush.bf16.msra.mxu3 %v1374_v11  ;;  %v1012_v34 = vld [vmem:[%s1558_s23] sm:$0xf]  ;;  %v1340_v35 = vld [vmem:[%s1558_s23 + $0x20] sm:$0xf0]  ;;  %v1020_v36 = vld [vmem:[%s1558_s23 + $0x8] sm:$0xf] }
  0x18   : > { %816 = vmatpush.bf16.msra.mxu0 %v1349_v12  ;;  %v1341_v37 = vld [vmem:[%s1558_s23 + $0x28] sm:$0xf0]  ;;  %v1336_v40 = vld [vmem:[%s1558_s23 + $0x4] sm:$0xf]  ;;  %v1014_v41 = vld [vmem:[%s1558_s23 + $0x24] sm:$0xf0]  ;;  %v1013_v44 = vor.u32 %v1340_v35, %v1012_v34 }
  0x19   : > { %844 = vmatpush.bf16.msra.mxu2 %v1365_v13  ;;  %v1337_v42 = vld [vmem:[%s1558_s23 + $0xc] sm:$0xf]  ;;  %v1022_v43 = vld [vmem:[%s1558_s23 + $0x2c] sm:$0xf0]  ;;  %v1021_v45 = vor.u32 %v1341_v37, %v1020_v36  ;;  %v1017_v48 = vor.u32 %v1336_v40, %v1014_v41  ;;  %v1381_v56 = vld [vmem:[%s1721_s1 + $0x120] sm:$0xff] }
  0x1a   : > { %830 = vmatpush.bf16.msra.mxu1 %v1357_v14  ;;  %v1383_v46 = vld [vmem:[%s1721_s1 + $0x130] sm:$0xff]  ;;  %v1025_v49 = vor.u32 %v1337_v42, %v1022_v43  ;;  %v1382_v52 = vld [vmem:[%s1721_s1 + $0x128] sm:$0xff]  ;;  %v1397_v57 = vld [vmem:[%s1721_s1 + $0x1a0] sm:$0xff] }
  0x1b   : > { %858 = vmatpush.bf16.msra.mxu3 %v1373_v15  ;;  %v1399_v47 = vld [vmem:[%s1721_s1 + $0x1b0] sm:$0xff]  ;;  %v1398_v53 = vld [vmem:[%s1721_s1 + $0x1a8] sm:$0xff]  ;;  %v1389_v58 = vld [vmem:[%s1721_s1 + $0x160] sm:$0xff] }
  0x1c   : > { %817 = vmatpush.bf16.msra.mxu0 %v1348_v16  ;;  %v1391_v50 = vld [vmem:[%s1721_s1 + $0x170] sm:$0xff]  ;;  %v1390_v54 = vld [vmem:[%s1721_s1 + $0x168] sm:$0xff]  ;;  %v1405_v59 = vld [vmem:[%s1721_s1 + $0x1e0] sm:$0xff] }
  0x1d   : > { %845 = vmatpush.bf16.msra.mxu2 %v1364_v17  ;;  %v1407_v51 = vld [vmem:[%s1721_s1 + $0x1f0] sm:$0xff]  ;;  %v1406_v55 = vld [vmem:[%s1721_s1 + $0x1e8] sm:$0xff]  ;;  %v1380_v60 = vld [vmem:[%s1721_s1 + $0x118] sm:$0xff] }
  0x1e   : > { %831 = vmatpush.bf16.msra.mxu1 %v1356_v18  ;;  %v1396_v61 = vld [vmem:[%s1721_s1 + $0x198] sm:$0xff]  ;;  %v1379_v0 = vld [vmem:[%s1721_s1 + $0x110] sm:$0xff]  ;;  %v1378_v4 = vld [vmem:[%s1721_s1 + $0x108] sm:$0xff] }
  0x1f   : > { %859 = vmatpush.bf16.msra.mxu3 %v1372_v19  ;;  %v1388_v62 = vld [vmem:[%s1721_s1 + $0x158] sm:$0xff]  ;;  %v1395_v1 = vld [vmem:[%s1721_s1 + $0x190] sm:$0xff]  ;;  %v1394_v5 = vld [vmem:[%s1721_s1 + $0x188] sm:$0xff] }
  0x20   : > { %818 = vmatpush.bf16.msra.mxu0 %v1347_v20  ;;  %v1404_v63 = vld [vmem:[%s1721_s1 + $0x1d8] sm:$0xff]  ;;  %v1387_v2 = vld [vmem:[%s1721_s1 + $0x150] sm:$0xff]  ;;  %v1386_v6 = vld [vmem:[%s1721_s1 + $0x148] sm:$0xff] }
  0x21   : > { %846 = vmatpush.bf16.msra.mxu2 %v1363_v21  ;;  %v1403_v3 = vld [vmem:[%s1721_s1 + $0x1d0] sm:$0xff]  ;;  %v1402_v7 = vld [vmem:[%s1721_s1 + $0x1c8] sm:$0xff]  ;;  %v1377_v8 = vld [vmem:[%s1721_s1 + $0x100] sm:$0xff] }
  0x22   : > { %832 = vmatpush.bf16.msra.mxu1 %v1355_v22  ;;  %v1393_v9 = vld [vmem:[%s1721_s1 + $0x180] sm:$0xff]  ;;  %v1416_v10 = vld [vmem:[%s1721_s1 + $0x238] sm:$0xff]  ;;  %v1028_v11 = vld [vmem:[%s1558_s23 + $0x10] sm:$0xf] }
  0x23   : > { %860 = vmatpush.bf16.msra.mxu3 %v1371_v23  ;;  %v1342_v12 = vld [vmem:[%s1558_s23 + $0x30] sm:$0xf0]  ;;  %v1036_v13 = vld [vmem:[%s1558_s23 + $0x18] sm:$0xf]  ;;  %v1343_v14 = vld [vmem:[%s1558_s23 + $0x38] sm:$0xf0] }
  0x24   : > { %819 = vmatpush.bf16.msra.mxu0 %v1346_v24  ;;  %v1385_v15 = vld [vmem:[%s1721_s1 + $0x140] sm:$0xff]  ;;  %v1338_v17 = vld [vmem:[%s1558_s23 + $0x14] sm:$0xf]  ;;  %v1030_v18 = vld [vmem:[%s1558_s23 + $0x34] sm:$0xf0]  ;;  %v1029_v21 = vor.u32 %v1342_v12, %v1028_v11  ;;  %v1037_v22 = vor.u32 %v1343_v14, %v1036_v13 }
  0x25   : > { %847 = vmatpush.bf16.msra.mxu2 %v1362_v25  ;;  %v1401_v16 = vld [vmem:[%s1721_s1 + $0x1c0] sm:$0xff]  ;;  %v1339_v19 = vld [vmem:[%s1558_s23 + $0x1c] sm:$0xf]  ;;  %v1033_v23 = vor.u32 %v1338_v17, %v1030_v18  ;;  %v1415_v25 = vld [vmem:[%s1721_s1 + $0x230] sm:$0xff] }
  0x26   : > { %833 = vmatpush.bf16.msra.mxu1 %v1354_v26  ;;  %v1038_v20 = vld [vmem:[%s1558_s23 + $0x3c] sm:$0xf0]  ;;  %v1414_v26 = vld [vmem:[%s1721_s1 + $0x228] sm:$0xff] }
  0x27   : > { %861 = vmatpush.bf16.msra.mxu3 %v1370_v27  ;;  %v1041_v24 = vor.u32 %v1339_v19, %v1038_v20  ;;  %v1413_v27 = vld [vmem:[%s1721_s1 + $0x220] sm:$0xff] }
  0x28   : > { %820 = vmatpush.bf16.msra.mxu0 %v1345_v28  ;;  %v1412_v28 = vld [vmem:[%s1721_s1 + $0x218] sm:$0xff] }
  0x29   : > { %848 = vmatpush.bf16.msra.mxu2 %v1361_v29  ;;  %v1411_v29 = vld [vmem:[%s1721_s1 + $0x210] sm:$0xff] }
  0x2a   : > { %834 = vmatpush.bf16.msra.mxu1 %v1353_v32  ;;  %v1044_v32 = vld [vmem:[%s1558_s23 + $0x20] sm:$0xf] }
  0x2b   : > { %862 = vmatpush.bf16.msra.mxu3 %v1369_v33  ;;  %821 = vmatmul.bf16.vlgmr.msra.gmra.mxu0 %v1013_v44  ;;  %v1344_v33 = vld [vmem:[%s1558_s23 + $0x40] sm:$0xf0]  ;;  %s1009_s23 = sshll.u32 %s1725_s11, 2 }
  0x2c   : > { %869 = vmatpush.bf16.msrb.mxu0 %v1384_v30  ;;  %849 = vmatmul.bf16.vlgmr.msra.gmra.mxu2 %v1021_v45  ;;  %v1410_v30 = vld [vmem:[%s1721_s1 + $0x208] sm:$0xff]  ;;  %v1045_v34 = vor.u32 %v1344_v33, %v1044_v32  ;;  %s175_s20 = scalar_lea.vmem %s1723_s3, %s1009_s23 }
  0x2d   : > { %897 = vmatpush.bf16.msrb.mxu2 %v1400_v31  ;;  %835 = vmatmul.bf16.vlgmr.msra.gmra.mxu1 %v1017_v48  ;;  %v1409_v31 = vld [vmem:[%s1721_s1 + $0x200] sm:$0xff] }
  0x2e   : > { %883 = vmatpush.bf16.msrb.mxu1 %v1392_v38  ;;  %863 = vmatmul.bf16.vlgmr.msra.gmra.mxu3 %v1025_v49 }
  0x2f   : > { %911 = vmatpush.bf16.msrb.mxu3 %v1408_v39  ;;  %v1431_v39 = vld [vmem:[%s1722_s2] ss:$0 sm:$0xff] }
  0x30   : > { %870 = vmatpush.bf16.msrb.mxu0 %v1383_v46 }
  0x31   : > { %898 = vmatpush.bf16.msrb.mxu2 %v1399_v47 }
  0x32   : > { %884 = vmatpush.bf16.msrb.mxu1 %v1391_v50 }
  0x33   : > { %912 = vmatpush.bf16.msrb.mxu3 %v1407_v51 }
  0x34   : > { %871 = vmatpush.bf16.msrb.mxu0 %v1382_v52 }
  0x35   : > { %899 = vmatpush.bf16.msrb.mxu2 %v1398_v53 }
  0x36   : > { %885 = vmatpush.bf16.msrb.mxu1 %v1390_v54 }
  0x37   : > { %913 = vmatpush.bf16.msrb.mxu3 %v1406_v55 }
  0x38   : > { %872 = vmatpush.bf16.msrb.mxu0 %v1381_v56 }
  0x39   : > { %900 = vmatpush.bf16.msrb.mxu2 %v1397_v57 }
  0x3a   : > { %886 = vmatpush.bf16.msrb.mxu1 %v1389_v58 }
  0x3b   : > { %914 = vmatpush.bf16.msrb.mxu3 %v1405_v59 }
  0x3c   : > { %873 = vmatpush.bf16.msrb.mxu0 %v1380_v60 }
  0x3d   : > { %901 = vmatpush.bf16.msrb.mxu2 %v1396_v61 }
  0x3e   : > { %887 = vmatpush.bf16.msrb.mxu1 %v1388_v62 }
  0x3f   : > { %915 = vmatpush.bf16.msrb.mxu3 %v1404_v63 }
  0x40   : > { %874 = vmatpush.bf16.msrb.mxu0 %v1379_v0 }
  0x41   : > { %902 = vmatpush.bf16.msrb.mxu2 %v1395_v1 }
  0x42   : > { %888 = vmatpush.bf16.msrb.mxu1 %v1387_v2 }
  0x43   : > { %916 = vmatpush.bf16.msrb.mxu3 %v1403_v3 }
  0x44   : > { %875 = vmatpush.bf16.msrb.mxu0 %v1378_v4 }
  0x45   : > { %903 = vmatpush.bf16.msrb.mxu2 %v1394_v5 }
  0x46   : > { %889 = vmatpush.bf16.msrb.mxu1 %v1386_v6 }
  0x47   : > { %917 = vmatpush.bf16.msrb.mxu3 %v1402_v7 }
  0x48   : > { %876 = vmatpush.bf16.msrb.mxu0 %v1377_v8 }
  0x49   : > { %904 = vmatpush.bf16.msrb.mxu2 %v1393_v9 }
  0x4a   : > { %890 = vmatpush.bf16.msrb.mxu1 %v1385_v15 }
  0x4b   : > { %918 = vmatpush.bf16.msrb.mxu3 %v1401_v16  ;;  %877 = vmatmul.bf16.vlgmr.msrb.gmra.mxu0 %v1029_v21 }
  0x4c   : > { %925 = vmatpush.bf16.msra.mxu0 %v1416_v10  ;;  %905 = vmatmul.bf16.vlgmr.msrb.gmra.mxu2 %v1037_v22 }
  0x4d   : > { %891 = vmatmul.bf16.vlgmr.msrb.gmra.mxu1 %v1033_v23 }
  0x4e   : > { %919 = vmatmul.bf16.vlgmr.msrb.gmra.mxu3 %v1041_v24 }
  0x50   : > { %926 = vmatpush.bf16.msra.mxu0 %v1415_v25 }
  0x54   : > { %927 = vmatpush.bf16.msra.mxu0 %v1414_v26 }
  0x58   : > { %928 = vmatpush.bf16.msra.mxu0 %v1413_v27 }
  0x5c   : > { %929 = vmatpush.bf16.msra.mxu0 %v1412_v28 }
  0x60   : > { %930 = vmatpush.bf16.msra.mxu0 %v1411_v29 }
  0x64   : > { %931 = vmatpush.bf16.msra.mxu0 %v1410_v30 }
  0x68   : > { %932 = vmatpush.bf16.msra.mxu0 %v1409_v31 }
  0x6b   : > { %933 = vmatmul.bf16.vlgmr.msra.gmra.mxu0 %v1045_v34 }
  0xa8   : > { %v822_v35 = vpop.f32.mrf.mxu0 }
  0xa9   : > { %v823_v41 = vadd.f32 %v1431_v39, %v822_v35 }
  0xaa   : > { %v836_v36 = vpop.f32.mrf.mxu1 }
  0xab   : > { %v837_v44 = vadd.f32 %v836_v36, %v823_v41 }
  0xaf   : > { %v850_v37 = vpop.f32.mrf.mxu2 }
  0xb0   : > { %v824_v38 = vpop.f32.mrf.mxu0  ;;  %v851_v48 = vadd.f32 %v850_v37, %v837_v44 }
  0xb1   : > { %v864_v40 = vpop.f32.mrf.mxu3  ;;  %v825_v46 = vadd.f32 %v1431_v39, %v824_v38 }
  0xb2   : > { %v838_v42 = vpop.f32.mrf.mxu1  ;;  %v865_v51 = vadd.f32 %v864_v40, %v851_v48 }
  0xb3   : > { %v839_v49 = vadd.f32 %v838_v42, %v825_v46 }
  0xb7   : > { %v852_v43 = vpop.f32.mrf.mxu2 }
  0xb8   : > { %v853_v53 = vadd.f32 %v852_v43, %v839_v49 }
  0xb9   : > { %v866_v47 = vpop.f32.mrf.mxu3 }
  0xba   : > { %v867_v57 = vadd.f32 %v866_v47, %v853_v53 }
  0xc8   : > { %v878_v45 = vpop.f32.mrf.mxu0 }
  0xc9   : > { %v879_v55 = vadd.f32 %v878_v45, %v865_v51 }
  0xca   : > { %v892_v50 = vpop.f32.mrf.mxu1 }
  0xcb   : > { %v893_v58 = vadd.f32 %v892_v50, %v879_v55 }
  0xcf   : > { %v906_v52 = vpop.f32.mrf.mxu2 }
  0xd0   : > { %v880_v54 = vpop.f32.mrf.mxu0  ;;  %v907_v63 = vadd.f32 %v906_v52, %v893_v58 }
  0xd1   : > { %v920_v56 = vpop.f32.mrf.mxu3  ;;  %v881_v59 = vadd.f32 %v880_v54, %v867_v57 }
  0xd2   : > { %v894_v60 = vpop.f32.mrf.mxu1  ;;  %v921_v3 = vadd.f32 %v920_v56, %v907_v63 }
  0xd3   : > { %v895_v0 = vadd.f32 %v894_v60, %v881_v59 }
  0xd7   : > { %v908_v61 = vpop.f32.mrf.mxu2 }
  0xd8   : > { %v909_v1 = vadd.f32 %v908_v61, %v895_v0 }
  0xd9   : > { %v922_v2 = vpop.f32.mrf.mxu3 }
  0xda   : > { %v923_v4 = vadd.f32 %v922_v2, %v909_v1 }
  0xe8   : > { %v934_v62 = vpop.f32.mrf.mxu0 }
  0xe9   : > { %v935_v5 = vadd.f32 %v934_v62, %v921_v3 }
  0xeb   : > { %v939_v8 = vmax.f32 %v935_v5, 0.0 }
  0xf0   : > { %v936_v6 = vpop.f32.mrf.mxu0 }
  0xf1   : > { %v937_v7 = vadd.f32 %v936_v6, %v923_v4 }
  0xf3   : > { %v940_v9 = vmax.f32 %v937_v7, 0.0 }
  0xf5   : > { %v1420_v10 = vpack.c.bf16 %v940_v9, %v939_v8 }
  0xf7   : > { %1421 = vst [vmem:[%s175_s20] sm:$0xff] %v1420_v10  }
  0xf8 PF: > { %s13_s12 = sadd.s32 1, %s1438_s12  }
  0xf9   : > { %p10_p4 = scmp.ge.s32.totalorder %s13_s12, 4  }
  0xfb   :  { %12 = sbr.rel (!%p10_p4) target bundleno = 1 (0x1), region = 62 }

// kernel: geolocalization_forward.31
= control target key start
LH: loop header
LB: loop body
LE: loop exit
PB: predicated region body
PF: predicated region fallthrough
CT: control target
= control target key end

     0   :  { %s286_s6 = smov 0   ;;  %s311_s0 = inlined_call_operand.vmem [shape: bf16[2,4,256], index: 0, kind: input, shape index: {}]   ;;  %s312_s1 = inlined_call_operand.vmem [shape: f32[2,1,256], index: 1, kind: output, shape index: {}]  }
   0x1 LB: > { %s241_s7 = sadd.s32 4294967295, %s272_s6   ;;  %p245_p0 = scmp.ge.s32.totalorder %s272_s6, 1  ;;  %s272_s6 = sphi %s286_s6, %s11_s6  }
   0x2   : > { %p87_p1 = scmp.lt.s32.totalorder %s272_s6, 3 }
   0x4   : > { %p88_p2 = pnand %p245_p0, %p87_p1 }
   0x5   : > { %p106_p3 = scmp.lt.s32.totalorder (!%p88_p2), %s241_s7, 1 }
   0x6   : > { %91 = sbr.rel (%p88_p2) target bundleno = 197 (0xc5), region = 24 }
   0xb   : > { %s314_s7 = smov (!%p106_p3, %s241_s7), 1  ;;  %vm124_vm0 = vcmask 1043456   ;;  %v274_v13 = vmov 839922192   ;;  %v275_v19 = vmov 4.0   ;;  %v183_v45 = vlaneseq }
   0xc   : > { %s251_s8 = sshll.u32 %s314_s7, 2  ;;  %v143_v14 = vunpack.c.l.s4 %v274_v13  ;;  %s248_s12 = sshll.u32 %s314_s7, 1  ;;  %vm180_vm5 = vcmask 1040384  }
   0xd   : > { %s110_s11 = scalar_lea.vmem %s311_s0, %s251_s8  ;;  %s114_s15 = scalar_lea.vmem %s312_s1, %s248_s12  ;;  %vm185_vm6 = vcmp.lt.s32.totalorder %v183_v45, 256 }
   0xe   : > { %v115_v0 = vld [vmem:[%s110_s11] sm:$0xf]  ;;  %v144_v17 = vunpack.c.0.s8 %v143_v14 }
   0xf   : > { %v116_v1 = vunpack.c.l.bf16 %v115_v0 }
  0x11   : > { %v117_v2 = vmul.f32 %v116_v1, %v116_v1 }
  0x13   : > { %119 = vst [vmem:[#allocation1] ss:$2 sm:$0xff] %v117_v2 }
  0x1a   : > { %v120_v3 = vld.sshfl [vmem:[#allocation1] sm:$0xff pattern:$0x75316420]  ;;  %v121_v4 = vld.sshfl [vmem:[#allocation1 + $0x8] sm:$0xff pattern:$0x75316420] }
  0x1b   : > { %v125_v5 = vsel %vm124_vm0, %v120_v3, 0.0  ;;  %v126_v6 = vsel %vm124_vm0, %v121_v4, 0.0 }
  0x1c   : > { %v127_v7 = vadd.f32 %v126_v6, %v125_v5 }
  0x1e   : > { %128 = vadd.xlane.f32.xlu0 %v127_v7 }
  0x91   : > { %v129_v8 = vpop.xlane.xlu0 %128 }
  0x92   : > { %v130_v9 = vmax.f32 %v129_v8, 1e-24 }
  0x94   : > { %262 = vrsqrt.f32 %v130_v9  ;;  %vm137_vm2 = vweird.f32 %v130_v9 }
  0x95   : > { %264 = vrcp.f32 %v275_v19 }
  0x9a   : > { %v263_v10 = vpop.eup %262 }
  0x9b   : > { %v132_v11 = vmul.f32 %v263_v10, %v130_v9  ;;  %vm138_vm1 = vweird.f32 %v263_v10  ;;  %v265_v23 = vpop.eup %264 }
  0x9c   : > { %vm139_vm3 = vmor %vm137_vm2, %vm138_vm1  ;;  %v169_v24 = vmul.f32 4.0, %v265_v23  ;;  %vm173_vm4 = vweird.f32 %v265_v23 }
  0x9d   : > { %v133_v12 = vmul.f32 %v263_v10, %v132_v11 }
  0x9e   : > { %v170_v25 = vsub.f32 1.0, %v169_v24 }
  0x9f   : > { %v134_v15 = vmul.f32 0.5, %v133_v12 }
  0xa0   : > { %v171_v32 = vmul.f32 %v265_v23, %v170_v25 }
  0xa1   : > { %v135_v16 = vsub.f32 1.5, %v134_v15 }
  0xa2   : > { %v172_v37 = vadd.f32 %v265_v23, %v171_v32 }
  0xa3   : > { %v136_v18 = vmul.f32 %v263_v10, %v135_v16 }
  0xa4   : > { %v174_v42 = vsel %vm173_vm4, %v265_v23, %v172_v37 }
  0xa5   : > { %v140_v20 = vsel %vm139_vm3, %v263_v10, %v136_v18 }
  0xa6   : > { %v145_v21 = vperm.slane %v140_v20, %v144_v17 }
  0xa8   : > { %v147_v22 = vmul.f32 %v145_v21, %v116_v1 }
  0xaa   : > { %149 = vst [vmem:[#allocation1] ss:$2 sm:$0xff] %v147_v22 }
  0xb1   : > { %v150_v26 = vld.sshfl [vmem:[#allocation1] sm:$0xff pattern:$0x75316420]  ;;  %v151_v27 = vld.sshfl [vmem:[#allocation1 + $0x8] sm:$0xff pattern:$0x75316420] }
  0xb2   : > { %v154_v28 = vsel %vm124_vm0, %v150_v26, 0.0  ;;  %v161_v29 = vsel %vm124_vm0, %v151_v27, 0.0 }
  0xb3   : > { %v155_v30 = vrot.slane %v154_v28, 4  ;;  %v162_v31 = vrot.slane %v161_v29, 4 }
  0xb5   : > { %v156_v33 = vadd.f32 %v155_v30, %v154_v28  ;;  %v163_v34 = vadd.f32 %v162_v31, %v161_v29 }
  0xb7   : > { %v157_v35 = vrot.slane %v156_v33, 2  ;;  %v164_v36 = vrot.slane %v163_v34, 2 }
  0xb9   : > { %v158_v38 = vadd.f32 %v157_v35, %v156_v33  ;;  %v165_v39 = vadd.f32 %v164_v36, %v163_v34 }
  0xbb   : > { %v159_v40 = vrot.slane %v158_v38, 1  ;;  %v166_v41 = vrot.slane %v165_v39, 1 }
  0xbd   : > { %v160_v43 = vadd.f32 %v159_v40, %v158_v38  ;;  %v167_v44 = vadd.f32 %v166_v41, %v165_v39 }
  0xbf   : > { %v176_v46 = vmul.f32 %v174_v42, %v167_v44  ;;  %v175_v47 = vmul.f32 %v174_v42, %v160_v43 }
  0xc1   : > { %v179_v48 = vrot.slane %v176_v46, 7 }
  0xc3   : > { %v181_v49 = vsel %vm180_vm5, %v175_v47, %v179_v48 }
  0xc4   : > { %187 = vst.msk [vmem:[%s114_s15] sm:$0x3] %vm185_vm6, %v181_v49 }
  0xc5 PF: > { %s11_s6 = sadd.s32 1, %s272_s6  }
  0xc6   : > { %p8_p4 = scmp.ge.s32.totalorder %s11_s6, 4  }
  0xc8   :  { %10 = sbr.rel (!%p8_p4) target bundleno = 1 (0x1), region = 54 }

// kernel: geolocalization_forward.26
= control target key start
LH: loop header
LB: loop body
LE: loop exit
PB: predicated region body
PF: predicated region fallthrough
CT: control target
= control target key end

     0   :  { %s2952_s1 = inlined_call_operand.vmem [shape: bf16[1152,256], index: 1, kind: input, shape index: {}]   ;;  %s2953_s0 = inlined_call_operand.vmem [shape: bf16[16,1152], index: 0, kind: input, shape index: {}]   ;;  %s2954_s2 = inlined_call_operand.vmem [shape: f32[1,256], index: 2, kind: input, shape index: {}]   ;;  %s2955_s3 = inlined_call_operand.vmem [shape: bf16[16,256], index: 3, kind: output, shape index: {}]  }
   0x1   :  { %v1298_v0 = vld [vmem:[%s2952_s1 + $0x70] sm:$0xf]  ;;  %v1840_v1 = vld [vmem:[%s2952_s1 + $0x74] sm:$0xf0]  ;;  %v1290_v11 = vld [vmem:[%s2952_s1 + $0x60] sm:$0xf] }
   0x2   :  { %v1362_v2 = vld [vmem:[%s2952_s1 + $0xf0] sm:$0xf]  ;;  %v1299_v3 = vor.u32 %v1840_v1, %v1298_v0  ;;  %v1856_v4 = vld [vmem:[%s2952_s1 + $0xf4] sm:$0xf0]  ;;  %v1838_v13 = vld [vmem:[%s2952_s1 + $0x64] sm:$0xf0] }
   0x3   :  { %v1426_v5 = vld [vmem:[%s2952_s1 + $0x170] sm:$0xf]  ;;  %v1872_v6 = vld [vmem:[%s2952_s1 + $0x174] sm:$0xf0]  ;;  %v1363_v7 = vor.u32 %v1856_v4, %v1362_v2  ;;  %v1354_v14 = vld [vmem:[%s2952_s1 + $0xe0] sm:$0xf]  ;;  %v1291_v16 = vor.u32 %v1838_v13, %v1290_v11 }
   0x4   :  { %v1427_v8 = vor.u32 %v1872_v6, %v1426_v5  ;;  %v1490_v9 = vld [vmem:[%s2952_s1 + $0x1f0] sm:$0xf]  ;;  %v1888_v10 = vld [vmem:[%s2952_s1 + $0x1f4] sm:$0xf0]  ;;  %940 = vmatpush.bf16.msra.mxu0 %v1299_v3  ;;  %v1854_v15 = vld [vmem:[%s2952_s1 + $0xe4] sm:$0xf0] }
   0x5   :  { %v1491_v12 = vor.u32 %v1888_v10, %v1490_v9  ;;  %954 = vmatpush.bf16.msra.mxu1 %v1363_v7  ;;  %v1355_v17 = vor.u32 %v1854_v15, %v1354_v14  ;;  %v1418_v18 = vld [vmem:[%s2952_s1 + $0x160] sm:$0xf]  ;;  %v1870_v19 = vld [vmem:[%s2952_s1 + $0x164] sm:$0xf0]  ;;  %v1282_v23 = vld [vmem:[%s2952_s1 + $0x50] sm:$0xf] }
   0x6   :  { %968 = vmatpush.bf16.msra.mxu2 %v1427_v8  ;;  %v1482_v20 = vld [vmem:[%s2952_s1 + $0x1e0] sm:$0xf]  ;;  %v1419_v21 = vor.u32 %v1870_v19, %v1418_v18  ;;  %v1886_v22 = vld [vmem:[%s2952_s1 + $0x1e4] sm:$0xf0]  ;;  %v1836_v24 = vld [vmem:[%s2952_s1 + $0x54] sm:$0xf0] }
   0x7   :  { %982 = vmatpush.bf16.msra.mxu3 %v1491_v12  ;;  %v1483_v25 = vor.u32 %v1886_v22, %v1482_v20  ;;  %v1346_v26 = vld [vmem:[%s2952_s1 + $0xd0] sm:$0xf]  ;;  %v1852_v27 = vld [vmem:[%s2952_s1 + $0xd4] sm:$0xf0]  ;;  %v1283_v29 = vor.u32 %v1836_v24, %v1282_v23  ;;  %v1274_v35 = vld [vmem:[%s2952_s1 + $0x40] sm:$0xf] }
   0x8   :  { %v1410_v28 = vld [vmem:[%s2952_s1 + $0x150] sm:$0xf]  ;;  %941 = vmatpush.bf16.msra.mxu0 %v1291_v16  ;;  %v1868_v30 = vld [vmem:[%s2952_s1 + $0x154] sm:$0xf0]  ;;  %v1347_v33 = vor.u32 %v1852_v27, %v1346_v26  ;;  %v1834_v36 = vld [vmem:[%s2952_s1 + $0x44] sm:$0xf0] }
   0x9   :  { %v1474_v31 = vld [vmem:[%s2952_s1 + $0x1d0] sm:$0xf]  ;;  %v1884_v32 = vld [vmem:[%s2952_s1 + $0x1d4] sm:$0xf0]  ;;  %955 = vmatpush.bf16.msra.mxu1 %v1355_v17  ;;  %v1411_v34 = vor.u32 %v1868_v30, %v1410_v28  ;;  %v1338_v37 = vld [vmem:[%s2952_s1 + $0xc0] sm:$0xf]  ;;  %v1275_v44 = vor.u32 %v1834_v36, %v1274_v35 }
   0xa   :  { %969 = vmatpush.bf16.msra.mxu2 %v1419_v21  ;;  %v1475_v38 = vor.u32 %v1884_v32, %v1474_v31  ;;  %v1850_v39 = vld [vmem:[%s2952_s1 + $0xc4] sm:$0xf0]  ;;  %v1402_v40 = vld [vmem:[%s2952_s1 + $0x140] sm:$0xf]  ;;  %v1266_v47 = vld [vmem:[%s2952_s1 + $0x30] sm:$0xf] }
   0xb   :  { %983 = vmatpush.bf16.msra.mxu3 %v1483_v25  ;;  %v1866_v41 = vld [vmem:[%s2952_s1 + $0x144] sm:$0xf0]  ;;  %v1466_v42 = vld [vmem:[%s2952_s1 + $0x1c0] sm:$0xf]  ;;  %v1339_v45 = vor.u32 %v1850_v39, %v1338_v37  ;;  %v1832_v48 = vld [vmem:[%s2952_s1 + $0x34] sm:$0xf0] }
   0xc   :  { %v1882_v43 = vld [vmem:[%s2952_s1 + $0x1c4] sm:$0xf0]  ;;  %942 = vmatpush.bf16.msra.mxu0 %v1283_v29  ;;  %v1403_v46 = vor.u32 %v1866_v41, %v1402_v40  ;;  %v1330_v49 = vld [vmem:[%s2952_s1 + $0xb0] sm:$0xf]  ;;  %v1848_v51 = vld [vmem:[%s2952_s1 + $0xb4] sm:$0xf0]  ;;  %v1267_v56 = vor.u32 %v1832_v48, %v1266_v47 }
   0xd   :  { %956 = vmatpush.bf16.msra.mxu1 %v1347_v33  ;;  %v1467_v50 = vor.u32 %v1882_v43, %v1466_v42  ;;  %v1394_v52 = vld [vmem:[%s2952_s1 + $0x130] sm:$0xf]  ;;  %v1864_v53 = vld [vmem:[%s2952_s1 + $0x134] sm:$0xf0]  ;;  %v1331_v57 = vor.u32 %v1848_v51, %v1330_v49  ;;  %v1258_v59 = vld [vmem:[%s2952_s1 + $0x20] sm:$0xf] }
   0xe   :  { %970 = vmatpush.bf16.msra.mxu2 %v1411_v34  ;;  %v1458_v54 = vld [vmem:[%s2952_s1 + $0x1b0] sm:$0xf]  ;;  %v1880_v55 = vld [vmem:[%s2952_s1 + $0x1b4] sm:$0xf0]  ;;  %v1395_v58 = vor.u32 %v1864_v53, %v1394_v52  ;;  %v1830_v60 = vld [vmem:[%s2952_s1 + $0x24] sm:$0xf0] }
   0xf   :  { %984 = vmatpush.bf16.msra.mxu3 %v1475_v38  ;;  %v1322_v61 = vld [vmem:[%s2952_s1 + $0xa0] sm:$0xf]  ;;  %v1459_v62 = vor.u32 %v1880_v55, %v1458_v54  ;;  %v1846_v63 = vld [vmem:[%s2952_s1 + $0xa4] sm:$0xf0]  ;;  %v1259_v4 = vor.u32 %v1830_v60, %v1258_v59  ;;  %v1250_v7 = vld [vmem:[%s2952_s1 + $0x10] sm:$0xf] }
  0x10   :  { %943 = vmatpush.bf16.msra.mxu0 %v1275_v44  ;;  %v1386_v0 = vld [vmem:[%s2952_s1 + $0x120] sm:$0xf]  ;;  %v1862_v1 = vld [vmem:[%s2952_s1 + $0x124] sm:$0xf0]  ;;  %v1323_v5 = vor.u32 %v1846_v63, %v1322_v61  ;;  %v1828_v8 = vld [vmem:[%s2952_s1 + $0x14] sm:$0xf0] }
  0x11   :  { %957 = vmatpush.bf16.msra.mxu1 %v1339_v45  ;;  %v1450_v2 = vld [vmem:[%s2952_s1 + $0x1a0] sm:$0xf]  ;;  %v1878_v3 = vld [vmem:[%s2952_s1 + $0x1a4] sm:$0xf0]  ;;  %v1387_v6 = vor.u32 %v1862_v1, %v1386_v0  ;;  %v1314_v9 = vld [vmem:[%s2952_s1 + $0x90] sm:$0xf]  ;;  %v1251_v16 = vor.u32 %v1828_v8, %v1250_v7 }
  0x12   :  { %971 = vmatpush.bf16.msra.mxu2 %v1403_v46  ;;  %v1451_v10 = vor.u32 %v1878_v3, %v1450_v2  ;;  %v1844_v11 = vld [vmem:[%s2952_s1 + $0x94] sm:$0xf0]  ;;  %v1378_v12 = vld [vmem:[%s2952_s1 + $0x110] sm:$0xf]  ;;  %v1242_v17 = vld [vmem:[%s2952_s1] sm:$0xf] }
  0x13   :  { %985 = vmatpush.bf16.msra.mxu3 %v1467_v50  ;;  %v1860_v13 = vld [vmem:[%s2952_s1 + $0x114] sm:$0xf0]  ;;  %v1442_v14 = vld [vmem:[%s2952_s1 + $0x190] sm:$0xf]  ;;  %v1826_v18 = vld [vmem:[%s2952_s1 + $0x4] sm:$0xf0]  ;;  %v1315_v19 = vor.u32 %v1844_v11, %v1314_v9 }
  0x14   :  { %944 = vmatpush.bf16.msra.mxu0 %v1267_v56  ;;  %v1876_v15 = vld [vmem:[%s2952_s1 + $0x194] sm:$0xf0]  ;;  %v1379_v20 = vor.u32 %v1860_v13, %v1378_v12  ;;  %v1306_v21 = vld [vmem:[%s2952_s1 + $0x80] sm:$0xf]  ;;  %v1842_v22 = vld [vmem:[%s2952_s1 + $0x84] sm:$0xf0]  ;;  %v1243_v31 = vor.u32 %v1826_v18, %v1242_v17 }
  0x15   :  { %958 = vmatpush.bf16.msra.mxu1 %v1331_v57  ;;  %v1370_v23 = vld [vmem:[%s2952_s1 + $0x100] sm:$0xf]  ;;  %v1443_v24 = vor.u32 %v1876_v15, %v1442_v14  ;;  %v1858_v25 = vld [vmem:[%s2952_s1 + $0x104] sm:$0xf0]  ;;  %v1554_v26 = vld [vmem:[%s2952_s1 + $0x270] sm:$0xf]  ;;  %v1307_v35 = vor.u32 %v1842_v22, %v1306_v21 }
  0x16   :  { %972 = vmatpush.bf16.msra.mxu2 %v1395_v58  ;;  %v1904_v27 = vld [vmem:[%s2952_s1 + $0x274] sm:$0xf0]  ;;  %v1618_v28 = vld [vmem:[%s2952_s1 + $0x2f0] sm:$0xf]  ;;  %v1434_v33 = vld [vmem:[%s2952_s1 + $0x180] sm:$0xf]  ;;  %v1371_v36 = vor.u32 %v1858_v25, %v1370_v23 }
  0x17   :  { %986 = vmatpush.bf16.msra.mxu3 %v1459_v62  ;;  %v1920_v29 = vld [vmem:[%s2952_s1 + $0x2f4] sm:$0xf0]  ;;  %v1682_v30 = vld [vmem:[%s2952_s1 + $0x370] sm:$0xf]  ;;  %v1874_v34 = vld [vmem:[%s2952_s1 + $0x184] sm:$0xf0]  ;;  %v1555_v39 = vor.u32 %v1904_v27, %v1554_v26 }
  0x18   :  { %945 = vmatpush.bf16.msra.mxu0 %v1259_v4  ;;  %v1936_v32 = vld [vmem:[%s2952_s1 + $0x374] sm:$0xf0]  ;;  %v1746_v37 = vld [vmem:[%s2952_s1 + $0x3f0] sm:$0xf]  ;;  %v1619_v40 = vor.u32 %v1920_v29, %v1618_v28  ;;  %v1546_v41 = vld [vmem:[%s2952_s1 + $0x260] sm:$0xf]  ;;  %v1435_v44 = vor.u32 %v1874_v34, %v1434_v33 }
  0x19   :  { %959 = vmatpush.bf16.msra.mxu1 %v1323_v5  ;;  %v1952_v38 = vld [vmem:[%s2952_s1 + $0x3f4] sm:$0xf0]  ;;  %v1902_v42 = vld [vmem:[%s2952_s1 + $0x264] sm:$0xf0]  ;;  %v1683_v43 = vor.u32 %v1936_v32, %v1682_v30  ;;  %v1610_v45 = vld [vmem:[%s2952_s1 + $0x2e0] sm:$0xf] }
  0x1a   :  { %973 = vmatpush.bf16.msra.mxu2 %v1387_v6  ;;  %v1918_v46 = vld [vmem:[%s2952_s1 + $0x2e4] sm:$0xf0]  ;;  %v1674_v47 = vld [vmem:[%s2952_s1 + $0x360] sm:$0xf]  ;;  %v1747_v48 = vor.u32 %v1952_v38, %v1746_v37  ;;  %v1538_v52 = vld [vmem:[%s2952_s1 + $0x250] sm:$0xf]  ;;  %v1547_v56 = vor.u32 %v1902_v42, %v1546_v41 }
  0x1b   :  { %987 = vmatpush.bf16.msra.mxu3 %v1451_v10  ;;  %v1934_v49 = vld [vmem:[%s2952_s1 + $0x364] sm:$0xf0]  ;;  %v1738_v50 = vld [vmem:[%s2952_s1 + $0x3e0] sm:$0xf]  ;;  %v1820_v54 = vld [vmem:[%s2953_s0 + $0x20] sm:$0xf0]  ;;  %v1611_v57 = vor.u32 %v1918_v46, %v1610_v45 }
  0x1c   :  { %946 = vmatpush.bf16.msra.mxu0 %v1251_v16  ;;  %v1950_v51 = vld [vmem:[%s2952_s1 + $0x3e4] sm:$0xf0]  ;;  %v1206_v53 = vld [vmem:[%s2953_s0] sm:$0xf]  ;;  %v1900_v58 = vld [vmem:[%s2952_s1 + $0x254] sm:$0xf0]  ;;  %v1675_v62 = vor.u32 %v1934_v49, %v1674_v47 }
  0x1d   :  { %960 = vmatpush.bf16.msra.mxu1 %v1315_v19  ;;  %v1214_v55 = vld [vmem:[%s2953_s0 + $0x8] sm:$0xf]  ;;  %v1602_v59 = vld [vmem:[%s2952_s1 + $0x2d0] sm:$0xf]  ;;  %v2247_v60 = vor.u32 %v1820_v54, %v1206_v53  ;;  %v1821_v61 = vld [vmem:[%s2953_s0 + $0x28] sm:$0xf0]  ;;  %v1739_v3 = vor.u32 %v1950_v51, %v1738_v50  ;;  %v1539_v11 = vor.u32 %v1900_v58, %v1538_v52 }
  0x1e   :  { %974 = vmatpush.bf16.msra.mxu2 %v1379_v20  ;;  %v1916_v63 = vld [vmem:[%s2952_s1 + $0x2d4] sm:$0xf0]  ;;  %v1666_v0 = vld [vmem:[%s2952_s1 + $0x350] sm:$0xf]  ;;  %v2261_v2 = vor.u32 %v1821_v61, %v1214_v55  ;;  %v1816_v5 = vld [vmem:[%s2953_s0 + $0x4] sm:$0xf] }
  0x1f   :  { %988 = vmatpush.bf16.msra.mxu3 %v1443_v24  ;;  %v1932_v1 = vld [vmem:[%s2952_s1 + $0x354] sm:$0xf0]  ;;  %v1730_v4 = vld [vmem:[%s2952_s1 + $0x3d0] sm:$0xf]  ;;  %v1208_v6 = vld [vmem:[%s2953_s0 + $0x24] sm:$0xf0]  ;;  %v1603_v12 = vor.u32 %v1916_v63, %v1602_v59 }
  0x20   :  { %947 = vmatpush.bf16.msra.mxu0 %v1243_v31  ;;  %v1948_v7 = vld [vmem:[%s2952_s1 + $0x3d4] sm:$0xf0]  ;;  %v2277_v8 = vor.u32 %v1816_v5, %v1208_v6  ;;  %v1817_v9 = vld [vmem:[%s2953_s0 + $0xc] sm:$0xf]  ;;  %v1216_v10 = vld [vmem:[%s2953_s0 + $0x2c] sm:$0xf0]  ;;  %v1667_v15 = vor.u32 %v1932_v1, %v1666_v0 }
  0x21   :  { %961 = vmatpush.bf16.msra.mxu1 %v1307_v35  ;;  %v1530_v13 = vld [vmem:[%s2952_s1 + $0x240] sm:$0xf]  ;;  %v2288_v14 = vor.u32 %v1817_v9, %v1216_v10  ;;  %v1898_v16 = vld [vmem:[%s2952_s1 + $0x244] sm:$0xf0]  ;;  %v1731_v19 = vor.u32 %v1948_v7, %v1730_v4  ;;  %v1522_v26 = vld [vmem:[%s2952_s1 + $0x230] sm:$0xf] }
  0x22   :  { %975 = vmatpush.bf16.msra.mxu2 %v1371_v36  ;;  %v1594_v17 = vld [vmem:[%s2952_s1 + $0x2c0] sm:$0xf]  ;;  %v1914_v18 = vld [vmem:[%s2952_s1 + $0x2c4] sm:$0xf0]  ;;  %v1531_v24 = vor.u32 %v1898_v16, %v1530_v13  ;;  %v1896_v28 = vld [vmem:[%s2952_s1 + $0x234] sm:$0xf0] }
  0x23   :  { %989 = vmatpush.bf16.msra.mxu3 %v1435_v44  ;;  %948 = vmatmul.bf16.vlgmr.msra.gmra.mxu0 %v2247_v60  ;;  %v1658_v20 = vld [vmem:[%s2952_s1 + $0x340] sm:$0xf]  ;;  %v1930_v21 = vld [vmem:[%s2952_s1 + $0x344] sm:$0xf0]  ;;  %v1595_v25 = vor.u32 %v1914_v18, %v1594_v17  ;;  %v1586_v29 = vld [vmem:[%s2952_s1 + $0x2b0] sm:$0xf]  ;;  %v1523_v36 = vor.u32 %v1896_v28, %v1522_v26 }
  0x24   :  { %996 = vmatpush.bf16.msrb.mxu0 %v1555_v39  ;;  %962 = vmatmul.bf16.vlgmr.msra.gmra.mxu1 %v2277_v8  ;;  %v1722_v22 = vld [vmem:[%s2952_s1 + $0x3c0] sm:$0xf]  ;;  %v1946_v23 = vld [vmem:[%s2952_s1 + $0x3c4] sm:$0xf0]  ;;  %v1659_v27 = vor.u32 %v1930_v21, %v1658_v20  ;;  %v1912_v30 = vld [vmem:[%s2952_s1 + $0x2b4] sm:$0xf0] }
  0x25   :  { %1010 = vmatpush.bf16.msrb.mxu1 %v1619_v40  ;;  %976 = vmatmul.bf16.vlgmr.msra.gmra.mxu2 %v2261_v2  ;;  %v1723_v31 = vor.u32 %v1946_v23, %v1722_v22  ;;  %v1650_v32 = vld [vmem:[%s2952_s1 + $0x330] sm:$0xf]  ;;  %v1928_v33 = vld [vmem:[%s2952_s1 + $0x334] sm:$0xf0]  ;;  %v1587_v37 = vor.u32 %v1912_v30, %v1586_v29  ;;  %v1514_v38 = vld [vmem:[%s2952_s1 + $0x220] sm:$0xf] }
  0x26   :  { %1024 = vmatpush.bf16.msrb.mxu2 %v1683_v43  ;;  %990 = vmatmul.bf16.vlgmr.msra.gmra.mxu3 %v2288_v14  ;;  %v1714_v34 = vld [vmem:[%s2952_s1 + $0x3b0] sm:$0xf]  ;;  %v1944_v35 = vld [vmem:[%s2952_s1 + $0x3b4] sm:$0xf0]  ;;  %v1651_v39 = vor.u32 %v1928_v33, %v1650_v32  ;;  %v1894_v40 = vld [vmem:[%s2952_s1 + $0x224] sm:$0xf0] }
  0x27   :  { %1038 = vmatpush.bf16.msrb.mxu3 %v1747_v48  ;;  %v1578_v41 = vld [vmem:[%s2952_s1 + $0x2a0] sm:$0xf]  ;;  %v1910_v42 = vld [vmem:[%s2952_s1 + $0x2a4] sm:$0xf0]  ;;  %v1715_v43 = vor.u32 %v1944_v35, %v1714_v34  ;;  %v1515_v48 = vor.u32 %v1894_v40, %v1514_v38  ;;  %v1506_v50 = vld [vmem:[%s2952_s1 + $0x210] sm:$0xf] }
  0x28   :  { %997 = vmatpush.bf16.msrb.mxu0 %v1547_v56  ;;  %v1642_v44 = vld [vmem:[%s2952_s1 + $0x320] sm:$0xf]  ;;  %v1926_v45 = vld [vmem:[%s2952_s1 + $0x324] sm:$0xf0]  ;;  %v1579_v49 = vor.u32 %v1910_v42, %v1578_v41  ;;  %v1892_v51 = vld [vmem:[%s2952_s1 + $0x214] sm:$0xf0] }
  0x29   :  { %1011 = vmatpush.bf16.msrb.mxu1 %v1611_v57  ;;  %v1706_v46 = vld [vmem:[%s2952_s1 + $0x3a0] sm:$0xf]  ;;  %v1942_v47 = vld [vmem:[%s2952_s1 + $0x3a4] sm:$0xf0]  ;;  %v1643_v52 = vor.u32 %v1926_v45, %v1642_v44  ;;  %v1570_v53 = vld [vmem:[%s2952_s1 + $0x290] sm:$0xf]  ;;  %v1507_v1 = vor.u32 %v1892_v51, %v1506_v50 }
  0x2a   :  { %1025 = vmatpush.bf16.msrb.mxu2 %v1675_v62  ;;  %v1908_v54 = vld [vmem:[%s2952_s1 + $0x294] sm:$0xf0]  ;;  %v1634_v55 = vld [vmem:[%s2952_s1 + $0x310] sm:$0xf]  ;;  %v1707_v56 = vor.u32 %v1942_v47, %v1706_v46  ;;  %v1498_v61 = vld [vmem:[%s2952_s1 + $0x200] sm:$0xf] }
  0x2b   :  { %1039 = vmatpush.bf16.msrb.mxu3 %v1739_v3  ;;  %v1924_v57 = vld [vmem:[%s2952_s1 + $0x314] sm:$0xf0]  ;;  %v1698_v58 = vld [vmem:[%s2952_s1 + $0x390] sm:$0xf]  ;;  %v1890_v62 = vld [vmem:[%s2952_s1 + $0x204] sm:$0xf0]  ;;  %v1571_v3 = vor.u32 %v1908_v54, %v1570_v53 }
  0x2c   :  { %998 = vmatpush.bf16.msrb.mxu0 %v1539_v11  ;;  %v1940_v59 = vld [vmem:[%s2952_s1 + $0x394] sm:$0xf0]  ;;  %v1562_v63 = vld [vmem:[%s2952_s1 + $0x280] sm:$0xf]  ;;  %v1906_v0 = vld [vmem:[%s2952_s1 + $0x284] sm:$0xf0]  ;;  %v1635_v7 = vor.u32 %v1924_v57, %v1634_v55  ;;  %v1499_v20 = vor.u32 %v1890_v62, %v1498_v61 }
  0x2d   :  { %1012 = vmatpush.bf16.msrb.mxu1 %v1603_v12  ;;  %v1626_v4 = vld [vmem:[%s2952_s1 + $0x300] sm:$0xf]  ;;  %v1922_v5 = vld [vmem:[%s2952_s1 + $0x304] sm:$0xf0]  ;;  %v1810_v6 = vld [vmem:[%s2952_s1 + $0x470] sm:$0xf]  ;;  %v1699_v12 = vor.u32 %v1940_v59, %v1698_v58  ;;  %v1563_v21 = vor.u32 %v1906_v0, %v1562_v63 }
  0x2e   :  { %1026 = vmatpush.bf16.msrb.mxu2 %v1667_v15  ;;  %v1968_v9 = vld [vmem:[%s2952_s1 + $0x474] sm:$0xf0]  ;;  %v1839_v10 = vld [vmem:[%s2952_s1 + $0x74] sm:$0xf]  ;;  %v1300_v11 = vld [vmem:[%s2952_s1 + $0x78] sm:$0xf0] }
  0x2f   :  { %1040 = vmatpush.bf16.msrb.mxu3 %v1731_v19  ;;  %v1855_v13 = vld [vmem:[%s2952_s1 + $0xf4] sm:$0xf]  ;;  %v1364_v15 = vld [vmem:[%s2952_s1 + $0xf8] sm:$0xf0]  ;;  %v1690_v16 = vld [vmem:[%s2952_s1 + $0x380] sm:$0xf]  ;;  %v1811_v26 = vor.u32 %v1968_v9, %v1810_v6  ;;  %v1303_v30 = vor.u32 %v1839_v10, %v1300_v11 }
  0x30   :  { %999 = vmatpush.bf16.msrb.mxu0 %v1531_v24  ;;  %v1938_v17 = vld [vmem:[%s2952_s1 + $0x384] sm:$0xf0]  ;;  %v1222_v18 = vld [vmem:[%s2953_s0 + $0x10] sm:$0xf]  ;;  %v1822_v19 = vld [vmem:[%s2953_s0 + $0x30] sm:$0xf0] }
  0x31   :  { %1013 = vmatpush.bf16.msrb.mxu1 %v1595_v25  ;;  %v1230_v22 = vld [vmem:[%s2953_s0 + $0x18] sm:$0xf]  ;;  %v1823_v23 = vld [vmem:[%s2953_s0 + $0x38] sm:$0xf0]  ;;  %v1871_v24 = vld [vmem:[%s2952_s1 + $0x174] sm:$0xf]  ;;  %v1627_v25 = vor.u32 %v1922_v5, %v1626_v4  ;;  %v1691_v35 = vor.u32 %v1938_v17, %v1690_v16 }
  0x32   :  { %1027 = vmatpush.bf16.msrb.mxu2 %v1659_v27  ;;  %v1428_v27 = vld [vmem:[%s2952_s1 + $0x178] sm:$0xf0]  ;;  %v1818_v28 = vld [vmem:[%s2953_s0 + $0x14] sm:$0xf]  ;;  %v1224_v29 = vld [vmem:[%s2953_s0 + $0x34] sm:$0xf0]  ;;  %v2471_v40 = vor.u32 %v1823_v23, %v1230_v22 }
  0x33   :  { %1041 = vmatpush.bf16.msrb.mxu3 %v1723_v31  ;;  %v1367_v31 = vor.u32 %v1855_v13, %v1364_v15  ;;  %v1819_v32 = vld [vmem:[%s2953_s0 + $0x1c] sm:$0xf]  ;;  %v1802_v33 = vld [vmem:[%s2952_s1 + $0x460] sm:$0xf]  ;;  %v1966_v34 = vld [vmem:[%s2952_s1 + $0x464] sm:$0xf0]  ;;  %v1431_v41 = vor.u32 %v1871_v24, %v1428_v27  ;;  %v2479_v44 = vor.u32 %v1818_v28, %v1224_v29 }
  0x34   :  { %1000 = vmatpush.bf16.msrb.mxu0 %v1523_v36  ;;  %v2460_v36 = vor.u32 %v1822_v19, %v1222_v18  ;;  %v1837_v38 = vld [vmem:[%s2952_s1 + $0x64] sm:$0xf]  ;;  %v1803_v45 = vor.u32 %v1966_v34, %v1802_v33  ;;  %v1420_v47 = vld [vmem:[%s2952_s1 + $0x168] sm:$0xf0]  ;;  %v1794_v50 = vld [vmem:[%s2952_s1 + $0x450] sm:$0xf] }
  0x35   :  { %1014 = vmatpush.bf16.msrb.mxu1 %v1587_v37  ;;  %v1232_v37 = vld [vmem:[%s2953_s0 + $0x3c] sm:$0xf0]  ;;  %v1853_v42 = vld [vmem:[%s2952_s1 + $0xe4] sm:$0xf]  ;;  %v1964_v51 = vld [vmem:[%s2952_s1 + $0x454] sm:$0xf0] }
  0x36   :  { %1028 = vmatpush.bf16.msrb.mxu2 %v1651_v39  ;;  %v1292_v39 = vld [vmem:[%s2952_s1 + $0x68] sm:$0xf0]  ;;  %v1869_v46 = vld [vmem:[%s2952_s1 + $0x164] sm:$0xf]  ;;  %v1835_v53 = vld [vmem:[%s2952_s1 + $0x54] sm:$0xf]  ;;  %v1795_v58 = vor.u32 %v1964_v51, %v1794_v50 }
  0x37   :  { %1042 = vmatpush.bf16.msrb.mxu3 %v1715_v43  ;;  %v1356_v43 = vld [vmem:[%s2952_s1 + $0xe8] sm:$0xf0]  ;;  %v1284_v54 = vld [vmem:[%s2952_s1 + $0x58] sm:$0xf0]  ;;  %v1423_v55 = vor.u32 %v1869_v46, %v1420_v47  ;;  %v1867_v59 = vld [vmem:[%s2952_s1 + $0x154] sm:$0xf] }
  0x38   :  { %1001 = vmatpush.bf16.msrb.mxu0 %v1515_v48  ;;  %v2487_v48 = vor.u32 %v1819_v32, %v1232_v37  ;;  %v1348_v57 = vld [vmem:[%s2952_s1 + $0xd8] sm:$0xf0]  ;;  %v1287_v62 = vor.u32 %v1835_v53, %v1284_v54  ;;  %v1786_v63 = vld [vmem:[%s2952_s1 + $0x440] sm:$0xf]  ;;  %v1962_v0 = vld [vmem:[%s2952_s1 + $0x444] sm:$0xf0] }
  0x39   :  { %1015 = vmatpush.bf16.msrb.mxu1 %v1579_v49  ;;  %v1295_v49 = vor.u32 %v1837_v38, %v1292_v39  ;;  %v1412_v61 = vld [vmem:[%s2952_s1 + $0x158] sm:$0xf0]  ;;  %v1276_v4 = vld [vmem:[%s2952_s1 + $0x48] sm:$0xf0]  ;;  %v1849_v6 = vld [vmem:[%s2952_s1 + $0xc4] sm:$0xf]  ;;  %v1787_v9 = vor.u32 %v1962_v0, %v1786_v63 }
  0x3a   :  { %1029 = vmatpush.bf16.msrb.mxu2 %v1643_v52  ;;  %v1359_v52 = vor.u32 %v1853_v42, %v1356_v43  ;;  %v1415_v5 = vor.u32 %v1867_v59, %v1412_v61  ;;  %v1865_v10 = vld [vmem:[%s2952_s1 + $0x144] sm:$0xf]  ;;  %v1404_v11 = vld [vmem:[%s2952_s1 + $0x148] sm:$0xf0]  ;;  %v1778_v13 = vld [vmem:[%s2952_s1 + $0x430] sm:$0xf] }
  0x3b   :  { %1043 = vmatpush.bf16.msrb.mxu3 %v1707_v56  ;;  %v1851_v56 = vld [vmem:[%s2952_s1 + $0xd4] sm:$0xf]  ;;  %v1960_v15 = vld [vmem:[%s2952_s1 + $0x434] sm:$0xf0]  ;;  %v1268_v18 = vld [vmem:[%s2952_s1 + $0x38] sm:$0xf0]  ;;  %v1407_v19 = vor.u32 %v1865_v10, %v1404_v11 }
  0x3c   :  { %1002 = vmatpush.bf16.msrb.mxu0 %v1507_v1  ;;  %v1351_v1 = vor.u32 %v1851_v56, %v1348_v57  ;;  %v1831_v17 = vld [vmem:[%s2952_s1 + $0x34] sm:$0xf]  ;;  %v1779_v22 = vor.u32 %v1960_v15, %v1778_v13  ;;  %v1396_v24 = vld [vmem:[%s2952_s1 + $0x138] sm:$0xf0]  ;;  %v1958_v27 = vld [vmem:[%s2952_s1 + $0x424] sm:$0xf0] }
  0x3d   :  { %1016 = vmatpush.bf16.msrb.mxu1 %v1571_v3  ;;  %v1833_v3 = vld [vmem:[%s2952_s1 + $0x44] sm:$0xf]  ;;  %v1863_v23 = vld [vmem:[%s2952_s1 + $0x134] sm:$0xf]  ;;  %v1324_v33 = vld [vmem:[%s2952_s1 + $0xa8] sm:$0xf0] }
  0x3e   :  { %1030 = vmatpush.bf16.msrb.mxu2 %v1635_v7  ;;  %v1340_v7 = vld [vmem:[%s2952_s1 + $0xc8] sm:$0xf0]  ;;  %v1829_v29 = vld [vmem:[%s2952_s1 + $0x24] sm:$0xf]  ;;  %v1762_v39 = vld [vmem:[%s2952_s1 + $0x410] sm:$0xf] }
  0x3f   :  { %1044 = vmatpush.bf16.msrb.mxu3 %v1699_v12  ;;  %v1279_v12 = vor.u32 %v1833_v3, %v1276_v4  ;;  %v1343_v16 = vor.u32 %v1849_v6, %v1340_v7  ;;  %v1845_v32 = vld [vmem:[%s2952_s1 + $0xa4] sm:$0xf]  ;;  %v1388_v37 = vld [vmem:[%s2952_s1 + $0x128] sm:$0xf0]  ;;  %v1827_v43 = vld [vmem:[%s2952_s1 + $0x14] sm:$0xf] }
  0x40   :  { %1003 = vmatpush.bf16.msrb.mxu0 %v1499_v20  ;;  %v1847_v20 = vld [vmem:[%s2952_s1 + $0xb4] sm:$0xf]  ;;  %v1327_v42 = vor.u32 %v1845_v32, %v1324_v33  ;;  %v1380_v51 = vld [vmem:[%s2952_s1 + $0x118] sm:$0xf0]  ;;  %v1754_v53 = vld [vmem:[%s2952_s1 + $0x400] sm:$0xf] }
  0x41   :  { %1017 = vmatpush.bf16.msrb.mxu1 %v1563_v21  ;;  %v1332_v21 = vld [vmem:[%s2952_s1 + $0xb8] sm:$0xf0]  ;;  %v1843_v46 = vld [vmem:[%s2952_s1 + $0x94] sm:$0xf]  ;;  %v1954_v54 = vld [vmem:[%s2952_s1 + $0x404] sm:$0xf0] }
  0x42   :  { %1031 = vmatpush.bf16.msrb.mxu2 %v1627_v25  ;;  %v1271_v25 = vor.u32 %v1831_v17, %v1268_v18  ;;  %v1335_v28 = vor.u32 %v1847_v20, %v1332_v21  ;;  %v1859_v50 = vld [vmem:[%s2952_s1 + $0x114] sm:$0xf]  ;;  %v1244_v57 = vld [vmem:[%s2952_s1 + $0x8] sm:$0xf0]  ;;  %v1492_v63 = vld [vmem:[%s2952_s1 + $0x1f8] sm:$0xf0]  ;;  %v1755_v6 = vor.u32 %v1954_v54, %v1754_v53 }
  0x43   :  { %1045 = vmatpush.bf16.msrb.mxu3 %v1691_v35  ;;  %1004 = vmatmul.bf16.vlgmr.msrb.gmra.mxu0 %v2460_v36  ;;  %v1861_v35 = vld [vmem:[%s2952_s1 + $0x124] sm:$0xf]  ;;  %v1308_v59 = vld [vmem:[%s2952_s1 + $0x88] sm:$0xf0]  ;;  %v1903_v0 = vld [vmem:[%s2952_s1 + $0x274] sm:$0xf] }
  0x44   :  { %1052 = vmatpush.bf16.msra.mxu0 %v1811_v26  ;;  %1018 = vmatmul.bf16.vlgmr.msrb.gmra.mxu1 %v2479_v44  ;;  %v1770_v26 = vld [vmem:[%s2952_s1 + $0x420] sm:$0xf]  ;;  %v1391_v47 = vor.u32 %v1861_v35, %v1388_v37  ;;  %v1556_v3 = vld [vmem:[%s2952_s1 + $0x278] sm:$0xf0]  ;;  %v1919_v4 = vld [vmem:[%s2952_s1 + $0x2f4] sm:$0xf] }
  0x45   :  { %1066 = vmatpush.bf16.msra.mxu1 %v1303_v30  ;;  %1032 = vmatmul.bf16.vlgmr.msrb.gmra.mxu2 %v2471_v40  ;;  %v1260_v30 = vld [vmem:[%s2952_s1 + $0x28] sm:$0xf0]  ;;  %v1771_v34 = vor.u32 %v1958_v27, %v1770_v26  ;;  %v1857_v7 = vld [vmem:[%s2952_s1 + $0x104] sm:$0xf]  ;;  %v1238_v10 = vld [vmem:[%s2953_s0 + $0x20] sm:$0xf]  ;;  %v1559_v18 = vor.u32 %v1903_v0, %v1556_v3 }
  0x46   :  { %1080 = vmatpush.bf16.msra.mxu2 %v1367_v31  ;;  %1046 = vmatmul.bf16.vlgmr.msrb.gmra.mxu3 %v2487_v48  ;;  %v1399_v31 = vor.u32 %v1863_v23, %v1396_v24  ;;  %v1263_v38 = vor.u32 %v1829_v29, %v1260_v30  ;;  %v1824_v13 = vld [vmem:[%s2953_s0 + $0x40] sm:$0xf0]  ;;  %v1935_v15 = vld [vmem:[%s2952_s1 + $0x374] sm:$0xf]  ;;  %v1484_v20 = vld [vmem:[%s2952_s1 + $0x1e8] sm:$0xf0] }
  0x47   :  { %1094 = vmatpush.bf16.msra.mxu3 %v1431_v41  ;;  %v1956_v41 = vld [vmem:[%s2952_s1 + $0x414] sm:$0xf0]  ;;  %v1901_v23 = vld [vmem:[%s2952_s1 + $0x264] sm:$0xf]  ;;  %v1548_v24 = vld [vmem:[%s2952_s1 + $0x268] sm:$0xf0] }
  0x48   :  { %1053 = vmatpush.bf16.msra.mxu0 %v1803_v45  ;;  %v1252_v45 = vld [vmem:[%s2952_s1 + $0x18] sm:$0xf0]  ;;  %v1917_v27 = vld [vmem:[%s2952_s1 + $0x2e4] sm:$0xf]  ;;  %v1551_v32 = vor.u32 %v1901_v23, %v1548_v24  ;;  %v1883_v33 = vld [vmem:[%s2952_s1 + $0x1d4] sm:$0xf] }
  0x49   :  { %1067 = vmatpush.bf16.msra.mxu1 %v1295_v49  ;;  %v1316_v49 = vld [vmem:[%s2952_s1 + $0x98] sm:$0xf0]  ;;  %v1255_v56 = vor.u32 %v1827_v43, %v1252_v45  ;;  %v1933_v30 = vld [vmem:[%s2952_s1 + $0x364] sm:$0xf]  ;;  %v1899_v37 = vld [vmem:[%s2952_s1 + $0x254] sm:$0xf] }
  0x4a   :  { %1081 = vmatpush.bf16.msra.mxu2 %v1359_v52  ;;  %v1763_v52 = vor.u32 %v1956_v41, %v1762_v39  ;;  %v1319_v61 = vor.u32 %v1843_v46, %v1316_v49  ;;  %v1915_v41 = vld [vmem:[%s2952_s1 + $0x2d4] sm:$0xf]  ;;  %v1668_v46 = vld [vmem:[%s2952_s1 + $0x358] sm:$0xf0]  ;;  %v1881_v49 = vld [vmem:[%s2952_s1 + $0x1c4] sm:$0xf] }
  0x4b   :  { %1095 = vmatpush.bf16.msra.mxu3 %v1423_v55  ;;  %v1825_v55 = vld [vmem:[%s2952_s1 + $0x4] sm:$0xf]  ;;  %v1931_v45 = vld [vmem:[%s2952_s1 + $0x354] sm:$0xf]  ;;  %v1588_v3 = vld [vmem:[%s2952_s1 + $0x2b8] sm:$0xf0] }
  0x4c   :  { %1054 = vmatpush.bf16.msra.mxu0 %v1795_v58  ;;  %v1841_v58 = vld [vmem:[%s2952_s1 + $0x84] sm:$0xf]  ;;  %v1247_v11 = vor.u32 %v1825_v55, %v1244_v57  ;;  %v1671_v53 = vor.u32 %v1931_v45, %v1668_v46  ;;  %v1444_v23 = vld [vmem:[%s2952_s1 + $0x198] sm:$0xf0] }
  0x4d   :  { %1068 = vmatpush.bf16.msra.mxu1 %v1287_v62  ;;  %v1887_v62 = vld [vmem:[%s2952_s1 + $0x1f4] sm:$0xf]  ;;  %v1311_v17 = vor.u32 %v1841_v58, %v1308_v59  ;;  %v1913_v54 = vld [vmem:[%s2952_s1 + $0x2c4] sm:$0xf]  ;;  %v1460_v59 = vld [vmem:[%s2952_s1 + $0x1b8] sm:$0xf0] }
  0x4e   :  { %1082 = vmatpush.bf16.msra.mxu2 %v1351_v1  ;;  %v1383_v1 = vor.u32 %v1859_v50, %v1380_v51  ;;  %v1468_v50 = vld [vmem:[%s2952_s1 + $0x1c8] sm:$0xf0]  ;;  %v1879_v58 = vld [vmem:[%s2952_s1 + $0x1b4] sm:$0xf]  ;;  %v1748_v45 = vld [vmem:[%s2952_s1 + $0x3f8] sm:$0xf0] }
  0x4f   :  { %1096 = vmatpush.bf16.msra.mxu3 %v1415_v5  ;;  %v1620_v5 = vld [vmem:[%s2952_s1 + $0x2f8] sm:$0xf0]  ;;  %v1471_v55 = vor.u32 %v1881_v49, %v1468_v50  ;;  %v1967_v49 = vld [vmem:[%s2952_s1 + $0x474] sm:$0xf] }
  0x50   :  { %1055 = vmatpush.bf16.msra.mxu0 %v1787_v9  ;;  %v1372_v9 = vld [vmem:[%s2952_s1 + $0x108] sm:$0xf0]  ;;  %v1623_v21 = vor.u32 %v1919_v4, %v1620_v5  ;;  %v1463_v4 = vor.u32 %v1879_v58, %v1460_v59  ;;  %v1927_v5 = vld [vmem:[%s2952_s1 + $0x334] sm:$0xf]  ;;  %v1812_v50 = vld [vmem:[%s2952_s1 + $0x478] sm:$0xf0] }
  0x51   :  { %1069 = vmatpush.bf16.msra.mxu1 %v1279_v12  ;;  %v1495_v12 = vor.u32 %v1887_v62, %v1492_v63  ;;  %v1895_v62 = vld [vmem:[%s2952_s1 + $0x234] sm:$0xf]  ;;  %v1524_v63 = vld [vmem:[%s2952_s1 + $0x238] sm:$0xf0]  ;;  %v1965_v58 = vld [vmem:[%s2952_s1 + $0x464] sm:$0xf] }
  0x52   :  { %1083 = vmatpush.bf16.msra.mxu2 %v1343_v16  ;;  %v1684_v16 = vld [vmem:[%s2952_s1 + $0x378] sm:$0xf0]  ;;  %v1804_v59 = vld [vmem:[%s2952_s1 + $0x468] sm:$0xf0] }
  0x53   :  { %1097 = vmatpush.bf16.msra.mxu3 %v1407_v19  ;;  %v1885_v19 = vld [vmem:[%s2952_s1 + $0x1e4] sm:$0xf]  ;;  %v1687_v26 = vor.u32 %v1935_v15, %v1684_v16 }
  0x54   :  { %1056 = vmatpush.bf16.msra.mxu0 %v1779_v22  ;;  %v1375_v22 = vor.u32 %v1857_v7, %v1372_v9  ;;  %v1487_v29 = vor.u32 %v1885_v19, %v1484_v20  ;;  %v1527_v7 = vor.u32 %v1895_v62, %v1524_v63  ;;  %v1877_v9 = vld [vmem:[%s2952_s1 + $0x1a4] sm:$0xf]  ;;  %v1644_v20 = vld [vmem:[%s2952_s1 + $0x328] sm:$0xf0]  ;;  %v1807_v62 = vor.u32 %v1965_v58, %v1804_v59  ;;  %v1947_v63 = vld [vmem:[%s2952_s1 + $0x3d4] sm:$0xf] }
  0x55   :  { %1070 = vmatpush.bf16.msra.mxu1 %v1271_v25  ;;  %v2679_v25 = vor.u32 %v1824_v13, %v1238_v10  ;;  %v1452_v10 = vld [vmem:[%s2952_s1 + $0x1a8] sm:$0xf0]  ;;  %v1909_v16 = vld [vmem:[%s2952_s1 + $0x2a4] sm:$0xf] }
  0x56   :  { %1084 = vmatpush.bf16.msra.mxu2 %v1335_v28  ;;  %v1612_v28 = vld [vmem:[%s2952_s1 + $0x2e8] sm:$0xf0]  ;;  %v1925_v19 = vld [vmem:[%s2952_s1 + $0x324] sm:$0xf] }
  0x57   :  { %1098 = vmatpush.bf16.msra.mxu3 %v1399_v31  ;;  %v1676_v31 = vld [vmem:[%s2952_s1 + $0x368] sm:$0xf0]  ;;  %v1615_v35 = vor.u32 %v1917_v27, %v1612_v28  ;;  %v1508_v27 = vld [vmem:[%s2952_s1 + $0x218] sm:$0xf0]  ;;  %v1647_v28 = vor.u32 %v1925_v19, %v1644_v20 }
  0x58   :  { %1057 = vmatpush.bf16.msra.mxu0 %v1771_v34  ;;  %v1476_v34 = vld [vmem:[%s2952_s1 + $0x1d8] sm:$0xf0]  ;;  %v1679_v39 = vor.u32 %v1933_v30, %v1676_v31  ;;  %v1516_v13 = vld [vmem:[%s2952_s1 + $0x228] sm:$0xf0] }
  0x59   :  { %1071 = vmatpush.bf16.msra.mxu1 %v1263_v38  ;;  %v1540_v38 = vld [vmem:[%s2952_s1 + $0x258] sm:$0xf0]  ;;  %v1479_v43 = vor.u32 %v1883_v33, %v1476_v34  ;;  %v1873_v34 = vld [vmem:[%s2952_s1 + $0x184] sm:$0xf]  ;;  %v1772_v19 = vld [vmem:[%s2952_s1 + $0x428] sm:$0xf0] }
  0x5a   :  { %1085 = vmatpush.bf16.msra.mxu2 %v1327_v42  ;;  %v1604_v42 = vld [vmem:[%s2952_s1 + $0x2d8] sm:$0xf0] }
  0x5b   :  { %1099 = vmatpush.bf16.msra.mxu3 %v1391_v47  ;;  %v1543_v47 = vor.u32 %v1899_v37, %v1540_v38  ;;  %v1607_v51 = vor.u32 %v1915_v41, %v1604_v42  ;;  %v1572_v30 = vld [vmem:[%s2952_s1 + $0x298] sm:$0xf0]  ;;  %v1436_v37 = vld [vmem:[%s2952_s1 + $0x188] sm:$0xf0]  ;;  %v1889_v38 = vld [vmem:[%s2952_s1 + $0x204] sm:$0xf] }
  0x5c   :  { %1058 = vmatpush.bf16.msra.mxu0 %v1763_v52  ;;  %v1897_v52 = vld [vmem:[%s2952_s1 + $0x244] sm:$0xf]  ;;  %v1636_v33 = vld [vmem:[%s2952_s1 + $0x318] sm:$0xf0] }
  0x5d   :  { %1072 = vmatpush.bf16.msra.mxu1 %v1255_v56  ;;  %v1929_v56 = vld [vmem:[%s2952_s1 + $0x344] sm:$0xf] }
  0x5e   :  { %1086 = vmatpush.bf16.msra.mxu2 %v1319_v61  ;;  %v1905_v42 = vld [vmem:[%s2952_s1 + $0x284] sm:$0xf] }
  0x5f   :  { %1100 = vmatpush.bf16.msra.mxu3 %v1383_v1  ;;  %v1911_v1 = vld [vmem:[%s2952_s1 + $0x2b4] sm:$0xf] }
  0x60   :  { %1059 = vmatpush.bf16.msra.mxu0 %v1755_v6  ;;  %v1652_v6 = vld [vmem:[%s2952_s1 + $0x338] sm:$0xf0] }
  0x61   :  { %1073 = vmatpush.bf16.msra.mxu1 %v1247_v11  ;;  %v1591_v11 = vor.u32 %v1911_v1, %v1588_v3  ;;  %v1655_v15 = vor.u32 %v1927_v5, %v1652_v6  ;;  %v1963_v1 = vld [vmem:[%s2952_s1 + $0x454] sm:$0xf]  ;;  %v1796_v3 = vld [vmem:[%s2952_s1 + $0x458] sm:$0xf0]  ;;  %v1724_v6 = vld [vmem:[%s2952_s1 + $0x3c8] sm:$0xf0] }
  0x62   :  { %1087 = vmatpush.bf16.msra.mxu2 %v1311_v17  ;;  %v1580_v17 = vld [vmem:[%s2952_s1 + $0x2a8] sm:$0xf0]  ;;  %v1799_v5 = vor.u32 %v1963_v1, %v1796_v3 }
  0x63   :  { %1101 = vmatpush.bf16.msra.mxu3 %v1375_v22  ;;  %1060 = vmatmul.bf16.vlgmr.msra.gmra.mxu0 %v2679_v25  ;;  %v1875_v22 = vld [vmem:[%s2952_s1 + $0x194] sm:$0xf]  ;;  %v1583_v24 = vor.u32 %v1909_v16, %v1580_v17  ;;  %v1941_v16 = vld [vmem:[%s2952_s1 + $0x3a4] sm:$0xf]  ;;  %v1708_v17 = vld [vmem:[%s2952_s1 + $0x3a8] sm:$0xf0] }
  0x64   :  { %1108 = vmatpush.bf16.msrb.mxu0 %v1495_v12  ;;  %1074 = vmatmul.bf16.vlgmr.msra.gmra.mxu1 %v2247_v60  ;;  %v1660_v60 = vld [vmem:[%s2952_s1 + $0x348] sm:$0xf0]  ;;  %v1893_v12 = vld [vmem:[%s2952_s1 + $0x224] sm:$0xf]  ;;  %v1447_v31 = vor.u32 %v1875_v22, %v1444_v23  ;;  %v1711_v20 = vor.u32 %v1941_v16, %v1708_v17  ;;  %v1939_v22 = vld [vmem:[%s2952_s1 + $0x394] sm:$0xf] }
  0x65   :  { %1122 = vmatpush.bf16.msrb.mxu1 %v1559_v18  ;;  %1088 = vmatmul.bf16.vlgmr.msra.gmra.mxu2 %v2277_v8  ;;  %v1532_v8 = vld [vmem:[%s2952_s1 + $0x248] sm:$0xf0]  ;;  %v1663_v0 = vor.u32 %v1929_v56, %v1660_v60  ;;  %v1455_v18 = vor.u32 %v1877_v9, %v1452_v10  ;;  %v1949_v56 = vld [vmem:[%s2952_s1 + $0x3e4] sm:$0xf]  ;;  %v1943_v9 = vld [vmem:[%s2952_s1 + $0x3b4] sm:$0xf] }
  0x66   :  { %1136 = vmatpush.bf16.msrb.mxu2 %v1623_v21  ;;  %1102 = vmatmul.bf16.vlgmr.msra.gmra.mxu3 %v2261_v2  ;;  %v1596_v2 = vld [vmem:[%s2952_s1 + $0x2c8] sm:$0xf0]  ;;  %v1535_v57 = vor.u32 %v1897_v52, %v1532_v8  ;;  %v1519_v21 = vor.u32 %v1893_v12, %v1516_v13  ;;  %v1921_v52 = vld [vmem:[%s2952_s1 + $0x304] sm:$0xf]  ;;  %v1716_v10 = vld [vmem:[%s2952_s1 + $0x3b8] sm:$0xf0] }
  0x67   :  { %1150 = vmatpush.bf16.msrb.mxu3 %v1687_v26  ;;  %v1599_v61 = vor.u32 %v1913_v54, %v1596_v2  ;;  %v1891_v26 = vld [vmem:[%s2952_s1 + $0x214] sm:$0xf]  ;;  %v1628_v8 = vld [vmem:[%s2952_s1 + $0x308] sm:$0xf0]  ;;  %v1780_v12 = vld [vmem:[%s2952_s1 + $0x438] sm:$0xf0]  ;;  %v1719_v13 = vor.u32 %v1943_v9, %v1716_v10 }
  0x68   :  { %1109 = vmatpush.bf16.msrb.mxu0 %v1487_v29  ;;  %v1907_v29 = vld [vmem:[%s2952_s1 + $0x294] sm:$0xf]  ;;  %v1740_v60 = vld [vmem:[%s2952_s1 + $0x3e8] sm:$0xf0]  ;;  %v1700_v23 = vld [vmem:[%s2952_s1 + $0x398] sm:$0xf0] }
  0x69   :  { %1123 = vmatpush.bf16.msrb.mxu1 %v1551_v32  ;;  %v1923_v32 = vld [vmem:[%s2952_s1 + $0x314] sm:$0xf]  ;;  %v1575_v41 = vor.u32 %v1907_v29, %v1572_v30  ;;  %v1937_v29 = vld [vmem:[%s2952_s1 + $0x384] sm:$0xf]  ;;  %v1692_v30 = vld [vmem:[%s2952_s1 + $0x388] sm:$0xf0] }
  0x6a   :  { %1137 = vmatpush.bf16.msrb.mxu2 %v1615_v35  ;;  %v1511_v35 = vor.u32 %v1891_v26, %v1508_v27  ;;  %v1639_v46 = vor.u32 %v1923_v32, %v1636_v33  ;;  %v1764_v26 = vld [vmem:[%s2952_s1 + $0x418] sm:$0xf0]  ;;  %v1703_v27 = vor.u32 %v1939_v22, %v1700_v23  ;;  %v1756_v32 = vld [vmem:[%s2952_s1 + $0x408] sm:$0xf0]  ;;  %v1695_v33 = vor.u32 %v1937_v29, %v1692_v30 }
  0x6b   :  { %1151 = vmatpush.bf16.msrb.mxu3 %v1679_v39  ;;  %v1500_v39 = vld [vmem:[%s2952_s1 + $0x208] sm:$0xf0] }
  0x6c   :  { %1110 = vmatpush.bf16.msrb.mxu0 %v1479_v43  ;;  %v1951_v43 = vld [vmem:[%s2952_s1 + $0x3f4] sm:$0xf] }
  0x6d   :  { %1124 = vmatpush.bf16.msrb.mxu1 %v1543_v47  ;;  %v1564_v47 = vld [vmem:[%s2952_s1 + $0x288] sm:$0xf0]  ;;  %v1751_v54 = vor.u32 %v1951_v43, %v1748_v45 }
  0x6e   :  { %1138 = vmatpush.bf16.msrb.mxu2 %v1607_v51  ;;  %v1439_v51 = vor.u32 %v1873_v34, %v1436_v37  ;;  %v1567_v2 = vor.u32 %v1905_v42, %v1564_v47 }
  0x6f   :  { %1152 = vmatpush.bf16.msrb.mxu3 %v1671_v53  ;;  %v1503_v53 = vor.u32 %v1889_v38, %v1500_v39 }
  0x70   :  { %1111 = vmatpush.bf16.msrb.mxu0 %v1471_v55  ;;  %v1815_v55 = vor.u32 %v1967_v49, %v1812_v50 }
  0x71   :  { %1125 = vmatpush.bf16.msrb.mxu1 %v1535_v57  ;;  %v1631_v57 = vor.u32 %v1921_v52, %v1628_v8 }
  0x72   :  { %1139 = vmatpush.bf16.msrb.mxu2 %v1599_v61  ;;  %v1743_v61 = vor.u32 %v1949_v56, %v1740_v60 }
  0x73   :  { %1153 = vmatpush.bf16.msrb.mxu3 %v1663_v0  ;;  %v1732_v0 = vld [vmem:[%s2952_s1 + $0x3d8] sm:$0xf0] }
  0x74   :  { %1112 = vmatpush.bf16.msrb.mxu0 %v1463_v4  ;;  %v1735_v4 = vor.u32 %v1947_v63, %v1732_v0 }
  0x75   :  { %1126 = vmatpush.bf16.msrb.mxu1 %v1527_v7 }
  0x76   :  { %1140 = vmatpush.bf16.msrb.mxu2 %v1591_v11  ;;  %v1959_v11 = vld [vmem:[%s2952_s1 + $0x434] sm:$0xf] }
  0x77   :  { %1154 = vmatpush.bf16.msrb.mxu3 %v1655_v15  ;;  %v1783_v15 = vor.u32 %v1959_v11, %v1780_v12 }
  0x78   :  { %1113 = vmatpush.bf16.msrb.mxu0 %v1455_v18  ;;  %v1957_v18 = vld [vmem:[%s2952_s1 + $0x424] sm:$0xf] }
  0x79   :  { %1127 = vmatpush.bf16.msrb.mxu1 %v1519_v21  ;;  %v1775_v21 = vor.u32 %v1957_v18, %v1772_v19 }
  0x7a   :  { %1141 = vmatpush.bf16.msrb.mxu2 %v1583_v24  ;;  %v1955_v24 = vld [vmem:[%s2952_s1 + $0x414] sm:$0xf] }
  0x7b   :  { %1155 = vmatpush.bf16.msrb.mxu3 %v1647_v28  ;;  %v1767_v28 = vor.u32 %v1955_v24, %v1764_v26 }
  0x7c   :  { %1114 = vmatpush.bf16.msrb.mxu0 %v1447_v31  ;;  %v1953_v31 = vld [vmem:[%s2952_s1 + $0x404] sm:$0xf] }
  0x7d   :  { %1128 = vmatpush.bf16.msrb.mxu1 %v1511_v35  ;;  %v1759_v34 = vor.u32 %v1953_v31, %v1756_v32 }
  0x7e   :  { %1142 = vmatpush.bf16.msrb.mxu2 %v1575_v41 }
  0x7f   :  { %1156 = vmatpush.bf16.msrb.mxu3 %v1639_v46 }
  0x80   :  { %1115 = vmatpush.bf16.msrb.mxu0 %v1439_v51 }
  0x81   :  { %1129 = vmatpush.bf16.msrb.mxu1 %v1503_v53 }
  0x82   :  { %1143 = vmatpush.bf16.msrb.mxu2 %v1567_v2 }
  0x83   :  { %1157 = vmatpush.bf16.msrb.mxu3 %v1631_v57  ;;  %1116 = vmatmul.bf16.vlgmr.msrb.gmra.mxu0 %v2288_v14  ;;  %v1945_v14 = vld [vmem:[%s2952_s1 + $0x3c4] sm:$0xf] }
  0x84   :  { %1164 = vmatpush.bf16.msra.mxu0 %v1751_v54  ;;  %1130 = vmatmul.bf16.vlgmr.msrb.gmra.mxu1 %v2460_v36  ;;  %v1961_v36 = vld [vmem:[%s2952_s1 + $0x444] sm:$0xf] }
  0x85   :  { %1178 = vmatpush.bf16.msra.mxu1 %v1815_v55  ;;  %1144 = vmatmul.bf16.vlgmr.msrb.gmra.mxu2 %v2479_v44  ;;  %v1788_v44 = vld [vmem:[%s2952_s1 + $0x448] sm:$0xf0] }
  0x86   :  { %1158 = vmatmul.bf16.vlgmr.msrb.gmra.mxu3 %v2471_v40  ;;  %v1727_v40 = vor.u32 %v1945_v14, %v1724_v6  ;;  %v1791_v7 = vor.u32 %v1961_v36, %v1788_v44 }
  0x88   :  { %1165 = vmatpush.bf16.msra.mxu0 %v1743_v61 }
  0x89   :  { %1179 = vmatpush.bf16.msra.mxu1 %v1807_v62 }
  0x8c   :  { %1166 = vmatpush.bf16.msra.mxu0 %v1735_v4 }
  0x8d   :  { %1180 = vmatpush.bf16.msra.mxu1 %v1799_v5 }
  0x90   :  { %1167 = vmatpush.bf16.msra.mxu0 %v1727_v40 }
  0x91   :  { %1181 = vmatpush.bf16.msra.mxu1 %v1791_v7 }
  0x94   :  { %1168 = vmatpush.bf16.msra.mxu0 %v1719_v13 }
  0x95   :  { %1182 = vmatpush.bf16.msra.mxu1 %v1783_v15 }
  0x98   :  { %1169 = vmatpush.bf16.msra.mxu0 %v1711_v20 }
  0x99   :  { %1183 = vmatpush.bf16.msra.mxu1 %v1775_v21 }
  0x9c   :  { %1170 = vmatpush.bf16.msra.mxu0 %v1703_v27 }
  0x9d   :  { %1184 = vmatpush.bf16.msra.mxu1 %v1767_v28 }
  0xa0   :  { %1171 = vmatpush.bf16.msra.mxu0 %v1695_v33  ;;  %v949_v37 = vpop.f32.mrf.mxu0 }
  0xa1   :  { %1185 = vmatpush.bf16.msra.mxu1 %v1759_v34  ;;  %v963_v35 = vpop.f32.mrf.mxu1 }
  0xa3   :  { %1172 = vmatmul.bf16.vlgmr.msra.gmra.mxu0 %v2487_v48  ;;  %v168_v48 = vld [vmem:[%s2954_s2] sm:$0x3] }
  0xa4   :  { %1186 = vmatmul.bf16.vlgmr.msra.gmra.mxu1 %v2679_v25  ;;  %v170_v2 = vperm.slane %v168_v48, 0  ;;  %v171_v60 = vperm.slane %v168_v48, 1 }
  0xa6   :  { %v950_v56 = vadd.f32 %v949_v37, %v170_v2 }
  0xa8   :  { %v977_v38 = vpop.f32.mrf.mxu2  ;;  %v951_v41 = vpop.f32.mrf.mxu0  ;;  %v964_v61 = vadd.f32 %v963_v35, %v950_v56 }
  0xa9   :  { %v965_v39 = vpop.f32.mrf.mxu1  ;;  %v991_v42 = vpop.f32.mrf.mxu3  ;;  %v952_v4 = vadd.f32 %v951_v41, %v170_v2 }
  0xaa   :  { %v978_v63 = vadd.f32 %v977_v38, %v964_v61 }
  0xab   :  { %v966_v44 = vadd.f32 %v965_v39, %v952_v4 }
  0xac   :  { %v992_v5 = vadd.f32 %v991_v42, %v978_v63 }
  0xb0   :  { %v979_v43 = vpop.f32.mrf.mxu2 }
  0xb1   :  { %v993_v46 = vpop.f32.mrf.mxu3  ;;  %v980_v11 = vadd.f32 %v979_v43, %v966_v44 }
  0xb3   :  { %v994_v19 = vadd.f32 %v993_v46, %v980_v11 }
  0xc0   :  { %v1005_v47 = vpop.f32.mrf.mxu0 }
  0xc1   :  { %v1019_v45 = vpop.f32.mrf.mxu1  ;;  %v1006_v40 = vadd.f32 %v1005_v47, %v992_v5 }
  0xc3   :  { %v1020_v12 = vadd.f32 %v1019_v45, %v1006_v40 }
  0xc8   :  { %v1033_v49 = vpop.f32.mrf.mxu2  ;;  %v1007_v51 = vpop.f32.mrf.mxu0 }
  0xc9   :  { %v1021_v50 = vpop.f32.mrf.mxu1  ;;  %v1047_v52 = vpop.f32.mrf.mxu3  ;;  %v1034_v20 = vadd.f32 %v1033_v49, %v1020_v12  ;;  %v1008_v23 = vadd.f32 %v1007_v51, %v994_v19 }
  0xcb   :  { %v1048_v26 = vadd.f32 %v1047_v52, %v1034_v20  ;;  %v1022_v30 = vadd.f32 %v1021_v50, %v1008_v23 }
  0xd0   :  { %v1035_v8 = vpop.f32.mrf.mxu2 }
  0xd1   :  { %v1049_v54 = vpop.f32.mrf.mxu3  ;;  %v1036_v35 = vadd.f32 %v1035_v8, %v1022_v30 }
  0xd3   :  { %v1050_v43 = vadd.f32 %v1049_v54, %v1036_v35 }
  0xe0   :  { %v1061_v25 = vpop.f32.mrf.mxu0 }
  0xe1   :  { %v1075_v53 = vpop.f32.mrf.mxu1  ;;  %v1062_v31 = vadd.f32 %v1061_v25, %v1048_v26 }
  0xe2   :  { %v1076_v62 = vadd.f32 %v1075_v53, %v171_v60 }
  0xe3   :  { %v1192_v41 = vmax.f32 %v1062_v31, 0.0 }
  0xe8   :  { %v1089_v55 = vpop.f32.mrf.mxu2  ;;  %v1063_v58 = vpop.f32.mrf.mxu0 }
  0xe9   :  { %v1077_v57 = vpop.f32.mrf.mxu1  ;;  %v1103_v59 = vpop.f32.mrf.mxu3  ;;  %v1090_v0 = vadd.f32 %v1089_v55, %v1076_v62  ;;  %v1064_v49 = vadd.f32 %v1063_v58, %v1050_v43 }
  0xea   :  { %v1078_v7 = vadd.f32 %v1077_v57, %v171_v60 }
  0xeb   :  { %v1104_v14 = vadd.f32 %v1103_v59, %v1090_v0  ;;  %v1194_v53 = vmax.f32 %v1064_v49, 0.0 }
  0xf0   :  { %v1091_v1 = vpop.f32.mrf.mxu2 }
  0xf1   :  { %v1105_v36 = vpop.f32.mrf.mxu3  ;;  %v1092_v13 = vadd.f32 %v1091_v1, %v1078_v7 }
  0xf3   :  { %v1106_v21 = vadd.f32 %v1105_v36, %v1092_v13 }
 0x100   :  { %v1117_v3 = vpop.f32.mrf.mxu0 }
 0x101   :  { %v1131_v6 = vpop.f32.mrf.mxu1  ;;  %v1118_v9 = vadd.f32 %v1117_v3, %v1104_v14 }
 0x103   :  { %v1132_v15 = vadd.f32 %v1131_v6, %v1118_v9 }
 0x108   :  { %v1145_v10 = vpop.f32.mrf.mxu2  ;;  %v1119_v16 = vpop.f32.mrf.mxu0 }
 0x109   :  { %v1133_v17 = vpop.f32.mrf.mxu1  ;;  %v1159_v18 = vpop.f32.mrf.mxu3  ;;  %v1146_v22 = vadd.f32 %v1145_v10, %v1132_v15  ;;  %v1120_v24 = vadd.f32 %v1119_v16, %v1106_v21 }
 0x10b   :  { %v1160_v27 = vadd.f32 %v1159_v18, %v1146_v22  ;;  %v1134_v32 = vadd.f32 %v1133_v17, %v1120_v24 }
 0x110   :  { %v1147_v28 = vpop.f32.mrf.mxu2 }
 0x111   :  { %v1148_v37 = vadd.f32 %v1147_v28, %v1134_v32  ;;  %v1161_v39 = vpop.f32.mrf.mxu3 }
 0x113   :  { %v1162_v45 = vadd.f32 %v1161_v39, %v1148_v37 }
 0x120   :  { %v1173_v29 = vpop.f32.mrf.mxu0 }
 0x121   :  { %v1174_v33 = vadd.f32 %v1173_v29, %v1160_v27  ;;  %v1187_v34 = vpop.f32.mrf.mxu1 }
 0x123   :  { %v1188_v38 = vadd.f32 %v1187_v34, %v1174_v33 }
 0x125   :  { %v1193_v42 = vmax.f32 %v1188_v38, 0.0 }
 0x127   :  { %v1196_v46 = vpack.c.bf16 %v1193_v42, %v1192_v41 }
 0x128   :  { %v1175_v47 = vpop.f32.mrf.mxu0 }
 0x129   :  { %1198 = vst [vmem:[%s2955_s3] sm:$0xff] %v1196_v46  ;;  %v1176_v50 = vadd.f32 %v1175_v47, %v1162_v45  ;;  %v1189_v51 = vpop.f32.mrf.mxu1 }
 0x12b   :  { %v1190_v52 = vadd.f32 %v1189_v51, %v1176_v50 }
 0x12d   :  { %v1195_v48 = vmax.f32 %v1190_v52, 0.0 }
 0x12f   :  { %v1197_v8 = vpack.c.bf16 %v1195_v48, %v1194_v53 }
 0x131   :  { %1199 = vst [vmem:[%s2955_s3 + $0x8] sm:$0xff] %v1197_v8 }

// kernel: geolocalization_forward.28
= control target key start
LH: loop header
LB: loop body
LE: loop exit
PB: predicated region body
PF: predicated region fallthrough
CT: control target
= control target key end

     0   :  { %s5894_s1 = inlined_call_operand.vmem [shape: bf16[2304,256], index: 1, kind: input, shape index: {}]   ;;  %s5895_s0 = inlined_call_operand.vmem [shape: bf16[16,2304], index: 0, kind: input, shape index: {}]   ;;  %s5896_s2 = inlined_call_operand.vmem [shape: f32[1,256], index: 2, kind: input, shape index: {}]   ;;  %s5897_s3 = inlined_call_operand.vmem [shape: bf16[16,256], index: 3, kind: input, shape index: {}]   ;;  %s5898_s4 = inlined_call_operand.vmem [shape: bf16[16,256], index: 4, kind: output, shape index: {}]  }
   0x1   :  { %v2515_v0 = vld [vmem:[%s5894_s1 + $0x70] sm:$0xf]  ;;  %v3642_v1 = vld [vmem:[%s5894_s1 + $0x74] sm:$0xf0]  ;;  %v2507_v11 = vld [vmem:[%s5894_s1 + $0x60] sm:$0xf] }
   0x2   :  { %v2579_v2 = vld [vmem:[%s5894_s1 + $0xf0] sm:$0xf]  ;;  %v2516_v3 = vor.u32 %v3642_v1, %v2515_v0  ;;  %v3658_v4 = vld [vmem:[%s5894_s1 + $0xf4] sm:$0xf0]  ;;  %v3640_v13 = vld [vmem:[%s5894_s1 + $0x64] sm:$0xf0] }
   0x3   :  { %v2643_v5 = vld [vmem:[%s5894_s1 + $0x170] sm:$0xf]  ;;  %v3674_v6 = vld [vmem:[%s5894_s1 + $0x174] sm:$0xf0]  ;;  %v2580_v7 = vor.u32 %v3658_v4, %v2579_v2  ;;  %v2571_v14 = vld [vmem:[%s5894_s1 + $0xe0] sm:$0xf]  ;;  %v2508_v16 = vor.u32 %v3640_v13, %v2507_v11 }
   0x4   :  { %v2644_v8 = vor.u32 %v3674_v6, %v2643_v5  ;;  %v2707_v9 = vld [vmem:[%s5894_s1 + $0x1f0] sm:$0xf]  ;;  %v3690_v10 = vld [vmem:[%s5894_s1 + $0x1f4] sm:$0xf0]  ;;  %1859 = vmatpush.bf16.msra.mxu0 %v2516_v3  ;;  %v3656_v15 = vld [vmem:[%s5894_s1 + $0xe4] sm:$0xf0] }
   0x5   :  { %v2708_v12 = vor.u32 %v3690_v10, %v2707_v9  ;;  %1873 = vmatpush.bf16.msra.mxu1 %v2580_v7  ;;  %v2572_v17 = vor.u32 %v3656_v15, %v2571_v14  ;;  %v2635_v18 = vld [vmem:[%s5894_s1 + $0x160] sm:$0xf]  ;;  %v3672_v19 = vld [vmem:[%s5894_s1 + $0x164] sm:$0xf0]  ;;  %v2499_v23 = vld [vmem:[%s5894_s1 + $0x50] sm:$0xf] }
   0x6   :  { %1887 = vmatpush.bf16.msra.mxu2 %v2644_v8  ;;  %v2699_v20 = vld [vmem:[%s5894_s1 + $0x1e0] sm:$0xf]  ;;  %v2636_v21 = vor.u32 %v3672_v19, %v2635_v18  ;;  %v3688_v22 = vld [vmem:[%s5894_s1 + $0x1e4] sm:$0xf0]  ;;  %v3638_v24 = vld [vmem:[%s5894_s1 + $0x54] sm:$0xf0] }
   0x7   :  { %1901 = vmatpush.bf16.msra.mxu3 %v2708_v12  ;;  %v2700_v25 = vor.u32 %v3688_v22, %v2699_v20  ;;  %v2563_v26 = vld [vmem:[%s5894_s1 + $0xd0] sm:$0xf]  ;;  %v3654_v27 = vld [vmem:[%s5894_s1 + $0xd4] sm:$0xf0]  ;;  %v2500_v29 = vor.u32 %v3638_v24, %v2499_v23  ;;  %v2491_v35 = vld [vmem:[%s5894_s1 + $0x40] sm:$0xf] }
   0x8   :  { %v2627_v28 = vld [vmem:[%s5894_s1 + $0x150] sm:$0xf]  ;;  %1860 = vmatpush.bf16.msra.mxu0 %v2508_v16  ;;  %v3670_v30 = vld [vmem:[%s5894_s1 + $0x154] sm:$0xf0]  ;;  %v2564_v33 = vor.u32 %v3654_v27, %v2563_v26  ;;  %v3636_v36 = vld [vmem:[%s5894_s1 + $0x44] sm:$0xf0] }
   0x9   :  { %v2691_v31 = vld [vmem:[%s5894_s1 + $0x1d0] sm:$0xf]  ;;  %v3686_v32 = vld [vmem:[%s5894_s1 + $0x1d4] sm:$0xf0]  ;;  %1874 = vmatpush.bf16.msra.mxu1 %v2572_v17  ;;  %v2628_v34 = vor.u32 %v3670_v30, %v2627_v28  ;;  %v2555_v37 = vld [vmem:[%s5894_s1 + $0xc0] sm:$0xf]  ;;  %v2492_v44 = vor.u32 %v3636_v36, %v2491_v35 }
   0xa   :  { %1888 = vmatpush.bf16.msra.mxu2 %v2636_v21  ;;  %v2692_v38 = vor.u32 %v3686_v32, %v2691_v31  ;;  %v3652_v39 = vld [vmem:[%s5894_s1 + $0xc4] sm:$0xf0]  ;;  %v2619_v40 = vld [vmem:[%s5894_s1 + $0x140] sm:$0xf]  ;;  %v2483_v47 = vld [vmem:[%s5894_s1 + $0x30] sm:$0xf] }
   0xb   :  { %1902 = vmatpush.bf16.msra.mxu3 %v2700_v25  ;;  %v3668_v41 = vld [vmem:[%s5894_s1 + $0x144] sm:$0xf0]  ;;  %v2683_v42 = vld [vmem:[%s5894_s1 + $0x1c0] sm:$0xf]  ;;  %v2556_v45 = vor.u32 %v3652_v39, %v2555_v37  ;;  %v3634_v48 = vld [vmem:[%s5894_s1 + $0x34] sm:$0xf0] }
   0xc   :  { %v3684_v43 = vld [vmem:[%s5894_s1 + $0x1c4] sm:$0xf0]  ;;  %1861 = vmatpush.bf16.msra.mxu0 %v2500_v29  ;;  %v2620_v46 = vor.u32 %v3668_v41, %v2619_v40  ;;  %v2547_v49 = vld [vmem:[%s5894_s1 + $0xb0] sm:$0xf]  ;;  %v3650_v51 = vld [vmem:[%s5894_s1 + $0xb4] sm:$0xf0]  ;;  %v2484_v56 = vor.u32 %v3634_v48, %v2483_v47 }
   0xd   :  { %1875 = vmatpush.bf16.msra.mxu1 %v2564_v33  ;;  %v2684_v50 = vor.u32 %v3684_v43, %v2683_v42  ;;  %v2611_v52 = vld [vmem:[%s5894_s1 + $0x130] sm:$0xf]  ;;  %v3666_v53 = vld [vmem:[%s5894_s1 + $0x134] sm:$0xf0]  ;;  %v2548_v57 = vor.u32 %v3650_v51, %v2547_v49  ;;  %v2475_v59 = vld [vmem:[%s5894_s1 + $0x20] sm:$0xf] }
   0xe   :  { %1889 = vmatpush.bf16.msra.mxu2 %v2628_v34  ;;  %v2675_v54 = vld [vmem:[%s5894_s1 + $0x1b0] sm:$0xf]  ;;  %v3682_v55 = vld [vmem:[%s5894_s1 + $0x1b4] sm:$0xf0]  ;;  %v2612_v58 = vor.u32 %v3666_v53, %v2611_v52  ;;  %v3632_v60 = vld [vmem:[%s5894_s1 + $0x24] sm:$0xf0] }
   0xf   :  { %1903 = vmatpush.bf16.msra.mxu3 %v2692_v38  ;;  %v2539_v61 = vld [vmem:[%s5894_s1 + $0xa0] sm:$0xf]  ;;  %v2676_v62 = vor.u32 %v3682_v55, %v2675_v54  ;;  %v3648_v63 = vld [vmem:[%s5894_s1 + $0xa4] sm:$0xf0]  ;;  %v2476_v4 = vor.u32 %v3632_v60, %v2475_v59  ;;  %v2467_v7 = vld [vmem:[%s5894_s1 + $0x10] sm:$0xf] }
  0x10   :  { %1862 = vmatpush.bf16.msra.mxu0 %v2492_v44  ;;  %v2603_v0 = vld [vmem:[%s5894_s1 + $0x120] sm:$0xf]  ;;  %v3664_v1 = vld [vmem:[%s5894_s1 + $0x124] sm:$0xf0]  ;;  %v2540_v5 = vor.u32 %v3648_v63, %v2539_v61  ;;  %v3630_v8 = vld [vmem:[%s5894_s1 + $0x14] sm:$0xf0] }
  0x11   :  { %1876 = vmatpush.bf16.msra.mxu1 %v2556_v45  ;;  %v2667_v2 = vld [vmem:[%s5894_s1 + $0x1a0] sm:$0xf]  ;;  %v3680_v3 = vld [vmem:[%s5894_s1 + $0x1a4] sm:$0xf0]  ;;  %v2604_v6 = vor.u32 %v3664_v1, %v2603_v0  ;;  %v2531_v9 = vld [vmem:[%s5894_s1 + $0x90] sm:$0xf]  ;;  %v2468_v16 = vor.u32 %v3630_v8, %v2467_v7 }
  0x12   :  { %1890 = vmatpush.bf16.msra.mxu2 %v2620_v46  ;;  %v2668_v10 = vor.u32 %v3680_v3, %v2667_v2  ;;  %v3646_v11 = vld [vmem:[%s5894_s1 + $0x94] sm:$0xf0]  ;;  %v2595_v12 = vld [vmem:[%s5894_s1 + $0x110] sm:$0xf]  ;;  %v2459_v17 = vld [vmem:[%s5894_s1] sm:$0xf] }
  0x13   :  { %1904 = vmatpush.bf16.msra.mxu3 %v2684_v50  ;;  %v3662_v13 = vld [vmem:[%s5894_s1 + $0x114] sm:$0xf0]  ;;  %v2659_v14 = vld [vmem:[%s5894_s1 + $0x190] sm:$0xf]  ;;  %v3628_v18 = vld [vmem:[%s5894_s1 + $0x4] sm:$0xf0]  ;;  %v2532_v19 = vor.u32 %v3646_v11, %v2531_v9 }
  0x14   :  { %1863 = vmatpush.bf16.msra.mxu0 %v2484_v56  ;;  %v3678_v15 = vld [vmem:[%s5894_s1 + $0x194] sm:$0xf0]  ;;  %v2596_v20 = vor.u32 %v3662_v13, %v2595_v12  ;;  %v2523_v21 = vld [vmem:[%s5894_s1 + $0x80] sm:$0xf]  ;;  %v3644_v22 = vld [vmem:[%s5894_s1 + $0x84] sm:$0xf0]  ;;  %v2460_v31 = vor.u32 %v3628_v18, %v2459_v17 }
  0x15   :  { %1877 = vmatpush.bf16.msra.mxu1 %v2548_v57  ;;  %v2587_v23 = vld [vmem:[%s5894_s1 + $0x100] sm:$0xf]  ;;  %v2660_v24 = vor.u32 %v3678_v15, %v2659_v14  ;;  %v3660_v25 = vld [vmem:[%s5894_s1 + $0x104] sm:$0xf0]  ;;  %v2771_v28 = vld [vmem:[%s5894_s1 + $0x270] sm:$0xf]  ;;  %v2524_v35 = vor.u32 %v3644_v22, %v2523_v21 }
  0x16   :  { %1891 = vmatpush.bf16.msra.mxu2 %v2612_v58  ;;  %v2651_v26 = vld [vmem:[%s5894_s1 + $0x180] sm:$0xf]  ;;  %v3676_v27 = vld [vmem:[%s5894_s1 + $0x184] sm:$0xf0]  ;;  %v3706_v29 = vld [vmem:[%s5894_s1 + $0x274] sm:$0xf0]  ;;  %v2588_v36 = vor.u32 %v3660_v25, %v2587_v23 }
  0x17   :  { %1905 = vmatpush.bf16.msra.mxu3 %v2676_v62  ;;  %v2835_v30 = vld [vmem:[%s5894_s1 + $0x2f0] sm:$0xf]  ;;  %v3722_v32 = vld [vmem:[%s5894_s1 + $0x2f4] sm:$0xf0]  ;;  %v2652_v39 = vor.u32 %v3676_v27, %v2651_v26  ;;  %v2772_v40 = vor.u32 %v3706_v29, %v2771_v28  ;;  %v2763_v41 = vld [vmem:[%s5894_s1 + $0x260] sm:$0xf] }
  0x18   :  { %1864 = vmatpush.bf16.msra.mxu0 %v2476_v4  ;;  %v2899_v33 = vld [vmem:[%s5894_s1 + $0x370] sm:$0xf]  ;;  %v3738_v34 = vld [vmem:[%s5894_s1 + $0x374] sm:$0xf0]  ;;  %v3704_v42 = vld [vmem:[%s5894_s1 + $0x264] sm:$0xf0]  ;;  %v2836_v43 = vor.u32 %v3722_v32, %v2835_v30 }
  0x19   :  { %1878 = vmatpush.bf16.msra.mxu1 %v2540_v5  ;;  %v2963_v37 = vld [vmem:[%s5894_s1 + $0x3f0] sm:$0xf]  ;;  %v3754_v38 = vld [vmem:[%s5894_s1 + $0x3f4] sm:$0xf0]  ;;  %v2900_v44 = vor.u32 %v3738_v34, %v2899_v33  ;;  %v2827_v45 = vld [vmem:[%s5894_s1 + $0x2e0] sm:$0xf]  ;;  %v2764_v55 = vor.u32 %v3704_v42, %v2763_v41 }
  0x1a   :  { %1892 = vmatpush.bf16.msra.mxu2 %v2604_v6  ;;  %v3720_v46 = vld [vmem:[%s5894_s1 + $0x2e4] sm:$0xf0]  ;;  %v2891_v47 = vld [vmem:[%s5894_s1 + $0x360] sm:$0xf]  ;;  %v2964_v48 = vor.u32 %v3754_v38, %v2963_v37  ;;  %v2755_v56 = vld [vmem:[%s5894_s1 + $0x250] sm:$0xf] }
  0x1b   :  { %1906 = vmatpush.bf16.msra.mxu3 %v2668_v10  ;;  %v3736_v49 = vld [vmem:[%s5894_s1 + $0x364] sm:$0xf0]  ;;  %v2955_v50 = vld [vmem:[%s5894_s1 + $0x3e0] sm:$0xf]  ;;  %v3702_v57 = vld [vmem:[%s5894_s1 + $0x254] sm:$0xf0]  ;;  %v2828_v60 = vor.u32 %v3720_v46, %v2827_v45 }
  0x1c   :  { %1865 = vmatpush.bf16.msra.mxu0 %v2468_v16  ;;  %v3752_v51 = vld [vmem:[%s5894_s1 + $0x3e4] sm:$0xf0]  ;;  %v2387_v52 = vld [vmem:[%s5895_s0] sm:$0xf]  ;;  %v3619_v59 = vld [vmem:[%s5895_s0 + $0x4c] sm:$0xf0]  ;;  %v2892_v61 = vor.u32 %v3736_v49, %v2891_v47  ;;  %v2756_v9 = vor.u32 %v3702_v57, %v2755_v56 }
  0x1d   :  { %1879 = vmatpush.bf16.msra.mxu1 %v2532_v19  ;;  %v3618_v53 = vld [vmem:[%s5895_s0 + $0x44] sm:$0xf0]  ;;  %v2819_v62 = vld [vmem:[%s5894_s1 + $0x2d0] sm:$0xf]  ;;  %v3718_v63 = vld [vmem:[%s5894_s1 + $0x2d4] sm:$0xf0]  ;;  %v2956_v2 = vor.u32 %v3752_v51, %v2955_v50 }
  0x1e   :  { %1893 = vmatpush.bf16.msra.mxu2 %v2596_v20  ;;  %v2395_v54 = vld [vmem:[%s5895_s0 + $0x8] sm:$0xf]  ;;  %v4196_v58 = vor.u32 %v3618_v53, %v2387_v52  ;;  %v2883_v0 = vld [vmem:[%s5894_s1 + $0x350] sm:$0xf]  ;;  %v3734_v3 = vld [vmem:[%s5894_s1 + $0x354] sm:$0xf0]  ;;  %v2820_v12 = vor.u32 %v3718_v63, %v2819_v62 }
  0x1f   :  { %1907 = vmatpush.bf16.msra.mxu3 %v2660_v24  ;;  %v4210_v1 = vor.u32 %v3619_v59, %v2395_v54  ;;  %v2947_v4 = vld [vmem:[%s5894_s1 + $0x3d0] sm:$0xf]  ;;  %v3750_v5 = vld [vmem:[%s5894_s1 + $0x3d4] sm:$0xf0]  ;;  %v3609_v6 = vld [vmem:[%s5895_s0 + $0x4] sm:$0xf]  ;;  %v2884_v13 = vor.u32 %v3734_v3, %v2883_v0 }
  0x20   :  { %1866 = vmatpush.bf16.msra.mxu0 %v2460_v31  ;;  %v2389_v7 = vld [vmem:[%s5895_s0 + $0x48] sm:$0xf0]  ;;  %v2397_v11 = vld [vmem:[%s5895_s0 + $0x50] sm:$0xf0]  ;;  %v2747_v14 = vld [vmem:[%s5894_s1 + $0x240] sm:$0xf]  ;;  %v2948_v18 = vor.u32 %v3750_v5, %v2947_v4 }
  0x21   :  { %1880 = vmatpush.bf16.msra.mxu1 %v2524_v35  ;;  %v3610_v8 = vld [vmem:[%s5895_s0 + $0xc] sm:$0xf]  ;;  %v4232_v10 = vor.u32 %v3609_v6, %v2389_v7  ;;  %v3700_v15 = vld [vmem:[%s5894_s1 + $0x244] sm:$0xf0]  ;;  %v2811_v16 = vld [vmem:[%s5894_s1 + $0x2c0] sm:$0xf] }
  0x22   :  { %1894 = vmatpush.bf16.msra.mxu2 %v2588_v36  ;;  %v4246_v17 = vor.u32 %v3610_v8, %v2397_v11  ;;  %v3716_v19 = vld [vmem:[%s5894_s1 + $0x2c4] sm:$0xf0]  ;;  %v2875_v20 = vld [vmem:[%s5894_s1 + $0x340] sm:$0xf]  ;;  %v2748_v24 = vor.u32 %v3700_v15, %v2747_v14  ;;  %v2739_v27 = vld [vmem:[%s5894_s1 + $0x230] sm:$0xf] }
  0x23   :  { %1908 = vmatpush.bf16.msra.mxu3 %v2652_v39  ;;  %1867 = vmatmul.bf16.vlgmr.msra.gmra.mxu0 %v4196_v58  ;;  %v3732_v21 = vld [vmem:[%s5894_s1 + $0x344] sm:$0xf0]  ;;  %v2939_v22 = vld [vmem:[%s5894_s1 + $0x3c0] sm:$0xf]  ;;  %v2812_v25 = vor.u32 %v3716_v19, %v2811_v16  ;;  %v3698_v28 = vld [vmem:[%s5894_s1 + $0x234] sm:$0xf0] }
  0x24   :  { %1915 = vmatpush.bf16.msrb.mxu0 %v2772_v40  ;;  %1881 = vmatmul.bf16.vlgmr.msra.gmra.mxu1 %v4232_v10  ;;  %v3748_v23 = vld [vmem:[%s5894_s1 + $0x3c4] sm:$0xf0]  ;;  %v2876_v26 = vor.u32 %v3732_v21, %v2875_v20  ;;  %v2803_v29 = vld [vmem:[%s5894_s1 + $0x2b0] sm:$0xf]  ;;  %v3714_v31 = vld [vmem:[%s5894_s1 + $0x2b4] sm:$0xf0]  ;;  %v2740_v36 = vor.u32 %v3698_v28, %v2739_v27 }
  0x25   :  { %1929 = vmatpush.bf16.msrb.mxu1 %v2836_v43  ;;  %1895 = vmatmul.bf16.vlgmr.msra.gmra.mxu2 %v4210_v1  ;;  %v2940_v30 = vor.u32 %v3748_v23, %v2939_v22  ;;  %v2867_v32 = vld [vmem:[%s5894_s1 + $0x330] sm:$0xf]  ;;  %v3730_v33 = vld [vmem:[%s5894_s1 + $0x334] sm:$0xf0]  ;;  %v2804_v37 = vor.u32 %v3714_v31, %v2803_v29  ;;  %v2731_v39 = vld [vmem:[%s5894_s1 + $0x220] sm:$0xf] }
  0x26   :  { %1943 = vmatpush.bf16.msrb.mxu2 %v2900_v44  ;;  %1909 = vmatmul.bf16.vlgmr.msra.gmra.mxu3 %v4246_v17  ;;  %v2931_v34 = vld [vmem:[%s5894_s1 + $0x3b0] sm:$0xf]  ;;  %v3746_v35 = vld [vmem:[%s5894_s1 + $0x3b4] sm:$0xf0]  ;;  %v2868_v38 = vor.u32 %v3730_v33, %v2867_v32  ;;  %v3696_v40 = vld [vmem:[%s5894_s1 + $0x224] sm:$0xf0] }
  0x27   :  { %1957 = vmatpush.bf16.msrb.mxu3 %v2964_v48  ;;  %v2795_v41 = vld [vmem:[%s5894_s1 + $0x2a0] sm:$0xf]  ;;  %v2932_v42 = vor.u32 %v3746_v35, %v2931_v34  ;;  %v3712_v43 = vld [vmem:[%s5894_s1 + $0x2a4] sm:$0xf0]  ;;  %v2732_v48 = vor.u32 %v3696_v40, %v2731_v39  ;;  %v2723_v49 = vld [vmem:[%s5894_s1 + $0x210] sm:$0xf] }
  0x28   :  { %1916 = vmatpush.bf16.msrb.mxu0 %v2764_v55  ;;  %v2859_v44 = vld [vmem:[%s5894_s1 + $0x320] sm:$0xf]  ;;  %v3728_v45 = vld [vmem:[%s5894_s1 + $0x324] sm:$0xf0]  ;;  %v2796_v50 = vor.u32 %v3712_v43, %v2795_v41  ;;  %v3694_v52 = vld [vmem:[%s5894_s1 + $0x214] sm:$0xf0] }
  0x29   :  { %1930 = vmatpush.bf16.msrb.mxu1 %v2828_v60  ;;  %v2923_v46 = vld [vmem:[%s5894_s1 + $0x3a0] sm:$0xf]  ;;  %v3744_v47 = vld [vmem:[%s5894_s1 + $0x3a4] sm:$0xf0]  ;;  %v2860_v51 = vor.u32 %v3728_v45, %v2859_v44  ;;  %v2787_v53 = vld [vmem:[%s5894_s1 + $0x290] sm:$0xf]  ;;  %v2724_v63 = vor.u32 %v3694_v52, %v2723_v49 }
  0x2a   :  { %1944 = vmatpush.bf16.msrb.mxu2 %v2892_v61  ;;  %v3710_v54 = vld [vmem:[%s5894_s1 + $0x294] sm:$0xf0]  ;;  %v2924_v55 = vor.u32 %v3744_v47, %v2923_v46  ;;  %v2851_v56 = vld [vmem:[%s5894_s1 + $0x310] sm:$0xf]  ;;  %v2715_v61 = vld [vmem:[%s5894_s1 + $0x200] sm:$0xf] }
  0x2b   :  { %1958 = vmatpush.bf16.msrb.mxu3 %v2956_v2  ;;  %v3726_v57 = vld [vmem:[%s5894_s1 + $0x314] sm:$0xf0]  ;;  %v2915_v59 = vld [vmem:[%s5894_s1 + $0x390] sm:$0xf]  ;;  %v3692_v62 = vld [vmem:[%s5894_s1 + $0x204] sm:$0xf0]  ;;  %v2788_v5 = vor.u32 %v3710_v54, %v2787_v53 }
  0x2c   :  { %1917 = vmatpush.bf16.msrb.mxu0 %v2756_v9  ;;  %v3742_v60 = vld [vmem:[%s5894_s1 + $0x394] sm:$0xf0]  ;;  %v2779_v0 = vld [vmem:[%s5894_s1 + $0x280] sm:$0xf]  ;;  %v3708_v2 = vld [vmem:[%s5894_s1 + $0x284] sm:$0xf0]  ;;  %v2852_v6 = vor.u32 %v3726_v57, %v2851_v56  ;;  %v2716_v19 = vor.u32 %v3692_v62, %v2715_v61 }
  0x2d   :  { %1931 = vmatpush.bf16.msrb.mxu1 %v2820_v12  ;;  %v2843_v3 = vld [vmem:[%s5894_s1 + $0x300] sm:$0xf]  ;;  %v3724_v4 = vld [vmem:[%s5894_s1 + $0x304] sm:$0xf0]  ;;  %v3027_v9 = vld [vmem:[%s5894_s1 + $0x470] sm:$0xf]  ;;  %v2916_v11 = vor.u32 %v3742_v60, %v2915_v59  ;;  %v2780_v23 = vor.u32 %v3708_v2, %v2779_v0 }
  0x2e   :  { %1945 = vmatpush.bf16.msrb.mxu2 %v2884_v13  ;;  %v2907_v7 = vld [vmem:[%s5894_s1 + $0x380] sm:$0xf]  ;;  %v3740_v8 = vld [vmem:[%s5894_s1 + $0x384] sm:$0xf0]  ;;  %v3770_v12 = vld [vmem:[%s5894_s1 + $0x474] sm:$0xf0] }
  0x2f   :  { %1959 = vmatpush.bf16.msrb.mxu3 %v2948_v18  ;;  %v3091_v13 = vld [vmem:[%s5894_s1 + $0x4f0] sm:$0xf]  ;;  %v3786_v14 = vld [vmem:[%s5894_s1 + $0x4f4] sm:$0xf0]  ;;  %v3611_v27 = vld [vmem:[%s5895_s0 + $0x14] sm:$0xf]  ;;  %v2908_v28 = vor.u32 %v3740_v8, %v2907_v7  ;;  %v3028_v29 = vor.u32 %v3770_v12, %v3027_v9 }
  0x30   :  { %1918 = vmatpush.bf16.msrb.mxu0 %v2748_v24  ;;  %v3155_v15 = vld [vmem:[%s5894_s1 + $0x570] sm:$0xf]  ;;  %v3802_v16 = vld [vmem:[%s5894_s1 + $0x574] sm:$0xf0]  ;;  %v2844_v24 = vor.u32 %v3724_v4, %v2843_v3  ;;  %v3612_v31 = vld [vmem:[%s5895_s0 + $0x1c] sm:$0xf]  ;;  %v3092_v33 = vor.u32 %v3786_v14, %v3091_v13 }
  0x31   :  { %1932 = vmatpush.bf16.msrb.mxu1 %v2812_v25  ;;  %v3219_v18 = vld [vmem:[%s5894_s1 + $0x5f0] sm:$0xf]  ;;  %v3818_v20 = vld [vmem:[%s5894_s1 + $0x5f4] sm:$0xf0]  ;;  %v2413_v32 = vld [vmem:[%s5895_s0 + $0x60] sm:$0xf0]  ;;  %v3156_v34 = vor.u32 %v3802_v16, %v3155_v15 }
  0x32   :  { %1946 = vmatpush.bf16.msrb.mxu2 %v2876_v26  ;;  %v2403_v21 = vld [vmem:[%s5895_s0 + $0x10] sm:$0xf]  ;;  %v3620_v22 = vld [vmem:[%s5895_s0 + $0x54] sm:$0xf0]  ;;  %v3621_v26 = vld [vmem:[%s5895_s0 + $0x5c] sm:$0xf0]  ;;  %v4439_v47 = vor.u32 %v3612_v31, %v2413_v32 }
  0x33   :  { %1960 = vmatpush.bf16.msrb.mxu3 %v2940_v30  ;;  %v2411_v25 = vld [vmem:[%s5895_s0 + $0x18] sm:$0xf]  ;;  %v2405_v30 = vld [vmem:[%s5895_s0 + $0x58] sm:$0xf0]  ;;  %v3019_v35 = vld [vmem:[%s5894_s1 + $0x460] sm:$0xf]  ;;  %v4418_v39 = vor.u32 %v3620_v22, %v2403_v21 }
  0x34   :  { %1919 = vmatpush.bf16.msrb.mxu0 %v2740_v36  ;;  %v3768_v36 = vld [vmem:[%s5894_s1 + $0x464] sm:$0xf0]  ;;  %v3147_v41 = vld [vmem:[%s5894_s1 + $0x560] sm:$0xf]  ;;  %v4429_v43 = vor.u32 %v3621_v26, %v2411_v25  ;;  %v4431_v44 = vor.u32 %v3611_v27, %v2405_v30  ;;  %v3766_v52 = vld [vmem:[%s5894_s1 + $0x454] sm:$0xf0] }
  0x35   :  { %1933 = vmatpush.bf16.msrb.mxu1 %v2804_v37  ;;  %v3083_v37 = vld [vmem:[%s5894_s1 + $0x4e0] sm:$0xf]  ;;  %v3784_v40 = vld [vmem:[%s5894_s1 + $0x4e4] sm:$0xf0]  ;;  %v3075_v53 = vld [vmem:[%s5894_s1 + $0x4d0] sm:$0xf] }
  0x36   :  { %1947 = vmatpush.bf16.msrb.mxu2 %v2868_v38  ;;  %v3220_v38 = vor.u32 %v3818_v20, %v3219_v18  ;;  %v3211_v45 = vld [vmem:[%s5894_s1 + $0x5e0] sm:$0xf]  ;;  %v3816_v46 = vld [vmem:[%s5894_s1 + $0x5e4] sm:$0xf0]  ;;  %v3084_v49 = vor.u32 %v3784_v40, %v3083_v37  ;;  %v3139_v56 = vld [vmem:[%s5894_s1 + $0x550] sm:$0xf] }
  0x37   :  { %1961 = vmatpush.bf16.msrb.mxu3 %v2932_v42  ;;  %v3800_v42 = vld [vmem:[%s5894_s1 + $0x564] sm:$0xf0]  ;;  %v3212_v54 = vor.u32 %v3816_v46, %v3211_v45  ;;  %v3798_v57 = vld [vmem:[%s5894_s1 + $0x554] sm:$0xf0]  ;;  %v3203_v59 = vld [vmem:[%s5894_s1 + $0x5d0] sm:$0xf] }
  0x38   :  { %1920 = vmatpush.bf16.msrb.mxu0 %v2732_v48  ;;  %v3020_v48 = vor.u32 %v3768_v36, %v3019_v35  ;;  %v3814_v60 = vld [vmem:[%s5894_s1 + $0x5d4] sm:$0xf0]  ;;  %v3003_v0 = vld [vmem:[%s5894_s1 + $0x440] sm:$0xf]  ;;  %v3764_v2 = vld [vmem:[%s5894_s1 + $0x444] sm:$0xf0] }
  0x39   :  { %1934 = vmatpush.bf16.msrb.mxu1 %v2796_v50  ;;  %v3148_v50 = vor.u32 %v3800_v42, %v3147_v41  ;;  %v3067_v3 = vld [vmem:[%s5894_s1 + $0x4c0] sm:$0xf]  ;;  %v3204_v4 = vor.u32 %v3814_v60, %v3203_v59  ;;  %v3796_v7 = vld [vmem:[%s5894_s1 + $0x544] sm:$0xf0]  ;;  %v2995_v14 = vld [vmem:[%s5894_s1 + $0x430] sm:$0xf] }
  0x3a   :  { %1948 = vmatpush.bf16.msrb.mxu2 %v2860_v51  ;;  %v3011_v51 = vld [vmem:[%s5894_s1 + $0x450] sm:$0xf]  ;;  %v3195_v8 = vld [vmem:[%s5894_s1 + $0x5c0] sm:$0xf]  ;;  %v3812_v9 = vld [vmem:[%s5894_s1 + $0x5c4] sm:$0xf0] }
  0x3b   :  { %1962 = vmatpush.bf16.msrb.mxu3 %v2924_v55  ;;  %v3782_v55 = vld [vmem:[%s5894_s1 + $0x4d4] sm:$0xf0]  ;;  %v3012_v61 = vor.u32 %v3766_v52, %v3011_v51  ;;  %v3059_v16 = vld [vmem:[%s5894_s1 + $0x4b0] sm:$0xf]  ;;  %v3196_v18 = vor.u32 %v3812_v9, %v3195_v8  ;;  %v2987_v27 = vld [vmem:[%s5894_s1 + $0x420] sm:$0xf] }
  0x3c   :  { %1921 = vmatpush.bf16.msrb.mxu0 %v2724_v63  ;;  %v3076_v62 = vor.u32 %v3782_v55, %v3075_v53  ;;  %v3140_v63 = vor.u32 %v3798_v57, %v3139_v56  ;;  %v3762_v15 = vld [vmem:[%s5894_s1 + $0x434] sm:$0xf0]  ;;  %v3123_v20 = vld [vmem:[%s5894_s1 + $0x530] sm:$0xf]  ;;  %v3776_v31 = vld [vmem:[%s5894_s1 + $0x4a4] sm:$0xf0] }
  0x3d   :  { %1935 = vmatpush.bf16.msrb.mxu1 %v2788_v5  ;;  %v3780_v5 = vld [vmem:[%s5894_s1 + $0x4c4] sm:$0xf0]  ;;  %v3794_v21 = vld [vmem:[%s5894_s1 + $0x534] sm:$0xf0]  ;;  %v3187_v22 = vld [vmem:[%s5894_s1 + $0x5b0] sm:$0xf] }
  0x3e   :  { %1949 = vmatpush.bf16.msrb.mxu2 %v2852_v6  ;;  %v3131_v6 = vld [vmem:[%s5894_s1 + $0x540] sm:$0xf]  ;;  %v3068_v12 = vor.u32 %v3780_v5, %v3067_v3  ;;  %v3124_v26 = vor.u32 %v3794_v21, %v3123_v20  ;;  %v3808_v35 = vld [vmem:[%s5894_s1 + $0x5a4] sm:$0xf0]  ;;  %v2979_v37 = vld [vmem:[%s5894_s1 + $0x410] sm:$0xf] }
  0x3f   :  { %1963 = vmatpush.bf16.msrb.mxu3 %v2916_v11  ;;  %v3004_v11 = vor.u32 %v3764_v2, %v3003_v0  ;;  %v3132_v13 = vor.u32 %v3796_v7, %v3131_v6  ;;  %v3115_v32 = vld [vmem:[%s5894_s1 + $0x520] sm:$0xf]  ;;  %v3758_v41 = vld [vmem:[%s5894_s1 + $0x414] sm:$0xf0]  ;;  %v3043_v42 = vld [vmem:[%s5894_s1 + $0x490] sm:$0xf] }
  0x40   :  { %1922 = vmatpush.bf16.msrb.mxu0 %v2716_v19  ;;  %v3778_v19 = vld [vmem:[%s5894_s1 + $0x4b4] sm:$0xf0]  ;;  %v2971_v52 = vld [vmem:[%s5894_s1 + $0x400] sm:$0xf]  ;;  %v3756_v53 = vld [vmem:[%s5894_s1 + $0x404] sm:$0xf0] }
  0x41   :  { %1936 = vmatpush.bf16.msrb.mxu1 %v2780_v23  ;;  %v3810_v23 = vld [vmem:[%s5894_s1 + $0x5b4] sm:$0xf0]  ;;  %v3060_v25 = vor.u32 %v3778_v19, %v3059_v16  ;;  %v3035_v55 = vld [vmem:[%s5894_s1 + $0x480] sm:$0xf]  ;;  %v3772_v56 = vld [vmem:[%s5894_s1 + $0x484] sm:$0xf0]  ;;  %v2972_v9 = vor.u32 %v3756_v53, %v2971_v52 }
  0x42   :  { %1950 = vmatpush.bf16.msrb.mxu2 %v2844_v24  ;;  %v2996_v24 = vor.u32 %v3762_v15, %v2995_v14  ;;  %v3188_v30 = vor.u32 %v3810_v23, %v3187_v22  ;;  %v3774_v45 = vld [vmem:[%s5894_s1 + $0x494] sm:$0xf0]  ;;  %v3099_v57 = vld [vmem:[%s5894_s1 + $0x500] sm:$0xf]  ;;  %v3788_v59 = vld [vmem:[%s5894_s1 + $0x504] sm:$0xf0]  ;;  %v3036_v14 = vor.u32 %v3772_v56, %v3035_v55 }
  0x43   :  { %1964 = vmatpush.bf16.msrb.mxu3 %v2908_v28  ;;  %1923 = vmatmul.bf16.vlgmr.msrb.gmra.mxu0 %v4418_v39  ;;  %v3760_v28 = vld [vmem:[%s5894_s1 + $0x424] sm:$0xf0]  ;;  %v3806_v51 = vld [vmem:[%s5894_s1 + $0x594] sm:$0xf0]  ;;  %v3044_v60 = vor.u32 %v3774_v45, %v3043_v42  ;;  %v3283_v0 = vld [vmem:[%s5894_s1 + $0x670] sm:$0xf]  ;;  %v3100_v15 = vor.u32 %v3788_v59, %v3099_v57 }
  0x44   :  { %1971 = vmatpush.bf16.msra.mxu0 %v3028_v29  ;;  %1937 = vmatmul.bf16.vlgmr.msrb.gmra.mxu1 %v4431_v44  ;;  %v3051_v29 = vld [vmem:[%s5894_s1 + $0x4a0] sm:$0xf]  ;;  %v2988_v36 = vor.u32 %v3760_v28, %v2987_v27  ;;  %v3834_v3 = vld [vmem:[%s5894_s1 + $0x674] sm:$0xf0]  ;;  %v3411_v6 = vld [vmem:[%s5894_s1 + $0x770] sm:$0xf] }
  0x45   :  { %1985 = vmatpush.bf16.msra.mxu1 %v3092_v33  ;;  %1951 = vmatmul.bf16.vlgmr.msrb.gmra.mxu2 %v4429_v43  ;;  %v3792_v33 = vld [vmem:[%s5894_s1 + $0x524] sm:$0xf0]  ;;  %v3850_v5 = vld [vmem:[%s5894_s1 + $0x6f4] sm:$0xf0]  ;;  %v3475_v8 = vld [vmem:[%s5894_s1 + $0x7f0] sm:$0xf]  ;;  %v3284_v21 = vor.u32 %v3834_v3, %v3283_v0 }
  0x46   :  { %1999 = vmatpush.bf16.msra.mxu2 %v3156_v34  ;;  %1965 = vmatmul.bf16.vlgmr.msrb.gmra.mxu3 %v4439_v47  ;;  %v3179_v34 = vld [vmem:[%s5894_s1 + $0x5a0] sm:$0xf]  ;;  %v3116_v40 = vor.u32 %v3792_v33, %v3115_v32  ;;  %v3866_v7 = vld [vmem:[%s5894_s1 + $0x774] sm:$0xf0]  ;;  %v2427_v16 = vld [vmem:[%s5895_s0 + $0x28] sm:$0xf] }
  0x47   :  { %2013 = vmatpush.bf16.msra.mxu3 %v3220_v38  ;;  %v3052_v38 = vor.u32 %v3776_v31, %v3051_v29  ;;  %v3180_v46 = vor.u32 %v3808_v35, %v3179_v34  ;;  %v3613_v19 = vld [vmem:[%s5895_s0 + $0x24] sm:$0xf]  ;;  %v2421_v22 = vld [vmem:[%s5895_s0 + $0x68] sm:$0xf0]  ;;  %v3275_v27 = vld [vmem:[%s5894_s1 + $0x660] sm:$0xf] }
  0x48   :  { %1972 = vmatpush.bf16.msra.mxu0 %v3020_v48  ;;  %v3107_v48 = vld [vmem:[%s5894_s1 + $0x510] sm:$0xf]  ;;  %v3614_v23 = vld [vmem:[%s5895_s0 + $0x2c] sm:$0xf]  ;;  %v3832_v28 = vld [vmem:[%s5894_s1 + $0x664] sm:$0xf0] }
  0x49   :  { %1986 = vmatpush.bf16.msra.mxu1 %v3084_v49  ;;  %v3790_v49 = vld [vmem:[%s5894_s1 + $0x514] sm:$0xf0]  ;;  %v3339_v29 = vld [vmem:[%s5894_s1 + $0x6e0] sm:$0xf]  ;;  %v3848_v32 = vld [vmem:[%s5894_s1 + $0x6e4] sm:$0xf0] }
  0x4a   :  { %2000 = vmatpush.bf16.msra.mxu2 %v3148_v50  ;;  %v3171_v50 = vld [vmem:[%s5894_s1 + $0x590] sm:$0xf]  ;;  %v3403_v33 = vld [vmem:[%s5894_s1 + $0x760] sm:$0xf]  ;;  %v3864_v34 = vld [vmem:[%s5894_s1 + $0x764] sm:$0xf0]  ;;  %v3340_v42 = vor.u32 %v3848_v32, %v3339_v29 }
  0x4b   :  { %2014 = vmatpush.bf16.msra.mxu3 %v3212_v54  ;;  %v2980_v54 = vor.u32 %v3758_v41, %v2979_v37  ;;  %v3172_v2 = vor.u32 %v3806_v51, %v3171_v50  ;;  %v3467_v37 = vld [vmem:[%s5894_s1 + $0x7e0] sm:$0xf]  ;;  %v3276_v41 = vor.u32 %v3832_v28, %v3275_v27  ;;  %v3404_v45 = vor.u32 %v3864_v34, %v3403_v33  ;;  %v3846_v51 = vld [vmem:[%s5894_s1 + $0x6d4] sm:$0xf0]  ;;  %v3395_v52 = vld [vmem:[%s5894_s1 + $0x750] sm:$0xf] }
  0x4c   :  { %1973 = vmatpush.bf16.msra.mxu0 %v3012_v61  ;;  %v3108_v61 = vor.u32 %v3790_v49, %v3107_v48  ;;  %v3830_v48 = vld [vmem:[%s5894_s1 + $0x654] sm:$0xf0]  ;;  %v3331_v49 = vld [vmem:[%s5894_s1 + $0x6d0] sm:$0xf]  ;;  %v3844_v0 = vld [vmem:[%s5894_s1 + $0x6c4] sm:$0xf0] }
  0x4d   :  { %1987 = vmatpush.bf16.msra.mxu1 %v3076_v62  ;;  %v3163_v62 = vld [vmem:[%s5894_s1 + $0x580] sm:$0xf]  ;;  %v3862_v53 = vld [vmem:[%s5894_s1 + $0x754] sm:$0xf0]  ;;  %v3332_v57 = vor.u32 %v3846_v51, %v3331_v49  ;;  %v3860_v3 = vld [vmem:[%s5894_s1 + $0x744] sm:$0xf0] }
  0x4e   :  { %2001 = vmatpush.bf16.msra.mxu2 %v3140_v63  ;;  %v3804_v63 = vld [vmem:[%s5894_s1 + $0x584] sm:$0xf0]  ;;  %v3878_v55 = vld [vmem:[%s5894_s1 + $0x7d4] sm:$0xf0]  ;;  %v3396_v59 = vor.u32 %v3862_v53, %v3395_v52  ;;  %v3371_v28 = vld [vmem:[%s5894_s1 + $0x720] sm:$0xf] }
  0x4f   :  { %2015 = vmatpush.bf16.msra.mxu3 %v3204_v4  ;;  %v3347_v4 = vld [vmem:[%s5894_s1 + $0x6f0] sm:$0xf]  ;;  %v3164_v20 = vor.u32 %v3804_v63, %v3163_v62  ;;  %v3323_v62 = vld [vmem:[%s5894_s1 + $0x6c0] sm:$0xf]  ;;  %v3840_v27 = vld [vmem:[%s5894_s1 + $0x6a4] sm:$0xf0] }
  0x50   :  { %1974 = vmatpush.bf16.msra.mxu0 %v3004_v11  ;;  %v3882_v11 = vld [vmem:[%s5894_s1 + $0x7f4] sm:$0xf0]  ;;  %v3856_v29 = vld [vmem:[%s5894_s1 + $0x724] sm:$0xf0]  ;;  %v3235_v34 = vld [vmem:[%s5894_s1 + $0x610] sm:$0xf] }
  0x51   :  { %1988 = vmatpush.bf16.msra.mxu1 %v3068_v12  ;;  %v2419_v12 = vld [vmem:[%s5895_s0 + $0x20] sm:$0xf]  ;;  %v3872_v32 = vld [vmem:[%s5894_s1 + $0x7a4] sm:$0xf0]  ;;  %v3854_v49 = vld [vmem:[%s5894_s1 + $0x714] sm:$0xf0] }
  0x52   :  { %2002 = vmatpush.bf16.msra.mxu2 %v3132_v13  ;;  %v3622_v13 = vld [vmem:[%s5895_s0 + $0x64] sm:$0xf0]  ;;  %v3870_v51 = vld [vmem:[%s5894_s1 + $0x794] sm:$0xf0]  ;;  %v3227_v52 = vld [vmem:[%s5894_s1 + $0x600] sm:$0xf] }
  0x53   :  { %2016 = vmatpush.bf16.msra.mxu3 %v3196_v18  ;;  %v3623_v18 = vld [vmem:[%s5895_s0 + $0x6c] sm:$0xf0]  ;;  %v4646_v31 = vor.u32 %v3622_v13, %v2419_v12  ;;  %v3820_v53 = vld [vmem:[%s5894_s1 + $0x604] sm:$0xf0] }
  0x54   :  { %1975 = vmatpush.bf16.msra.mxu0 %v2996_v24  ;;  %v2429_v24 = vld [vmem:[%s5895_s0 + $0x70] sm:$0xf0]  ;;  %v4657_v35 = vor.u32 %v3623_v18, %v2427_v16  ;;  %v3315_v12 = vld [vmem:[%s5894_s1 + $0x6b0] sm:$0xf]  ;;  %v3858_v16 = vld [vmem:[%s5894_s1 + $0x734] sm:$0xf0] }
  0x55   :  { %1989 = vmatpush.bf16.msra.mxu1 %v3060_v25  ;;  %v3348_v25 = vor.u32 %v3850_v5, %v3347_v4  ;;  %v3451_v4 = vld [vmem:[%s5894_s1 + $0x7c0] sm:$0xf]  ;;  %v3876_v5 = vld [vmem:[%s5894_s1 + $0x7c4] sm:$0xf0]  ;;  %v3443_v18 = vld [vmem:[%s5894_s1 + $0x7b0] sm:$0xf] }
  0x56   :  { %2003 = vmatpush.bf16.msra.mxu2 %v3124_v26  ;;  %v3412_v26 = vor.u32 %v3866_v7, %v3411_v6  ;;  %v3324_v7 = vor.u32 %v3844_v0, %v3323_v62  ;;  %v3452_v13 = vor.u32 %v3876_v5, %v3451_v4  ;;  %v3419_v62 = vld [vmem:[%s5894_s1 + $0x780] sm:$0xf]  ;;  %v3539_v0 = vld [vmem:[%s5894_s1 + $0x870] sm:$0xf]  ;;  %v3914_v5 = vld [vmem:[%s5894_s1 + $0x8f4] sm:$0xf0] }
  0x57   :  { %2017 = vmatpush.bf16.msra.mxu3 %v3188_v30  ;;  %v3476_v30 = vor.u32 %v3882_v11, %v3475_v8  ;;  %v3826_v11 = vld [vmem:[%s5894_s1 + $0x634] sm:$0xf0]  ;;  %v3603_v4 = vld [vmem:[%s5894_s1 + $0x8f0] sm:$0xf] }
  0x58   :  { %1976 = vmatpush.bf16.msra.mxu0 %v2988_v36  ;;  %v4659_v36 = vor.u32 %v3613_v19, %v2421_v22  ;;  %v3874_v19 = vld [vmem:[%s5894_s1 + $0x7b4] sm:$0xf0] }
  0x59   :  { %1990 = vmatpush.bf16.msra.mxu1 %v3052_v38  ;;  %v3880_v38 = vld [vmem:[%s5894_s1 + $0x7e4] sm:$0xf0] }
  0x5a   :  { %2004 = vmatpush.bf16.msra.mxu2 %v3116_v40  ;;  %v4667_v40 = vor.u32 %v3614_v23, %v2429_v24  ;;  %v3468_v50 = vor.u32 %v3880_v38, %v3467_v37  ;;  %v3243_v23 = vld [vmem:[%s5894_s1 + $0x620] sm:$0xf]  ;;  %v3824_v24 = vld [vmem:[%s5894_s1 + $0x624] sm:$0xf0]  ;;  %v3372_v38 = vor.u32 %v3856_v29, %v3371_v28 }
  0x5b   :  { %2018 = vmatpush.bf16.msra.mxu3 %v3180_v46  ;;  %v3267_v46 = vld [vmem:[%s5894_s1 + $0x650] sm:$0xf]  ;;  %v3244_v33 = vor.u32 %v3824_v24, %v3243_v23  ;;  %v3616_v23 = vld [vmem:[%s5895_s0 + $0x3c] sm:$0xf]  ;;  %v2445_v24 = vld [vmem:[%s5895_s0 + $0x80] sm:$0xf0] }
  0x5c   :  { %1977 = vmatpush.bf16.msra.mxu0 %v2980_v54  ;;  %v3459_v54 = vld [vmem:[%s5894_s1 + $0x7d0] sm:$0xf]  ;;  %v3268_v56 = vor.u32 %v3830_v48, %v3267_v46  ;;  %v3896_v28 = vld [vmem:[%s5894_s1 + $0x864] sm:$0xf0]  ;;  %v3595_v29 = vld [vmem:[%s5894_s1 + $0x8e0] sm:$0xf] }
  0x5d   :  { %1991 = vmatpush.bf16.msra.mxu1 %v3044_v60  ;;  %v3259_v60 = vld [vmem:[%s5894_s1 + $0x640] sm:$0xf]  ;;  %v3460_v63 = vor.u32 %v3878_v55, %v3459_v54  ;;  %v3363_v48 = vld [vmem:[%s5894_s1 + $0x710] sm:$0xf] }
  0x5e   :  { %2005 = vmatpush.bf16.msra.mxu2 %v3108_v61  ;;  %v3828_v61 = vld [vmem:[%s5894_s1 + $0x644] sm:$0xf0]  ;;  %v3291_v55 = vld [vmem:[%s5894_s1 + $0x680] sm:$0xf] }
  0x5f   :  { %2019 = vmatpush.bf16.msra.mxu3 %v3172_v2  ;;  %v3387_v2 = vld [vmem:[%s5894_s1 + $0x740] sm:$0xf]  ;;  %v3260_v6 = vor.u32 %v3828_v61, %v3259_v60  ;;  %v3364_v61 = vor.u32 %v3854_v49, %v3363_v48 }
  0x60   :  { %1978 = vmatpush.bf16.msra.mxu0 %v2972_v9  ;;  %v3388_v8 = vor.u32 %v3860_v3, %v3387_v2  ;;  %v3251_v9 = vld [vmem:[%s5894_s1 + $0x630] sm:$0xf]  ;;  %v3898_v3 = vld [vmem:[%s5894_s1 + $0x874] sm:$0xf0] }
  0x61   :  { %1992 = vmatpush.bf16.msra.mxu1 %v3036_v14  ;;  %v3842_v14 = vld [vmem:[%s5894_s1 + $0x6b4] sm:$0xf0] }
  0x62   :  { %2006 = vmatpush.bf16.msra.mxu2 %v3100_v15  ;;  %v3379_v15 = vld [vmem:[%s5894_s1 + $0x730] sm:$0xf] }
  0x63   :  { %2020 = vmatpush.bf16.msra.mxu3 %v3164_v20  ;;  %1979 = vmatmul.bf16.vlgmr.msra.gmra.mxu0 %v4646_v31  ;;  %v3252_v20 = vor.u32 %v3826_v11, %v3251_v9  ;;  %v3380_v22 = vor.u32 %v3858_v16, %v3379_v15  ;;  %v3228_v9 = vor.u32 %v3820_v53, %v3227_v52  ;;  %v2581_v11 = vld [vmem:[%s5894_s1 + $0xf8] sm:$0xf0]  ;;  %v2443_v16 = vld [vmem:[%s5895_s0 + $0x38] sm:$0xf]  ;;  %v3587_v53 = vld [vmem:[%s5894_s1 + $0x8d0] sm:$0xf] }
  0x64   :  { %2027 = vmatpush.bf16.msrb.mxu0 %v3284_v21  ;;  %1993 = vmatmul.bf16.vlgmr.msra.gmra.mxu1 %v4659_v36  ;;  %v3316_v21 = vor.u32 %v3842_v14, %v3315_v12  ;;  %v2435_v12 = vld [vmem:[%s5895_s0 + $0x30] sm:$0xf]  ;;  %v3894_v52 = vld [vmem:[%s5894_s1 + $0x854] sm:$0xf0] }
  0x65   :  { %2041 = vmatpush.bf16.msrb.mxu1 %v3348_v25  ;;  %2007 = vmatmul.bf16.vlgmr.msra.gmra.mxu2 %v4657_v35  ;;  %v3307_v25 = vld [vmem:[%s5894_s1 + $0x6a0] sm:$0xf] }
  0x66   :  { %2055 = vmatpush.bf16.msrb.mxu2 %v3412_v26  ;;  %2021 = vmatmul.bf16.vlgmr.msra.gmra.mxu3 %v4667_v40  ;;  %v3444_v26 = vor.u32 %v3874_v19, %v3443_v18  ;;  %v3308_v37 = vor.u32 %v3840_v27, %v3307_v25  ;;  %v3625_v18 = vld [vmem:[%s5895_s0 + $0x7c] sm:$0xf0]  ;;  %v3615_v19 = vld [vmem:[%s5895_s0 + $0x34] sm:$0xf]  ;;  %v3604_v25 = vor.u32 %v3914_v5, %v3603_v4  ;;  %v3908_v5 = vld [vmem:[%s5894_s1 + $0x8c4] sm:$0xf0] }
  0x67   :  { %2069 = vmatpush.bf16.msrb.mxu3 %v3476_v30  ;;  %v3435_v30 = vld [vmem:[%s5894_s1 + $0x7a0] sm:$0xf] }
  0x68   :  { %2028 = vmatpush.bf16.msrb.mxu0 %v3276_v41  ;;  %v3822_v41 = vld [vmem:[%s5894_s1 + $0x614] sm:$0xf0]  ;;  %v3436_v46 = vor.u32 %v3872_v32, %v3435_v30  ;;  %v3531_v27 = vld [vmem:[%s5894_s1 + $0x860] sm:$0xf] }
  0x69   :  { %2042 = vmatpush.bf16.msrb.mxu1 %v3340_v42  ;;  %v3299_v42 = vld [vmem:[%s5894_s1 + $0x690] sm:$0xf]  ;;  %v3236_v54 = vor.u32 %v3822_v41, %v3235_v34  ;;  %v3639_v34 = vld [vmem:[%s5894_s1 + $0x64] sm:$0xf]  ;;  %v3532_v48 = vor.u32 %v3896_v28, %v3531_v27  ;;  %v3499_v27 = vld [vmem:[%s5894_s1 + $0x820] sm:$0xf] }
  0x6a   :  { %2056 = vmatpush.bf16.msrb.mxu2 %v3404_v45  ;;  %v3838_v45 = vld [vmem:[%s5894_s1 + $0x694] sm:$0xf0]  ;;  %v3888_v28 = vld [vmem:[%s5894_s1 + $0x824] sm:$0xf0] }
  0x6b   :  { %2070 = vmatpush.bf16.msrb.mxu3 %v3468_v50  ;;  %v3427_v50 = vld [vmem:[%s5894_s1 + $0x790] sm:$0xf]  ;;  %v3300_v60 = vor.u32 %v3838_v45, %v3299_v42  ;;  %v3655_v42 = vld [vmem:[%s5894_s1 + $0xe4] sm:$0xf]  ;;  %v2573_v45 = vld [vmem:[%s5894_s1 + $0xe8] sm:$0xf0] }
  0x6c   :  { %2029 = vmatpush.bf16.msrb.mxu0 %v3268_v56  ;;  %v3836_v56 = vld [vmem:[%s5894_s1 + $0x684] sm:$0xf0]  ;;  %v3428_v2 = vor.u32 %v3870_v51, %v3427_v50  ;;  %v3523_v51 = vld [vmem:[%s5894_s1 + $0x850] sm:$0xf] }
  0x6d   :  { %2043 = vmatpush.bf16.msrb.mxu1 %v3332_v57  ;;  %v3355_v57 = vld [vmem:[%s5894_s1 + $0x700] sm:$0xf]  ;;  %v3292_v14 = vor.u32 %v3836_v56, %v3291_v55  ;;  %v3910_v55 = vld [vmem:[%s5894_s1 + $0x8d4] sm:$0xf0]  ;;  %v3637_v56 = vld [vmem:[%s5894_s1 + $0x54] sm:$0xf] }
  0x6e   :  { %2057 = vmatpush.bf16.msrb.mxu2 %v3396_v59  ;;  %v3852_v59 = vld [vmem:[%s5894_s1 + $0x704] sm:$0xf0] }
  0x6f   :  { %2071 = vmatpush.bf16.msrb.mxu3 %v3460_v63  ;;  %v3868_v63 = vld [vmem:[%s5894_s1 + $0x784] sm:$0xf0]  ;;  %v3356_v15 = vor.u32 %v3852_v59, %v3355_v57  ;;  %v2501_v57 = vld [vmem:[%s5894_s1 + $0x58] sm:$0xf0]  ;;  %v3653_v59 = vld [vmem:[%s5894_s1 + $0xd4] sm:$0xf] }
  0x70   :  { %2030 = vmatpush.bf16.msrb.mxu0 %v3260_v6  ;;  %v3641_v6 = vld [vmem:[%s5894_s1 + $0x74] sm:$0xf] }
  0x71   :  { %2044 = vmatpush.bf16.msrb.mxu1 %v3324_v7  ;;  %v2517_v7 = vld [vmem:[%s5894_s1 + $0x78] sm:$0xf0] }
  0x72   :  { %2058 = vmatpush.bf16.msrb.mxu2 %v3388_v8  ;;  %v3657_v8 = vld [vmem:[%s5894_s1 + $0xf4] sm:$0xf] }
  0x73   :  { %2072 = vmatpush.bf16.msrb.mxu3 %v3452_v13  ;;  %v3624_v13 = vld [vmem:[%s5895_s0 + $0x74] sm:$0xf0]  ;;  %v2584_v30 = vor.u32 %v3657_v8, %v2581_v11  ;;  %v3651_v8 = vld [vmem:[%s5894_s1 + $0xc4] sm:$0xf] }
  0x74   :  { %2031 = vmatpush.bf16.msrb.mxu0 %v3252_v20  ;;  %v3420_v20 = vor.u32 %v3868_v63, %v3419_v62  ;;  %v4874_v32 = vor.u32 %v3624_v13, %v2435_v12  ;;  %v3588_v62 = vor.u32 %v3910_v55, %v3587_v53  ;;  %v2504_v63 = vor.u32 %v3637_v56, %v2501_v57  ;;  %v3555_v53 = vld [vmem:[%s5894_s1 + $0x890] sm:$0xf]  ;;  %v3902_v55 = vld [vmem:[%s5894_s1 + $0x894] sm:$0xf0]  ;;  %v3629_v56 = vld [vmem:[%s5894_s1 + $0x14] sm:$0xf] }
  0x75   :  { %2045 = vmatpush.bf16.msrb.mxu1 %v3316_v21  ;;  %v3540_v21 = vor.u32 %v3898_v3, %v3539_v0  ;;  %v3515_v0 = vld [vmem:[%s5894_s1 + $0x840] sm:$0xf]  ;;  %v2469_v57 = vld [vmem:[%s5894_s1 + $0x18] sm:$0xf0] }
  0x76   :  { %2059 = vmatpush.bf16.msrb.mxu2 %v3380_v22  ;;  %v2437_v22 = vld [vmem:[%s5895_s0 + $0x78] sm:$0xf0]  ;;  %v3579_v3 = vld [vmem:[%s5894_s1 + $0x8c0] sm:$0xf] }
  0x77   :  { %2073 = vmatpush.bf16.msrb.mxu3 %v3444_v26  ;;  %v2520_v26 = vor.u32 %v3641_v6, %v2517_v7  ;;  %v4887_v41 = vor.u32 %v3615_v19, %v2437_v22  ;;  %v3635_v6 = vld [vmem:[%s5894_s1 + $0x44] sm:$0xf]  ;;  %v2493_v7 = vld [vmem:[%s5894_s1 + $0x48] sm:$0xf0]  ;;  %v3580_v12 = vor.u32 %v3908_v5, %v3579_v3  ;;  %v3906_v19 = vld [vmem:[%s5894_s1 + $0x8b4] sm:$0xf0]  ;;  %v2472_v3 = vor.u32 %v3629_v56, %v2469_v57 }
  0x78   :  { %2032 = vmatpush.bf16.msrb.mxu0 %v3244_v33  ;;  %v3912_v33 = vld [vmem:[%s5894_s1 + $0x8e4] sm:$0xf0]  ;;  %v2496_v13 = vor.u32 %v3635_v6, %v2493_v7  ;;  %v3649_v22 = vld [vmem:[%s5894_s1 + $0xb4] sm:$0xf]  ;;  %v3627_v5 = vld [vmem:[%s5894_s1 + $0x4] sm:$0xf] }
  0x79   :  { %2046 = vmatpush.bf16.msrb.mxu1 %v3308_v37  ;;  %v2509_v37 = vld [vmem:[%s5894_s1 + $0x68] sm:$0xf0]  ;;  %v3596_v49 = vor.u32 %v3912_v33, %v3595_v29  ;;  %v3563_v29 = vld [vmem:[%s5894_s1 + $0x8a0] sm:$0xf]  ;;  %v3904_v33 = vld [vmem:[%s5894_s1 + $0x8a4] sm:$0xf0] }
  0x7a   :  { %2060 = vmatpush.bf16.msrb.mxu2 %v3372_v38  ;;  %v4885_v38 = vor.u32 %v3625_v18, %v2443_v16  ;;  %v2512_v50 = vor.u32 %v3639_v34, %v2509_v37  ;;  %v3571_v16 = vld [vmem:[%s5894_s1 + $0x8b0] sm:$0xf]  ;;  %v3631_v34 = vld [vmem:[%s5894_s1 + $0x24] sm:$0xf]  ;;  %v2477_v37 = vld [vmem:[%s5894_s1 + $0x28] sm:$0xf0] }
  0x7b   :  { %2074 = vmatpush.bf16.msrb.mxu3 %v3436_v46  ;;  %v4895_v46 = vor.u32 %v3616_v23, %v2445_v24  ;;  %v2549_v23 = vld [vmem:[%s5894_s1 + $0xb8] sm:$0xf0]  ;;  %v2461_v6 = vld [vmem:[%s5894_s1 + $0x8] sm:$0xf0] }
  0x7c   :  { %2033 = vmatpush.bf16.msrb.mxu0 %v3236_v54  ;;  %v2576_v54 = vor.u32 %v3655_v42, %v2573_v45  ;;  %v3647_v42 = vld [vmem:[%s5894_s1 + $0xa4] sm:$0xf]  ;;  %v2541_v45 = vld [vmem:[%s5894_s1 + $0xa8] sm:$0xf0] }
  0x7d   :  { %2047 = vmatpush.bf16.msrb.mxu1 %v3300_v60  ;;  %v2565_v60 = vld [vmem:[%s5894_s1 + $0xd8] sm:$0xf0] }
  0x7e   :  { %2061 = vmatpush.bf16.msrb.mxu2 %v3364_v61  ;;  %v3524_v61 = vor.u32 %v3894_v52, %v3523_v51  ;;  %v2568_v4 = vor.u32 %v3653_v59, %v2565_v60  ;;  %v3491_v51 = vld [vmem:[%s5894_s1 + $0x810] sm:$0xf]  ;;  %v3886_v52 = vld [vmem:[%s5894_s1 + $0x814] sm:$0xf0]  ;;  %v3645_v59 = vld [vmem:[%s5894_s1 + $0x94] sm:$0xf] }
  0x7f   :  { %2075 = vmatpush.bf16.msrb.mxu3 %v3428_v2  ;;  %v3892_v2 = vld [vmem:[%s5894_s1 + $0x844] sm:$0xf0]  ;;  %v2533_v60 = vld [vmem:[%s5894_s1 + $0x98] sm:$0xf0] }
  0x80   :  { %2034 = vmatpush.bf16.msrb.mxu0 %v3228_v9  ;;  %v2557_v9 = vld [vmem:[%s5894_s1 + $0xc8] sm:$0xf0]  ;;  %v3516_v11 = vor.u32 %v3892_v2, %v3515_v0  ;;  %v3547_v0 = vld [vmem:[%s5894_s1 + $0x880] sm:$0xf]  ;;  %v3556_v2 = vor.u32 %v3902_v55, %v3555_v53  ;;  %v2536_v7 = vor.u32 %v3645_v59, %v2533_v60  ;;  %v3669_v55 = vld [vmem:[%s5894_s1 + $0x154] sm:$0xf] }
  0x81   :  { %2048 = vmatpush.bf16.msrb.mxu1 %v3292_v14  ;;  %v3507_v14 = vld [vmem:[%s5894_s1 + $0x830] sm:$0xf]  ;;  %v2560_v18 = vor.u32 %v3651_v8, %v2557_v9  ;;  %v3643_v8 = vld [vmem:[%s5894_s1 + $0x84] sm:$0xf]  ;;  %v2525_v9 = vld [vmem:[%s5894_s1 + $0x88] sm:$0xf0] }
  0x82   :  { %2062 = vmatpush.bf16.msrb.mxu2 %v3356_v15  ;;  %v3890_v15 = vld [vmem:[%s5894_s1 + $0x834] sm:$0xf0]  ;;  %v2829_v53 = vld [vmem:[%s5894_s1 + $0x2e8] sm:$0xf0]  ;;  %v2629_v59 = vld [vmem:[%s5894_s1 + $0x158] sm:$0xf0] }
  0x83   :  { %2076 = vmatpush.bf16.msrb.mxu3 %v3420_v20  ;;  %2035 = vmatmul.bf16.vlgmr.msrb.gmra.mxu0 %v4874_v32  ;;  %v3633_v20 = vld [vmem:[%s5894_s1 + $0x34] sm:$0xf]  ;;  %v3508_v24 = vor.u32 %v3890_v15, %v3507_v14  ;;  %v2709_v14 = vld [vmem:[%s5894_s1 + $0x1f8] sm:$0xf0] }
  0x84   :  { %2083 = vmatpush.bf16.msra.mxu0 %v3540_v21  ;;  %2049 = vmatmul.bf16.vlgmr.msrb.gmra.mxu1 %v4887_v41  ;;  %v2485_v21 = vld [vmem:[%s5894_s1 + $0x38] sm:$0xf0]  ;;  %v3685_v60 = vld [vmem:[%s5894_s1 + $0x1d4] sm:$0xf] }
  0x85   :  { %2097 = vmatpush.bf16.msra.mxu1 %v3604_v25  ;;  %2063 = vmatmul.bf16.vlgmr.msrb.gmra.mxu2 %v4885_v38  ;;  %v3572_v25 = vor.u32 %v3906_v19, %v3571_v16  ;;  %v3705_v16 = vld [vmem:[%s5894_s1 + $0x274] sm:$0xf] }
  0x86   :  { %2111 = vmatpush.bf16.msra.mxu2 %v2520_v26  ;;  %2077 = vmatmul.bf16.vlgmr.msrb.gmra.mxu3 %v4895_v46  ;;  %v2488_v26 = vor.u32 %v3633_v20, %v2485_v21  ;;  %v3721_v19 = vld [vmem:[%s5894_s1 + $0x2f4] sm:$0xf]  ;;  %v2464_v21 = vor.u32 %v3627_v5, %v2461_v6  ;;  %v2632_v5 = vor.u32 %v3669_v55, %v2629_v59  ;;  %v2669_v55 = vld [vmem:[%s5894_s1 + $0x1a8] sm:$0xf0] }
  0x87   :  { %2125 = vmatpush.bf16.msra.mxu3 %v2584_v30  ;;  %v2552_v30 = vor.u32 %v3649_v22, %v2549_v23  ;;  %v2837_v22 = vld [vmem:[%s5894_s1 + $0x2f8] sm:$0xf0]  ;;  %v2451_v23 = vld [vmem:[%s5895_s0 + $0x40] sm:$0xf] }
  0x88   :  { %2084 = vmatpush.bf16.msra.mxu0 %v3532_v48  ;;  %v3500_v48 = vor.u32 %v3888_v28, %v3499_v27  ;;  %v3617_v27 = vld [vmem:[%s5895_s0 + $0x44] sm:$0xf]  ;;  %v2453_v28 = vld [vmem:[%s5895_s0 + $0x88] sm:$0xf0] }
  0x89   :  { %2098 = vmatpush.bf16.msra.mxu1 %v3596_v49  ;;  %v3564_v49 = vor.u32 %v3904_v33, %v3563_v29  ;;  %v3671_v33 = vld [vmem:[%s5894_s1 + $0x164] sm:$0xf] }
  0x8a   :  { %2112 = vmatpush.bf16.msra.mxu2 %v2512_v50  ;;  %v2480_v50 = vor.u32 %v3631_v34, %v2477_v37  ;;  %v2637_v34 = vld [vmem:[%s5894_s1 + $0x168] sm:$0xf0]  ;;  %v3687_v37 = vld [vmem:[%s5894_s1 + $0x1e4] sm:$0xf] }
  0x8b   :  { %2126 = vmatpush.bf16.msra.mxu3 %v2576_v54  ;;  %v2544_v54 = vor.u32 %v3647_v42, %v2541_v45  ;;  %v2840_v42 = vor.u32 %v3721_v19, %v2837_v22 }
  0x8c   :  { %2085 = vmatpush.bf16.msra.mxu0 %v3524_v61  ;;  %v3492_v61 = vor.u32 %v3886_v52, %v3491_v51  ;;  %v5101_v51 = vor.u32 %v3617_v27, %v2453_v28  ;;  %v3719_v52 = vld [vmem:[%s5894_s1 + $0x2e4] sm:$0xf]  ;;  %v2677_v27 = vld [vmem:[%s5894_s1 + $0x1b8] sm:$0xf0]  ;;  %v3697_v28 = vld [vmem:[%s5894_s1 + $0x234] sm:$0xf] }
  0x8d   :  { %2099 = vmatpush.bf16.msra.mxu1 %v3588_v62  ;;  %v3483_v62 = vld [vmem:[%s5894_s1 + $0x800] sm:$0xf] }
  0x8e   :  { %2113 = vmatpush.bf16.msra.mxu2 %v2504_v63  ;;  %v3884_v63 = vld [vmem:[%s5894_s1 + $0x804] sm:$0xf0] }
  0x8f   :  { %2127 = vmatpush.bf16.msra.mxu3 %v2568_v4  ;;  %v3900_v4 = vld [vmem:[%s5894_s1 + $0x884] sm:$0xf0]  ;;  %v3484_v15 = vor.u32 %v3884_v63, %v3483_v62  ;;  %v2832_v62 = vor.u32 %v3719_v52, %v2829_v53  ;;  %v2693_v63 = vld [vmem:[%s5894_s1 + $0x1d8] sm:$0xf0]  ;;  %v2605_v52 = vld [vmem:[%s5894_s1 + $0x128] sm:$0xf0] }
  0x90   :  { %2086 = vmatpush.bf16.msra.mxu0 %v3516_v11  ;;  %v3673_v11 = vld [vmem:[%s5894_s1 + $0x174] sm:$0xf]  ;;  %v3548_v20 = vor.u32 %v3900_v4, %v3547_v0  ;;  %v2821_v4 = vld [vmem:[%s5894_s1 + $0x2d8] sm:$0xf0]  ;;  %v3679_v53 = vld [vmem:[%s5894_s1 + $0x1a4] sm:$0xf] }
  0x91   :  { %2100 = vmatpush.bf16.msra.mxu1 %v3580_v12  ;;  %v2645_v12 = vld [vmem:[%s5894_s1 + $0x178] sm:$0xf0]  ;;  %v3701_v0 = vld [vmem:[%s5894_s1 + $0x254] sm:$0xf] }
  0x92   :  { %2114 = vmatpush.bf16.msra.mxu2 %v2496_v13  ;;  %v3689_v13 = vld [vmem:[%s5894_s1 + $0x1f4] sm:$0xf] }
  0x93   :  { %2128 = vmatpush.bf16.msra.mxu3 %v2560_v18  ;;  %v2773_v18 = vld [vmem:[%s5894_s1 + $0x278] sm:$0xf0]  ;;  %v2712_v29 = vor.u32 %v3689_v13, %v2709_v14  ;;  %v3699_v13 = vld [vmem:[%s5894_s1 + $0x244] sm:$0xf]  ;;  %v2749_v14 = vld [vmem:[%s5894_s1 + $0x248] sm:$0xf0] }
  0x94   :  { %2087 = vmatpush.bf16.msra.mxu0 %v3508_v24  ;;  %v3626_v24 = vld [vmem:[%s5895_s0 + $0x84] sm:$0xf0]  ;;  %v2752_v22 = vor.u32 %v3699_v13, %v2749_v14  ;;  %v2789_v13 = vld [vmem:[%s5894_s1 + $0x298] sm:$0xf0] }
  0x95   :  { %2101 = vmatpush.bf16.msra.mxu1 %v3572_v25  ;;  %v2528_v25 = vor.u32 %v3643_v8, %v2525_v9  ;;  %v5090_v45 = vor.u32 %v3626_v24, %v2451_v23  ;;  %v3667_v9 = vld [vmem:[%s5894_s1 + $0x144] sm:$0xf]  ;;  %v3665_v23 = vld [vmem:[%s5894_s1 + $0x134] sm:$0xf]  ;;  %v2613_v24 = vld [vmem:[%s5894_s1 + $0x138] sm:$0xf0] }
  0x96   :  { %2115 = vmatpush.bf16.msra.mxu2 %v2488_v26  ;;  %v2648_v26 = vor.u32 %v3673_v11, %v2645_v12  ;;  %v2621_v11 = vld [vmem:[%s5894_s1 + $0x148] sm:$0xf0] }
  0x97   :  { %2129 = vmatpush.bf16.msra.mxu3 %v2552_v30  ;;  %v2776_v30 = vor.u32 %v3705_v16, %v2773_v18  ;;  %v2685_v12 = vld [vmem:[%s5894_s1 + $0x1c8] sm:$0xf0]  ;;  %v2624_v19 = vor.u32 %v3667_v9, %v2621_v11  ;;  %v3693_v11 = vld [vmem:[%s5894_s1 + $0x214] sm:$0xf] }
  0x98   :  { %2088 = vmatpush.bf16.msra.mxu0 %v3500_v48  ;;  %v2701_v48 = vld [vmem:[%s5894_s1 + $0x1e8] sm:$0xf0] }
  0x99   :  { %2102 = vmatpush.bf16.msra.mxu1 %v3564_v49  ;;  %v3703_v49 = vld [vmem:[%s5894_s1 + $0x264] sm:$0xf]  ;;  %v2704_v56 = vor.u32 %v3687_v37, %v2701_v48  ;;  %v2813_v16 = vld [vmem:[%s5894_s1 + $0x2c8] sm:$0xf0]  ;;  %v2616_v37 = vor.u32 %v3665_v23, %v2613_v24 }
  0x9a   :  { %2116 = vmatpush.bf16.msra.mxu2 %v2480_v50  ;;  %v2765_v50 = vld [vmem:[%s5894_s1 + $0x268] sm:$0xf0]  ;;  %v3675_v23 = vld [vmem:[%s5894_s1 + $0x184] sm:$0xf] }
  0x9b   :  { %2130 = vmatpush.bf16.msra.mxu3 %v2544_v54  ;;  %v2640_v54 = vor.u32 %v3671_v33, %v2637_v34  ;;  %v2768_v57 = vor.u32 %v3703_v49, %v2765_v50  ;;  %v2805_v33 = vld [vmem:[%s5894_s1 + $0x2b8] sm:$0xf0]  ;;  %v3663_v50 = vld [vmem:[%s5894_s1 + $0x124] sm:$0xf]  ;;  %v2653_v24 = vld [vmem:[%s5894_s1 + $0x188] sm:$0xf0] }
  0x9c   :  { %2089 = vmatpush.bf16.msra.mxu0 %v3492_v61  ;;  %v5121_v61 = vld [vmem:[%s5896_s2] sm:$0x3] }
  0x9d   :  { %2103 = vmatpush.bf16.msra.mxu1 %v3556_v2  ;;  %v2757_v2 = vld [vmem:[%s5894_s1 + $0x258] sm:$0xf0]  ;;  %v325_v6 = vperm.slane %v5121_v61, 0  ;;  %v2797_v61 = vld [vmem:[%s5894_s1 + $0x2a8] sm:$0xf0] }
  0x9e   :  { %2117 = vmatpush.bf16.msra.mxu2 %v2472_v3  ;;  %v3717_v3 = vld [vmem:[%s5894_s1 + $0x2d4] sm:$0xf]  ;;  %v2760_v8 = vor.u32 %v3701_v0, %v2757_v2  ;;  %v2608_v0 = vor.u32 %v3663_v50, %v2605_v52  ;;  %v3029_v52 = vld [vmem:[%s5894_s1 + $0x478] sm:$0xf0] }
  0x9f   :  { %2131 = vmatpush.bf16.msra.mxu3 %v2536_v7  ;;  %v2696_v7 = vor.u32 %v3685_v60, %v2693_v63  ;;  %v3711_v60 = vld [vmem:[%s5894_s1 + $0x2a4] sm:$0xf]  ;;  %v3769_v50 = vld [vmem:[%s5894_s1 + $0x474] sm:$0xf] }
  0xa0   :  { %2090 = vmatpush.bf16.msra.mxu0 %v3484_v15  ;;  %v3715_v15 = vld [vmem:[%s5894_s1 + $0x2c4] sm:$0xf]  ;;  %v1868_v18 = vpop.f32.mrf.mxu0  ;;  %v2800_v9 = vor.u32 %v3711_v60, %v2797_v61 }
  0xa1   :  { %2104 = vmatpush.bf16.msra.mxu1 %v3548_v20  ;;  %v1869_v20 = vadd.f32 %v1868_v18, %v325_v6  ;;  %v1882_v34 = vpop.f32.mrf.mxu1  ;;  %v3659_v18 = vld [vmem:[%s5894_s1 + $0x104] sm:$0xf] }
  0xa2   :  { %2118 = vmatpush.bf16.msra.mxu2 %v2464_v21 }
  0xa3   :  { %2132 = vmatpush.bf16.msra.mxu3 %v2528_v25  ;;  %2091 = vmatmul.bf16.vlgmr.msra.gmra.mxu0 %v5090_v45  ;;  %v3681_v25 = vld [vmem:[%s5894_s1 + $0x1b4] sm:$0xf] }
  0xa4   :  { %2139 = vmatpush.bf16.msrb.mxu0 %v2648_v26  ;;  %2105 = vmatmul.bf16.vlgmr.msra.gmra.mxu1 %v5101_v51  ;;  %v2816_v26 = vor.u32 %v3715_v15, %v2813_v16  ;;  %v2680_v48 = vor.u32 %v3681_v25, %v2677_v27  ;;  %v3691_v25 = vld [vmem:[%s5894_s1 + $0x204] sm:$0xf]  ;;  %v2717_v27 = vld [vmem:[%s5894_s1 + $0x208] sm:$0xf0] }
  0xa5   :  { %2153 = vmatpush.bf16.msrb.mxu1 %v2712_v29  ;;  %2119 = vmatmul.bf16.vlgmr.msra.gmra.mxu2 %v4196_v58  ;;  %v3683_v58 = vld [vmem:[%s5894_s1 + $0x1c4] sm:$0xf]  ;;  %v2741_v29 = vld [vmem:[%s5894_s1 + $0x238] sm:$0xf0] }
  0xa6   :  { %2167 = vmatpush.bf16.msrb.mxu2 %v2776_v30  ;;  %2133 = vmatmul.bf16.vlgmr.msra.gmra.mxu3 %v4232_v10  ;;  %v2824_v10 = vor.u32 %v3717_v3, %v2821_v4  ;;  %v2688_v21 = vor.u32 %v3683_v58, %v2685_v12  ;;  %v3713_v30 = vld [vmem:[%s5894_s1 + $0x2b4] sm:$0xf]  ;;  %v2744_v49 = vor.u32 %v3697_v28, %v2741_v29  ;;  %v2725_v58 = vld [vmem:[%s5894_s1 + $0x218] sm:$0xf0]  ;;  %v3707_v28 = vld [vmem:[%s5894_s1 + $0x284] sm:$0xf] }
  0xa7   :  { %2181 = vmatpush.bf16.msrb.mxu3 %v2840_v42  ;;  %v1883_v42 = vadd.f32 %v1882_v34, %v1869_v20  ;;  %v2672_v3 = vor.u32 %v3679_v53, %v2669_v55  ;;  %v3709_v12 = vld [vmem:[%s5894_s1 + $0x294] sm:$0xf]  ;;  %v2781_v29 = vld [vmem:[%s5894_s1 + $0x288] sm:$0xf0]  ;;  %v2901_v34 = vld [vmem:[%s5894_s1 + $0x378] sm:$0xf0]  ;;  %v2656_v53 = vor.u32 %v3675_v23, %v2653_v24 }
  0xa8   :  { %2140 = vmatpush.bf16.msrb.mxu0 %v2640_v54  ;;  %v2808_v54 = vor.u32 %v3713_v30, %v2805_v33  ;;  %v1896_v59 = vpop.f32.mrf.mxu2  ;;  %v1870_v63 = vpop.f32.mrf.mxu0  ;;  %v3737_v33 = vld [vmem:[%s5894_s1 + $0x374] sm:$0xf] }
  0xa9   :  { %2154 = vmatpush.bf16.msrb.mxu1 %v2704_v56  ;;  %v3695_v56 = vld [vmem:[%s5894_s1 + $0x224] sm:$0xf]  ;;  %v1871_v2 = vadd.f32 %v1870_v63, %v325_v6  ;;  %v2661_v6 = vld [vmem:[%s5894_s1 + $0x198] sm:$0xf0]  ;;  %v1884_v15 = vpop.f32.mrf.mxu1  ;;  %v3785_v55 = vld [vmem:[%s5894_s1 + $0x4f4] sm:$0xf] }
  0xaa   :  { %2168 = vmatpush.bf16.msrb.mxu2 %v2768_v57  ;;  %v2733_v57 = vld [vmem:[%s5894_s1 + $0x228] sm:$0xf0]  ;;  %v3735_v63 = vld [vmem:[%s5894_s1 + $0x364] sm:$0xf] }
  0xab   :  { %2182 = vmatpush.bf16.msrb.mxu3 %v2832_v62  ;;  %v1897_v62 = vadd.f32 %v1896_v59, %v1883_v42  ;;  %v2736_v4 = vor.u32 %v3695_v56, %v2733_v57  ;;  %v1885_v20 = vadd.f32 %v1884_v15, %v1871_v2  ;;  %v3093_v56 = vld [vmem:[%s5894_s1 + $0x4f8] sm:$0xf0]  ;;  %v2784_v57 = vor.u32 %v3707_v28, %v2781_v29  ;;  %v3751_v2 = vld [vmem:[%s5894_s1 + $0x3e4] sm:$0xf]  ;;  %v3749_v15 = vld [vmem:[%s5894_s1 + $0x3d4] sm:$0xf] }
  0xac   :  { %2141 = vmatpush.bf16.msrb.mxu0 %v2632_v5  ;;  %v3661_v5 = vld [vmem:[%s5894_s1 + $0x114] sm:$0xf]  ;;  %v2904_v59 = vor.u32 %v3737_v33, %v2901_v34  ;;  %v3005_v28 = vld [vmem:[%s5894_s1 + $0x448] sm:$0xf0] }
  0xad   :  { %2155 = vmatpush.bf16.msrb.mxu1 %v2696_v7  ;;  %v2597_v7 = vld [vmem:[%s5894_s1 + $0x118] sm:$0xf0]  ;;  %v3069_v33 = vld [vmem:[%s5894_s1 + $0x4c8] sm:$0xf0] }
  0xae   :  { %2169 = vmatpush.bf16.msrb.mxu2 %v2760_v8  ;;  %v3677_v8 = vld [vmem:[%s5894_s1 + $0x194] sm:$0xf]  ;;  %v2600_v16 = vor.u32 %v3661_v5, %v2597_v7  ;;  %v2957_v5 = vld [vmem:[%s5894_s1 + $0x3e8] sm:$0xf0]  ;;  %v3767_v7 = vld [vmem:[%s5894_s1 + $0x464] sm:$0xf] }
  0xaf   :  { %2183 = vmatpush.bf16.msrb.mxu3 %v2824_v10  ;;  %v1910_v10 = vpop.f32.mrf.mxu3 }
  0xb0   :  { %2142 = vmatpush.bf16.msrb.mxu0 %v2624_v19  ;;  %v5239_v14 = vadd.f32 %v1910_v10, %v1897_v62  ;;  %v2589_v19 = vld [vmem:[%s5894_s1 + $0x108] sm:$0xf0]  ;;  %v1898_v30 = vpop.f32.mrf.mxu2  ;;  %v3032_v62 = vor.u32 %v3769_v50, %v3029_v52  ;;  %v3729_v50 = vld [vmem:[%s5894_s1 + $0x334] sm:$0xf]  ;;  %v2869_v52 = vld [vmem:[%s5894_s1 + $0x338] sm:$0xf0] }
  0xb1   :  { %2156 = vmatpush.bf16.msrb.mxu1 %v2688_v21  ;;  %v2664_v21 = vor.u32 %v3677_v8, %v2661_v6  ;;  %v1899_v42 = vadd.f32 %v1898_v30, %v1885_v20  ;;  %v3021_v8 = vld [vmem:[%s5894_s1 + $0x468] sm:$0xf0]  ;;  %v3013_v20 = vld [vmem:[%s5894_s1 + $0x458] sm:$0xf0]  ;;  %v3779_v30 = vld [vmem:[%s5894_s1 + $0x4c4] sm:$0xf] }
  0xb2   :  { %2170 = vmatpush.bf16.msrb.mxu2 %v2752_v22  ;;  %v2728_v22 = vor.u32 %v3693_v11, %v2725_v58  ;;  %v3085_v6 = vld [vmem:[%s5894_s1 + $0x4e8] sm:$0xf0]  ;;  %v2960_v58 = vor.u32 %v3751_v2, %v2957_v5  ;;  %v3024_v10 = vor.u32 %v3767_v7, %v3021_v8 }
  0xb3   :  { %2184 = vmatpush.bf16.msrb.mxu3 %v2816_v26  ;;  %v2792_v26 = vor.u32 %v3709_v12, %v2789_v13  ;;  %v3733_v12 = vld [vmem:[%s5894_s1 + $0x354] sm:$0xf]  ;;  %v2885_v13 = vld [vmem:[%s5894_s1 + $0x358] sm:$0xf0]  ;;  %v2861_v2 = vld [vmem:[%s5894_s1 + $0x328] sm:$0xf0] }
  0xb4   :  { %2143 = vmatpush.bf16.msrb.mxu0 %v2616_v37  ;;  %v3753_v37 = vld [vmem:[%s5894_s1 + $0x3f4] sm:$0xf]  ;;  %v2925_v8 = vld [vmem:[%s5894_s1 + $0x3a8] sm:$0xf0] }
  0xb5   :  { %2157 = vmatpush.bf16.msrb.mxu1 %v2680_v48  ;;  %v2592_v48 = vor.u32 %v3659_v18, %v2589_v19  ;;  %v2949_v18 = vld [vmem:[%s5894_s1 + $0x3d8] sm:$0xf0]  ;;  %v3765_v19 = vld [vmem:[%s5894_s1 + $0x454] sm:$0xf] }
  0xb6   :  { %2171 = vmatpush.bf16.msrb.mxu2 %v2744_v49  ;;  %v2965_v49 = vld [vmem:[%s5894_s1 + $0x3f8] sm:$0xf0]  ;;  %v2952_v23 = vor.u32 %v3749_v15, %v2949_v18  ;;  %v3016_v24 = vor.u32 %v3765_v19, %v3013_v20 }
  0xb7   :  { %2185 = vmatpush.bf16.msrb.mxu3 %v2808_v54  ;;  %v2720_v54 = vor.u32 %v3691_v25, %v2717_v27  ;;  %v1912_v60 = vpop.f32.mrf.mxu3  ;;  %v2968_v61 = vor.u32 %v3753_v37, %v2965_v49  ;;  %v3747_v25 = vld [vmem:[%s5894_s1 + $0x3c4] sm:$0xf] }
  0xb8   :  { %2144 = vmatpush.bf16.msrb.mxu0 %v2608_v0  ;;  %v2893_v0 = vld [vmem:[%s5894_s1 + $0x368] sm:$0xf0]  ;;  %v3763_v27 = vld [vmem:[%s5894_s1 + $0x444] sm:$0xf] }
  0xb9   :  { %2158 = vmatpush.bf16.msrb.mxu1 %v2672_v3  ;;  %v5298_v3 = vadd.f32 %v1912_v60, %v1899_v42  ;;  %v2896_v11 = vor.u32 %v3735_v63, %v2893_v0  ;;  %v3008_v49 = vor.u32 %v3763_v27, %v3005_v28  ;;  %v3061_v60 = vld [vmem:[%s5894_s1 + $0x4b8] sm:$0xf0]  ;;  %v3727_v0 = vld [vmem:[%s5894_s1 + $0x324] sm:$0xf] }
  0xba   :  { %2172 = vmatpush.bf16.msrb.mxu2 %v2736_v4  ;;  %v3096_v4 = vor.u32 %v3785_v55, %v3093_v56  ;;  %v2933_v55 = vld [vmem:[%s5894_s1 + $0x3b8] sm:$0xf0]  ;;  %v3761_v56 = vld [vmem:[%s5894_s1 + $0x434] sm:$0xf]  ;;  %v3723_v28 = vld [vmem:[%s5894_s1 + $0x304] sm:$0xf] }
  0xbb   :  { %2186 = vmatpush.bf16.msrb.mxu3 %v2800_v9  ;;  %v3783_v9 = vld [vmem:[%s5894_s1 + $0x4e4] sm:$0xf] }
  0xbc   :  { %2145 = vmatpush.bf16.msrb.mxu0 %v2600_v16  ;;  %v3088_v16 = vor.u32 %v3783_v9, %v3085_v6  ;;  %v3759_v9 = vld [vmem:[%s5894_s1 + $0x424] sm:$0xf]  ;;  %v2989_v6 = vld [vmem:[%s5894_s1 + $0x428] sm:$0xf0] }
  0xbd   :  { %2159 = vmatpush.bf16.msrb.mxu1 %v2664_v21  ;;  %v3077_v21 = vld [vmem:[%s5894_s1 + $0x4d8] sm:$0xf0] }
  0xbe   :  { %2173 = vmatpush.bf16.msrb.mxu2 %v2728_v22  ;;  %v2888_v22 = vor.u32 %v3733_v12, %v2885_v13  ;;  %v3775_v12 = vld [vmem:[%s5894_s1 + $0x4a4] sm:$0xf]  ;;  %v3053_v13 = vld [vmem:[%s5894_s1 + $0x4a8] sm:$0xf0] }
  0xbf   :  { %2187 = vmatpush.bf16.msrb.mxu3 %v2792_v26  ;;  %v2941_v26 = vld [vmem:[%s5894_s1 + $0x3c8] sm:$0xf0] }
  0xc0   :  { %2146 = vmatpush.bf16.msrb.mxu0 %v2592_v48  ;;  %v1924_v29 = vpop.f32.mrf.mxu0  ;;  %v2944_v48 = vor.u32 %v3747_v25, %v2941_v26  ;;  %v2981_v25 = vld [vmem:[%s5894_s1 + $0x418] sm:$0xf0] }
  0xc1   :  { %2160 = vmatpush.bf16.msrb.mxu1 %v2656_v53  ;;  %v1925_v34 = vadd.f32 %v1924_v29, %v5239_v14  ;;  %v1938_v42 = vpop.f32.mrf.mxu1  ;;  %v3745_v53 = vld [vmem:[%s5894_s1 + $0x3b4] sm:$0xf]  ;;  %v3072_v14 = vor.u32 %v3779_v30, %v3069_v33  ;;  %v3045_v26 = vld [vmem:[%s5894_s1 + $0x498] sm:$0xf0]  ;;  %v2845_v29 = vld [vmem:[%s5894_s1 + $0x308] sm:$0xf0] }
  0xc2   :  { %2174 = vmatpush.bf16.msrb.mxu2 %v2720_v54 }
  0xc3   :  { %2188 = vmatpush.bf16.msrb.mxu3 %v2784_v57  ;;  %2147 = vmatmul.bf16.vlgmr.msrb.gmra.mxu0 %v4210_v1  ;;  %v3781_v1 = vld [vmem:[%s5894_s1 + $0x4d4] sm:$0xf]  ;;  %v1939_v54 = vadd.f32 %v1938_v42, %v1925_v34  ;;  %v2997_v57 = vld [vmem:[%s5894_s1 + $0x438] sm:$0xf0]  ;;  %v3739_v34 = vld [vmem:[%s5894_s1 + $0x384] sm:$0xf] }
  0xc4   :  { %2195 = vmatpush.bf16.msra.mxu0 %v2904_v59  ;;  %2161 = vmatmul.bf16.vlgmr.msrb.gmra.mxu1 %v4246_v17  ;;  %v3731_v17 = vld [vmem:[%s5894_s1 + $0x344] sm:$0xf]  ;;  %v3777_v59 = vld [vmem:[%s5894_s1 + $0x4b4] sm:$0xf]  ;;  %v3000_v63 = vor.u32 %v3761_v56, %v2997_v57  ;;  %v3157_v56 = vld [vmem:[%s5894_s1 + $0x578] sm:$0xf0] }
  0xc5   :  { %2209 = vmatpush.bf16.msra.mxu1 %v2968_v61  ;;  %2175 = vmatmul.bf16.vlgmr.msrb.gmra.mxu2 %v4418_v39  ;;  %v2877_v39 = vld [vmem:[%s5894_s1 + $0x348] sm:$0xf0]  ;;  %v2872_v61 = vor.u32 %v3729_v50, %v2869_v52  ;;  %v3064_v5 = vor.u32 %v3777_v59, %v3061_v60  ;;  %v3755_v42 = vld [vmem:[%s5894_s1 + $0x404] sm:$0xf]  ;;  %v3817_v57 = vld [vmem:[%s5894_s1 + $0x5f4] sm:$0xf]  ;;  %v2848_v59 = vor.u32 %v3723_v28, %v2845_v29 }
  0xc6   :  { %2223 = vmatpush.bf16.msra.mxu2 %v3032_v62  ;;  %2189 = vmatmul.bf16.vlgmr.msrb.gmra.mxu3 %v4431_v44  ;;  %v3080_v44 = vor.u32 %v3781_v1, %v3077_v21  ;;  %v2880_v37 = vor.u32 %v3731_v17, %v2877_v39  ;;  %v2936_v62 = vor.u32 %v3745_v53, %v2933_v55  ;;  %v3725_v21 = vld [vmem:[%s5894_s1 + $0x314] sm:$0xf]  ;;  %v2917_v17 = vld [vmem:[%s5894_s1 + $0x398] sm:$0xf0]  ;;  %v2973_v50 = vld [vmem:[%s5894_s1 + $0x408] sm:$0xf0] }
  0xc7   :  { %2237 = vmatpush.bf16.msra.mxu3 %v3096_v4  ;;  %v3743_v4 = vld [vmem:[%s5894_s1 + $0x3a4] sm:$0xf]  ;;  %v2992_v1 = vor.u32 %v3759_v9, %v2989_v6  ;;  %v3757_v39 = vld [vmem:[%s5894_s1 + $0x414] sm:$0xf]  ;;  %v3037_v53 = vld [vmem:[%s5894_s1 + $0x488] sm:$0xf0] }
  0xc8   :  { %2196 = vmatpush.bf16.msra.mxu0 %v2896_v11  ;;  %v1952_v7 = vpop.f32.mrf.mxu2  ;;  %v2928_v20 = vor.u32 %v3743_v4, %v2925_v8  ;;  %v2984_v33 = vor.u32 %v3757_v39, %v2981_v25  ;;  %v3771_v52 = vld [vmem:[%s5894_s1 + $0x484] sm:$0xf]  ;;  %v3801_v55 = vld [vmem:[%s5894_s1 + $0x574] sm:$0xf]  ;;  %v3221_v60 = vld [vmem:[%s5894_s1 + $0x5f8] sm:$0xf0] }
  0xc9   :  { %2210 = vmatpush.bf16.msra.mxu1 %v2960_v58  ;;  %v1953_v11 = vadd.f32 %v1952_v7, %v1939_v54  ;;  %v1926_v58 = vpop.f32.mrf.mxu0  ;;  %v1940_v18 = vpop.f32.mrf.mxu1  ;;  %v3849_v4 = vld [vmem:[%s5894_s1 + $0x6f4] sm:$0xf]  ;;  %v3040_v7 = vor.u32 %v3771_v52, %v3037_v53  ;;  %v3160_v8 = vor.u32 %v3801_v55, %v3157_v56  ;;  %v3224_v9 = vor.u32 %v3817_v57, %v3221_v60  ;;  %v3205_v39 = vld [vmem:[%s5894_s1 + $0x5d8] sm:$0xf0] }
  0xca   :  { %2224 = vmatpush.bf16.msra.mxu2 %v3024_v10  ;;  %v1966_v10 = vpop.f32.mrf.mxu3  ;;  %v1927_v15 = vadd.f32 %v1926_v58, %v5298_v3  ;;  %v3741_v3 = vld [vmem:[%s5894_s1 + $0x394] sm:$0xf]  ;;  %v3149_v58 = vld [vmem:[%s5894_s1 + $0x568] sm:$0xf0]  ;;  %v3125_v56 = vld [vmem:[%s5894_s1 + $0x538] sm:$0xf0] }
  0xcb   :  { %2238 = vmatpush.bf16.msra.mxu3 %v3088_v16  ;;  %v2864_v16 = vor.u32 %v3727_v0, %v2861_v2  ;;  %v5417_v19 = vadd.f32 %v1966_v10, %v1953_v11  ;;  %v2920_v30 = vor.u32 %v3741_v3, %v2917_v17  ;;  %v2976_v2 = vor.u32 %v3755_v42, %v2973_v50  ;;  %v3799_v11 = vld [vmem:[%s5894_s1 + $0x564] sm:$0xf]  ;;  %v3797_v3 = vld [vmem:[%s5894_s1 + $0x554] sm:$0xf]  ;;  %v3189_v60 = vld [vmem:[%s5894_s1 + $0x5b8] sm:$0xf0] }
  0xcc   :  { %2197 = vmatpush.bf16.msra.mxu0 %v2888_v22  ;;  %v2853_v22 = vld [vmem:[%s5894_s1 + $0x318] sm:$0xf0]  ;;  %v3815_v10 = vld [vmem:[%s5894_s1 + $0x5e4] sm:$0xf]  ;;  %v3829_v25 = vld [vmem:[%s5894_s1 + $0x654] sm:$0xf] }
  0xcd   :  { %2211 = vmatpush.bf16.msra.mxu1 %v2952_v23  ;;  %v3056_v23 = vor.u32 %v3775_v12, %v3053_v13  ;;  %v2856_v27 = vor.u32 %v3725_v21, %v2853_v22  ;;  %v3213_v13 = vld [vmem:[%s5894_s1 + $0x5e8] sm:$0xf0]  ;;  %v3793_v55 = vld [vmem:[%s5894_s1 + $0x534] sm:$0xf] }
  0xce   :  { %2225 = vmatpush.bf16.msra.mxu2 %v3016_v24  ;;  %v1941_v24 = vadd.f32 %v1940_v18, %v1927_v15  ;;  %v3831_v15 = vld [vmem:[%s5894_s1 + $0x664] sm:$0xf]  ;;  %v3216_v21 = vor.u32 %v3815_v10, %v3213_v13  ;;  %v3809_v57 = vld [vmem:[%s5894_s1 + $0x5b4] sm:$0xf]  ;;  %v3181_v10 = vld [vmem:[%s5894_s1 + $0x5a8] sm:$0xf0] }
  0xcf   :  { %2239 = vmatpush.bf16.msra.mxu3 %v3080_v44  ;;  %v3773_v44 = vld [vmem:[%s5894_s1 + $0x494] sm:$0xf]  ;;  %v3847_v18 = vld [vmem:[%s5894_s1 + $0x6e4] sm:$0xf]  ;;  %v3245_v13 = vld [vmem:[%s5894_s1 + $0x628] sm:$0xf0] }
  0xd0   :  { %2198 = vmatpush.bf16.msra.mxu0 %v2880_v37  ;;  %v2909_v37 = vld [vmem:[%s5894_s1 + $0x388] sm:$0xf0] }
  0xd1   :  { %2212 = vmatpush.bf16.msra.mxu1 %v2944_v48  ;;  %v3048_v48 = vor.u32 %v3773_v44, %v3045_v26  ;;  %v2912_v0 = vor.u32 %v3739_v34, %v2909_v37  ;;  %v3269_v44 = vld [vmem:[%s5894_s1 + $0x658] sm:$0xf0]  ;;  %v3827_v34 = vld [vmem:[%s5894_s1 + $0x644] sm:$0xf]  ;;  %v3261_v37 = vld [vmem:[%s5894_s1 + $0x648] sm:$0xf0] }
  0xd2   :  { %2226 = vmatpush.bf16.msra.mxu2 %v3008_v49  ;;  %v1954_v49 = vpop.f32.mrf.mxu2  ;;  %v1968_v54 = vpop.f32.mrf.mxu3  ;;  %v3333_v26 = vld [vmem:[%s5894_s1 + $0x6d8] sm:$0xf0]  ;;  %v3272_v29 = vor.u32 %v3829_v25, %v3269_v44 }
  0xd3   :  { %2240 = vmatpush.bf16.msra.mxu3 %v3072_v14  ;;  %v1955_v14 = vadd.f32 %v1954_v49, %v1941_v24  ;;  %v3813_v24 = vld [vmem:[%s5894_s1 + $0x5d4] sm:$0xf]  ;;  %v3325_v49 = vld [vmem:[%s5894_s1 + $0x6c8] sm:$0xf0]  ;;  %v3109_v25 = vld [vmem:[%s5894_s1 + $0x518] sm:$0xf0] }
  0xd4   :  { %2199 = vmatpush.bf16.msra.mxu0 %v2872_v61  ;;  %v3833_v61 = vld [vmem:[%s5894_s1 + $0x674] sm:$0xf]  ;;  %v3208_v28 = vor.u32 %v3813_v24, %v3205_v39 }
  0xd5   :  { %2213 = vmatpush.bf16.msra.mxu1 %v2936_v62  ;;  %v3285_v62 = vld [vmem:[%s5894_s1 + $0x678] sm:$0xf0]  ;;  %v3789_v39 = vld [vmem:[%s5894_s1 + $0x514] sm:$0xf] }
  0xd6   :  { %2227 = vmatpush.bf16.msra.mxu2 %v3000_v63  ;;  %v5485_v63 = vadd.f32 %v1968_v54, %v1955_v14  ;;  %v3288_v6 = vor.u32 %v3833_v61, %v3285_v62  ;;  %v3264_v54 = vor.u32 %v3827_v34, %v3261_v37  ;;  %v3825_v61 = vld [vmem:[%s5894_s1 + $0x634] sm:$0xf]  ;;  %v3253_v62 = vld [vmem:[%s5894_s1 + $0x638] sm:$0xf0]  ;;  %v3803_v37 = vld [vmem:[%s5894_s1 + $0x584] sm:$0xf] }
  0xd7   :  { %2241 = vmatpush.bf16.msra.mxu3 %v3064_v5  ;;  %v3349_v5 = vld [vmem:[%s5894_s1 + $0x6f8] sm:$0xf0] }
  0xd8   :  { %2200 = vmatpush.bf16.msra.mxu0 %v2864_v16  ;;  %v3352_v12 = vor.u32 %v3849_v4, %v3349_v5  ;;  %v3277_v16 = vld [vmem:[%s5894_s1 + $0x668] sm:$0xf0]  ;;  %v3128_v4 = vor.u32 %v3793_v55, %v3125_v56  ;;  %v3192_v5 = vor.u32 %v3809_v57, %v3189_v60  ;;  %v3865_v56 = vld [vmem:[%s5894_s1 + $0x774] sm:$0xf]  ;;  %v3413_v57 = vld [vmem:[%s5894_s1 + $0x778] sm:$0xf0] }
  0xd9   :  { %2214 = vmatpush.bf16.msra.mxu1 %v2928_v20  ;;  %v3341_v20 = vld [vmem:[%s5894_s1 + $0x6e8] sm:$0xf0]  ;;  %v3280_v22 = vor.u32 %v3831_v15, %v3277_v16  ;;  %v3477_v60 = vld [vmem:[%s5894_s1 + $0x7f8] sm:$0xf0] }
  0xda   :  { %2228 = vmatpush.bf16.msra.mxu2 %v2992_v1  ;;  %v3152_v1 = vor.u32 %v3799_v11, %v3149_v58  ;;  %v3344_v17 = vor.u32 %v3847_v18, %v3341_v20  ;;  %v3839_v20 = vld [vmem:[%s5894_s1 + $0x6a4] sm:$0xf] }
  0xdb   :  { %2242 = vmatpush.bf16.msra.mxu3 %v3056_v23  ;;  %v3141_v23 = vld [vmem:[%s5894_s1 + $0x558] sm:$0xf0] }
  0xdc   :  { %2201 = vmatpush.bf16.msra.mxu0 %v2856_v27  ;;  %v3144_v27 = vor.u32 %v3797_v3, %v3141_v23 }
  0xdd   :  { %2215 = vmatpush.bf16.msra.mxu1 %v2920_v30  ;;  %v3811_v30 = vld [vmem:[%s5894_s1 + $0x5c4] sm:$0xf] }
  0xde   :  { %2229 = vmatpush.bf16.msra.mxu2 %v2984_v33  ;;  %v3197_v33 = vld [vmem:[%s5894_s1 + $0x5c8] sm:$0xf0] }
  0xdf   :  { %2243 = vmatpush.bf16.msra.mxu3 %v3048_v48  ;;  %v3843_v48 = vld [vmem:[%s5894_s1 + $0x6c4] sm:$0xf]  ;;  %v3200_v14 = vor.u32 %v3811_v30, %v3197_v33 }
  0xe0   :  { %2202 = vmatpush.bf16.msra.mxu0 %v2848_v59  ;;  %v1980_v42 = vpop.f32.mrf.mxu0  ;;  %v3787_v30 = vld [vmem:[%s5894_s1 + $0x504] sm:$0xf] }
  0xe1   :  { %2216 = vmatpush.bf16.msra.mxu1 %v2912_v0  ;;  %v1981_v50 = vadd.f32 %v1980_v42, %v5417_v19  ;;  %v1994_v53 = vpop.f32.mrf.mxu1  ;;  %v3328_v19 = vor.u32 %v3843_v48, %v3325_v49  ;;  %v3841_v0 = vld [vmem:[%s5894_s1 + $0x6b4] sm:$0xf]  ;;  %v3165_v42 = vld [vmem:[%s5894_s1 + $0x588] sm:$0xf0]  ;;  %v3819_v48 = vld [vmem:[%s5894_s1 + $0x604] sm:$0xf] }
  0xe2   :  { %2230 = vmatpush.bf16.msra.mxu2 %v2976_v2  ;;  %v3317_v2 = vld [vmem:[%s5894_s1 + $0x6b8] sm:$0xf0] }
  0xe3   :  { %2244 = vmatpush.bf16.msra.mxu3 %v3040_v7  ;;  %2203 = vmatmul.bf16.vlgmr.msra.gmra.mxu0 %v4429_v43  ;;  %v3845_v43 = vld [vmem:[%s5894_s1 + $0x6d4] sm:$0xf]  ;;  %v1995_v59 = vadd.f32 %v1994_v53, %v1981_v50  ;;  %v3256_v7 = vor.u32 %v3825_v61, %v3253_v62  ;;  %v3320_v11 = vor.u32 %v3841_v0, %v3317_v2  ;;  %v3835_v53 = vld [vmem:[%s5894_s1 + $0x684] sm:$0xf]  ;;  %v3541_v62 = vld [vmem:[%s5894_s1 + $0x878] sm:$0xf0] }
  0xe4   :  { %2251 = vmatpush.bf16.msrb.mxu0 %v3160_v8  ;;  %2217 = vmatmul.bf16.vlgmr.msra.gmra.mxu1 %v4439_v47  ;;  %v3795_v47 = vld [vmem:[%s5894_s1 + $0x544] sm:$0xf]  ;;  %v3897_v61 = vld [vmem:[%s5894_s1 + $0x874] sm:$0xf]  ;;  %v3168_v2 = vor.u32 %v3803_v37, %v3165_v42  ;;  %v3581_v37 = vld [vmem:[%s5894_s1 + $0x8c8] sm:$0xf0] }
  0xe5   :  { %2265 = vmatpush.bf16.msrb.mxu1 %v3224_v9  ;;  %2231 = vmatmul.bf16.vlgmr.msra.gmra.mxu2 %v4646_v31  ;;  %v3133_v31 = vld [vmem:[%s5894_s1 + $0x548] sm:$0xf0]  ;;  %v3791_v8 = vld [vmem:[%s5894_s1 + $0x524] sm:$0xf] }
  0xe6   :  { %2279 = vmatpush.bf16.msrb.mxu2 %v3288_v6  ;;  %2245 = vmatmul.bf16.vlgmr.msra.gmra.mxu3 %v4659_v36  ;;  %v3336_v36 = vor.u32 %v3845_v43, %v3333_v26  ;;  %v3136_v52 = vor.u32 %v3795_v47, %v3133_v31  ;;  %v3117_v9 = vld [vmem:[%s5894_s1 + $0x528] sm:$0xf0]  ;;  %v3807_v6 = vld [vmem:[%s5894_s1 + $0x5a4] sm:$0xf]  ;;  %v3173_v26 = vld [vmem:[%s5894_s1 + $0x598] sm:$0xf0]  ;;  %v3112_v31 = vor.u32 %v3789_v39, %v3109_v25 }
  0xe7   :  { %2293 = vmatpush.bf16.msrb.mxu3 %v3352_v12  ;;  %v3823_v12 = vld [vmem:[%s5894_s1 + $0x624] sm:$0xf]  ;;  %v3184_v24 = vor.u32 %v3807_v6, %v3181_v10  ;;  %v3301_v47 = vld [vmem:[%s5894_s1 + $0x698] sm:$0xf0]  ;;  %v3405_v10 = vld [vmem:[%s5894_s1 + $0x768] sm:$0xf0] }
  0xe8   :  { %2252 = vmatpush.bf16.msrb.mxu0 %v3152_v1  ;;  %v2008_v58 = vpop.f32.mrf.mxu2  ;;  %v1982_v16 = vpop.f32.mrf.mxu0  ;;  %v3309_v1 = vld [vmem:[%s5894_s1 + $0x6a8] sm:$0xf0]  ;;  %v3877_v39 = vld [vmem:[%s5894_s1 + $0x7d4] sm:$0xf] }
  0xe9   :  { %2266 = vmatpush.bf16.msrb.mxu1 %v3216_v21  ;;  %v2009_v15 = vadd.f32 %v2008_v58, %v1995_v59  ;;  %v2022_v18 = vpop.f32.mrf.mxu3  ;;  %v1983_v21 = vadd.f32 %v1982_v16, %v5485_v63  ;;  %v1996_v3 = vpop.f32.mrf.mxu1  ;;  %v3805_v63 = vld [vmem:[%s5894_s1 + $0x594] sm:$0xf]  ;;  %v3312_v44 = vor.u32 %v3839_v20, %v3309_v1  ;;  %v3863_v58 = vld [vmem:[%s5894_s1 + $0x764] sm:$0xf]  ;;  %v3597_v1 = vld [vmem:[%s5894_s1 + $0x8e8] sm:$0xf0] }
  0xea   :  { %2280 = vmatpush.bf16.msrb.mxu2 %v3280_v22  ;;  %v3120_v22 = vor.u32 %v3791_v8, %v3117_v9  ;;  %v3176_v33 = vor.u32 %v3805_v63, %v3173_v26  ;;  %v3416_v9 = vor.u32 %v3865_v56, %v3413_v57  ;;  %v3895_v16 = vld [vmem:[%s5894_s1 + $0x864] sm:$0xf]  ;;  %v3461_v63 = vld [vmem:[%s5894_s1 + $0x7d8] sm:$0xf0]  ;;  %v3889_v57 = vld [vmem:[%s5894_s1 + $0x834] sm:$0xf] }
  0xeb   :  { %2294 = vmatpush.bf16.msrb.mxu3 %v3344_v17  ;;  %v5619_v23 = vadd.f32 %v2022_v18, %v2009_v15  ;;  %v3248_v17 = vor.u32 %v3823_v12, %v3245_v13  ;;  %v1997_v43 = vadd.f32 %v1996_v3, %v1983_v21  ;;  %v3879_v12 = vld [vmem:[%s5894_s1 + $0x7e4] sm:$0xf]  ;;  %v3469_v15 = vld [vmem:[%s5894_s1 + $0x7e8] sm:$0xf0]  ;;  %v3408_v21 = vor.u32 %v3863_v58, %v3405_v10  ;;  %v3589_v26 = vld [vmem:[%s5894_s1 + $0x8d8] sm:$0xf0] }
  0xec   :  { %2253 = vmatpush.bf16.msrb.mxu0 %v3144_v27  ;;  %v3821_v27 = vld [vmem:[%s5894_s1 + $0x614] sm:$0xf]  ;;  %v3533_v18 = vld [vmem:[%s5894_s1 + $0x868] sm:$0xf0]  ;;  %v3911_v20 = vld [vmem:[%s5894_s1 + $0x8e4] sm:$0xf] }
  0xed   :  { %2267 = vmatpush.bf16.msrb.mxu1 %v3208_v28  ;;  %v3237_v28 = vld [vmem:[%s5894_s1 + $0x618] sm:$0xf0]  ;;  %v3536_v3 = vor.u32 %v3895_v16, %v3533_v18  ;;  %v3600_v25 = vor.u32 %v3911_v20, %v3597_v1  ;;  %v3501_v58 = vld [vmem:[%s5894_s1 + $0x828] sm:$0xf0] }
  0xee   :  { %2281 = vmatpush.bf16.msrb.mxu2 %v3272_v29  ;;  %v3837_v29 = vld [vmem:[%s5894_s1 + $0x694] sm:$0xf]  ;;  %v3240_v34 = vor.u32 %v3821_v27, %v3237_v28  ;;  %v3464_v28 = vor.u32 %v3877_v39, %v3461_v63  ;;  %v3445_v56 = vld [vmem:[%s5894_s1 + $0x7b8] sm:$0xf0]  ;;  %v3565_v16 = vld [vmem:[%s5894_s1 + $0x8a8] sm:$0xf0] }
  0xef   :  { %2295 = vmatpush.bf16.msrb.mxu3 %v3336_v36  ;;  %v3101_v36 = vld [vmem:[%s5894_s1 + $0x508] sm:$0xf0]  ;;  %v3304_v49 = vor.u32 %v3837_v29, %v3301_v47  ;;  %v3875_v47 = vld [vmem:[%s5894_s1 + $0x7c4] sm:$0xf]  ;;  %v3869_v39 = vld [vmem:[%s5894_s1 + $0x794] sm:$0xf] }
  0xf0   :  { %2254 = vmatpush.bf16.msrb.mxu0 %v3136_v52  ;;  %v2010_v50 = vpop.f32.mrf.mxu2  ;;  %v3229_v52 = vld [vmem:[%s5894_s1 + $0x608] sm:$0xf0]  ;;  %v3104_v59 = vor.u32 %v3787_v30, %v3101_v36  ;;  %v3891_v30 = vld [vmem:[%s5894_s1 + $0x844] sm:$0xf]  ;;  %v3429_v63 = vld [vmem:[%s5894_s1 + $0x798] sm:$0xf0] }
  0xf1   :  { %2268 = vmatpush.bf16.msrb.mxu1 %v3200_v14  ;;  %v3293_v14 = vld [vmem:[%s5894_s1 + $0x688] sm:$0xf0]  ;;  %v2024_v55 = vpop.f32.mrf.mxu3 }
  0xf2   :  { %2282 = vmatpush.bf16.msrb.mxu2 %v3264_v54  ;;  %v2011_v54 = vadd.f32 %v2010_v50, %v1997_v43  ;;  %v3296_v8 = vor.u32 %v3835_v53, %v3293_v14  ;;  %v3525_v43 = vld [vmem:[%s5894_s1 + $0x858] sm:$0xf0]  ;;  %v3517_v36 = vld [vmem:[%s5894_s1 + $0x848] sm:$0xf0]  ;;  %v3857_v53 = vld [vmem:[%s5894_s1 + $0x734] sm:$0xf] }
  0xf3   :  { %2296 = vmatpush.bf16.msrb.mxu3 %v3328_v19  ;;  %v3881_v19 = vld [vmem:[%s5894_s1 + $0x7f4] sm:$0xf]  ;;  %v3381_v14 = vld [vmem:[%s5894_s1 + $0x738] sm:$0xf0] }
  0xf4   :  { %2255 = vmatpush.bf16.msrb.mxu0 %v3128_v4  ;;  %v5687_v0 = vadd.f32 %v2024_v55, %v2011_v54  ;;  %v3232_v4 = vor.u32 %v3819_v48, %v3229_v52  ;;  %v3480_v6 = vor.u32 %v3881_v19, %v3477_v60  ;;  %v3520_v52 = vor.u32 %v3891_v30, %v3517_v36  ;;  %v3873_v54 = vld [vmem:[%s5894_s1 + $0x7b4] sm:$0xf]  ;;  %v3509_v19 = vld [vmem:[%s5894_s1 + $0x838] sm:$0xf0]  ;;  %v3421_v30 = vld [vmem:[%s5894_s1 + $0x788] sm:$0xf0] }
  0xf5   :  { %2269 = vmatpush.bf16.msrb.mxu1 %v3192_v5  ;;  %v3913_v5 = vld [vmem:[%s5894_s1 + $0x8f4] sm:$0xf]  ;;  %v3573_v60 = vld [vmem:[%s5894_s1 + $0x8b8] sm:$0xf0]  ;;  %v3883_v36 = vld [vmem:[%s5894_s1 + $0x804] sm:$0xf] }
  0xf6   :  { %2283 = vmatpush.bf16.msrb.mxu2 %v3256_v7  ;;  %v3605_v7 = vld [vmem:[%s5894_s1 + $0x8f8] sm:$0xf0] }
  0xf7   :  { %2297 = vmatpush.bf16.msrb.mxu3 %v3320_v11  ;;  %v3544_v11 = vor.u32 %v3897_v61, %v3541_v62  ;;  %v3608_v13 = vor.u32 %v3913_v5, %v3605_v7  ;;  %v3384_v61 = vor.u32 %v3857_v53, %v3381_v14  ;;  %v3448_v62 = vor.u32 %v3873_v54, %v3445_v56  ;;  %v3373_v5 = vld [vmem:[%s5894_s1 + $0x728] sm:$0xf0]  ;;  %v3871_v7 = vld [vmem:[%s5894_s1 + $0x7a4] sm:$0xf] }
  0xf8   :  { %2256 = vmatpush.bf16.msrb.mxu0 %v3120_v22  ;;  %v3472_v22 = vor.u32 %v3879_v12, %v3469_v15  ;;  %v3903_v15 = vld [vmem:[%s5894_s1 + $0x8a4] sm:$0xf] }
  0xf9   :  { %2270 = vmatpush.bf16.msrb.mxu1 %v3184_v24  ;;  %v3861_v24 = vld [vmem:[%s5894_s1 + $0x754] sm:$0xf] }
  0xfa   :  { %2284 = vmatpush.bf16.msrb.mxu2 %v3248_v17  ;;  %v3397_v17 = vld [vmem:[%s5894_s1 + $0x758] sm:$0xf0] }
  0xfb   :  { %2298 = vmatpush.bf16.msrb.mxu3 %v3312_v44  ;;  %v3893_v44 = vld [vmem:[%s5894_s1 + $0x854] sm:$0xf]  ;;  %v3400_v27 = vor.u32 %v3861_v24, %v3397_v17  ;;  %v3365_v17 = vld [vmem:[%s5894_s1 + $0x718] sm:$0xf0] }
  0xfc   :  { %2257 = vmatpush.bf16.msrb.mxu0 %v3112_v31  ;;  %v3528_v29 = vor.u32 %v3893_v44, %v3525_v43  ;;  %v3453_v31 = vld [vmem:[%s5894_s1 + $0x7c8] sm:$0xf0]  ;;  %v3853_v24 = vld [vmem:[%s5894_s1 + $0x714] sm:$0xf]  ;;  %v3493_v43 = vld [vmem:[%s5894_s1 + $0x818] sm:$0xf0] }
  0xfd   :  { %2271 = vmatpush.bf16.msrb.mxu1 %v3176_v33  ;;  %v3456_v50 = vor.u32 %v3875_v47, %v3453_v31  ;;  %v3885_v44 = vld [vmem:[%s5894_s1 + $0x814] sm:$0xf]  ;;  %v3867_v47 = vld [vmem:[%s5894_s1 + $0x784] sm:$0xf] }
  0xfe   :  { %2285 = vmatpush.bf16.msrb.mxu2 %v3240_v34  ;;  %v3907_v34 = vld [vmem:[%s5894_s1 + $0x8c4] sm:$0xf] }
  0xff   :  { %2299 = vmatpush.bf16.msrb.mxu3 %v3304_v49 }
 0x100   :  { %2258 = vmatpush.bf16.msrb.mxu0 %v3104_v59  ;;  %v2036_v33 = vpop.f32.mrf.mxu0  ;;  %v3905_v59 = vld [vmem:[%s5894_s1 + $0x8b4] sm:$0xf] }
 0x101   :  { %2272 = vmatpush.bf16.msrb.mxu1 %v3168_v2  ;;  %v2037_v42 = vadd.f32 %v2036_v33, %v5619_v23  ;;  %v2050_v49 = vpop.f32.mrf.mxu1  ;;  %v3584_v23 = vor.u32 %v3907_v34, %v3581_v37  ;;  %v3512_v2 = vor.u32 %v3889_v57, %v3509_v19  ;;  %v3485_v33 = vld [vmem:[%s5894_s1 + $0x808] sm:$0xf0] }
 0x102   :  { %2286 = vmatpush.bf16.msrb.mxu2 %v3232_v4  ;;  %v3855_v4 = vld [vmem:[%s5894_s1 + $0x724] sm:$0xf]  ;;  %v3488_v53 = vor.u32 %v3883_v36, %v3485_v33 }
 0x103   :  { %2300 = vmatpush.bf16.msrb.mxu3 %v3296_v8  ;;  %2259 = vmatmul.bf16.vlgmr.msrb.gmra.mxu0 %v4657_v35  ;;  %v3909_v35 = vld [vmem:[%s5894_s1 + $0x8d4] sm:$0xf]  ;;  %v2051_v55 = vadd.f32 %v2050_v49, %v2037_v42  ;;  %v3576_v8 = vor.u32 %v3905_v59, %v3573_v60  ;;  %v3376_v20 = vor.u32 %v3855_v4, %v3373_v5  ;;  %v3899_v42 = vld [vmem:[%s5894_s1 + $0x884] sm:$0xf] }
 0x104   :  { %2307 = vmatpush.bf16.msra.mxu0 %v3416_v9  ;;  %2273 = vmatmul.bf16.vlgmr.msrb.gmra.mxu1 %v4667_v40  ;;  %v3859_v40 = vld [vmem:[%s5894_s1 + $0x744] sm:$0xf] }
 0x105   :  { %2321 = vmatpush.bf16.msra.mxu1 %v3480_v6  ;;  %2287 = vmatmul.bf16.vlgmr.msrb.gmra.mxu2 %v4874_v32  ;;  %v3389_v32 = vld [vmem:[%s5894_s1 + $0x748] sm:$0xf0] }
 0x106   :  { %2335 = vmatpush.bf16.msra.mxu2 %v3544_v11  ;;  %2301 = vmatmul.bf16.vlgmr.msrb.gmra.mxu3 %v4887_v41  ;;  %v3592_v41 = vor.u32 %v3909_v35, %v3589_v26  ;;  %v3392_v48 = vor.u32 %v3859_v40, %v3389_v32  ;;  %v3437_v6 = vld [vmem:[%s5894_s1 + $0x7a8] sm:$0xf0]  ;;  %v3887_v11 = vld [vmem:[%s5894_s1 + $0x824] sm:$0xf]  ;;  %v3901_v35 = vld [vmem:[%s5894_s1 + $0x894] sm:$0xf] }
 0x107   :  { %2349 = vmatpush.bf16.msra.mxu3 %v3608_v13  ;;  %v3557_v26 = vld [vmem:[%s5894_s1 + $0x898] sm:$0xf0]  ;;  %v3851_v40 = vld [vmem:[%s5894_s1 + $0x704] sm:$0xf]  ;;  %v3357_v32 = vld [vmem:[%s5894_s1 + $0x708] sm:$0xf0] }
 0x108   :  { %2308 = vmatpush.bf16.msra.mxu0 %v3408_v21  ;;  %v2064_v9 = vpop.f32.mrf.mxu2  ;;  %v2038_v12 = vpop.f32.mrf.mxu0  ;;  %v3360_v49 = vor.u32 %v3851_v40, %v3357_v32 }
 0x109   :  { %2322 = vmatpush.bf16.msra.mxu1 %v3472_v22  ;;  %v2065_v10 = vadd.f32 %v2064_v9, %v2051_v55  ;;  %v2078_v13 = vpop.f32.mrf.mxu3  ;;  %v2039_v18 = vadd.f32 %v2038_v12, %v5687_v0  ;;  %v2052_v1 = vpop.f32.mrf.mxu1  ;;  %v3440_v22 = vor.u32 %v3871_v7, %v3437_v6  ;;  %v3568_v0 = vor.u32 %v3903_v15, %v3565_v16 }
 0x10a   :  { %2336 = vmatpush.bf16.msra.mxu2 %v3536_v3  ;;  %v3504_v3 = vor.u32 %v3887_v11, %v3501_v58 }
 0x10b   :  { %2350 = vmatpush.bf16.msra.mxu3 %v3600_v25  ;;  %v2079_v21 = vadd.f32 %v2078_v13, %v2065_v10  ;;  %v2053_v25 = vadd.f32 %v2052_v1, %v2039_v18 }
 0x10c   :  { %2309 = vmatpush.bf16.msra.mxu0 %v3400_v27  ;;  %v3368_v27 = vor.u32 %v3853_v24, %v3365_v17 }
 0x10d   :  { %2323 = vmatpush.bf16.msra.mxu1 %v3464_v28  ;;  %v3432_v28 = vor.u32 %v3869_v39, %v3429_v63 }
 0x10e   :  { %2337 = vmatpush.bf16.msra.mxu2 %v3528_v29  ;;  %v3496_v29 = vor.u32 %v3885_v44, %v3493_v43 }
 0x10f   :  { %2351 = vmatpush.bf16.msra.mxu3 %v3592_v41  ;;  %v3560_v41 = vor.u32 %v3901_v35, %v3557_v26 }
 0x110   :  { %2310 = vmatpush.bf16.msra.mxu0 %v3392_v48  ;;  %v2066_v31 = vpop.f32.mrf.mxu2  ;;  %v3549_v48 = vld [vmem:[%s5894_s1 + $0x888] sm:$0xf0] }
 0x111   :  { %2324 = vmatpush.bf16.msra.mxu1 %v3456_v50  ;;  %v2067_v34 = vadd.f32 %v2066_v31, %v2053_v25  ;;  %v2080_v37 = vpop.f32.mrf.mxu3  ;;  %v3552_v14 = vor.u32 %v3899_v42, %v3549_v48 }
 0x112   :  { %2338 = vmatpush.bf16.msra.mxu2 %v3520_v52  ;;  %v3424_v52 = vor.u32 %v3867_v47, %v3421_v30 }
 0x113   :  { %2352 = vmatpush.bf16.msra.mxu3 %v3584_v23  ;;  %v2081_v50 = vadd.f32 %v2080_v37, %v2067_v34 }
 0x114   :  { %2311 = vmatpush.bf16.msra.mxu0 %v3384_v61 }
 0x115   :  { %2325 = vmatpush.bf16.msra.mxu1 %v3448_v62 }
 0x116   :  { %2339 = vmatpush.bf16.msra.mxu2 %v3512_v2 }
 0x117   :  { %2353 = vmatpush.bf16.msra.mxu3 %v3576_v8 }
 0x118   :  { %2312 = vmatpush.bf16.msra.mxu0 %v3376_v20 }
 0x119   :  { %2326 = vmatpush.bf16.msra.mxu1 %v3440_v22 }
 0x11a   :  { %2340 = vmatpush.bf16.msra.mxu2 %v3504_v3 }
 0x11b   :  { %2354 = vmatpush.bf16.msra.mxu3 %v3568_v0 }
 0x11c   :  { %2313 = vmatpush.bf16.msra.mxu0 %v3368_v27 }
 0x11d   :  { %2327 = vmatpush.bf16.msra.mxu1 %v3432_v28 }
 0x11e   :  { %2341 = vmatpush.bf16.msra.mxu2 %v3496_v29 }
 0x11f   :  { %2355 = vmatpush.bf16.msra.mxu3 %v3560_v41 }
 0x120   :  { %2314 = vmatpush.bf16.msra.mxu0 %v3360_v49  ;;  %v2092_v54 = vpop.f32.mrf.mxu0 }
 0x121   :  { %2328 = vmatpush.bf16.msra.mxu1 %v3424_v52  ;;  %v2093_v23 = vadd.f32 %v2092_v54, %v2079_v21  ;;  %v2106_v55 = vpop.f32.mrf.mxu1 }
 0x122   :  { %2342 = vmatpush.bf16.msra.mxu2 %v3488_v53 }
 0x123   :  { %2356 = vmatpush.bf16.msra.mxu3 %v3552_v14  ;;  %2315 = vmatmul.bf16.vlgmr.msra.gmra.mxu0 %v4885_v38  ;;  %v5873_v56 = vadd.f32 %v2106_v55, %v2093_v23  ;;  %v2363_v55 = vld [vmem:[%s5897_s3] sm:$0xff] }
 0x124   :  { %2329 = vmatmul.bf16.vlgmr.msra.gmra.mxu1 %v4895_v46 }
 0x125   :  { %2343 = vmatmul.bf16.vlgmr.msra.gmra.mxu2 %v5090_v45  ;;  %v3915_v45 = vld [vmem:[%s5896_s2] sm:$0x3] }
 0x126   :  { %2357 = vmatmul.bf16.vlgmr.msra.gmra.mxu3 %v5101_v51  ;;  %v326_v51 = vperm.slane %v3915_v45, 1 }
 0x128   :  { %v2094_v57 = vpop.f32.mrf.mxu0  ;;  %v2120_v61 = vpop.f32.mrf.mxu2 }
 0x129   :  { %v2095_v19 = vadd.f32 %v2094_v57, %v2081_v50  ;;  %v2108_v59 = vpop.f32.mrf.mxu1  ;;  %v2134_v62 = vpop.f32.mrf.mxu3  ;;  %v2121_v8 = vadd.f32 %v2120_v61, %v326_v51 }
 0x12b   :  { %v5875_v60 = vadd.f32 %v2108_v59, %v2095_v19  ;;  %v2135_v11 = vadd.f32 %v2134_v62, %v2121_v8  ;;  %v2365_v59 = vunpack.c.l.bf16 %v2363_v55  ;;  %v2364_v8 = vld [vmem:[%s5897_s3 + $0x8] sm:$0xff] }
 0x130   :  { %v2122_v2 = vpop.f32.mrf.mxu2 }
 0x131   :  { %v2136_v38 = vpop.f32.mrf.mxu3  ;;  %v2123_v15 = vadd.f32 %v2122_v2, %v326_v51  ;;  %v2369_v51 = vadd.f32 %v2365_v59, %v5873_v56 }
 0x133   :  { %v2137_v20 = vadd.f32 %v2136_v38, %v2123_v15 }
 0x140   :  { %v2148_v4 = vpop.f32.mrf.mxu0 }
 0x141   :  { %v2162_v46 = vpop.f32.mrf.mxu1  ;;  %v2149_v10 = vadd.f32 %v2148_v4, %v2135_v11  ;;  %v2373_v11 = vmax.f32 %v2369_v51, 0.0 }
 0x143   :  { %v2163_v18 = vadd.f32 %v2162_v46, %v2149_v10  ;;  %v2366_v46 = vunpack.c.h.bf16 %v2363_v55 }
 0x148   :  { %v2176_v5 = vpop.f32.mrf.mxu2  ;;  %v2150_v9 = vpop.f32.mrf.mxu0 }
 0x149   :  { %v2190_v7 = vpop.f32.mrf.mxu3  ;;  %v2164_v6 = vpop.f32.mrf.mxu1  ;;  %v2177_v21 = vadd.f32 %v2176_v5, %v2163_v18  ;;  %v2151_v3 = vadd.f32 %v2150_v9, %v2137_v20  ;;  %v2368_v18 = vunpack.c.h.bf16 %v2364_v8 }
 0x14b   :  { %v2191_v17 = vadd.f32 %v2190_v7, %v2177_v21  ;;  %v2165_v0 = vadd.f32 %v2164_v6, %v2151_v3 }
 0x150   :  { %v2178_v58 = vpop.f32.mrf.mxu2 }
 0x151   :  { %v2192_v12 = vpop.f32.mrf.mxu3  ;;  %v2179_v63 = vadd.f32 %v2178_v58, %v2165_v0  ;;  %v2367_v58 = vunpack.c.l.bf16 %v2364_v8 }
 0x153   :  { %v2193_v27 = vadd.f32 %v2192_v12, %v2179_v63 }
 0x160   :  { %v2204_v13 = vpop.f32.mrf.mxu0 }
 0x161   :  { %v2218_v16 = vpop.f32.mrf.mxu1  ;;  %v2205_v25 = vadd.f32 %v2204_v13, %v2191_v17 }
 0x163   :  { %v2219_v43 = vadd.f32 %v2218_v16, %v2205_v25 }
 0x168   :  { %v2232_v1 = vpop.f32.mrf.mxu2  ;;  %v2206_v24 = vpop.f32.mrf.mxu0 }
 0x169   :  { %v2246_v22 = vpop.f32.mrf.mxu3  ;;  %v2220_v39 = vpop.f32.mrf.mxu1  ;;  %v2233_v28 = vadd.f32 %v2232_v1, %v2219_v43  ;;  %v2207_v40 = vadd.f32 %v2206_v24, %v2193_v27  ;;  %v2371_v1 = vadd.f32 %v2367_v58, %v5875_v60 }
 0x16b   :  { %v2247_v32 = vadd.f32 %v2246_v22, %v2233_v28  ;;  %v2221_v41 = vadd.f32 %v2220_v39, %v2207_v40  ;;  %v2375_v22 = vmax.f32 %v2371_v1, 0.0 }
 0x170   :  { %v2234_v44 = vpop.f32.mrf.mxu2 }
 0x171   :  { %v2248_v35 = vpop.f32.mrf.mxu3  ;;  %v2235_v36 = vadd.f32 %v2234_v44, %v2221_v41 }
 0x173   :  { %v2249_v42 = vadd.f32 %v2248_v35, %v2235_v36 }
 0x180   :  { %v2260_v26 = vpop.f32.mrf.mxu0 }
 0x181   :  { %v2274_v29 = vpop.f32.mrf.mxu1  ;;  %v2261_v31 = vadd.f32 %v2260_v26, %v2247_v32 }
 0x183   :  { %v2275_v34 = vadd.f32 %v2274_v29, %v2261_v31 }
 0x188   :  { %v2288_v47 = vpop.f32.mrf.mxu2  ;;  %v2262_v33 = vpop.f32.mrf.mxu0 }
 0x189   :  { %v2302_v30 = vpop.f32.mrf.mxu3  ;;  %v2276_v37 = vpop.f32.mrf.mxu1  ;;  %v2289_v48 = vadd.f32 %v2288_v47, %v2275_v34  ;;  %v2263_v49 = vadd.f32 %v2262_v33, %v2249_v42 }
 0x18b   :  { %v2303_v52 = vadd.f32 %v2302_v30, %v2289_v48  ;;  %v2277_v54 = vadd.f32 %v2276_v37, %v2263_v49 }
 0x190   :  { %v2290_v50 = vpop.f32.mrf.mxu2 }
 0x191   :  { %v2304_v53 = vpop.f32.mrf.mxu3  ;;  %v2291_v19 = vadd.f32 %v2290_v50, %v2277_v54 }
 0x193   :  { %v2305_v2 = vadd.f32 %v2304_v53, %v2291_v19 }
 0x1a0   :  { %v2316_v14 = vpop.f32.mrf.mxu0 }
 0x1a1   :  { %v2317_v23 = vadd.f32 %v2316_v14, %v2303_v52  ;;  %v2330_v57 = vpop.f32.mrf.mxu1 }
 0x1a3   :  { %v2331_v61 = vadd.f32 %v2330_v57, %v2317_v23 }
 0x1a8   :  { %v2344_v62 = vpop.f32.mrf.mxu2  ;;  %v2318_v45 = vpop.f32.mrf.mxu0 }
 0x1a9   :  { %v2345_v38 = vadd.f32 %v2344_v62, %v2331_v61  ;;  %v2358_v4 = vpop.f32.mrf.mxu3  ;;  %v2319_v7 = vadd.f32 %v2318_v45, %v2305_v2  ;;  %v2332_v6 = vpop.f32.mrf.mxu1 }
 0x1ab   :  { %v2359_v5 = vadd.f32 %v2358_v4, %v2345_v38  ;;  %v2333_v12 = vadd.f32 %v2332_v6, %v2319_v7 }
 0x1ad   :  { %v2370_v9 = vadd.f32 %v2366_v46, %v2359_v5 }
 0x1af   :  { %v2374_v10 = vmax.f32 %v2370_v9, 0.0 }
 0x1b0   :  { %v2346_v13 = vpop.f32.mrf.mxu2 }
 0x1b1   :  { %v2377_v15 = vpack.c.bf16 %v2374_v10, %v2373_v11  ;;  %v2347_v16 = vadd.f32 %v2346_v13, %v2333_v12  ;;  %v2360_v20 = vpop.f32.mrf.mxu3 }
 0x1b3   :  { %2379 = vst [vmem:[%s5898_s4] sm:$0xff] %v2377_v15  ;;  %v2361_v56 = vadd.f32 %v2360_v20, %v2347_v16 }
 0x1b5   :  { %v2372_v21 = vadd.f32 %v2368_v18, %v2361_v56 }
 0x1b7   :  { %v2376_v3 = vmax.f32 %v2372_v21, 0.0 }
 0x1b9   :  { %v2378_v24 = vpack.c.bf16 %v2376_v3, %v2375_v22 }
 0x1bb   :  { %2380 = vst [vmem:[%s5898_s4 + $0x8] sm:$0xff] %v2378_v24 }

// kernel: geolocalization_forward.29
= control target key start
LH: loop header
LB: loop body
LE: loop exit
PB: predicated region body
PF: predicated region fallthrough
CT: control target
= control target key end

     0   :  { %s5870_s1 = inlined_call_operand.vmem [shape: bf16[2304,256], index: 1, kind: input, shape index: {}]   ;;  %s5871_s0 = inlined_call_operand.vmem [shape: bf16[16,2304], index: 0, kind: input, shape index: {}]   ;;  %s5872_s2 = inlined_call_operand.vmem [shape: f32[1,256], index: 2, kind: input, shape index: {}]   ;;  %s5873_s3 = inlined_call_operand.vmem [shape: bf16[16,256], index: 3, kind: output, shape index: {}]  }
   0x1   :  { %v2502_v0 = vld [vmem:[%s5870_s1 + $0x70] sm:$0xf]  ;;  %v3629_v1 = vld [vmem:[%s5870_s1 + $0x74] sm:$0xf0]  ;;  %v2494_v11 = vld [vmem:[%s5870_s1 + $0x60] sm:$0xf] }
   0x2   :  { %v2566_v2 = vld [vmem:[%s5870_s1 + $0xf0] sm:$0xf]  ;;  %v2503_v3 = vor.u32 %v3629_v1, %v2502_v0  ;;  %v3645_v4 = vld [vmem:[%s5870_s1 + $0xf4] sm:$0xf0]  ;;  %v3627_v13 = vld [vmem:[%s5870_s1 + $0x64] sm:$0xf0] }
   0x3   :  { %v2630_v5 = vld [vmem:[%s5870_s1 + $0x170] sm:$0xf]  ;;  %v3661_v6 = vld [vmem:[%s5870_s1 + $0x174] sm:$0xf0]  ;;  %v2567_v7 = vor.u32 %v3645_v4, %v2566_v2  ;;  %v2558_v14 = vld [vmem:[%s5870_s1 + $0xe0] sm:$0xf]  ;;  %v2495_v16 = vor.u32 %v3627_v13, %v2494_v11 }
   0x4   :  { %v2631_v8 = vor.u32 %v3661_v6, %v2630_v5  ;;  %v2694_v9 = vld [vmem:[%s5870_s1 + $0x1f0] sm:$0xf]  ;;  %v3677_v10 = vld [vmem:[%s5870_s1 + $0x1f4] sm:$0xf0]  ;;  %1856 = vmatpush.bf16.msra.mxu0 %v2503_v3  ;;  %v3643_v15 = vld [vmem:[%s5870_s1 + $0xe4] sm:$0xf0] }
   0x5   :  { %v2695_v12 = vor.u32 %v3677_v10, %v2694_v9  ;;  %1870 = vmatpush.bf16.msra.mxu1 %v2567_v7  ;;  %v2559_v17 = vor.u32 %v3643_v15, %v2558_v14  ;;  %v2622_v18 = vld [vmem:[%s5870_s1 + $0x160] sm:$0xf]  ;;  %v3659_v19 = vld [vmem:[%s5870_s1 + $0x164] sm:$0xf0]  ;;  %v2486_v23 = vld [vmem:[%s5870_s1 + $0x50] sm:$0xf] }
   0x6   :  { %1884 = vmatpush.bf16.msra.mxu2 %v2631_v8  ;;  %v2686_v20 = vld [vmem:[%s5870_s1 + $0x1e0] sm:$0xf]  ;;  %v2623_v21 = vor.u32 %v3659_v19, %v2622_v18  ;;  %v3675_v22 = vld [vmem:[%s5870_s1 + $0x1e4] sm:$0xf0]  ;;  %v3625_v24 = vld [vmem:[%s5870_s1 + $0x54] sm:$0xf0] }
   0x7   :  { %1898 = vmatpush.bf16.msra.mxu3 %v2695_v12  ;;  %v2687_v25 = vor.u32 %v3675_v22, %v2686_v20  ;;  %v2550_v26 = vld [vmem:[%s5870_s1 + $0xd0] sm:$0xf]  ;;  %v3641_v27 = vld [vmem:[%s5870_s1 + $0xd4] sm:$0xf0]  ;;  %v2487_v29 = vor.u32 %v3625_v24, %v2486_v23  ;;  %v2478_v35 = vld [vmem:[%s5870_s1 + $0x40] sm:$0xf] }
   0x8   :  { %v2614_v28 = vld [vmem:[%s5870_s1 + $0x150] sm:$0xf]  ;;  %1857 = vmatpush.bf16.msra.mxu0 %v2495_v16  ;;  %v3657_v30 = vld [vmem:[%s5870_s1 + $0x154] sm:$0xf0]  ;;  %v2551_v33 = vor.u32 %v3641_v27, %v2550_v26  ;;  %v3623_v36 = vld [vmem:[%s5870_s1 + $0x44] sm:$0xf0] }
   0x9   :  { %v2678_v31 = vld [vmem:[%s5870_s1 + $0x1d0] sm:$0xf]  ;;  %v3673_v32 = vld [vmem:[%s5870_s1 + $0x1d4] sm:$0xf0]  ;;  %1871 = vmatpush.bf16.msra.mxu1 %v2559_v17  ;;  %v2615_v34 = vor.u32 %v3657_v30, %v2614_v28  ;;  %v2542_v37 = vld [vmem:[%s5870_s1 + $0xc0] sm:$0xf]  ;;  %v2479_v44 = vor.u32 %v3623_v36, %v2478_v35 }
   0xa   :  { %1885 = vmatpush.bf16.msra.mxu2 %v2623_v21  ;;  %v2679_v38 = vor.u32 %v3673_v32, %v2678_v31  ;;  %v3639_v39 = vld [vmem:[%s5870_s1 + $0xc4] sm:$0xf0]  ;;  %v2606_v40 = vld [vmem:[%s5870_s1 + $0x140] sm:$0xf]  ;;  %v2470_v47 = vld [vmem:[%s5870_s1 + $0x30] sm:$0xf] }
   0xb   :  { %1899 = vmatpush.bf16.msra.mxu3 %v2687_v25  ;;  %v3655_v41 = vld [vmem:[%s5870_s1 + $0x144] sm:$0xf0]  ;;  %v2670_v42 = vld [vmem:[%s5870_s1 + $0x1c0] sm:$0xf]  ;;  %v2543_v45 = vor.u32 %v3639_v39, %v2542_v37  ;;  %v3621_v48 = vld [vmem:[%s5870_s1 + $0x34] sm:$0xf0] }
   0xc   :  { %v3671_v43 = vld [vmem:[%s5870_s1 + $0x1c4] sm:$0xf0]  ;;  %1858 = vmatpush.bf16.msra.mxu0 %v2487_v29  ;;  %v2607_v46 = vor.u32 %v3655_v41, %v2606_v40  ;;  %v2534_v49 = vld [vmem:[%s5870_s1 + $0xb0] sm:$0xf]  ;;  %v3637_v51 = vld [vmem:[%s5870_s1 + $0xb4] sm:$0xf0]  ;;  %v2471_v56 = vor.u32 %v3621_v48, %v2470_v47 }
   0xd   :  { %1872 = vmatpush.bf16.msra.mxu1 %v2551_v33  ;;  %v2671_v50 = vor.u32 %v3671_v43, %v2670_v42  ;;  %v2598_v52 = vld [vmem:[%s5870_s1 + $0x130] sm:$0xf]  ;;  %v3653_v53 = vld [vmem:[%s5870_s1 + $0x134] sm:$0xf0]  ;;  %v2535_v57 = vor.u32 %v3637_v51, %v2534_v49  ;;  %v2462_v59 = vld [vmem:[%s5870_s1 + $0x20] sm:$0xf] }
   0xe   :  { %1886 = vmatpush.bf16.msra.mxu2 %v2615_v34  ;;  %v2662_v54 = vld [vmem:[%s5870_s1 + $0x1b0] sm:$0xf]  ;;  %v3669_v55 = vld [vmem:[%s5870_s1 + $0x1b4] sm:$0xf0]  ;;  %v2599_v58 = vor.u32 %v3653_v53, %v2598_v52  ;;  %v3619_v60 = vld [vmem:[%s5870_s1 + $0x24] sm:$0xf0] }
   0xf   :  { %1900 = vmatpush.bf16.msra.mxu3 %v2679_v38  ;;  %v2526_v61 = vld [vmem:[%s5870_s1 + $0xa0] sm:$0xf]  ;;  %v2663_v62 = vor.u32 %v3669_v55, %v2662_v54  ;;  %v3635_v63 = vld [vmem:[%s5870_s1 + $0xa4] sm:$0xf0]  ;;  %v2463_v4 = vor.u32 %v3619_v60, %v2462_v59  ;;  %v2454_v7 = vld [vmem:[%s5870_s1 + $0x10] sm:$0xf] }
  0x10   :  { %1859 = vmatpush.bf16.msra.mxu0 %v2479_v44  ;;  %v2590_v0 = vld [vmem:[%s5870_s1 + $0x120] sm:$0xf]  ;;  %v3651_v1 = vld [vmem:[%s5870_s1 + $0x124] sm:$0xf0]  ;;  %v2527_v5 = vor.u32 %v3635_v63, %v2526_v61  ;;  %v3617_v8 = vld [vmem:[%s5870_s1 + $0x14] sm:$0xf0] }
  0x11   :  { %1873 = vmatpush.bf16.msra.mxu1 %v2543_v45  ;;  %v2654_v2 = vld [vmem:[%s5870_s1 + $0x1a0] sm:$0xf]  ;;  %v3667_v3 = vld [vmem:[%s5870_s1 + $0x1a4] sm:$0xf0]  ;;  %v2591_v6 = vor.u32 %v3651_v1, %v2590_v0  ;;  %v2518_v9 = vld [vmem:[%s5870_s1 + $0x90] sm:$0xf]  ;;  %v2455_v16 = vor.u32 %v3617_v8, %v2454_v7 }
  0x12   :  { %1887 = vmatpush.bf16.msra.mxu2 %v2607_v46  ;;  %v2655_v10 = vor.u32 %v3667_v3, %v2654_v2  ;;  %v3633_v11 = vld [vmem:[%s5870_s1 + $0x94] sm:$0xf0]  ;;  %v2582_v12 = vld [vmem:[%s5870_s1 + $0x110] sm:$0xf]  ;;  %v2446_v17 = vld [vmem:[%s5870_s1] sm:$0xf] }
  0x13   :  { %1901 = vmatpush.bf16.msra.mxu3 %v2671_v50  ;;  %v3649_v13 = vld [vmem:[%s5870_s1 + $0x114] sm:$0xf0]  ;;  %v2646_v14 = vld [vmem:[%s5870_s1 + $0x190] sm:$0xf]  ;;  %v3615_v18 = vld [vmem:[%s5870_s1 + $0x4] sm:$0xf0]  ;;  %v2519_v19 = vor.u32 %v3633_v11, %v2518_v9 }
  0x14   :  { %1860 = vmatpush.bf16.msra.mxu0 %v2471_v56  ;;  %v3665_v15 = vld [vmem:[%s5870_s1 + $0x194] sm:$0xf0]  ;;  %v2583_v20 = vor.u32 %v3649_v13, %v2582_v12  ;;  %v2510_v21 = vld [vmem:[%s5870_s1 + $0x80] sm:$0xf]  ;;  %v3631_v22 = vld [vmem:[%s5870_s1 + $0x84] sm:$0xf0]  ;;  %v2447_v31 = vor.u32 %v3615_v18, %v2446_v17 }
  0x15   :  { %1874 = vmatpush.bf16.msra.mxu1 %v2535_v57  ;;  %v2574_v23 = vld [vmem:[%s5870_s1 + $0x100] sm:$0xf]  ;;  %v2647_v24 = vor.u32 %v3665_v15, %v2646_v14  ;;  %v3647_v25 = vld [vmem:[%s5870_s1 + $0x104] sm:$0xf0]  ;;  %v2758_v28 = vld [vmem:[%s5870_s1 + $0x270] sm:$0xf]  ;;  %v2511_v35 = vor.u32 %v3631_v22, %v2510_v21 }
  0x16   :  { %1888 = vmatpush.bf16.msra.mxu2 %v2599_v58  ;;  %v2638_v26 = vld [vmem:[%s5870_s1 + $0x180] sm:$0xf]  ;;  %v3663_v27 = vld [vmem:[%s5870_s1 + $0x184] sm:$0xf0]  ;;  %v3693_v29 = vld [vmem:[%s5870_s1 + $0x274] sm:$0xf0]  ;;  %v2575_v36 = vor.u32 %v3647_v25, %v2574_v23 }
  0x17   :  { %1902 = vmatpush.bf16.msra.mxu3 %v2663_v62  ;;  %v2822_v30 = vld [vmem:[%s5870_s1 + $0x2f0] sm:$0xf]  ;;  %v3709_v32 = vld [vmem:[%s5870_s1 + $0x2f4] sm:$0xf0]  ;;  %v2639_v39 = vor.u32 %v3663_v27, %v2638_v26  ;;  %v2759_v40 = vor.u32 %v3693_v29, %v2758_v28  ;;  %v2750_v41 = vld [vmem:[%s5870_s1 + $0x260] sm:$0xf] }
  0x18   :  { %1861 = vmatpush.bf16.msra.mxu0 %v2463_v4  ;;  %v2886_v33 = vld [vmem:[%s5870_s1 + $0x370] sm:$0xf]  ;;  %v3725_v34 = vld [vmem:[%s5870_s1 + $0x374] sm:$0xf0]  ;;  %v3691_v42 = vld [vmem:[%s5870_s1 + $0x264] sm:$0xf0]  ;;  %v2823_v43 = vor.u32 %v3709_v32, %v2822_v30 }
  0x19   :  { %1875 = vmatpush.bf16.msra.mxu1 %v2527_v5  ;;  %v2950_v37 = vld [vmem:[%s5870_s1 + $0x3f0] sm:$0xf]  ;;  %v3741_v38 = vld [vmem:[%s5870_s1 + $0x3f4] sm:$0xf0]  ;;  %v2887_v44 = vor.u32 %v3725_v34, %v2886_v33  ;;  %v2814_v45 = vld [vmem:[%s5870_s1 + $0x2e0] sm:$0xf]  ;;  %v2751_v55 = vor.u32 %v3691_v42, %v2750_v41 }
  0x1a   :  { %1889 = vmatpush.bf16.msra.mxu2 %v2591_v6  ;;  %v3707_v46 = vld [vmem:[%s5870_s1 + $0x2e4] sm:$0xf0]  ;;  %v2878_v47 = vld [vmem:[%s5870_s1 + $0x360] sm:$0xf]  ;;  %v2951_v48 = vor.u32 %v3741_v38, %v2950_v37  ;;  %v2742_v56 = vld [vmem:[%s5870_s1 + $0x250] sm:$0xf] }
  0x1b   :  { %1903 = vmatpush.bf16.msra.mxu3 %v2655_v10  ;;  %v3723_v49 = vld [vmem:[%s5870_s1 + $0x364] sm:$0xf0]  ;;  %v2942_v50 = vld [vmem:[%s5870_s1 + $0x3e0] sm:$0xf]  ;;  %v3689_v57 = vld [vmem:[%s5870_s1 + $0x254] sm:$0xf0]  ;;  %v2815_v60 = vor.u32 %v3707_v46, %v2814_v45 }
  0x1c   :  { %1862 = vmatpush.bf16.msra.mxu0 %v2455_v16  ;;  %v3739_v51 = vld [vmem:[%s5870_s1 + $0x3e4] sm:$0xf0]  ;;  %v2374_v52 = vld [vmem:[%s5871_s0] sm:$0xf]  ;;  %v3606_v59 = vld [vmem:[%s5871_s0 + $0x4c] sm:$0xf0]  ;;  %v2879_v61 = vor.u32 %v3723_v49, %v2878_v47  ;;  %v2743_v9 = vor.u32 %v3689_v57, %v2742_v56 }
  0x1d   :  { %1876 = vmatpush.bf16.msra.mxu1 %v2519_v19  ;;  %v3605_v53 = vld [vmem:[%s5871_s0 + $0x44] sm:$0xf0]  ;;  %v2806_v62 = vld [vmem:[%s5870_s1 + $0x2d0] sm:$0xf]  ;;  %v3705_v63 = vld [vmem:[%s5870_s1 + $0x2d4] sm:$0xf0]  ;;  %v2943_v2 = vor.u32 %v3739_v51, %v2942_v50 }
  0x1e   :  { %1890 = vmatpush.bf16.msra.mxu2 %v2583_v20  ;;  %v2382_v54 = vld [vmem:[%s5871_s0 + $0x8] sm:$0xf]  ;;  %v4178_v58 = vor.u32 %v3605_v53, %v2374_v52  ;;  %v2870_v0 = vld [vmem:[%s5870_s1 + $0x350] sm:$0xf]  ;;  %v3721_v3 = vld [vmem:[%s5870_s1 + $0x354] sm:$0xf0]  ;;  %v2807_v12 = vor.u32 %v3705_v63, %v2806_v62 }
  0x1f   :  { %1904 = vmatpush.bf16.msra.mxu3 %v2647_v24  ;;  %v4192_v1 = vor.u32 %v3606_v59, %v2382_v54  ;;  %v2934_v4 = vld [vmem:[%s5870_s1 + $0x3d0] sm:$0xf]  ;;  %v3737_v5 = vld [vmem:[%s5870_s1 + $0x3d4] sm:$0xf0]  ;;  %v3596_v6 = vld [vmem:[%s5871_s0 + $0x4] sm:$0xf]  ;;  %v2871_v13 = vor.u32 %v3721_v3, %v2870_v0 }
  0x20   :  { %1863 = vmatpush.bf16.msra.mxu0 %v2447_v31  ;;  %v2376_v7 = vld [vmem:[%s5871_s0 + $0x48] sm:$0xf0]  ;;  %v2384_v11 = vld [vmem:[%s5871_s0 + $0x50] sm:$0xf0]  ;;  %v2734_v14 = vld [vmem:[%s5870_s1 + $0x240] sm:$0xf]  ;;  %v2935_v18 = vor.u32 %v3737_v5, %v2934_v4 }
  0x21   :  { %1877 = vmatpush.bf16.msra.mxu1 %v2511_v35  ;;  %v3597_v8 = vld [vmem:[%s5871_s0 + $0xc] sm:$0xf]  ;;  %v4214_v10 = vor.u32 %v3596_v6, %v2376_v7  ;;  %v3687_v15 = vld [vmem:[%s5870_s1 + $0x244] sm:$0xf0]  ;;  %v2798_v16 = vld [vmem:[%s5870_s1 + $0x2c0] sm:$0xf] }
  0x22   :  { %1891 = vmatpush.bf16.msra.mxu2 %v2575_v36  ;;  %v4228_v17 = vor.u32 %v3597_v8, %v2384_v11  ;;  %v3703_v19 = vld [vmem:[%s5870_s1 + $0x2c4] sm:$0xf0]  ;;  %v2862_v20 = vld [vmem:[%s5870_s1 + $0x340] sm:$0xf]  ;;  %v2735_v24 = vor.u32 %v3687_v15, %v2734_v14  ;;  %v2726_v27 = vld [vmem:[%s5870_s1 + $0x230] sm:$0xf] }
  0x23   :  { %1905 = vmatpush.bf16.msra.mxu3 %v2639_v39  ;;  %1864 = vmatmul.bf16.vlgmr.msra.gmra.mxu0 %v4178_v58  ;;  %v3719_v21 = vld [vmem:[%s5870_s1 + $0x344] sm:$0xf0]  ;;  %v2926_v22 = vld [vmem:[%s5870_s1 + $0x3c0] sm:$0xf]  ;;  %v2799_v25 = vor.u32 %v3703_v19, %v2798_v16  ;;  %v3685_v28 = vld [vmem:[%s5870_s1 + $0x234] sm:$0xf0] }
  0x24   :  { %1912 = vmatpush.bf16.msrb.mxu0 %v2759_v40  ;;  %1878 = vmatmul.bf16.vlgmr.msra.gmra.mxu1 %v4214_v10  ;;  %v3735_v23 = vld [vmem:[%s5870_s1 + $0x3c4] sm:$0xf0]  ;;  %v2863_v26 = vor.u32 %v3719_v21, %v2862_v20  ;;  %v2790_v29 = vld [vmem:[%s5870_s1 + $0x2b0] sm:$0xf]  ;;  %v3701_v31 = vld [vmem:[%s5870_s1 + $0x2b4] sm:$0xf0]  ;;  %v2727_v36 = vor.u32 %v3685_v28, %v2726_v27 }
  0x25   :  { %1926 = vmatpush.bf16.msrb.mxu1 %v2823_v43  ;;  %1892 = vmatmul.bf16.vlgmr.msra.gmra.mxu2 %v4192_v1  ;;  %v2927_v30 = vor.u32 %v3735_v23, %v2926_v22  ;;  %v2854_v32 = vld [vmem:[%s5870_s1 + $0x330] sm:$0xf]  ;;  %v3717_v33 = vld [vmem:[%s5870_s1 + $0x334] sm:$0xf0]  ;;  %v2791_v37 = vor.u32 %v3701_v31, %v2790_v29  ;;  %v2718_v39 = vld [vmem:[%s5870_s1 + $0x220] sm:$0xf] }
  0x26   :  { %1940 = vmatpush.bf16.msrb.mxu2 %v2887_v44  ;;  %1906 = vmatmul.bf16.vlgmr.msra.gmra.mxu3 %v4228_v17  ;;  %v2918_v34 = vld [vmem:[%s5870_s1 + $0x3b0] sm:$0xf]  ;;  %v3733_v35 = vld [vmem:[%s5870_s1 + $0x3b4] sm:$0xf0]  ;;  %v2855_v38 = vor.u32 %v3717_v33, %v2854_v32  ;;  %v3683_v40 = vld [vmem:[%s5870_s1 + $0x224] sm:$0xf0] }
  0x27   :  { %1954 = vmatpush.bf16.msrb.mxu3 %v2951_v48  ;;  %v2782_v41 = vld [vmem:[%s5870_s1 + $0x2a0] sm:$0xf]  ;;  %v2919_v42 = vor.u32 %v3733_v35, %v2918_v34  ;;  %v3699_v43 = vld [vmem:[%s5870_s1 + $0x2a4] sm:$0xf0]  ;;  %v2719_v48 = vor.u32 %v3683_v40, %v2718_v39  ;;  %v2710_v49 = vld [vmem:[%s5870_s1 + $0x210] sm:$0xf] }
  0x28   :  { %1913 = vmatpush.bf16.msrb.mxu0 %v2751_v55  ;;  %v2846_v44 = vld [vmem:[%s5870_s1 + $0x320] sm:$0xf]  ;;  %v3715_v45 = vld [vmem:[%s5870_s1 + $0x324] sm:$0xf0]  ;;  %v2783_v50 = vor.u32 %v3699_v43, %v2782_v41  ;;  %v3681_v52 = vld [vmem:[%s5870_s1 + $0x214] sm:$0xf0] }
  0x29   :  { %1927 = vmatpush.bf16.msrb.mxu1 %v2815_v60  ;;  %v2910_v46 = vld [vmem:[%s5870_s1 + $0x3a0] sm:$0xf]  ;;  %v3731_v47 = vld [vmem:[%s5870_s1 + $0x3a4] sm:$0xf0]  ;;  %v2847_v51 = vor.u32 %v3715_v45, %v2846_v44  ;;  %v2774_v53 = vld [vmem:[%s5870_s1 + $0x290] sm:$0xf]  ;;  %v2711_v63 = vor.u32 %v3681_v52, %v2710_v49 }
  0x2a   :  { %1941 = vmatpush.bf16.msrb.mxu2 %v2879_v61  ;;  %v3697_v54 = vld [vmem:[%s5870_s1 + $0x294] sm:$0xf0]  ;;  %v2911_v55 = vor.u32 %v3731_v47, %v2910_v46  ;;  %v2838_v56 = vld [vmem:[%s5870_s1 + $0x310] sm:$0xf]  ;;  %v2702_v61 = vld [vmem:[%s5870_s1 + $0x200] sm:$0xf] }
  0x2b   :  { %1955 = vmatpush.bf16.msrb.mxu3 %v2943_v2  ;;  %v3713_v57 = vld [vmem:[%s5870_s1 + $0x314] sm:$0xf0]  ;;  %v2902_v59 = vld [vmem:[%s5870_s1 + $0x390] sm:$0xf]  ;;  %v3679_v62 = vld [vmem:[%s5870_s1 + $0x204] sm:$0xf0]  ;;  %v2775_v5 = vor.u32 %v3697_v54, %v2774_v53 }
  0x2c   :  { %1914 = vmatpush.bf16.msrb.mxu0 %v2743_v9  ;;  %v3729_v60 = vld [vmem:[%s5870_s1 + $0x394] sm:$0xf0]  ;;  %v2766_v0 = vld [vmem:[%s5870_s1 + $0x280] sm:$0xf]  ;;  %v3695_v2 = vld [vmem:[%s5870_s1 + $0x284] sm:$0xf0]  ;;  %v2839_v6 = vor.u32 %v3713_v57, %v2838_v56  ;;  %v2703_v19 = vor.u32 %v3679_v62, %v2702_v61 }
  0x2d   :  { %1928 = vmatpush.bf16.msrb.mxu1 %v2807_v12  ;;  %v2830_v3 = vld [vmem:[%s5870_s1 + $0x300] sm:$0xf]  ;;  %v3711_v4 = vld [vmem:[%s5870_s1 + $0x304] sm:$0xf0]  ;;  %v3014_v9 = vld [vmem:[%s5870_s1 + $0x470] sm:$0xf]  ;;  %v2903_v11 = vor.u32 %v3729_v60, %v2902_v59  ;;  %v2767_v23 = vor.u32 %v3695_v2, %v2766_v0 }
  0x2e   :  { %1942 = vmatpush.bf16.msrb.mxu2 %v2871_v13  ;;  %v2894_v7 = vld [vmem:[%s5870_s1 + $0x380] sm:$0xf]  ;;  %v3727_v8 = vld [vmem:[%s5870_s1 + $0x384] sm:$0xf0]  ;;  %v3757_v12 = vld [vmem:[%s5870_s1 + $0x474] sm:$0xf0] }
  0x2f   :  { %1956 = vmatpush.bf16.msrb.mxu3 %v2935_v18  ;;  %v3078_v13 = vld [vmem:[%s5870_s1 + $0x4f0] sm:$0xf]  ;;  %v3773_v14 = vld [vmem:[%s5870_s1 + $0x4f4] sm:$0xf0]  ;;  %v3598_v27 = vld [vmem:[%s5871_s0 + $0x14] sm:$0xf]  ;;  %v2895_v28 = vor.u32 %v3727_v8, %v2894_v7  ;;  %v3015_v29 = vor.u32 %v3757_v12, %v3014_v9 }
  0x30   :  { %1915 = vmatpush.bf16.msrb.mxu0 %v2735_v24  ;;  %v3142_v15 = vld [vmem:[%s5870_s1 + $0x570] sm:$0xf]  ;;  %v3789_v16 = vld [vmem:[%s5870_s1 + $0x574] sm:$0xf0]  ;;  %v2831_v24 = vor.u32 %v3711_v4, %v2830_v3  ;;  %v3599_v31 = vld [vmem:[%s5871_s0 + $0x1c] sm:$0xf]  ;;  %v3079_v33 = vor.u32 %v3773_v14, %v3078_v13 }
  0x31   :  { %1929 = vmatpush.bf16.msrb.mxu1 %v2799_v25  ;;  %v3206_v18 = vld [vmem:[%s5870_s1 + $0x5f0] sm:$0xf]  ;;  %v3805_v20 = vld [vmem:[%s5870_s1 + $0x5f4] sm:$0xf0]  ;;  %v2400_v32 = vld [vmem:[%s5871_s0 + $0x60] sm:$0xf0]  ;;  %v3143_v34 = vor.u32 %v3789_v16, %v3142_v15 }
  0x32   :  { %1943 = vmatpush.bf16.msrb.mxu2 %v2863_v26  ;;  %v2390_v21 = vld [vmem:[%s5871_s0 + $0x10] sm:$0xf]  ;;  %v3607_v22 = vld [vmem:[%s5871_s0 + $0x54] sm:$0xf0]  ;;  %v3608_v26 = vld [vmem:[%s5871_s0 + $0x5c] sm:$0xf0]  ;;  %v4421_v47 = vor.u32 %v3599_v31, %v2400_v32 }
  0x33   :  { %1957 = vmatpush.bf16.msrb.mxu3 %v2927_v30  ;;  %v2398_v25 = vld [vmem:[%s5871_s0 + $0x18] sm:$0xf]  ;;  %v2392_v30 = vld [vmem:[%s5871_s0 + $0x58] sm:$0xf0]  ;;  %v3006_v35 = vld [vmem:[%s5870_s1 + $0x460] sm:$0xf]  ;;  %v4400_v39 = vor.u32 %v3607_v22, %v2390_v21 }
  0x34   :  { %1916 = vmatpush.bf16.msrb.mxu0 %v2727_v36  ;;  %v3755_v36 = vld [vmem:[%s5870_s1 + $0x464] sm:$0xf0]  ;;  %v3134_v41 = vld [vmem:[%s5870_s1 + $0x560] sm:$0xf]  ;;  %v4411_v43 = vor.u32 %v3608_v26, %v2398_v25  ;;  %v4413_v44 = vor.u32 %v3598_v27, %v2392_v30  ;;  %v3753_v52 = vld [vmem:[%s5870_s1 + $0x454] sm:$0xf0] }
  0x35   :  { %1930 = vmatpush.bf16.msrb.mxu1 %v2791_v37  ;;  %v3070_v37 = vld [vmem:[%s5870_s1 + $0x4e0] sm:$0xf]  ;;  %v3771_v40 = vld [vmem:[%s5870_s1 + $0x4e4] sm:$0xf0]  ;;  %v3062_v53 = vld [vmem:[%s5870_s1 + $0x4d0] sm:$0xf] }
  0x36   :  { %1944 = vmatpush.bf16.msrb.mxu2 %v2855_v38  ;;  %v3207_v38 = vor.u32 %v3805_v20, %v3206_v18  ;;  %v3198_v45 = vld [vmem:[%s5870_s1 + $0x5e0] sm:$0xf]  ;;  %v3803_v46 = vld [vmem:[%s5870_s1 + $0x5e4] sm:$0xf0]  ;;  %v3071_v49 = vor.u32 %v3771_v40, %v3070_v37  ;;  %v3126_v56 = vld [vmem:[%s5870_s1 + $0x550] sm:$0xf] }
  0x37   :  { %1958 = vmatpush.bf16.msrb.mxu3 %v2919_v42  ;;  %v3787_v42 = vld [vmem:[%s5870_s1 + $0x564] sm:$0xf0]  ;;  %v3199_v54 = vor.u32 %v3803_v46, %v3198_v45  ;;  %v3785_v57 = vld [vmem:[%s5870_s1 + $0x554] sm:$0xf0]  ;;  %v3190_v59 = vld [vmem:[%s5870_s1 + $0x5d0] sm:$0xf] }
  0x38   :  { %1917 = vmatpush.bf16.msrb.mxu0 %v2719_v48  ;;  %v3007_v48 = vor.u32 %v3755_v36, %v3006_v35  ;;  %v3801_v60 = vld [vmem:[%s5870_s1 + $0x5d4] sm:$0xf0]  ;;  %v2990_v0 = vld [vmem:[%s5870_s1 + $0x440] sm:$0xf]  ;;  %v3751_v2 = vld [vmem:[%s5870_s1 + $0x444] sm:$0xf0] }
  0x39   :  { %1931 = vmatpush.bf16.msrb.mxu1 %v2783_v50  ;;  %v3135_v50 = vor.u32 %v3787_v42, %v3134_v41  ;;  %v3054_v3 = vld [vmem:[%s5870_s1 + $0x4c0] sm:$0xf]  ;;  %v3191_v4 = vor.u32 %v3801_v60, %v3190_v59  ;;  %v3783_v7 = vld [vmem:[%s5870_s1 + $0x544] sm:$0xf0]  ;;  %v2982_v14 = vld [vmem:[%s5870_s1 + $0x430] sm:$0xf] }
  0x3a   :  { %1945 = vmatpush.bf16.msrb.mxu2 %v2847_v51  ;;  %v2998_v51 = vld [vmem:[%s5870_s1 + $0x450] sm:$0xf]  ;;  %v3182_v8 = vld [vmem:[%s5870_s1 + $0x5c0] sm:$0xf]  ;;  %v3799_v9 = vld [vmem:[%s5870_s1 + $0x5c4] sm:$0xf0] }
  0x3b   :  { %1959 = vmatpush.bf16.msrb.mxu3 %v2911_v55  ;;  %v3769_v55 = vld [vmem:[%s5870_s1 + $0x4d4] sm:$0xf0]  ;;  %v2999_v61 = vor.u32 %v3753_v52, %v2998_v51  ;;  %v3046_v16 = vld [vmem:[%s5870_s1 + $0x4b0] sm:$0xf]  ;;  %v3183_v18 = vor.u32 %v3799_v9, %v3182_v8  ;;  %v2974_v27 = vld [vmem:[%s5870_s1 + $0x420] sm:$0xf] }
  0x3c   :  { %1918 = vmatpush.bf16.msrb.mxu0 %v2711_v63  ;;  %v3063_v62 = vor.u32 %v3769_v55, %v3062_v53  ;;  %v3127_v63 = vor.u32 %v3785_v57, %v3126_v56  ;;  %v3749_v15 = vld [vmem:[%s5870_s1 + $0x434] sm:$0xf0]  ;;  %v3110_v20 = vld [vmem:[%s5870_s1 + $0x530] sm:$0xf]  ;;  %v3763_v31 = vld [vmem:[%s5870_s1 + $0x4a4] sm:$0xf0] }
  0x3d   :  { %1932 = vmatpush.bf16.msrb.mxu1 %v2775_v5  ;;  %v3767_v5 = vld [vmem:[%s5870_s1 + $0x4c4] sm:$0xf0]  ;;  %v3781_v21 = vld [vmem:[%s5870_s1 + $0x534] sm:$0xf0]  ;;  %v3174_v22 = vld [vmem:[%s5870_s1 + $0x5b0] sm:$0xf] }
  0x3e   :  { %1946 = vmatpush.bf16.msrb.mxu2 %v2839_v6  ;;  %v3118_v6 = vld [vmem:[%s5870_s1 + $0x540] sm:$0xf]  ;;  %v3055_v12 = vor.u32 %v3767_v5, %v3054_v3  ;;  %v3111_v26 = vor.u32 %v3781_v21, %v3110_v20  ;;  %v3795_v35 = vld [vmem:[%s5870_s1 + $0x5a4] sm:$0xf0]  ;;  %v2966_v37 = vld [vmem:[%s5870_s1 + $0x410] sm:$0xf] }
  0x3f   :  { %1960 = vmatpush.bf16.msrb.mxu3 %v2903_v11  ;;  %v2991_v11 = vor.u32 %v3751_v2, %v2990_v0  ;;  %v3119_v13 = vor.u32 %v3783_v7, %v3118_v6  ;;  %v3102_v32 = vld [vmem:[%s5870_s1 + $0x520] sm:$0xf]  ;;  %v3745_v41 = vld [vmem:[%s5870_s1 + $0x414] sm:$0xf0]  ;;  %v3030_v42 = vld [vmem:[%s5870_s1 + $0x490] sm:$0xf] }
  0x40   :  { %1919 = vmatpush.bf16.msrb.mxu0 %v2703_v19  ;;  %v3765_v19 = vld [vmem:[%s5870_s1 + $0x4b4] sm:$0xf0]  ;;  %v2958_v52 = vld [vmem:[%s5870_s1 + $0x400] sm:$0xf]  ;;  %v3743_v53 = vld [vmem:[%s5870_s1 + $0x404] sm:$0xf0] }
  0x41   :  { %1933 = vmatpush.bf16.msrb.mxu1 %v2767_v23  ;;  %v3797_v23 = vld [vmem:[%s5870_s1 + $0x5b4] sm:$0xf0]  ;;  %v3047_v25 = vor.u32 %v3765_v19, %v3046_v16  ;;  %v3022_v55 = vld [vmem:[%s5870_s1 + $0x480] sm:$0xf]  ;;  %v3759_v56 = vld [vmem:[%s5870_s1 + $0x484] sm:$0xf0]  ;;  %v2959_v9 = vor.u32 %v3743_v53, %v2958_v52 }
  0x42   :  { %1947 = vmatpush.bf16.msrb.mxu2 %v2831_v24  ;;  %v2983_v24 = vor.u32 %v3749_v15, %v2982_v14  ;;  %v3175_v30 = vor.u32 %v3797_v23, %v3174_v22  ;;  %v3761_v45 = vld [vmem:[%s5870_s1 + $0x494] sm:$0xf0]  ;;  %v3086_v57 = vld [vmem:[%s5870_s1 + $0x500] sm:$0xf]  ;;  %v3775_v59 = vld [vmem:[%s5870_s1 + $0x504] sm:$0xf0]  ;;  %v3023_v14 = vor.u32 %v3759_v56, %v3022_v55 }
  0x43   :  { %1961 = vmatpush.bf16.msrb.mxu3 %v2895_v28  ;;  %1920 = vmatmul.bf16.vlgmr.msrb.gmra.mxu0 %v4400_v39  ;;  %v3747_v28 = vld [vmem:[%s5870_s1 + $0x424] sm:$0xf0]  ;;  %v3793_v51 = vld [vmem:[%s5870_s1 + $0x594] sm:$0xf0]  ;;  %v3031_v60 = vor.u32 %v3761_v45, %v3030_v42  ;;  %v3270_v0 = vld [vmem:[%s5870_s1 + $0x670] sm:$0xf]  ;;  %v3087_v15 = vor.u32 %v3775_v59, %v3086_v57 }
  0x44   :  { %1968 = vmatpush.bf16.msra.mxu0 %v3015_v29  ;;  %1934 = vmatmul.bf16.vlgmr.msrb.gmra.mxu1 %v4413_v44  ;;  %v3038_v29 = vld [vmem:[%s5870_s1 + $0x4a0] sm:$0xf]  ;;  %v2975_v36 = vor.u32 %v3747_v28, %v2974_v27  ;;  %v3821_v3 = vld [vmem:[%s5870_s1 + $0x674] sm:$0xf0]  ;;  %v3398_v6 = vld [vmem:[%s5870_s1 + $0x770] sm:$0xf] }
  0x45   :  { %1982 = vmatpush.bf16.msra.mxu1 %v3079_v33  ;;  %1948 = vmatmul.bf16.vlgmr.msrb.gmra.mxu2 %v4411_v43  ;;  %v3779_v33 = vld [vmem:[%s5870_s1 + $0x524] sm:$0xf0]  ;;  %v3837_v5 = vld [vmem:[%s5870_s1 + $0x6f4] sm:$0xf0]  ;;  %v3462_v8 = vld [vmem:[%s5870_s1 + $0x7f0] sm:$0xf]  ;;  %v3271_v21 = vor.u32 %v3821_v3, %v3270_v0 }
  0x46   :  { %1996 = vmatpush.bf16.msra.mxu2 %v3143_v34  ;;  %1962 = vmatmul.bf16.vlgmr.msrb.gmra.mxu3 %v4421_v47  ;;  %v3166_v34 = vld [vmem:[%s5870_s1 + $0x5a0] sm:$0xf]  ;;  %v3103_v40 = vor.u32 %v3779_v33, %v3102_v32  ;;  %v3853_v7 = vld [vmem:[%s5870_s1 + $0x774] sm:$0xf0]  ;;  %v2414_v16 = vld [vmem:[%s5871_s0 + $0x28] sm:$0xf] }
  0x47   :  { %2010 = vmatpush.bf16.msra.mxu3 %v3207_v38  ;;  %v3039_v38 = vor.u32 %v3763_v31, %v3038_v29  ;;  %v3167_v46 = vor.u32 %v3795_v35, %v3166_v34  ;;  %v3600_v19 = vld [vmem:[%s5871_s0 + $0x24] sm:$0xf]  ;;  %v2408_v22 = vld [vmem:[%s5871_s0 + $0x68] sm:$0xf0]  ;;  %v3262_v27 = vld [vmem:[%s5870_s1 + $0x660] sm:$0xf] }
  0x48   :  { %1969 = vmatpush.bf16.msra.mxu0 %v3007_v48  ;;  %v3094_v48 = vld [vmem:[%s5870_s1 + $0x510] sm:$0xf]  ;;  %v3601_v23 = vld [vmem:[%s5871_s0 + $0x2c] sm:$0xf]  ;;  %v3819_v28 = vld [vmem:[%s5870_s1 + $0x664] sm:$0xf0] }
  0x49   :  { %1983 = vmatpush.bf16.msra.mxu1 %v3071_v49  ;;  %v3777_v49 = vld [vmem:[%s5870_s1 + $0x514] sm:$0xf0]  ;;  %v3326_v29 = vld [vmem:[%s5870_s1 + $0x6e0] sm:$0xf]  ;;  %v3835_v32 = vld [vmem:[%s5870_s1 + $0x6e4] sm:$0xf0] }
  0x4a   :  { %1997 = vmatpush.bf16.msra.mxu2 %v3135_v50  ;;  %v3158_v50 = vld [vmem:[%s5870_s1 + $0x590] sm:$0xf]  ;;  %v3390_v33 = vld [vmem:[%s5870_s1 + $0x760] sm:$0xf]  ;;  %v3851_v34 = vld [vmem:[%s5870_s1 + $0x764] sm:$0xf0]  ;;  %v3327_v42 = vor.u32 %v3835_v32, %v3326_v29 }
  0x4b   :  { %2011 = vmatpush.bf16.msra.mxu3 %v3199_v54  ;;  %v2967_v54 = vor.u32 %v3745_v41, %v2966_v37  ;;  %v3159_v2 = vor.u32 %v3793_v51, %v3158_v50  ;;  %v3454_v37 = vld [vmem:[%s5870_s1 + $0x7e0] sm:$0xf]  ;;  %v3263_v41 = vor.u32 %v3819_v28, %v3262_v27  ;;  %v3391_v45 = vor.u32 %v3851_v34, %v3390_v33  ;;  %v3833_v51 = vld [vmem:[%s5870_s1 + $0x6d4] sm:$0xf0]  ;;  %v3382_v52 = vld [vmem:[%s5870_s1 + $0x750] sm:$0xf] }
  0x4c   :  { %1970 = vmatpush.bf16.msra.mxu0 %v2999_v61  ;;  %v3095_v61 = vor.u32 %v3777_v49, %v3094_v48  ;;  %v3817_v48 = vld [vmem:[%s5870_s1 + $0x654] sm:$0xf0]  ;;  %v3318_v49 = vld [vmem:[%s5870_s1 + $0x6d0] sm:$0xf]  ;;  %v3831_v0 = vld [vmem:[%s5870_s1 + $0x6c4] sm:$0xf0] }
  0x4d   :  { %1984 = vmatpush.bf16.msra.mxu1 %v3063_v62  ;;  %v3150_v62 = vld [vmem:[%s5870_s1 + $0x580] sm:$0xf]  ;;  %v3849_v53 = vld [vmem:[%s5870_s1 + $0x754] sm:$0xf0]  ;;  %v3319_v57 = vor.u32 %v3833_v51, %v3318_v49  ;;  %v3847_v3 = vld [vmem:[%s5870_s1 + $0x744] sm:$0xf0] }
  0x4e   :  { %1998 = vmatpush.bf16.msra.mxu2 %v3127_v63  ;;  %v3791_v63 = vld [vmem:[%s5870_s1 + $0x584] sm:$0xf0]  ;;  %v3865_v55 = vld [vmem:[%s5870_s1 + $0x7d4] sm:$0xf0]  ;;  %v3383_v59 = vor.u32 %v3849_v53, %v3382_v52  ;;  %v3358_v28 = vld [vmem:[%s5870_s1 + $0x720] sm:$0xf] }
  0x4f   :  { %2012 = vmatpush.bf16.msra.mxu3 %v3191_v4  ;;  %v3334_v4 = vld [vmem:[%s5870_s1 + $0x6f0] sm:$0xf]  ;;  %v3151_v20 = vor.u32 %v3791_v63, %v3150_v62  ;;  %v3310_v62 = vld [vmem:[%s5870_s1 + $0x6c0] sm:$0xf]  ;;  %v3827_v27 = vld [vmem:[%s5870_s1 + $0x6a4] sm:$0xf0] }
  0x50   :  { %1971 = vmatpush.bf16.msra.mxu0 %v2991_v11  ;;  %v3869_v11 = vld [vmem:[%s5870_s1 + $0x7f4] sm:$0xf0]  ;;  %v3843_v29 = vld [vmem:[%s5870_s1 + $0x724] sm:$0xf0]  ;;  %v3222_v34 = vld [vmem:[%s5870_s1 + $0x610] sm:$0xf] }
  0x51   :  { %1985 = vmatpush.bf16.msra.mxu1 %v3055_v12  ;;  %v2406_v12 = vld [vmem:[%s5871_s0 + $0x20] sm:$0xf]  ;;  %v3859_v32 = vld [vmem:[%s5870_s1 + $0x7a4] sm:$0xf0]  ;;  %v3841_v49 = vld [vmem:[%s5870_s1 + $0x714] sm:$0xf0] }
  0x52   :  { %1999 = vmatpush.bf16.msra.mxu2 %v3119_v13  ;;  %v3609_v13 = vld [vmem:[%s5871_s0 + $0x64] sm:$0xf0]  ;;  %v3857_v51 = vld [vmem:[%s5870_s1 + $0x794] sm:$0xf0]  ;;  %v3214_v52 = vld [vmem:[%s5870_s1 + $0x600] sm:$0xf] }
  0x53   :  { %2013 = vmatpush.bf16.msra.mxu3 %v3183_v18  ;;  %v3610_v18 = vld [vmem:[%s5871_s0 + $0x6c] sm:$0xf0]  ;;  %v4628_v31 = vor.u32 %v3609_v13, %v2406_v12  ;;  %v3807_v53 = vld [vmem:[%s5870_s1 + $0x604] sm:$0xf0] }
  0x54   :  { %1972 = vmatpush.bf16.msra.mxu0 %v2983_v24  ;;  %v2416_v24 = vld [vmem:[%s5871_s0 + $0x70] sm:$0xf0]  ;;  %v4639_v35 = vor.u32 %v3610_v18, %v2414_v16  ;;  %v3302_v12 = vld [vmem:[%s5870_s1 + $0x6b0] sm:$0xf]  ;;  %v3845_v16 = vld [vmem:[%s5870_s1 + $0x734] sm:$0xf0] }
  0x55   :  { %1986 = vmatpush.bf16.msra.mxu1 %v3047_v25  ;;  %v3335_v25 = vor.u32 %v3837_v5, %v3334_v4  ;;  %v3438_v4 = vld [vmem:[%s5870_s1 + $0x7c0] sm:$0xf]  ;;  %v3863_v5 = vld [vmem:[%s5870_s1 + $0x7c4] sm:$0xf0]  ;;  %v3430_v18 = vld [vmem:[%s5870_s1 + $0x7b0] sm:$0xf] }
  0x56   :  { %2000 = vmatpush.bf16.msra.mxu2 %v3111_v26  ;;  %v3399_v26 = vor.u32 %v3853_v7, %v3398_v6  ;;  %v3311_v7 = vor.u32 %v3831_v0, %v3310_v62  ;;  %v3439_v13 = vor.u32 %v3863_v5, %v3438_v4  ;;  %v3406_v62 = vld [vmem:[%s5870_s1 + $0x780] sm:$0xf]  ;;  %v3526_v0 = vld [vmem:[%s5870_s1 + $0x870] sm:$0xf]  ;;  %v3901_v5 = vld [vmem:[%s5870_s1 + $0x8f4] sm:$0xf0] }
  0x57   :  { %2014 = vmatpush.bf16.msra.mxu3 %v3175_v30  ;;  %v3463_v30 = vor.u32 %v3869_v11, %v3462_v8  ;;  %v3813_v11 = vld [vmem:[%s5870_s1 + $0x634] sm:$0xf0]  ;;  %v3590_v4 = vld [vmem:[%s5870_s1 + $0x8f0] sm:$0xf] }
  0x58   :  { %1973 = vmatpush.bf16.msra.mxu0 %v2975_v36  ;;  %v4641_v36 = vor.u32 %v3600_v19, %v2408_v22  ;;  %v3861_v19 = vld [vmem:[%s5870_s1 + $0x7b4] sm:$0xf0] }
  0x59   :  { %1987 = vmatpush.bf16.msra.mxu1 %v3039_v38  ;;  %v3867_v38 = vld [vmem:[%s5870_s1 + $0x7e4] sm:$0xf0] }
  0x5a   :  { %2001 = vmatpush.bf16.msra.mxu2 %v3103_v40  ;;  %v4649_v40 = vor.u32 %v3601_v23, %v2416_v24  ;;  %v3455_v50 = vor.u32 %v3867_v38, %v3454_v37  ;;  %v3230_v23 = vld [vmem:[%s5870_s1 + $0x620] sm:$0xf]  ;;  %v3811_v24 = vld [vmem:[%s5870_s1 + $0x624] sm:$0xf0]  ;;  %v3359_v38 = vor.u32 %v3843_v29, %v3358_v28 }
  0x5b   :  { %2015 = vmatpush.bf16.msra.mxu3 %v3167_v46  ;;  %v3254_v46 = vld [vmem:[%s5870_s1 + $0x650] sm:$0xf]  ;;  %v3231_v33 = vor.u32 %v3811_v24, %v3230_v23  ;;  %v3603_v23 = vld [vmem:[%s5871_s0 + $0x3c] sm:$0xf]  ;;  %v2432_v24 = vld [vmem:[%s5871_s0 + $0x80] sm:$0xf0] }
  0x5c   :  { %1974 = vmatpush.bf16.msra.mxu0 %v2967_v54  ;;  %v3446_v54 = vld [vmem:[%s5870_s1 + $0x7d0] sm:$0xf]  ;;  %v3255_v56 = vor.u32 %v3817_v48, %v3254_v46  ;;  %v3883_v28 = vld [vmem:[%s5870_s1 + $0x864] sm:$0xf0]  ;;  %v3582_v29 = vld [vmem:[%s5870_s1 + $0x8e0] sm:$0xf] }
  0x5d   :  { %1988 = vmatpush.bf16.msra.mxu1 %v3031_v60  ;;  %v3246_v60 = vld [vmem:[%s5870_s1 + $0x640] sm:$0xf]  ;;  %v3447_v63 = vor.u32 %v3865_v55, %v3446_v54  ;;  %v3350_v48 = vld [vmem:[%s5870_s1 + $0x710] sm:$0xf] }
  0x5e   :  { %2002 = vmatpush.bf16.msra.mxu2 %v3095_v61  ;;  %v3815_v61 = vld [vmem:[%s5870_s1 + $0x644] sm:$0xf0]  ;;  %v3278_v55 = vld [vmem:[%s5870_s1 + $0x680] sm:$0xf] }
  0x5f   :  { %2016 = vmatpush.bf16.msra.mxu3 %v3159_v2  ;;  %v3374_v2 = vld [vmem:[%s5870_s1 + $0x740] sm:$0xf]  ;;  %v3247_v6 = vor.u32 %v3815_v61, %v3246_v60  ;;  %v3351_v61 = vor.u32 %v3841_v49, %v3350_v48 }
  0x60   :  { %1975 = vmatpush.bf16.msra.mxu0 %v2959_v9  ;;  %v3375_v8 = vor.u32 %v3847_v3, %v3374_v2  ;;  %v3238_v9 = vld [vmem:[%s5870_s1 + $0x630] sm:$0xf]  ;;  %v3885_v3 = vld [vmem:[%s5870_s1 + $0x874] sm:$0xf0] }
  0x61   :  { %1989 = vmatpush.bf16.msra.mxu1 %v3023_v14  ;;  %v3829_v14 = vld [vmem:[%s5870_s1 + $0x6b4] sm:$0xf0] }
  0x62   :  { %2003 = vmatpush.bf16.msra.mxu2 %v3087_v15  ;;  %v3366_v15 = vld [vmem:[%s5870_s1 + $0x730] sm:$0xf] }
  0x63   :  { %2017 = vmatpush.bf16.msra.mxu3 %v3151_v20  ;;  %1976 = vmatmul.bf16.vlgmr.msra.gmra.mxu0 %v4628_v31  ;;  %v3239_v20 = vor.u32 %v3813_v11, %v3238_v9  ;;  %v3367_v22 = vor.u32 %v3845_v16, %v3366_v15  ;;  %v3215_v9 = vor.u32 %v3807_v53, %v3214_v52  ;;  %v2568_v11 = vld [vmem:[%s5870_s1 + $0xf8] sm:$0xf0]  ;;  %v2430_v16 = vld [vmem:[%s5871_s0 + $0x38] sm:$0xf]  ;;  %v3574_v53 = vld [vmem:[%s5870_s1 + $0x8d0] sm:$0xf] }
  0x64   :  { %2024 = vmatpush.bf16.msrb.mxu0 %v3271_v21  ;;  %1990 = vmatmul.bf16.vlgmr.msra.gmra.mxu1 %v4641_v36  ;;  %v3303_v21 = vor.u32 %v3829_v14, %v3302_v12  ;;  %v2422_v12 = vld [vmem:[%s5871_s0 + $0x30] sm:$0xf]  ;;  %v3881_v52 = vld [vmem:[%s5870_s1 + $0x854] sm:$0xf0] }
  0x65   :  { %2038 = vmatpush.bf16.msrb.mxu1 %v3335_v25  ;;  %2004 = vmatmul.bf16.vlgmr.msra.gmra.mxu2 %v4639_v35  ;;  %v3294_v25 = vld [vmem:[%s5870_s1 + $0x6a0] sm:$0xf] }
  0x66   :  { %2052 = vmatpush.bf16.msrb.mxu2 %v3399_v26  ;;  %2018 = vmatmul.bf16.vlgmr.msra.gmra.mxu3 %v4649_v40  ;;  %v3431_v26 = vor.u32 %v3861_v19, %v3430_v18  ;;  %v3295_v37 = vor.u32 %v3827_v27, %v3294_v25  ;;  %v3612_v18 = vld [vmem:[%s5871_s0 + $0x7c] sm:$0xf0]  ;;  %v3602_v19 = vld [vmem:[%s5871_s0 + $0x34] sm:$0xf]  ;;  %v3591_v25 = vor.u32 %v3901_v5, %v3590_v4  ;;  %v3895_v5 = vld [vmem:[%s5870_s1 + $0x8c4] sm:$0xf0] }
  0x67   :  { %2066 = vmatpush.bf16.msrb.mxu3 %v3463_v30  ;;  %v3422_v30 = vld [vmem:[%s5870_s1 + $0x7a0] sm:$0xf] }
  0x68   :  { %2025 = vmatpush.bf16.msrb.mxu0 %v3263_v41  ;;  %v3809_v41 = vld [vmem:[%s5870_s1 + $0x614] sm:$0xf0]  ;;  %v3423_v46 = vor.u32 %v3859_v32, %v3422_v30  ;;  %v3518_v27 = vld [vmem:[%s5870_s1 + $0x860] sm:$0xf] }
  0x69   :  { %2039 = vmatpush.bf16.msrb.mxu1 %v3327_v42  ;;  %v3286_v42 = vld [vmem:[%s5870_s1 + $0x690] sm:$0xf]  ;;  %v3223_v54 = vor.u32 %v3809_v41, %v3222_v34  ;;  %v3626_v34 = vld [vmem:[%s5870_s1 + $0x64] sm:$0xf]  ;;  %v3519_v48 = vor.u32 %v3883_v28, %v3518_v27  ;;  %v3486_v27 = vld [vmem:[%s5870_s1 + $0x820] sm:$0xf] }
  0x6a   :  { %2053 = vmatpush.bf16.msrb.mxu2 %v3391_v45  ;;  %v3825_v45 = vld [vmem:[%s5870_s1 + $0x694] sm:$0xf0]  ;;  %v3875_v28 = vld [vmem:[%s5870_s1 + $0x824] sm:$0xf0] }
  0x6b   :  { %2067 = vmatpush.bf16.msrb.mxu3 %v3455_v50  ;;  %v3414_v50 = vld [vmem:[%s5870_s1 + $0x790] sm:$0xf]  ;;  %v3287_v60 = vor.u32 %v3825_v45, %v3286_v42  ;;  %v3642_v42 = vld [vmem:[%s5870_s1 + $0xe4] sm:$0xf]  ;;  %v2560_v45 = vld [vmem:[%s5870_s1 + $0xe8] sm:$0xf0] }
  0x6c   :  { %2026 = vmatpush.bf16.msrb.mxu0 %v3255_v56  ;;  %v3823_v56 = vld [vmem:[%s5870_s1 + $0x684] sm:$0xf0]  ;;  %v3415_v2 = vor.u32 %v3857_v51, %v3414_v50  ;;  %v3510_v51 = vld [vmem:[%s5870_s1 + $0x850] sm:$0xf] }
  0x6d   :  { %2040 = vmatpush.bf16.msrb.mxu1 %v3319_v57  ;;  %v3342_v57 = vld [vmem:[%s5870_s1 + $0x700] sm:$0xf]  ;;  %v3279_v14 = vor.u32 %v3823_v56, %v3278_v55  ;;  %v3897_v55 = vld [vmem:[%s5870_s1 + $0x8d4] sm:$0xf0]  ;;  %v3624_v56 = vld [vmem:[%s5870_s1 + $0x54] sm:$0xf] }
  0x6e   :  { %2054 = vmatpush.bf16.msrb.mxu2 %v3383_v59  ;;  %v3839_v59 = vld [vmem:[%s5870_s1 + $0x704] sm:$0xf0] }
  0x6f   :  { %2068 = vmatpush.bf16.msrb.mxu3 %v3447_v63  ;;  %v3855_v63 = vld [vmem:[%s5870_s1 + $0x784] sm:$0xf0]  ;;  %v3343_v15 = vor.u32 %v3839_v59, %v3342_v57  ;;  %v2488_v57 = vld [vmem:[%s5870_s1 + $0x58] sm:$0xf0]  ;;  %v3640_v59 = vld [vmem:[%s5870_s1 + $0xd4] sm:$0xf] }
  0x70   :  { %2027 = vmatpush.bf16.msrb.mxu0 %v3247_v6  ;;  %v3628_v6 = vld [vmem:[%s5870_s1 + $0x74] sm:$0xf] }
  0x71   :  { %2041 = vmatpush.bf16.msrb.mxu1 %v3311_v7  ;;  %v2504_v7 = vld [vmem:[%s5870_s1 + $0x78] sm:$0xf0] }
  0x72   :  { %2055 = vmatpush.bf16.msrb.mxu2 %v3375_v8  ;;  %v3644_v8 = vld [vmem:[%s5870_s1 + $0xf4] sm:$0xf] }
  0x73   :  { %2069 = vmatpush.bf16.msrb.mxu3 %v3439_v13  ;;  %v3611_v13 = vld [vmem:[%s5871_s0 + $0x74] sm:$0xf0]  ;;  %v2571_v30 = vor.u32 %v3644_v8, %v2568_v11  ;;  %v3638_v8 = vld [vmem:[%s5870_s1 + $0xc4] sm:$0xf] }
  0x74   :  { %2028 = vmatpush.bf16.msrb.mxu0 %v3239_v20  ;;  %v3407_v20 = vor.u32 %v3855_v63, %v3406_v62  ;;  %v4856_v32 = vor.u32 %v3611_v13, %v2422_v12  ;;  %v3575_v62 = vor.u32 %v3897_v55, %v3574_v53  ;;  %v2491_v63 = vor.u32 %v3624_v56, %v2488_v57  ;;  %v3542_v53 = vld [vmem:[%s5870_s1 + $0x890] sm:$0xf]  ;;  %v3889_v55 = vld [vmem:[%s5870_s1 + $0x894] sm:$0xf0]  ;;  %v3616_v56 = vld [vmem:[%s5870_s1 + $0x14] sm:$0xf] }
  0x75   :  { %2042 = vmatpush.bf16.msrb.mxu1 %v3303_v21  ;;  %v3527_v21 = vor.u32 %v3885_v3, %v3526_v0  ;;  %v3502_v0 = vld [vmem:[%s5870_s1 + $0x840] sm:$0xf]  ;;  %v2456_v57 = vld [vmem:[%s5870_s1 + $0x18] sm:$0xf0] }
  0x76   :  { %2056 = vmatpush.bf16.msrb.mxu2 %v3367_v22  ;;  %v2424_v22 = vld [vmem:[%s5871_s0 + $0x78] sm:$0xf0]  ;;  %v3566_v3 = vld [vmem:[%s5870_s1 + $0x8c0] sm:$0xf] }
  0x77   :  { %2070 = vmatpush.bf16.msrb.mxu3 %v3431_v26  ;;  %v2507_v26 = vor.u32 %v3628_v6, %v2504_v7  ;;  %v4869_v41 = vor.u32 %v3602_v19, %v2424_v22  ;;  %v3622_v6 = vld [vmem:[%s5870_s1 + $0x44] sm:$0xf]  ;;  %v2480_v7 = vld [vmem:[%s5870_s1 + $0x48] sm:$0xf0]  ;;  %v3567_v12 = vor.u32 %v3895_v5, %v3566_v3  ;;  %v3893_v19 = vld [vmem:[%s5870_s1 + $0x8b4] sm:$0xf0]  ;;  %v2459_v3 = vor.u32 %v3616_v56, %v2456_v57 }
  0x78   :  { %2029 = vmatpush.bf16.msrb.mxu0 %v3231_v33  ;;  %v3899_v33 = vld [vmem:[%s5870_s1 + $0x8e4] sm:$0xf0]  ;;  %v2483_v13 = vor.u32 %v3622_v6, %v2480_v7  ;;  %v3636_v22 = vld [vmem:[%s5870_s1 + $0xb4] sm:$0xf]  ;;  %v3614_v5 = vld [vmem:[%s5870_s1 + $0x4] sm:$0xf] }
  0x79   :  { %2043 = vmatpush.bf16.msrb.mxu1 %v3295_v37  ;;  %v2496_v37 = vld [vmem:[%s5870_s1 + $0x68] sm:$0xf0]  ;;  %v3583_v49 = vor.u32 %v3899_v33, %v3582_v29  ;;  %v3550_v29 = vld [vmem:[%s5870_s1 + $0x8a0] sm:$0xf]  ;;  %v3891_v33 = vld [vmem:[%s5870_s1 + $0x8a4] sm:$0xf0] }
  0x7a   :  { %2057 = vmatpush.bf16.msrb.mxu2 %v3359_v38  ;;  %v4867_v38 = vor.u32 %v3612_v18, %v2430_v16  ;;  %v2499_v50 = vor.u32 %v3626_v34, %v2496_v37  ;;  %v3558_v16 = vld [vmem:[%s5870_s1 + $0x8b0] sm:$0xf]  ;;  %v3618_v34 = vld [vmem:[%s5870_s1 + $0x24] sm:$0xf]  ;;  %v2464_v37 = vld [vmem:[%s5870_s1 + $0x28] sm:$0xf0] }
  0x7b   :  { %2071 = vmatpush.bf16.msrb.mxu3 %v3423_v46  ;;  %v4877_v46 = vor.u32 %v3603_v23, %v2432_v24  ;;  %v2536_v23 = vld [vmem:[%s5870_s1 + $0xb8] sm:$0xf0]  ;;  %v2448_v6 = vld [vmem:[%s5870_s1 + $0x8] sm:$0xf0] }
  0x7c   :  { %2030 = vmatpush.bf16.msrb.mxu0 %v3223_v54  ;;  %v2563_v54 = vor.u32 %v3642_v42, %v2560_v45  ;;  %v3634_v42 = vld [vmem:[%s5870_s1 + $0xa4] sm:$0xf]  ;;  %v2528_v45 = vld [vmem:[%s5870_s1 + $0xa8] sm:$0xf0] }
  0x7d   :  { %2044 = vmatpush.bf16.msrb.mxu1 %v3287_v60  ;;  %v2552_v60 = vld [vmem:[%s5870_s1 + $0xd8] sm:$0xf0] }
  0x7e   :  { %2058 = vmatpush.bf16.msrb.mxu2 %v3351_v61  ;;  %v3511_v61 = vor.u32 %v3881_v52, %v3510_v51  ;;  %v2555_v4 = vor.u32 %v3640_v59, %v2552_v60  ;;  %v3478_v51 = vld [vmem:[%s5870_s1 + $0x810] sm:$0xf]  ;;  %v3873_v52 = vld [vmem:[%s5870_s1 + $0x814] sm:$0xf0]  ;;  %v3632_v59 = vld [vmem:[%s5870_s1 + $0x94] sm:$0xf] }
  0x7f   :  { %2072 = vmatpush.bf16.msrb.mxu3 %v3415_v2  ;;  %v3879_v2 = vld [vmem:[%s5870_s1 + $0x844] sm:$0xf0]  ;;  %v2520_v60 = vld [vmem:[%s5870_s1 + $0x98] sm:$0xf0] }
  0x80   :  { %2031 = vmatpush.bf16.msrb.mxu0 %v3215_v9  ;;  %v2544_v9 = vld [vmem:[%s5870_s1 + $0xc8] sm:$0xf0]  ;;  %v3503_v11 = vor.u32 %v3879_v2, %v3502_v0  ;;  %v3534_v0 = vld [vmem:[%s5870_s1 + $0x880] sm:$0xf]  ;;  %v3543_v2 = vor.u32 %v3889_v55, %v3542_v53  ;;  %v2523_v7 = vor.u32 %v3632_v59, %v2520_v60  ;;  %v3656_v55 = vld [vmem:[%s5870_s1 + $0x154] sm:$0xf] }
  0x81   :  { %2045 = vmatpush.bf16.msrb.mxu1 %v3279_v14  ;;  %v3494_v14 = vld [vmem:[%s5870_s1 + $0x830] sm:$0xf]  ;;  %v2547_v18 = vor.u32 %v3638_v8, %v2544_v9  ;;  %v3630_v8 = vld [vmem:[%s5870_s1 + $0x84] sm:$0xf]  ;;  %v2512_v9 = vld [vmem:[%s5870_s1 + $0x88] sm:$0xf0] }
  0x82   :  { %2059 = vmatpush.bf16.msrb.mxu2 %v3343_v15  ;;  %v3877_v15 = vld [vmem:[%s5870_s1 + $0x834] sm:$0xf0]  ;;  %v2816_v53 = vld [vmem:[%s5870_s1 + $0x2e8] sm:$0xf0]  ;;  %v2616_v59 = vld [vmem:[%s5870_s1 + $0x158] sm:$0xf0] }
  0x83   :  { %2073 = vmatpush.bf16.msrb.mxu3 %v3407_v20  ;;  %2032 = vmatmul.bf16.vlgmr.msrb.gmra.mxu0 %v4856_v32  ;;  %v3620_v20 = vld [vmem:[%s5870_s1 + $0x34] sm:$0xf]  ;;  %v3495_v24 = vor.u32 %v3877_v15, %v3494_v14  ;;  %v2696_v14 = vld [vmem:[%s5870_s1 + $0x1f8] sm:$0xf0] }
  0x84   :  { %2080 = vmatpush.bf16.msra.mxu0 %v3527_v21  ;;  %2046 = vmatmul.bf16.vlgmr.msrb.gmra.mxu1 %v4869_v41  ;;  %v2472_v21 = vld [vmem:[%s5870_s1 + $0x38] sm:$0xf0]  ;;  %v3672_v60 = vld [vmem:[%s5870_s1 + $0x1d4] sm:$0xf] }
  0x85   :  { %2094 = vmatpush.bf16.msra.mxu1 %v3591_v25  ;;  %2060 = vmatmul.bf16.vlgmr.msrb.gmra.mxu2 %v4867_v38  ;;  %v3559_v25 = vor.u32 %v3893_v19, %v3558_v16  ;;  %v3692_v16 = vld [vmem:[%s5870_s1 + $0x274] sm:$0xf] }
  0x86   :  { %2108 = vmatpush.bf16.msra.mxu2 %v2507_v26  ;;  %2074 = vmatmul.bf16.vlgmr.msrb.gmra.mxu3 %v4877_v46  ;;  %v2475_v26 = vor.u32 %v3620_v20, %v2472_v21  ;;  %v3708_v19 = vld [vmem:[%s5870_s1 + $0x2f4] sm:$0xf]  ;;  %v2451_v21 = vor.u32 %v3614_v5, %v2448_v6  ;;  %v2619_v5 = vor.u32 %v3656_v55, %v2616_v59  ;;  %v2656_v55 = vld [vmem:[%s5870_s1 + $0x1a8] sm:$0xf0] }
  0x87   :  { %2122 = vmatpush.bf16.msra.mxu3 %v2571_v30  ;;  %v2539_v30 = vor.u32 %v3636_v22, %v2536_v23  ;;  %v2824_v22 = vld [vmem:[%s5870_s1 + $0x2f8] sm:$0xf0]  ;;  %v2438_v23 = vld [vmem:[%s5871_s0 + $0x40] sm:$0xf] }
  0x88   :  { %2081 = vmatpush.bf16.msra.mxu0 %v3519_v48  ;;  %v3487_v48 = vor.u32 %v3875_v28, %v3486_v27  ;;  %v3604_v27 = vld [vmem:[%s5871_s0 + $0x44] sm:$0xf]  ;;  %v2440_v28 = vld [vmem:[%s5871_s0 + $0x88] sm:$0xf0] }
  0x89   :  { %2095 = vmatpush.bf16.msra.mxu1 %v3583_v49  ;;  %v3551_v49 = vor.u32 %v3891_v33, %v3550_v29  ;;  %v3658_v33 = vld [vmem:[%s5870_s1 + $0x164] sm:$0xf] }
  0x8a   :  { %2109 = vmatpush.bf16.msra.mxu2 %v2499_v50  ;;  %v2467_v50 = vor.u32 %v3618_v34, %v2464_v37  ;;  %v2624_v34 = vld [vmem:[%s5870_s1 + $0x168] sm:$0xf0]  ;;  %v3674_v37 = vld [vmem:[%s5870_s1 + $0x1e4] sm:$0xf] }
  0x8b   :  { %2123 = vmatpush.bf16.msra.mxu3 %v2563_v54  ;;  %v2531_v54 = vor.u32 %v3634_v42, %v2528_v45  ;;  %v2827_v42 = vor.u32 %v3708_v19, %v2824_v22 }
  0x8c   :  { %2082 = vmatpush.bf16.msra.mxu0 %v3511_v61  ;;  %v3479_v61 = vor.u32 %v3873_v52, %v3478_v51  ;;  %v5083_v51 = vor.u32 %v3604_v27, %v2440_v28  ;;  %v3706_v52 = vld [vmem:[%s5870_s1 + $0x2e4] sm:$0xf]  ;;  %v2664_v27 = vld [vmem:[%s5870_s1 + $0x1b8] sm:$0xf0]  ;;  %v3684_v28 = vld [vmem:[%s5870_s1 + $0x234] sm:$0xf] }
  0x8d   :  { %2096 = vmatpush.bf16.msra.mxu1 %v3575_v62  ;;  %v3470_v62 = vld [vmem:[%s5870_s1 + $0x800] sm:$0xf] }
  0x8e   :  { %2110 = vmatpush.bf16.msra.mxu2 %v2491_v63  ;;  %v3871_v63 = vld [vmem:[%s5870_s1 + $0x804] sm:$0xf0] }
  0x8f   :  { %2124 = vmatpush.bf16.msra.mxu3 %v2555_v4  ;;  %v3887_v4 = vld [vmem:[%s5870_s1 + $0x884] sm:$0xf0]  ;;  %v3471_v15 = vor.u32 %v3871_v63, %v3470_v62  ;;  %v2819_v62 = vor.u32 %v3706_v52, %v2816_v53  ;;  %v2680_v63 = vld [vmem:[%s5870_s1 + $0x1d8] sm:$0xf0]  ;;  %v2592_v52 = vld [vmem:[%s5870_s1 + $0x128] sm:$0xf0] }
  0x90   :  { %2083 = vmatpush.bf16.msra.mxu0 %v3503_v11  ;;  %v3660_v11 = vld [vmem:[%s5870_s1 + $0x174] sm:$0xf]  ;;  %v3535_v20 = vor.u32 %v3887_v4, %v3534_v0  ;;  %v2808_v4 = vld [vmem:[%s5870_s1 + $0x2d8] sm:$0xf0]  ;;  %v3666_v53 = vld [vmem:[%s5870_s1 + $0x1a4] sm:$0xf] }
  0x91   :  { %2097 = vmatpush.bf16.msra.mxu1 %v3567_v12  ;;  %v2632_v12 = vld [vmem:[%s5870_s1 + $0x178] sm:$0xf0]  ;;  %v3688_v0 = vld [vmem:[%s5870_s1 + $0x254] sm:$0xf] }
  0x92   :  { %2111 = vmatpush.bf16.msra.mxu2 %v2483_v13  ;;  %v3676_v13 = vld [vmem:[%s5870_s1 + $0x1f4] sm:$0xf] }
  0x93   :  { %2125 = vmatpush.bf16.msra.mxu3 %v2547_v18  ;;  %v2760_v18 = vld [vmem:[%s5870_s1 + $0x278] sm:$0xf0]  ;;  %v2699_v29 = vor.u32 %v3676_v13, %v2696_v14  ;;  %v3686_v13 = vld [vmem:[%s5870_s1 + $0x244] sm:$0xf]  ;;  %v2736_v14 = vld [vmem:[%s5870_s1 + $0x248] sm:$0xf0] }
  0x94   :  { %2084 = vmatpush.bf16.msra.mxu0 %v3495_v24  ;;  %v3613_v24 = vld [vmem:[%s5871_s0 + $0x84] sm:$0xf0]  ;;  %v2739_v22 = vor.u32 %v3686_v13, %v2736_v14  ;;  %v2776_v13 = vld [vmem:[%s5870_s1 + $0x298] sm:$0xf0] }
  0x95   :  { %2098 = vmatpush.bf16.msra.mxu1 %v3559_v25  ;;  %v2515_v25 = vor.u32 %v3630_v8, %v2512_v9  ;;  %v5072_v45 = vor.u32 %v3613_v24, %v2438_v23  ;;  %v3654_v9 = vld [vmem:[%s5870_s1 + $0x144] sm:$0xf]  ;;  %v3652_v23 = vld [vmem:[%s5870_s1 + $0x134] sm:$0xf]  ;;  %v2600_v24 = vld [vmem:[%s5870_s1 + $0x138] sm:$0xf0] }
  0x96   :  { %2112 = vmatpush.bf16.msra.mxu2 %v2475_v26  ;;  %v2635_v26 = vor.u32 %v3660_v11, %v2632_v12  ;;  %v2608_v11 = vld [vmem:[%s5870_s1 + $0x148] sm:$0xf0] }
  0x97   :  { %2126 = vmatpush.bf16.msra.mxu3 %v2539_v30  ;;  %v2763_v30 = vor.u32 %v3692_v16, %v2760_v18  ;;  %v2672_v12 = vld [vmem:[%s5870_s1 + $0x1c8] sm:$0xf0]  ;;  %v2611_v19 = vor.u32 %v3654_v9, %v2608_v11  ;;  %v3680_v11 = vld [vmem:[%s5870_s1 + $0x214] sm:$0xf] }
  0x98   :  { %2085 = vmatpush.bf16.msra.mxu0 %v3487_v48  ;;  %v2688_v48 = vld [vmem:[%s5870_s1 + $0x1e8] sm:$0xf0] }
  0x99   :  { %2099 = vmatpush.bf16.msra.mxu1 %v3551_v49  ;;  %v3690_v49 = vld [vmem:[%s5870_s1 + $0x264] sm:$0xf]  ;;  %v2691_v56 = vor.u32 %v3674_v37, %v2688_v48  ;;  %v2800_v16 = vld [vmem:[%s5870_s1 + $0x2c8] sm:$0xf0]  ;;  %v2603_v37 = vor.u32 %v3652_v23, %v2600_v24 }
  0x9a   :  { %2113 = vmatpush.bf16.msra.mxu2 %v2467_v50  ;;  %v2752_v50 = vld [vmem:[%s5870_s1 + $0x268] sm:$0xf0]  ;;  %v3662_v23 = vld [vmem:[%s5870_s1 + $0x184] sm:$0xf] }
  0x9b   :  { %2127 = vmatpush.bf16.msra.mxu3 %v2531_v54  ;;  %v2627_v54 = vor.u32 %v3658_v33, %v2624_v34  ;;  %v2755_v57 = vor.u32 %v3690_v49, %v2752_v50  ;;  %v2792_v33 = vld [vmem:[%s5870_s1 + $0x2b8] sm:$0xf0]  ;;  %v3650_v50 = vld [vmem:[%s5870_s1 + $0x124] sm:$0xf]  ;;  %v2640_v24 = vld [vmem:[%s5870_s1 + $0x188] sm:$0xf0] }
  0x9c   :  { %2086 = vmatpush.bf16.msra.mxu0 %v3479_v61  ;;  %v5103_v61 = vld [vmem:[%s5872_s2] sm:$0x3] }
  0x9d   :  { %2100 = vmatpush.bf16.msra.mxu1 %v3543_v2  ;;  %v2744_v2 = vld [vmem:[%s5870_s1 + $0x258] sm:$0xf0]  ;;  %v322_v6 = vperm.slane %v5103_v61, 0  ;;  %v2784_v61 = vld [vmem:[%s5870_s1 + $0x2a8] sm:$0xf0] }
  0x9e   :  { %2114 = vmatpush.bf16.msra.mxu2 %v2459_v3  ;;  %v3704_v3 = vld [vmem:[%s5870_s1 + $0x2d4] sm:$0xf]  ;;  %v2747_v8 = vor.u32 %v3688_v0, %v2744_v2  ;;  %v2595_v0 = vor.u32 %v3650_v50, %v2592_v52  ;;  %v3016_v52 = vld [vmem:[%s5870_s1 + $0x478] sm:$0xf0] }
  0x9f   :  { %2128 = vmatpush.bf16.msra.mxu3 %v2523_v7  ;;  %v2683_v7 = vor.u32 %v3672_v60, %v2680_v63  ;;  %v3698_v60 = vld [vmem:[%s5870_s1 + $0x2a4] sm:$0xf]  ;;  %v3756_v50 = vld [vmem:[%s5870_s1 + $0x474] sm:$0xf] }
  0xa0   :  { %2087 = vmatpush.bf16.msra.mxu0 %v3471_v15  ;;  %v3702_v15 = vld [vmem:[%s5870_s1 + $0x2c4] sm:$0xf]  ;;  %v1865_v18 = vpop.f32.mrf.mxu0  ;;  %v2787_v9 = vor.u32 %v3698_v60, %v2784_v61 }
  0xa1   :  { %2101 = vmatpush.bf16.msra.mxu1 %v3535_v20  ;;  %v1866_v20 = vadd.f32 %v1865_v18, %v322_v6  ;;  %v1879_v34 = vpop.f32.mrf.mxu1  ;;  %v3646_v18 = vld [vmem:[%s5870_s1 + $0x104] sm:$0xf] }
  0xa2   :  { %2115 = vmatpush.bf16.msra.mxu2 %v2451_v21 }
  0xa3   :  { %2129 = vmatpush.bf16.msra.mxu3 %v2515_v25  ;;  %2088 = vmatmul.bf16.vlgmr.msra.gmra.mxu0 %v5072_v45  ;;  %v3668_v25 = vld [vmem:[%s5870_s1 + $0x1b4] sm:$0xf] }
  0xa4   :  { %2136 = vmatpush.bf16.msrb.mxu0 %v2635_v26  ;;  %2102 = vmatmul.bf16.vlgmr.msra.gmra.mxu1 %v5083_v51  ;;  %v2803_v26 = vor.u32 %v3702_v15, %v2800_v16  ;;  %v2667_v48 = vor.u32 %v3668_v25, %v2664_v27  ;;  %v3678_v25 = vld [vmem:[%s5870_s1 + $0x204] sm:$0xf]  ;;  %v2704_v27 = vld [vmem:[%s5870_s1 + $0x208] sm:$0xf0] }
  0xa5   :  { %2150 = vmatpush.bf16.msrb.mxu1 %v2699_v29  ;;  %2116 = vmatmul.bf16.vlgmr.msra.gmra.mxu2 %v4178_v58  ;;  %v3670_v58 = vld [vmem:[%s5870_s1 + $0x1c4] sm:$0xf]  ;;  %v2728_v29 = vld [vmem:[%s5870_s1 + $0x238] sm:$0xf0] }
  0xa6   :  { %2164 = vmatpush.bf16.msrb.mxu2 %v2763_v30  ;;  %2130 = vmatmul.bf16.vlgmr.msra.gmra.mxu3 %v4214_v10  ;;  %v2811_v10 = vor.u32 %v3704_v3, %v2808_v4  ;;  %v2675_v21 = vor.u32 %v3670_v58, %v2672_v12  ;;  %v3700_v30 = vld [vmem:[%s5870_s1 + $0x2b4] sm:$0xf]  ;;  %v2731_v49 = vor.u32 %v3684_v28, %v2728_v29  ;;  %v2712_v58 = vld [vmem:[%s5870_s1 + $0x218] sm:$0xf0]  ;;  %v3694_v28 = vld [vmem:[%s5870_s1 + $0x284] sm:$0xf] }
  0xa7   :  { %2178 = vmatpush.bf16.msrb.mxu3 %v2827_v42  ;;  %v1880_v42 = vadd.f32 %v1879_v34, %v1866_v20  ;;  %v2659_v3 = vor.u32 %v3666_v53, %v2656_v55  ;;  %v3696_v12 = vld [vmem:[%s5870_s1 + $0x294] sm:$0xf]  ;;  %v2768_v29 = vld [vmem:[%s5870_s1 + $0x288] sm:$0xf0]  ;;  %v2888_v34 = vld [vmem:[%s5870_s1 + $0x378] sm:$0xf0]  ;;  %v2643_v53 = vor.u32 %v3662_v23, %v2640_v24 }
  0xa8   :  { %2137 = vmatpush.bf16.msrb.mxu0 %v2627_v54  ;;  %v2795_v54 = vor.u32 %v3700_v30, %v2792_v33  ;;  %v1893_v59 = vpop.f32.mrf.mxu2  ;;  %v1867_v63 = vpop.f32.mrf.mxu0  ;;  %v3724_v33 = vld [vmem:[%s5870_s1 + $0x374] sm:$0xf] }
  0xa9   :  { %2151 = vmatpush.bf16.msrb.mxu1 %v2691_v56  ;;  %v3682_v56 = vld [vmem:[%s5870_s1 + $0x224] sm:$0xf]  ;;  %v1868_v2 = vadd.f32 %v1867_v63, %v322_v6  ;;  %v2648_v6 = vld [vmem:[%s5870_s1 + $0x198] sm:$0xf0]  ;;  %v1881_v15 = vpop.f32.mrf.mxu1  ;;  %v3772_v55 = vld [vmem:[%s5870_s1 + $0x4f4] sm:$0xf] }
  0xaa   :  { %2165 = vmatpush.bf16.msrb.mxu2 %v2755_v57  ;;  %v2720_v57 = vld [vmem:[%s5870_s1 + $0x228] sm:$0xf0]  ;;  %v3722_v63 = vld [vmem:[%s5870_s1 + $0x364] sm:$0xf] }
  0xab   :  { %2179 = vmatpush.bf16.msrb.mxu3 %v2819_v62  ;;  %v1894_v62 = vadd.f32 %v1893_v59, %v1880_v42  ;;  %v2723_v4 = vor.u32 %v3682_v56, %v2720_v57  ;;  %v1882_v20 = vadd.f32 %v1881_v15, %v1868_v2  ;;  %v3080_v56 = vld [vmem:[%s5870_s1 + $0x4f8] sm:$0xf0]  ;;  %v2771_v57 = vor.u32 %v3694_v28, %v2768_v29  ;;  %v3738_v2 = vld [vmem:[%s5870_s1 + $0x3e4] sm:$0xf]  ;;  %v3736_v15 = vld [vmem:[%s5870_s1 + $0x3d4] sm:$0xf] }
  0xac   :  { %2138 = vmatpush.bf16.msrb.mxu0 %v2619_v5  ;;  %v3648_v5 = vld [vmem:[%s5870_s1 + $0x114] sm:$0xf]  ;;  %v2891_v59 = vor.u32 %v3724_v33, %v2888_v34  ;;  %v2992_v28 = vld [vmem:[%s5870_s1 + $0x448] sm:$0xf0] }
  0xad   :  { %2152 = vmatpush.bf16.msrb.mxu1 %v2683_v7  ;;  %v2584_v7 = vld [vmem:[%s5870_s1 + $0x118] sm:$0xf0]  ;;  %v3056_v33 = vld [vmem:[%s5870_s1 + $0x4c8] sm:$0xf0] }
  0xae   :  { %2166 = vmatpush.bf16.msrb.mxu2 %v2747_v8  ;;  %v3664_v8 = vld [vmem:[%s5870_s1 + $0x194] sm:$0xf]  ;;  %v2587_v16 = vor.u32 %v3648_v5, %v2584_v7  ;;  %v2944_v5 = vld [vmem:[%s5870_s1 + $0x3e8] sm:$0xf0]  ;;  %v3754_v7 = vld [vmem:[%s5870_s1 + $0x464] sm:$0xf] }
  0xaf   :  { %2180 = vmatpush.bf16.msrb.mxu3 %v2811_v10  ;;  %v1907_v10 = vpop.f32.mrf.mxu3 }
  0xb0   :  { %2139 = vmatpush.bf16.msrb.mxu0 %v2611_v19  ;;  %v5221_v14 = vadd.f32 %v1907_v10, %v1894_v62  ;;  %v2576_v19 = vld [vmem:[%s5870_s1 + $0x108] sm:$0xf0]  ;;  %v1895_v30 = vpop.f32.mrf.mxu2  ;;  %v3019_v62 = vor.u32 %v3756_v50, %v3016_v52  ;;  %v3716_v50 = vld [vmem:[%s5870_s1 + $0x334] sm:$0xf]  ;;  %v2856_v52 = vld [vmem:[%s5870_s1 + $0x338] sm:$0xf0] }
  0xb1   :  { %2153 = vmatpush.bf16.msrb.mxu1 %v2675_v21  ;;  %v2651_v21 = vor.u32 %v3664_v8, %v2648_v6  ;;  %v1896_v42 = vadd.f32 %v1895_v30, %v1882_v20  ;;  %v3008_v8 = vld [vmem:[%s5870_s1 + $0x468] sm:$0xf0]  ;;  %v3000_v20 = vld [vmem:[%s5870_s1 + $0x458] sm:$0xf0]  ;;  %v3766_v30 = vld [vmem:[%s5870_s1 + $0x4c4] sm:$0xf] }
  0xb2   :  { %2167 = vmatpush.bf16.msrb.mxu2 %v2739_v22  ;;  %v2715_v22 = vor.u32 %v3680_v11, %v2712_v58  ;;  %v3072_v6 = vld [vmem:[%s5870_s1 + $0x4e8] sm:$0xf0]  ;;  %v2947_v58 = vor.u32 %v3738_v2, %v2944_v5  ;;  %v3011_v10 = vor.u32 %v3754_v7, %v3008_v8 }
  0xb3   :  { %2181 = vmatpush.bf16.msrb.mxu3 %v2803_v26  ;;  %v2779_v26 = vor.u32 %v3696_v12, %v2776_v13  ;;  %v3720_v12 = vld [vmem:[%s5870_s1 + $0x354] sm:$0xf]  ;;  %v2872_v13 = vld [vmem:[%s5870_s1 + $0x358] sm:$0xf0]  ;;  %v2848_v2 = vld [vmem:[%s5870_s1 + $0x328] sm:$0xf0] }
  0xb4   :  { %2140 = vmatpush.bf16.msrb.mxu0 %v2603_v37  ;;  %v3740_v37 = vld [vmem:[%s5870_s1 + $0x3f4] sm:$0xf]  ;;  %v2912_v8 = vld [vmem:[%s5870_s1 + $0x3a8] sm:$0xf0] }
  0xb5   :  { %2154 = vmatpush.bf16.msrb.mxu1 %v2667_v48  ;;  %v2579_v48 = vor.u32 %v3646_v18, %v2576_v19  ;;  %v2936_v18 = vld [vmem:[%s5870_s1 + $0x3d8] sm:$0xf0]  ;;  %v3752_v19 = vld [vmem:[%s5870_s1 + $0x454] sm:$0xf] }
  0xb6   :  { %2168 = vmatpush.bf16.msrb.mxu2 %v2731_v49  ;;  %v2952_v49 = vld [vmem:[%s5870_s1 + $0x3f8] sm:$0xf0]  ;;  %v2939_v23 = vor.u32 %v3736_v15, %v2936_v18  ;;  %v3003_v24 = vor.u32 %v3752_v19, %v3000_v20 }
  0xb7   :  { %2182 = vmatpush.bf16.msrb.mxu3 %v2795_v54  ;;  %v2707_v54 = vor.u32 %v3678_v25, %v2704_v27  ;;  %v1909_v60 = vpop.f32.mrf.mxu3  ;;  %v2955_v61 = vor.u32 %v3740_v37, %v2952_v49  ;;  %v3734_v25 = vld [vmem:[%s5870_s1 + $0x3c4] sm:$0xf] }
  0xb8   :  { %2141 = vmatpush.bf16.msrb.mxu0 %v2595_v0  ;;  %v2880_v0 = vld [vmem:[%s5870_s1 + $0x368] sm:$0xf0]  ;;  %v3750_v27 = vld [vmem:[%s5870_s1 + $0x444] sm:$0xf] }
  0xb9   :  { %2155 = vmatpush.bf16.msrb.mxu1 %v2659_v3  ;;  %v5280_v3 = vadd.f32 %v1909_v60, %v1896_v42  ;;  %v2883_v11 = vor.u32 %v3722_v63, %v2880_v0  ;;  %v2995_v49 = vor.u32 %v3750_v27, %v2992_v28  ;;  %v3048_v60 = vld [vmem:[%s5870_s1 + $0x4b8] sm:$0xf0]  ;;  %v3714_v0 = vld [vmem:[%s5870_s1 + $0x324] sm:$0xf] }
  0xba   :  { %2169 = vmatpush.bf16.msrb.mxu2 %v2723_v4  ;;  %v3083_v4 = vor.u32 %v3772_v55, %v3080_v56  ;;  %v2920_v55 = vld [vmem:[%s5870_s1 + $0x3b8] sm:$0xf0]  ;;  %v3748_v56 = vld [vmem:[%s5870_s1 + $0x434] sm:$0xf]  ;;  %v3710_v28 = vld [vmem:[%s5870_s1 + $0x304] sm:$0xf] }
  0xbb   :  { %2183 = vmatpush.bf16.msrb.mxu3 %v2787_v9  ;;  %v3770_v9 = vld [vmem:[%s5870_s1 + $0x4e4] sm:$0xf] }
  0xbc   :  { %2142 = vmatpush.bf16.msrb.mxu0 %v2587_v16  ;;  %v3075_v16 = vor.u32 %v3770_v9, %v3072_v6  ;;  %v3746_v9 = vld [vmem:[%s5870_s1 + $0x424] sm:$0xf]  ;;  %v2976_v6 = vld [vmem:[%s5870_s1 + $0x428] sm:$0xf0] }
  0xbd   :  { %2156 = vmatpush.bf16.msrb.mxu1 %v2651_v21  ;;  %v3064_v21 = vld [vmem:[%s5870_s1 + $0x4d8] sm:$0xf0] }
  0xbe   :  { %2170 = vmatpush.bf16.msrb.mxu2 %v2715_v22  ;;  %v2875_v22 = vor.u32 %v3720_v12, %v2872_v13  ;;  %v3762_v12 = vld [vmem:[%s5870_s1 + $0x4a4] sm:$0xf]  ;;  %v3040_v13 = vld [vmem:[%s5870_s1 + $0x4a8] sm:$0xf0] }
  0xbf   :  { %2184 = vmatpush.bf16.msrb.mxu3 %v2779_v26  ;;  %v2928_v26 = vld [vmem:[%s5870_s1 + $0x3c8] sm:$0xf0] }
  0xc0   :  { %2143 = vmatpush.bf16.msrb.mxu0 %v2579_v48  ;;  %v1921_v29 = vpop.f32.mrf.mxu0  ;;  %v2931_v48 = vor.u32 %v3734_v25, %v2928_v26  ;;  %v2968_v25 = vld [vmem:[%s5870_s1 + $0x418] sm:$0xf0] }
  0xc1   :  { %2157 = vmatpush.bf16.msrb.mxu1 %v2643_v53  ;;  %v1922_v34 = vadd.f32 %v1921_v29, %v5221_v14  ;;  %v1935_v42 = vpop.f32.mrf.mxu1  ;;  %v3732_v53 = vld [vmem:[%s5870_s1 + $0x3b4] sm:$0xf]  ;;  %v3059_v14 = vor.u32 %v3766_v30, %v3056_v33  ;;  %v3032_v26 = vld [vmem:[%s5870_s1 + $0x498] sm:$0xf0]  ;;  %v2832_v29 = vld [vmem:[%s5870_s1 + $0x308] sm:$0xf0] }
  0xc2   :  { %2171 = vmatpush.bf16.msrb.mxu2 %v2707_v54 }
  0xc3   :  { %2185 = vmatpush.bf16.msrb.mxu3 %v2771_v57  ;;  %2144 = vmatmul.bf16.vlgmr.msrb.gmra.mxu0 %v4192_v1  ;;  %v3768_v1 = vld [vmem:[%s5870_s1 + $0x4d4] sm:$0xf]  ;;  %v1936_v54 = vadd.f32 %v1935_v42, %v1922_v34  ;;  %v2984_v57 = vld [vmem:[%s5870_s1 + $0x438] sm:$0xf0]  ;;  %v3726_v34 = vld [vmem:[%s5870_s1 + $0x384] sm:$0xf] }
  0xc4   :  { %2192 = vmatpush.bf16.msra.mxu0 %v2891_v59  ;;  %2158 = vmatmul.bf16.vlgmr.msrb.gmra.mxu1 %v4228_v17  ;;  %v3718_v17 = vld [vmem:[%s5870_s1 + $0x344] sm:$0xf]  ;;  %v3764_v59 = vld [vmem:[%s5870_s1 + $0x4b4] sm:$0xf]  ;;  %v2987_v63 = vor.u32 %v3748_v56, %v2984_v57  ;;  %v3144_v56 = vld [vmem:[%s5870_s1 + $0x578] sm:$0xf0] }
  0xc5   :  { %2206 = vmatpush.bf16.msra.mxu1 %v2955_v61  ;;  %2172 = vmatmul.bf16.vlgmr.msrb.gmra.mxu2 %v4400_v39  ;;  %v2864_v39 = vld [vmem:[%s5870_s1 + $0x348] sm:$0xf0]  ;;  %v2859_v61 = vor.u32 %v3716_v50, %v2856_v52  ;;  %v3051_v5 = vor.u32 %v3764_v59, %v3048_v60  ;;  %v3742_v42 = vld [vmem:[%s5870_s1 + $0x404] sm:$0xf]  ;;  %v3804_v57 = vld [vmem:[%s5870_s1 + $0x5f4] sm:$0xf]  ;;  %v2835_v59 = vor.u32 %v3710_v28, %v2832_v29 }
  0xc6   :  { %2220 = vmatpush.bf16.msra.mxu2 %v3019_v62  ;;  %2186 = vmatmul.bf16.vlgmr.msrb.gmra.mxu3 %v4413_v44  ;;  %v3067_v44 = vor.u32 %v3768_v1, %v3064_v21  ;;  %v2867_v37 = vor.u32 %v3718_v17, %v2864_v39  ;;  %v2923_v62 = vor.u32 %v3732_v53, %v2920_v55  ;;  %v3712_v21 = vld [vmem:[%s5870_s1 + $0x314] sm:$0xf]  ;;  %v2904_v17 = vld [vmem:[%s5870_s1 + $0x398] sm:$0xf0]  ;;  %v2960_v50 = vld [vmem:[%s5870_s1 + $0x408] sm:$0xf0] }
  0xc7   :  { %2234 = vmatpush.bf16.msra.mxu3 %v3083_v4  ;;  %v3730_v4 = vld [vmem:[%s5870_s1 + $0x3a4] sm:$0xf]  ;;  %v2979_v1 = vor.u32 %v3746_v9, %v2976_v6  ;;  %v3744_v39 = vld [vmem:[%s5870_s1 + $0x414] sm:$0xf]  ;;  %v3024_v53 = vld [vmem:[%s5870_s1 + $0x488] sm:$0xf0] }
  0xc8   :  { %2193 = vmatpush.bf16.msra.mxu0 %v2883_v11  ;;  %v1949_v7 = vpop.f32.mrf.mxu2  ;;  %v2915_v20 = vor.u32 %v3730_v4, %v2912_v8  ;;  %v2971_v33 = vor.u32 %v3744_v39, %v2968_v25  ;;  %v3758_v52 = vld [vmem:[%s5870_s1 + $0x484] sm:$0xf]  ;;  %v3788_v55 = vld [vmem:[%s5870_s1 + $0x574] sm:$0xf]  ;;  %v3208_v60 = vld [vmem:[%s5870_s1 + $0x5f8] sm:$0xf0] }
  0xc9   :  { %2207 = vmatpush.bf16.msra.mxu1 %v2947_v58  ;;  %v1950_v11 = vadd.f32 %v1949_v7, %v1936_v54  ;;  %v1923_v58 = vpop.f32.mrf.mxu0  ;;  %v1937_v18 = vpop.f32.mrf.mxu1  ;;  %v3836_v4 = vld [vmem:[%s5870_s1 + $0x6f4] sm:$0xf]  ;;  %v3027_v7 = vor.u32 %v3758_v52, %v3024_v53  ;;  %v3147_v8 = vor.u32 %v3788_v55, %v3144_v56  ;;  %v3211_v9 = vor.u32 %v3804_v57, %v3208_v60  ;;  %v3192_v39 = vld [vmem:[%s5870_s1 + $0x5d8] sm:$0xf0] }
  0xca   :  { %2221 = vmatpush.bf16.msra.mxu2 %v3011_v10  ;;  %v1963_v10 = vpop.f32.mrf.mxu3  ;;  %v1924_v15 = vadd.f32 %v1923_v58, %v5280_v3  ;;  %v3728_v3 = vld [vmem:[%s5870_s1 + $0x394] sm:$0xf]  ;;  %v3136_v58 = vld [vmem:[%s5870_s1 + $0x568] sm:$0xf0]  ;;  %v3112_v56 = vld [vmem:[%s5870_s1 + $0x538] sm:$0xf0] }
  0xcb   :  { %2235 = vmatpush.bf16.msra.mxu3 %v3075_v16  ;;  %v2851_v16 = vor.u32 %v3714_v0, %v2848_v2  ;;  %v5399_v19 = vadd.f32 %v1963_v10, %v1950_v11  ;;  %v2907_v30 = vor.u32 %v3728_v3, %v2904_v17  ;;  %v2963_v2 = vor.u32 %v3742_v42, %v2960_v50  ;;  %v3786_v11 = vld [vmem:[%s5870_s1 + $0x564] sm:$0xf]  ;;  %v3784_v3 = vld [vmem:[%s5870_s1 + $0x554] sm:$0xf]  ;;  %v3176_v60 = vld [vmem:[%s5870_s1 + $0x5b8] sm:$0xf0] }
  0xcc   :  { %2194 = vmatpush.bf16.msra.mxu0 %v2875_v22  ;;  %v2840_v22 = vld [vmem:[%s5870_s1 + $0x318] sm:$0xf0]  ;;  %v3802_v10 = vld [vmem:[%s5870_s1 + $0x5e4] sm:$0xf]  ;;  %v3816_v25 = vld [vmem:[%s5870_s1 + $0x654] sm:$0xf] }
  0xcd   :  { %2208 = vmatpush.bf16.msra.mxu1 %v2939_v23  ;;  %v3043_v23 = vor.u32 %v3762_v12, %v3040_v13  ;;  %v2843_v27 = vor.u32 %v3712_v21, %v2840_v22  ;;  %v3200_v13 = vld [vmem:[%s5870_s1 + $0x5e8] sm:$0xf0]  ;;  %v3780_v55 = vld [vmem:[%s5870_s1 + $0x534] sm:$0xf] }
  0xce   :  { %2222 = vmatpush.bf16.msra.mxu2 %v3003_v24  ;;  %v1938_v24 = vadd.f32 %v1937_v18, %v1924_v15  ;;  %v3818_v15 = vld [vmem:[%s5870_s1 + $0x664] sm:$0xf]  ;;  %v3203_v21 = vor.u32 %v3802_v10, %v3200_v13  ;;  %v3796_v57 = vld [vmem:[%s5870_s1 + $0x5b4] sm:$0xf]  ;;  %v3168_v10 = vld [vmem:[%s5870_s1 + $0x5a8] sm:$0xf0] }
  0xcf   :  { %2236 = vmatpush.bf16.msra.mxu3 %v3067_v44  ;;  %v3760_v44 = vld [vmem:[%s5870_s1 + $0x494] sm:$0xf]  ;;  %v3834_v18 = vld [vmem:[%s5870_s1 + $0x6e4] sm:$0xf]  ;;  %v3232_v13 = vld [vmem:[%s5870_s1 + $0x628] sm:$0xf0] }
  0xd0   :  { %2195 = vmatpush.bf16.msra.mxu0 %v2867_v37  ;;  %v2896_v37 = vld [vmem:[%s5870_s1 + $0x388] sm:$0xf0] }
  0xd1   :  { %2209 = vmatpush.bf16.msra.mxu1 %v2931_v48  ;;  %v3035_v48 = vor.u32 %v3760_v44, %v3032_v26  ;;  %v2899_v0 = vor.u32 %v3726_v34, %v2896_v37  ;;  %v3256_v44 = vld [vmem:[%s5870_s1 + $0x658] sm:$0xf0]  ;;  %v3814_v34 = vld [vmem:[%s5870_s1 + $0x644] sm:$0xf]  ;;  %v3248_v37 = vld [vmem:[%s5870_s1 + $0x648] sm:$0xf0] }
  0xd2   :  { %2223 = vmatpush.bf16.msra.mxu2 %v2995_v49  ;;  %v1951_v49 = vpop.f32.mrf.mxu2  ;;  %v1965_v54 = vpop.f32.mrf.mxu3  ;;  %v3320_v26 = vld [vmem:[%s5870_s1 + $0x6d8] sm:$0xf0]  ;;  %v3259_v29 = vor.u32 %v3816_v25, %v3256_v44 }
  0xd3   :  { %2237 = vmatpush.bf16.msra.mxu3 %v3059_v14  ;;  %v1952_v14 = vadd.f32 %v1951_v49, %v1938_v24  ;;  %v3800_v24 = vld [vmem:[%s5870_s1 + $0x5d4] sm:$0xf]  ;;  %v3312_v49 = vld [vmem:[%s5870_s1 + $0x6c8] sm:$0xf0]  ;;  %v3096_v25 = vld [vmem:[%s5870_s1 + $0x518] sm:$0xf0] }
  0xd4   :  { %2196 = vmatpush.bf16.msra.mxu0 %v2859_v61  ;;  %v3820_v61 = vld [vmem:[%s5870_s1 + $0x674] sm:$0xf]  ;;  %v3195_v28 = vor.u32 %v3800_v24, %v3192_v39 }
  0xd5   :  { %2210 = vmatpush.bf16.msra.mxu1 %v2923_v62  ;;  %v3272_v62 = vld [vmem:[%s5870_s1 + $0x678] sm:$0xf0]  ;;  %v3776_v39 = vld [vmem:[%s5870_s1 + $0x514] sm:$0xf] }
  0xd6   :  { %2224 = vmatpush.bf16.msra.mxu2 %v2987_v63  ;;  %v5467_v63 = vadd.f32 %v1965_v54, %v1952_v14  ;;  %v3275_v6 = vor.u32 %v3820_v61, %v3272_v62  ;;  %v3251_v54 = vor.u32 %v3814_v34, %v3248_v37  ;;  %v3812_v61 = vld [vmem:[%s5870_s1 + $0x634] sm:$0xf]  ;;  %v3240_v62 = vld [vmem:[%s5870_s1 + $0x638] sm:$0xf0]  ;;  %v3790_v37 = vld [vmem:[%s5870_s1 + $0x584] sm:$0xf] }
  0xd7   :  { %2238 = vmatpush.bf16.msra.mxu3 %v3051_v5  ;;  %v3336_v5 = vld [vmem:[%s5870_s1 + $0x6f8] sm:$0xf0] }
  0xd8   :  { %2197 = vmatpush.bf16.msra.mxu0 %v2851_v16  ;;  %v3339_v12 = vor.u32 %v3836_v4, %v3336_v5  ;;  %v3264_v16 = vld [vmem:[%s5870_s1 + $0x668] sm:$0xf0]  ;;  %v3115_v4 = vor.u32 %v3780_v55, %v3112_v56  ;;  %v3179_v5 = vor.u32 %v3796_v57, %v3176_v60  ;;  %v3852_v56 = vld [vmem:[%s5870_s1 + $0x774] sm:$0xf]  ;;  %v3400_v57 = vld [vmem:[%s5870_s1 + $0x778] sm:$0xf0] }
  0xd9   :  { %2211 = vmatpush.bf16.msra.mxu1 %v2915_v20  ;;  %v3328_v20 = vld [vmem:[%s5870_s1 + $0x6e8] sm:$0xf0]  ;;  %v3267_v22 = vor.u32 %v3818_v15, %v3264_v16  ;;  %v3464_v60 = vld [vmem:[%s5870_s1 + $0x7f8] sm:$0xf0] }
  0xda   :  { %2225 = vmatpush.bf16.msra.mxu2 %v2979_v1  ;;  %v3139_v1 = vor.u32 %v3786_v11, %v3136_v58  ;;  %v3331_v17 = vor.u32 %v3834_v18, %v3328_v20  ;;  %v3826_v20 = vld [vmem:[%s5870_s1 + $0x6a4] sm:$0xf] }
  0xdb   :  { %2239 = vmatpush.bf16.msra.mxu3 %v3043_v23  ;;  %v3128_v23 = vld [vmem:[%s5870_s1 + $0x558] sm:$0xf0] }
  0xdc   :  { %2198 = vmatpush.bf16.msra.mxu0 %v2843_v27  ;;  %v3131_v27 = vor.u32 %v3784_v3, %v3128_v23 }
  0xdd   :  { %2212 = vmatpush.bf16.msra.mxu1 %v2907_v30  ;;  %v3798_v30 = vld [vmem:[%s5870_s1 + $0x5c4] sm:$0xf] }
  0xde   :  { %2226 = vmatpush.bf16.msra.mxu2 %v2971_v33  ;;  %v3184_v33 = vld [vmem:[%s5870_s1 + $0x5c8] sm:$0xf0] }
  0xdf   :  { %2240 = vmatpush.bf16.msra.mxu3 %v3035_v48  ;;  %v3830_v48 = vld [vmem:[%s5870_s1 + $0x6c4] sm:$0xf]  ;;  %v3187_v14 = vor.u32 %v3798_v30, %v3184_v33 }
  0xe0   :  { %2199 = vmatpush.bf16.msra.mxu0 %v2835_v59  ;;  %v1977_v42 = vpop.f32.mrf.mxu0  ;;  %v3774_v30 = vld [vmem:[%s5870_s1 + $0x504] sm:$0xf] }
  0xe1   :  { %2213 = vmatpush.bf16.msra.mxu1 %v2899_v0  ;;  %v1978_v50 = vadd.f32 %v1977_v42, %v5399_v19  ;;  %v1991_v53 = vpop.f32.mrf.mxu1  ;;  %v3315_v19 = vor.u32 %v3830_v48, %v3312_v49  ;;  %v3828_v0 = vld [vmem:[%s5870_s1 + $0x6b4] sm:$0xf]  ;;  %v3152_v42 = vld [vmem:[%s5870_s1 + $0x588] sm:$0xf0]  ;;  %v3806_v48 = vld [vmem:[%s5870_s1 + $0x604] sm:$0xf] }
  0xe2   :  { %2227 = vmatpush.bf16.msra.mxu2 %v2963_v2  ;;  %v3304_v2 = vld [vmem:[%s5870_s1 + $0x6b8] sm:$0xf0] }
  0xe3   :  { %2241 = vmatpush.bf16.msra.mxu3 %v3027_v7  ;;  %2200 = vmatmul.bf16.vlgmr.msra.gmra.mxu0 %v4411_v43  ;;  %v3832_v43 = vld [vmem:[%s5870_s1 + $0x6d4] sm:$0xf]  ;;  %v1992_v59 = vadd.f32 %v1991_v53, %v1978_v50  ;;  %v3243_v7 = vor.u32 %v3812_v61, %v3240_v62  ;;  %v3307_v11 = vor.u32 %v3828_v0, %v3304_v2  ;;  %v3822_v53 = vld [vmem:[%s5870_s1 + $0x684] sm:$0xf]  ;;  %v3528_v62 = vld [vmem:[%s5870_s1 + $0x878] sm:$0xf0] }
  0xe4   :  { %2248 = vmatpush.bf16.msrb.mxu0 %v3147_v8  ;;  %2214 = vmatmul.bf16.vlgmr.msra.gmra.mxu1 %v4421_v47  ;;  %v3782_v47 = vld [vmem:[%s5870_s1 + $0x544] sm:$0xf]  ;;  %v3884_v61 = vld [vmem:[%s5870_s1 + $0x874] sm:$0xf]  ;;  %v3155_v2 = vor.u32 %v3790_v37, %v3152_v42  ;;  %v3568_v37 = vld [vmem:[%s5870_s1 + $0x8c8] sm:$0xf0] }
  0xe5   :  { %2262 = vmatpush.bf16.msrb.mxu1 %v3211_v9  ;;  %2228 = vmatmul.bf16.vlgmr.msra.gmra.mxu2 %v4628_v31  ;;  %v3120_v31 = vld [vmem:[%s5870_s1 + $0x548] sm:$0xf0]  ;;  %v3778_v8 = vld [vmem:[%s5870_s1 + $0x524] sm:$0xf] }
  0xe6   :  { %2276 = vmatpush.bf16.msrb.mxu2 %v3275_v6  ;;  %2242 = vmatmul.bf16.vlgmr.msra.gmra.mxu3 %v4641_v36  ;;  %v3323_v36 = vor.u32 %v3832_v43, %v3320_v26  ;;  %v3123_v52 = vor.u32 %v3782_v47, %v3120_v31  ;;  %v3104_v9 = vld [vmem:[%s5870_s1 + $0x528] sm:$0xf0]  ;;  %v3794_v6 = vld [vmem:[%s5870_s1 + $0x5a4] sm:$0xf]  ;;  %v3160_v26 = vld [vmem:[%s5870_s1 + $0x598] sm:$0xf0]  ;;  %v3099_v31 = vor.u32 %v3776_v39, %v3096_v25 }
  0xe7   :  { %2290 = vmatpush.bf16.msrb.mxu3 %v3339_v12  ;;  %v3810_v12 = vld [vmem:[%s5870_s1 + $0x624] sm:$0xf]  ;;  %v3171_v24 = vor.u32 %v3794_v6, %v3168_v10  ;;  %v3288_v47 = vld [vmem:[%s5870_s1 + $0x698] sm:$0xf0]  ;;  %v3392_v10 = vld [vmem:[%s5870_s1 + $0x768] sm:$0xf0] }
  0xe8   :  { %2249 = vmatpush.bf16.msrb.mxu0 %v3139_v1  ;;  %v2005_v58 = vpop.f32.mrf.mxu2  ;;  %v1979_v16 = vpop.f32.mrf.mxu0  ;;  %v3296_v1 = vld [vmem:[%s5870_s1 + $0x6a8] sm:$0xf0]  ;;  %v3864_v39 = vld [vmem:[%s5870_s1 + $0x7d4] sm:$0xf] }
  0xe9   :  { %2263 = vmatpush.bf16.msrb.mxu1 %v3203_v21  ;;  %v2006_v15 = vadd.f32 %v2005_v58, %v1992_v59  ;;  %v2019_v18 = vpop.f32.mrf.mxu3  ;;  %v1980_v21 = vadd.f32 %v1979_v16, %v5467_v63  ;;  %v1993_v3 = vpop.f32.mrf.mxu1  ;;  %v3792_v63 = vld [vmem:[%s5870_s1 + $0x594] sm:$0xf]  ;;  %v3299_v44 = vor.u32 %v3826_v20, %v3296_v1  ;;  %v3850_v58 = vld [vmem:[%s5870_s1 + $0x764] sm:$0xf]  ;;  %v3584_v1 = vld [vmem:[%s5870_s1 + $0x8e8] sm:$0xf0] }
  0xea   :  { %2277 = vmatpush.bf16.msrb.mxu2 %v3267_v22  ;;  %v3107_v22 = vor.u32 %v3778_v8, %v3104_v9  ;;  %v3163_v33 = vor.u32 %v3792_v63, %v3160_v26  ;;  %v3403_v9 = vor.u32 %v3852_v56, %v3400_v57  ;;  %v3882_v16 = vld [vmem:[%s5870_s1 + $0x864] sm:$0xf]  ;;  %v3448_v63 = vld [vmem:[%s5870_s1 + $0x7d8] sm:$0xf0]  ;;  %v3876_v57 = vld [vmem:[%s5870_s1 + $0x834] sm:$0xf] }
  0xeb   :  { %2291 = vmatpush.bf16.msrb.mxu3 %v3331_v17  ;;  %v5601_v23 = vadd.f32 %v2019_v18, %v2006_v15  ;;  %v3235_v17 = vor.u32 %v3810_v12, %v3232_v13  ;;  %v1994_v43 = vadd.f32 %v1993_v3, %v1980_v21  ;;  %v3866_v12 = vld [vmem:[%s5870_s1 + $0x7e4] sm:$0xf]  ;;  %v3456_v15 = vld [vmem:[%s5870_s1 + $0x7e8] sm:$0xf0]  ;;  %v3395_v21 = vor.u32 %v3850_v58, %v3392_v10  ;;  %v3576_v26 = vld [vmem:[%s5870_s1 + $0x8d8] sm:$0xf0] }
  0xec   :  { %2250 = vmatpush.bf16.msrb.mxu0 %v3131_v27  ;;  %v3808_v27 = vld [vmem:[%s5870_s1 + $0x614] sm:$0xf]  ;;  %v3520_v18 = vld [vmem:[%s5870_s1 + $0x868] sm:$0xf0]  ;;  %v3898_v20 = vld [vmem:[%s5870_s1 + $0x8e4] sm:$0xf] }
  0xed   :  { %2264 = vmatpush.bf16.msrb.mxu1 %v3195_v28  ;;  %v3224_v28 = vld [vmem:[%s5870_s1 + $0x618] sm:$0xf0]  ;;  %v3523_v3 = vor.u32 %v3882_v16, %v3520_v18  ;;  %v3587_v25 = vor.u32 %v3898_v20, %v3584_v1  ;;  %v3488_v58 = vld [vmem:[%s5870_s1 + $0x828] sm:$0xf0] }
  0xee   :  { %2278 = vmatpush.bf16.msrb.mxu2 %v3259_v29  ;;  %v3824_v29 = vld [vmem:[%s5870_s1 + $0x694] sm:$0xf]  ;;  %v3227_v34 = vor.u32 %v3808_v27, %v3224_v28  ;;  %v3451_v28 = vor.u32 %v3864_v39, %v3448_v63  ;;  %v3432_v56 = vld [vmem:[%s5870_s1 + $0x7b8] sm:$0xf0]  ;;  %v3552_v16 = vld [vmem:[%s5870_s1 + $0x8a8] sm:$0xf0] }
  0xef   :  { %2292 = vmatpush.bf16.msrb.mxu3 %v3323_v36  ;;  %v3088_v36 = vld [vmem:[%s5870_s1 + $0x508] sm:$0xf0]  ;;  %v3291_v49 = vor.u32 %v3824_v29, %v3288_v47  ;;  %v3862_v47 = vld [vmem:[%s5870_s1 + $0x7c4] sm:$0xf]  ;;  %v3856_v39 = vld [vmem:[%s5870_s1 + $0x794] sm:$0xf] }
  0xf0   :  { %2251 = vmatpush.bf16.msrb.mxu0 %v3123_v52  ;;  %v2007_v50 = vpop.f32.mrf.mxu2  ;;  %v3216_v52 = vld [vmem:[%s5870_s1 + $0x608] sm:$0xf0]  ;;  %v3091_v59 = vor.u32 %v3774_v30, %v3088_v36  ;;  %v3878_v30 = vld [vmem:[%s5870_s1 + $0x844] sm:$0xf]  ;;  %v3416_v63 = vld [vmem:[%s5870_s1 + $0x798] sm:$0xf0] }
  0xf1   :  { %2265 = vmatpush.bf16.msrb.mxu1 %v3187_v14  ;;  %v3280_v14 = vld [vmem:[%s5870_s1 + $0x688] sm:$0xf0]  ;;  %v2021_v55 = vpop.f32.mrf.mxu3 }
  0xf2   :  { %2279 = vmatpush.bf16.msrb.mxu2 %v3251_v54  ;;  %v2008_v54 = vadd.f32 %v2007_v50, %v1994_v43  ;;  %v3283_v8 = vor.u32 %v3822_v53, %v3280_v14  ;;  %v3512_v43 = vld [vmem:[%s5870_s1 + $0x858] sm:$0xf0]  ;;  %v3504_v36 = vld [vmem:[%s5870_s1 + $0x848] sm:$0xf0]  ;;  %v3844_v53 = vld [vmem:[%s5870_s1 + $0x734] sm:$0xf] }
  0xf3   :  { %2293 = vmatpush.bf16.msrb.mxu3 %v3315_v19  ;;  %v3868_v19 = vld [vmem:[%s5870_s1 + $0x7f4] sm:$0xf]  ;;  %v3368_v14 = vld [vmem:[%s5870_s1 + $0x738] sm:$0xf0] }
  0xf4   :  { %2252 = vmatpush.bf16.msrb.mxu0 %v3115_v4  ;;  %v5669_v0 = vadd.f32 %v2021_v55, %v2008_v54  ;;  %v3219_v4 = vor.u32 %v3806_v48, %v3216_v52  ;;  %v3467_v6 = vor.u32 %v3868_v19, %v3464_v60  ;;  %v3507_v52 = vor.u32 %v3878_v30, %v3504_v36  ;;  %v3860_v54 = vld [vmem:[%s5870_s1 + $0x7b4] sm:$0xf]  ;;  %v3496_v19 = vld [vmem:[%s5870_s1 + $0x838] sm:$0xf0]  ;;  %v3408_v30 = vld [vmem:[%s5870_s1 + $0x788] sm:$0xf0] }
  0xf5   :  { %2266 = vmatpush.bf16.msrb.mxu1 %v3179_v5  ;;  %v3900_v5 = vld [vmem:[%s5870_s1 + $0x8f4] sm:$0xf]  ;;  %v3560_v60 = vld [vmem:[%s5870_s1 + $0x8b8] sm:$0xf0]  ;;  %v3870_v36 = vld [vmem:[%s5870_s1 + $0x804] sm:$0xf] }
  0xf6   :  { %2280 = vmatpush.bf16.msrb.mxu2 %v3243_v7  ;;  %v3592_v7 = vld [vmem:[%s5870_s1 + $0x8f8] sm:$0xf0] }
  0xf7   :  { %2294 = vmatpush.bf16.msrb.mxu3 %v3307_v11  ;;  %v3531_v11 = vor.u32 %v3884_v61, %v3528_v62  ;;  %v3595_v13 = vor.u32 %v3900_v5, %v3592_v7  ;;  %v3371_v61 = vor.u32 %v3844_v53, %v3368_v14  ;;  %v3435_v62 = vor.u32 %v3860_v54, %v3432_v56  ;;  %v3360_v5 = vld [vmem:[%s5870_s1 + $0x728] sm:$0xf0]  ;;  %v3858_v7 = vld [vmem:[%s5870_s1 + $0x7a4] sm:$0xf] }
  0xf8   :  { %2253 = vmatpush.bf16.msrb.mxu0 %v3107_v22  ;;  %v3459_v22 = vor.u32 %v3866_v12, %v3456_v15  ;;  %v3890_v15 = vld [vmem:[%s5870_s1 + $0x8a4] sm:$0xf] }
  0xf9   :  { %2267 = vmatpush.bf16.msrb.mxu1 %v3171_v24  ;;  %v3848_v24 = vld [vmem:[%s5870_s1 + $0x754] sm:$0xf] }
  0xfa   :  { %2281 = vmatpush.bf16.msrb.mxu2 %v3235_v17  ;;  %v3384_v17 = vld [vmem:[%s5870_s1 + $0x758] sm:$0xf0] }
  0xfb   :  { %2295 = vmatpush.bf16.msrb.mxu3 %v3299_v44  ;;  %v3880_v44 = vld [vmem:[%s5870_s1 + $0x854] sm:$0xf]  ;;  %v3387_v27 = vor.u32 %v3848_v24, %v3384_v17  ;;  %v3352_v17 = vld [vmem:[%s5870_s1 + $0x718] sm:$0xf0] }
  0xfc   :  { %2254 = vmatpush.bf16.msrb.mxu0 %v3099_v31  ;;  %v3515_v29 = vor.u32 %v3880_v44, %v3512_v43  ;;  %v3440_v31 = vld [vmem:[%s5870_s1 + $0x7c8] sm:$0xf0]  ;;  %v3840_v24 = vld [vmem:[%s5870_s1 + $0x714] sm:$0xf]  ;;  %v3480_v43 = vld [vmem:[%s5870_s1 + $0x818] sm:$0xf0] }
  0xfd   :  { %2268 = vmatpush.bf16.msrb.mxu1 %v3163_v33  ;;  %v3443_v50 = vor.u32 %v3862_v47, %v3440_v31  ;;  %v3872_v44 = vld [vmem:[%s5870_s1 + $0x814] sm:$0xf]  ;;  %v3854_v47 = vld [vmem:[%s5870_s1 + $0x784] sm:$0xf] }
  0xfe   :  { %2282 = vmatpush.bf16.msrb.mxu2 %v3227_v34  ;;  %v3894_v34 = vld [vmem:[%s5870_s1 + $0x8c4] sm:$0xf] }
  0xff   :  { %2296 = vmatpush.bf16.msrb.mxu3 %v3291_v49 }
 0x100   :  { %2255 = vmatpush.bf16.msrb.mxu0 %v3091_v59  ;;  %v2033_v33 = vpop.f32.mrf.mxu0  ;;  %v3892_v59 = vld [vmem:[%s5870_s1 + $0x8b4] sm:$0xf] }
 0x101   :  { %2269 = vmatpush.bf16.msrb.mxu1 %v3155_v2  ;;  %v2034_v42 = vadd.f32 %v2033_v33, %v5601_v23  ;;  %v2047_v49 = vpop.f32.mrf.mxu1  ;;  %v3571_v23 = vor.u32 %v3894_v34, %v3568_v37  ;;  %v3499_v2 = vor.u32 %v3876_v57, %v3496_v19  ;;  %v3472_v33 = vld [vmem:[%s5870_s1 + $0x808] sm:$0xf0] }
 0x102   :  { %2283 = vmatpush.bf16.msrb.mxu2 %v3219_v4  ;;  %v3842_v4 = vld [vmem:[%s5870_s1 + $0x724] sm:$0xf]  ;;  %v3475_v53 = vor.u32 %v3870_v36, %v3472_v33 }
 0x103   :  { %2297 = vmatpush.bf16.msrb.mxu3 %v3283_v8  ;;  %2256 = vmatmul.bf16.vlgmr.msrb.gmra.mxu0 %v4639_v35  ;;  %v3896_v35 = vld [vmem:[%s5870_s1 + $0x8d4] sm:$0xf]  ;;  %v2048_v55 = vadd.f32 %v2047_v49, %v2034_v42  ;;  %v3563_v8 = vor.u32 %v3892_v59, %v3560_v60  ;;  %v3363_v20 = vor.u32 %v3842_v4, %v3360_v5  ;;  %v3886_v42 = vld [vmem:[%s5870_s1 + $0x884] sm:$0xf] }
 0x104   :  { %2304 = vmatpush.bf16.msra.mxu0 %v3403_v9  ;;  %2270 = vmatmul.bf16.vlgmr.msrb.gmra.mxu1 %v4649_v40  ;;  %v3846_v40 = vld [vmem:[%s5870_s1 + $0x744] sm:$0xf] }
 0x105   :  { %2318 = vmatpush.bf16.msra.mxu1 %v3467_v6  ;;  %2284 = vmatmul.bf16.vlgmr.msrb.gmra.mxu2 %v4856_v32  ;;  %v3376_v32 = vld [vmem:[%s5870_s1 + $0x748] sm:$0xf0] }
 0x106   :  { %2332 = vmatpush.bf16.msra.mxu2 %v3531_v11  ;;  %2298 = vmatmul.bf16.vlgmr.msrb.gmra.mxu3 %v4869_v41  ;;  %v3579_v41 = vor.u32 %v3896_v35, %v3576_v26  ;;  %v3379_v48 = vor.u32 %v3846_v40, %v3376_v32  ;;  %v3424_v6 = vld [vmem:[%s5870_s1 + $0x7a8] sm:$0xf0]  ;;  %v3874_v11 = vld [vmem:[%s5870_s1 + $0x824] sm:$0xf]  ;;  %v3888_v35 = vld [vmem:[%s5870_s1 + $0x894] sm:$0xf] }
 0x107   :  { %2346 = vmatpush.bf16.msra.mxu3 %v3595_v13  ;;  %v3544_v26 = vld [vmem:[%s5870_s1 + $0x898] sm:$0xf0]  ;;  %v3838_v40 = vld [vmem:[%s5870_s1 + $0x704] sm:$0xf]  ;;  %v3344_v32 = vld [vmem:[%s5870_s1 + $0x708] sm:$0xf0] }
 0x108   :  { %2305 = vmatpush.bf16.msra.mxu0 %v3395_v21  ;;  %v2061_v9 = vpop.f32.mrf.mxu2  ;;  %v2035_v12 = vpop.f32.mrf.mxu0  ;;  %v3347_v49 = vor.u32 %v3838_v40, %v3344_v32 }
 0x109   :  { %2319 = vmatpush.bf16.msra.mxu1 %v3459_v22  ;;  %v2062_v10 = vadd.f32 %v2061_v9, %v2048_v55  ;;  %v2075_v13 = vpop.f32.mrf.mxu3  ;;  %v2036_v18 = vadd.f32 %v2035_v12, %v5669_v0  ;;  %v2049_v1 = vpop.f32.mrf.mxu1  ;;  %v3427_v22 = vor.u32 %v3858_v7, %v3424_v6  ;;  %v3555_v0 = vor.u32 %v3890_v15, %v3552_v16 }
 0x10a   :  { %2333 = vmatpush.bf16.msra.mxu2 %v3523_v3  ;;  %v3491_v3 = vor.u32 %v3874_v11, %v3488_v58 }
 0x10b   :  { %2347 = vmatpush.bf16.msra.mxu3 %v3587_v25  ;;  %v2076_v21 = vadd.f32 %v2075_v13, %v2062_v10  ;;  %v2050_v25 = vadd.f32 %v2049_v1, %v2036_v18 }
 0x10c   :  { %2306 = vmatpush.bf16.msra.mxu0 %v3387_v27  ;;  %v3355_v27 = vor.u32 %v3840_v24, %v3352_v17 }
 0x10d   :  { %2320 = vmatpush.bf16.msra.mxu1 %v3451_v28  ;;  %v3419_v28 = vor.u32 %v3856_v39, %v3416_v63 }
 0x10e   :  { %2334 = vmatpush.bf16.msra.mxu2 %v3515_v29  ;;  %v3483_v29 = vor.u32 %v3872_v44, %v3480_v43 }
 0x10f   :  { %2348 = vmatpush.bf16.msra.mxu3 %v3579_v41  ;;  %v3547_v41 = vor.u32 %v3888_v35, %v3544_v26 }
 0x110   :  { %2307 = vmatpush.bf16.msra.mxu0 %v3379_v48  ;;  %v2063_v31 = vpop.f32.mrf.mxu2  ;;  %v3536_v48 = vld [vmem:[%s5870_s1 + $0x888] sm:$0xf0] }
 0x111   :  { %2321 = vmatpush.bf16.msra.mxu1 %v3443_v50  ;;  %v2064_v34 = vadd.f32 %v2063_v31, %v2050_v25  ;;  %v2077_v37 = vpop.f32.mrf.mxu3  ;;  %v3539_v14 = vor.u32 %v3886_v42, %v3536_v48 }
 0x112   :  { %2335 = vmatpush.bf16.msra.mxu2 %v3507_v52  ;;  %v3411_v52 = vor.u32 %v3854_v47, %v3408_v30 }
 0x113   :  { %2349 = vmatpush.bf16.msra.mxu3 %v3571_v23  ;;  %v2078_v50 = vadd.f32 %v2077_v37, %v2064_v34 }
 0x114   :  { %2308 = vmatpush.bf16.msra.mxu0 %v3371_v61 }
 0x115   :  { %2322 = vmatpush.bf16.msra.mxu1 %v3435_v62 }
 0x116   :  { %2336 = vmatpush.bf16.msra.mxu2 %v3499_v2 }
 0x117   :  { %2350 = vmatpush.bf16.msra.mxu3 %v3563_v8 }
 0x118   :  { %2309 = vmatpush.bf16.msra.mxu0 %v3363_v20 }
 0x119   :  { %2323 = vmatpush.bf16.msra.mxu1 %v3427_v22 }
 0x11a   :  { %2337 = vmatpush.bf16.msra.mxu2 %v3491_v3 }
 0x11b   :  { %2351 = vmatpush.bf16.msra.mxu3 %v3555_v0 }
 0x11c   :  { %2310 = vmatpush.bf16.msra.mxu0 %v3355_v27 }
 0x11d   :  { %2324 = vmatpush.bf16.msra.mxu1 %v3419_v28 }
 0x11e   :  { %2338 = vmatpush.bf16.msra.mxu2 %v3483_v29 }
 0x11f   :  { %2352 = vmatpush.bf16.msra.mxu3 %v3547_v41 }
 0x120   :  { %2311 = vmatpush.bf16.msra.mxu0 %v3347_v49  ;;  %v2089_v54 = vpop.f32.mrf.mxu0 }
 0x121   :  { %2325 = vmatpush.bf16.msra.mxu1 %v3411_v52  ;;  %v2090_v23 = vadd.f32 %v2089_v54, %v2076_v21  ;;  %v2103_v55 = vpop.f32.mrf.mxu1 }
 0x122   :  { %2339 = vmatpush.bf16.msra.mxu2 %v3475_v53 }
 0x123   :  { %2353 = vmatpush.bf16.msra.mxu3 %v3539_v14  ;;  %2312 = vmatmul.bf16.vlgmr.msra.gmra.mxu0 %v4867_v38  ;;  %v5855_v56 = vadd.f32 %v2103_v55, %v2090_v23 }
 0x124   :  { %2326 = vmatmul.bf16.vlgmr.msra.gmra.mxu1 %v4877_v46 }
 0x125   :  { %2340 = vmatmul.bf16.vlgmr.msra.gmra.mxu2 %v5072_v45  ;;  %v3902_v45 = vld [vmem:[%s5872_s2] sm:$0x3] }
 0x126   :  { %2354 = vmatmul.bf16.vlgmr.msra.gmra.mxu3 %v5083_v51  ;;  %v323_v51 = vperm.slane %v3902_v45, 1  ;;  %v2360_v45 = vmax.f32 %v5855_v56, 0.0 }
 0x128   :  { %v2091_v57 = vpop.f32.mrf.mxu0  ;;  %v2117_v61 = vpop.f32.mrf.mxu2 }
 0x129   :  { %v2092_v19 = vadd.f32 %v2091_v57, %v2078_v50  ;;  %v2105_v59 = vpop.f32.mrf.mxu1  ;;  %v2131_v62 = vpop.f32.mrf.mxu3  ;;  %v2118_v8 = vadd.f32 %v2117_v61, %v323_v51 }
 0x12b   :  { %v5857_v60 = vadd.f32 %v2105_v59, %v2092_v19  ;;  %v2132_v11 = vadd.f32 %v2131_v62, %v2118_v8 }
 0x130   :  { %v2119_v2 = vpop.f32.mrf.mxu2 }
 0x131   :  { %v2133_v38 = vpop.f32.mrf.mxu3  ;;  %v2120_v15 = vadd.f32 %v2119_v2, %v323_v51 }
 0x133   :  { %v2134_v20 = vadd.f32 %v2133_v38, %v2120_v15 }
 0x140   :  { %v2145_v4 = vpop.f32.mrf.mxu0 }
 0x141   :  { %v2159_v46 = vpop.f32.mrf.mxu1  ;;  %v2146_v10 = vadd.f32 %v2145_v4, %v2132_v11 }
 0x143   :  { %v2160_v18 = vadd.f32 %v2159_v46, %v2146_v10  ;;  %v2362_v10 = vmax.f32 %v5857_v60, 0.0 }
 0x148   :  { %v2173_v5 = vpop.f32.mrf.mxu2  ;;  %v2147_v9 = vpop.f32.mrf.mxu0 }
 0x149   :  { %v2187_v7 = vpop.f32.mrf.mxu3  ;;  %v2161_v6 = vpop.f32.mrf.mxu1  ;;  %v2174_v21 = vadd.f32 %v2173_v5, %v2160_v18  ;;  %v2148_v3 = vadd.f32 %v2147_v9, %v2134_v20 }
 0x14b   :  { %v2188_v17 = vadd.f32 %v2187_v7, %v2174_v21  ;;  %v2162_v0 = vadd.f32 %v2161_v6, %v2148_v3 }
 0x150   :  { %v2175_v58 = vpop.f32.mrf.mxu2 }
 0x151   :  { %v2189_v12 = vpop.f32.mrf.mxu3  ;;  %v2176_v63 = vadd.f32 %v2175_v58, %v2162_v0 }
 0x153   :  { %v2190_v27 = vadd.f32 %v2189_v12, %v2176_v63 }
 0x160   :  { %v2201_v13 = vpop.f32.mrf.mxu0 }
 0x161   :  { %v2215_v16 = vpop.f32.mrf.mxu1  ;;  %v2202_v25 = vadd.f32 %v2201_v13, %v2188_v17 }
 0x163   :  { %v2216_v43 = vadd.f32 %v2215_v16, %v2202_v25 }
 0x168   :  { %v2229_v1 = vpop.f32.mrf.mxu2  ;;  %v2203_v24 = vpop.f32.mrf.mxu0 }
 0x169   :  { %v2243_v22 = vpop.f32.mrf.mxu3  ;;  %v2217_v39 = vpop.f32.mrf.mxu1  ;;  %v2230_v28 = vadd.f32 %v2229_v1, %v2216_v43  ;;  %v2204_v40 = vadd.f32 %v2203_v24, %v2190_v27 }
 0x16b   :  { %v2244_v32 = vadd.f32 %v2243_v22, %v2230_v28  ;;  %v2218_v41 = vadd.f32 %v2217_v39, %v2204_v40 }
 0x170   :  { %v2231_v44 = vpop.f32.mrf.mxu2 }
 0x171   :  { %v2245_v35 = vpop.f32.mrf.mxu3  ;;  %v2232_v36 = vadd.f32 %v2231_v44, %v2218_v41 }
 0x173   :  { %v2246_v42 = vadd.f32 %v2245_v35, %v2232_v36 }
 0x180   :  { %v2257_v26 = vpop.f32.mrf.mxu0 }
 0x181   :  { %v2271_v29 = vpop.f32.mrf.mxu1  ;;  %v2258_v31 = vadd.f32 %v2257_v26, %v2244_v32 }
 0x183   :  { %v2272_v34 = vadd.f32 %v2271_v29, %v2258_v31 }
 0x188   :  { %v2285_v47 = vpop.f32.mrf.mxu2  ;;  %v2259_v33 = vpop.f32.mrf.mxu0 }
 0x189   :  { %v2299_v30 = vpop.f32.mrf.mxu3  ;;  %v2273_v37 = vpop.f32.mrf.mxu1  ;;  %v2286_v48 = vadd.f32 %v2285_v47, %v2272_v34  ;;  %v2260_v49 = vadd.f32 %v2259_v33, %v2246_v42 }
 0x18b   :  { %v2300_v52 = vadd.f32 %v2299_v30, %v2286_v48  ;;  %v2274_v54 = vadd.f32 %v2273_v37, %v2260_v49 }
 0x190   :  { %v2287_v50 = vpop.f32.mrf.mxu2 }
 0x191   :  { %v2301_v53 = vpop.f32.mrf.mxu3  ;;  %v2288_v57 = vadd.f32 %v2287_v50, %v2274_v54 }
 0x193   :  { %v2302_v61 = vadd.f32 %v2301_v53, %v2288_v57 }
 0x1a0   :  { %v2313_v14 = vpop.f32.mrf.mxu0 }
 0x1a1   :  { %v2314_v23 = vadd.f32 %v2313_v14, %v2300_v52  ;;  %v2327_v55 = vpop.f32.mrf.mxu1 }
 0x1a3   :  { %v2328_v19 = vadd.f32 %v2327_v55, %v2314_v23 }
 0x1a8   :  { %v2341_v59 = vpop.f32.mrf.mxu2  ;;  %v2315_v38 = vpop.f32.mrf.mxu0 }
 0x1a9   :  { %v2342_v62 = vadd.f32 %v2341_v59, %v2328_v19  ;;  %v2355_v2 = vpop.f32.mrf.mxu3  ;;  %v2316_v46 = vadd.f32 %v2315_v38, %v2302_v61  ;;  %v2329_v5 = vpop.f32.mrf.mxu1 }
 0x1ab   :  { %v2356_v4 = vadd.f32 %v2355_v2, %v2342_v62  ;;  %v2330_v8 = vadd.f32 %v2329_v5, %v2316_v46 }
 0x1ad   :  { %v2361_v51 = vmax.f32 %v2356_v4, 0.0 }
 0x1af   :  { %v2364_v7 = vpack.c.bf16 %v2361_v51, %v2360_v45 }
 0x1b0   :  { %v2343_v9 = vpop.f32.mrf.mxu2 }
 0x1b1   :  { %2366 = vst [vmem:[%s5873_s3] sm:$0xff] %v2364_v7  ;;  %v2344_v6 = vadd.f32 %v2343_v9, %v2330_v8  ;;  %v2357_v11 = vpop.f32.mrf.mxu3 }
 0x1b3   :  { %v2358_v58 = vadd.f32 %v2357_v11, %v2344_v6 }
 0x1b5   :  { %v2363_v12 = vmax.f32 %v2358_v58, 0.0 }
 0x1b7   :  { %v2365_v13 = vpack.c.bf16 %v2363_v12, %v2362_v10 }
 0x1b9   :  { %2367 = vst [vmem:[%s5873_s3 + $0x8] sm:$0xff] %v2365_v13 }

</bundles_post_ra>
